<compile_context>
chip_gen: v7x
topology: tpu7x:2x2x1
jax: 0.10.0
libtpu: 0.0.40
codegen_flags: <defaults>
</compile_context>

<pallas_src>
import functools

import jax
import jax.numpy as jnp
from jax.experimental import pallas as pl
from jax.experimental.pallas import tpu as pltpu

N_EDGE_FEATURES = 3
N_NODE_FEATURES = 7
NODE_COLS = 2 * N_NODE_FEATURES           # 14
INPUT_SIZE = NODE_COLS + N_EDGE_FEATURES  # 17
HIDDEN_SIZE = 200
ROW_TILE = 1024                           # rows of the edge batch per grid step


def _mlp_kernel(node_ref, edge_ref, w1a_ref, w1b_ref, b1_ref,
                w2_ref, b2_ref, w3_ref, b3_ref, w4_ref, b4_ref, o_ref):
    # Fused concat: cat(node, edge) @ W1 == node @ W1[:14] + edge @ W1[14:]
    xn = node_ref[...].astype(jnp.bfloat16)
    xe = edge_ref[...].astype(jnp.bfloat16)
    h = jnp.dot(xn, w1a_ref[...], preferred_element_type=jnp.float32)
    h = h + jnp.dot(xe, w1b_ref[...], preferred_element_type=jnp.float32)
    h = jnp.maximum(h + b1_ref[...], 0.0)

    h = jnp.dot(h.astype(jnp.bfloat16), w2_ref[...],
                preferred_element_type=jnp.float32) + b2_ref[...]
    h = jnp.maximum(h, 0.0)

    h = jnp.dot(h.astype(jnp.bfloat16), w3_ref[...],
                preferred_element_type=jnp.float32) + b3_ref[...]
    h = jnp.maximum(h, 0.0)

    # Final 200 -> 1 projection on the VPU/XLU (broadcast multiply + lane reduce)
    # instead of a 1-output-lane MXU matmul.
    z = jnp.sum(h * w4_ref[...], axis=-1, keepdims=True) + b4_ref[...]
    o_ref[...] = jax.nn.sigmoid(z)


@functools.partial(jax.jit, static_argnames=("tm",))
def _forward_impl(params, node_attr, edge_attr, *, tm):
    (w1, b1), (w2, b2), (w3, b3), (w4, b4) = params

    n = node_attr.shape[0]
    n_pad = ((n + tm - 1) // tm) * tm

    node = node_attr.astype(jnp.float32)
    edge = edge_attr.astype(jnp.float32)
    if n_pad != n:
        node = jnp.pad(node, ((0, n_pad - n), (0, 0)))
        edge = jnp.pad(edge, ((0, n_pad - n), (0, 0)))

    # Split W1 rows so the concat is fused into the kernel; bf16 weights for the MXU.
    w1a = w1[:NODE_COLS].astype(jnp.bfloat16)               # (14, 200)
    w1b = w1[NODE_COLS:].astype(jnp.bfloat16)               # (3, 200)
    w2b = w2.astype(jnp.bfloat16)                           # (200, 200)
    w3b = w3.astype(jnp.bfloat16)                           # (200, 200)
    w4r = w4.reshape(1, HIDDEN_SIZE).astype(jnp.float32)    # (1, 200) row for VPU reduce
    b1f = b1.astype(jnp.float32)                            # (1, 200)
    b2f = b2.astype(jnp.float32)
    b3f = b3.astype(jnp.float32)
    b4f = b4.astype(jnp.float32)                            # (1, 1)

    grid = (n_pad // tm,)
    rows = lambda i: (i, 0)       # batched row tiles
    full = lambda i: (0, 0)       # weights / biases: single resident block

    flops = 2 * n_pad * (NODE_COLS * HIDDEN_SIZE + N_EDGE_FEATURES * HIDDEN_SIZE
                         + 2 * HIDDEN_SIZE * HIDDEN_SIZE + HIDDEN_SIZE)
    bytes_accessed = (n_pad * (NODE_COLS + N_EDGE_FEATURES) * 4        # inputs (f32)
                      + 2 * (w1a.size + w1b.size + w2b.size + w3b.size)  # bf16 weights
                      + 4 * (b1f.size + b2f.size + b3f.size + w4r.size + b4f.size)
                      + n_pad * 4)                                     # output
    cost = pl.CostEstimate(flops=flops, transcendentals=n_pad,
                           bytes_accessed=bytes_accessed)

    y = pl.pallas_call(
        _mlp_kernel,
        out_shape=jax.ShapeDtypeStruct((n_pad, 1), jnp.float32),
        grid_spec=pltpu.PrefetchScalarGridSpec(
            num_scalar_prefetch=0,
            grid=grid,
            in_specs=[
                pl.BlockSpec((tm, NODE_COLS), rows),            # node rows tile
                pl.BlockSpec((tm, N_EDGE_FEATURES), rows),      # edge rows tile
                pl.BlockSpec((NODE_COLS, HIDDEN_SIZE), full),   # W1[:14]  (bf16)
                pl.BlockSpec((N_EDGE_FEATURES, HIDDEN_SIZE), full),  # W1[14:] (bf16)
                pl.BlockSpec((1, HIDDEN_SIZE), full),           # b1
                pl.BlockSpec((HIDDEN_SIZE, HIDDEN_SIZE), full),  # W2 (bf16)
                pl.BlockSpec((1, HIDDEN_SIZE), full),           # b2
                pl.BlockSpec((HIDDEN_SIZE, HIDDEN_SIZE), full),  # W3 (bf16)
                pl.BlockSpec((1, HIDDEN_SIZE), full),           # b3
                pl.BlockSpec((1, HIDDEN_SIZE), full),           # W4 row (f32)
                pl.BlockSpec((1, 1), full),                     # b4
            ],
            out_specs=pl.BlockSpec((tm, 1), rows),
        ),
        compiler_params=pltpu.CompilerParams(
            dimension_semantics=("parallel",)),
        cost_estimate=cost,
    )(node, edge, w1a, w1b, b1f, w2b, b2f, w3b, b3f, w4r, b4f)

    return y[:n, None, :]    # [N, 1, 1]  (== .unsqueeze(1))


def neural_network_forward(params, node_attr, edge_idxs, edge_attr):
    """Matches NeuralNetwork.forward; edge_idxs is unused (as in the reference)."""
    del edge_idxs
    return _forward_impl(params, node_attr, edge_attr, tm=ROW_TILE)


def init_params(key):
    """Deterministic PyTorch-Linear-style init: U(-1/sqrt(fan_in), 1/sqrt(fan_in))."""
    dims = [(INPUT_SIZE, HIDDEN_SIZE),
            (HIDDEN_SIZE, HIDDEN_SIZE),
            (HIDDEN_SIZE, HIDDEN_SIZE),
            (HIDDEN_SIZE, 1)]
    params = []
    for (fan_in, fan_out) in dims:
        key, kw, kb = jax.random.split(key, 3)
        bound = 1.0 / jnp.sqrt(float(fan_in))
        w = jax.random.uniform(kw, (fan_in, fan_out), jnp.float32, -bound, bound)
        b = jax.random.uniform(kb, (1, fan_out), jnp.float32, -bound, bound)
        params.append((w, b))
    return params


def _reference_forward(params, node_attr, edge_idxs, edge_attr):
    del edge_idxs
    x = jnp.concatenate((node_attr, edge_attr), axis=1).astype(jnp.float32)
    (w1, b1), (w2, b2), (w3, b3), (w4, b4) = params
    h = jnp.maximum(x @ w1 + b1, 0.0)
    h = jnp.maximum(h @ w2 + b2, 0.0)
    h = jnp.maximum(h @ w3 + b3, 0.0)
    z = h @ w4 + b4
    return jax.nn.sigmoid(z)[:, None, :]


if __name__ == "__main__":
    key = jax.random.PRNGKey(0)
    k_param, k_node, k_edge, k_node2, k_edge2 = jax.random.split(key, 5)

    params = init_params(k_param)

    # Small test case (single row tile, exercises padding).
    n_edges = 8
    node_attr = jax.random.normal(k_node, (n_edges, NODE_COLS), jnp.float32)
    edge_attr = jax.random.normal(k_edge, (n_edges, N_EDGE_FEATURES), jnp.float32)
    edge_idxs = jnp.zeros((n_edges, 2), jnp.int32)   # unused by forward

    out = neural_network_forward(params, node_attr, edge_idxs, edge_attr)
    out = jax.block_until_ready(out)
    assert out.shape == (n_edges, 1, 1), out.shape

    ref = _reference_forward(params, node_attr, edge_idxs, edge_attr)
    # bf16 matmuls with f32 accumulation -> loose tolerance vs f32 reference.
    assert jnp.allclose(out, ref, atol=2e-2, rtol=2e-2), \
        f"max abs err {jnp.max(jnp.abs(out - ref))}"

    # Multi-tile check (grid > 1, ragged N) — same code path, tiny data.
    n2 = 2051
    node2 = jax.random.normal(k_node2, (n2, NODE_COLS), jnp.float32)
    edge2 = jax.random.normal(k_edge2, (n2, N_EDGE_FEATURES), jnp.float32)
    idxs2 = jnp.zeros((n2, 2), jnp.int32)
    out2 = jax.block_until_ready(neural_network_forward(params, node2, idxs2, edge2))
    ref2 = _reference_forward(params, node2, idxs2, edge2)
    assert out2.shape == (n2, 1, 1), out2.shape
    assert jnp.allclose(out2, ref2, atol=2e-2, rtol=2e-2), \
        f"max abs err {jnp.max(jnp.abs(out2 - ref2))}"

    print("KERNEL_OK")
</pallas_src>

<mosaic_0001>
module attributes {stable_mosaic.version = 11 : i64} {
  func.func @_mlp_kernel(%arg0: i32, %arg1: memref<1024x14xf32, #tpu.memory_space<vmem>>, %arg2: memref<1024x3xf32, #tpu.memory_space<vmem>>, %arg3: memref<14x200xbf16, #tpu.memory_space<vmem>>, %arg4: memref<3x200xbf16, #tpu.memory_space<vmem>>, %arg5: memref<1x200xf32, #tpu.memory_space<vmem>>, %arg6: memref<200x200xbf16, #tpu.memory_space<vmem>>, %arg7: memref<1x200xf32, #tpu.memory_space<vmem>>, %arg8: memref<200x200xbf16, #tpu.memory_space<vmem>>, %arg9: memref<1x200xf32, #tpu.memory_space<vmem>>, %arg10: memref<1x200xf32, #tpu.memory_space<vmem>>, %arg11: memref<1x1xf32, #tpu.memory_space<vmem>>, %arg12: memref<1024x1xf32, #tpu.memory_space<vmem>>) attributes {dimension_semantics = [#tpu.dimension_semantics<parallel>], iteration_bounds = array<i64: 1>, scalar_prefetch = 0 : i64, scratch_operands = 0 : i64, tpu.core_type = #tpu.core_type<tc>, window_params = [{transform_indices = @transform_0, window_bounds = array<i64: 1024, 14>}, {transform_indices = @transform_1, window_bounds = array<i64: 1024, 3>}, {pipeline_mode = #tpu.pipeline_mode<synchronous>, transform_indices = @transform_2, window_bounds = array<i64: 14, 200>}, {pipeline_mode = #tpu.pipeline_mode<synchronous>, transform_indices = @transform_3, window_bounds = array<i64: 3, 200>}, {pipeline_mode = #tpu.pipeline_mode<synchronous>, transform_indices = @transform_4, window_bounds = array<i64: 1, 200>}, {pipeline_mode = #tpu.pipeline_mode<synchronous>, transform_indices = @transform_5, window_bounds = array<i64: 200, 200>}, {pipeline_mode = #tpu.pipeline_mode<synchronous>, transform_indices = @transform_6, window_bounds = array<i64: 1, 200>}, {pipeline_mode = #tpu.pipeline_mode<synchronous>, transform_indices = @transform_7, window_bounds = array<i64: 200, 200>}, {pipeline_mode = #tpu.pipeline_mode<synchronous>, transform_indices = @transform_8, window_bounds = array<i64: 1, 200>}, {pipeline_mode = #tpu.pipeline_mode<synchronous>, transform_indices = @transform_9, window_bounds = array<i64: 1, 200>}, {pipeline_mode = #tpu.pipeline_mode<synchronous>, transform_indices = @transform_10, window_bounds = array<i64: 1, 1>}, {transform_indices = @transform_11, window_bounds = array<i64: 1024, 1>}]} {
    %c0 = arith.constant 0 : index
    %c0_0 = arith.constant 0 : index
    %0 = vector.load %arg1[%c0, %c0_0] : memref<1024x14xf32, #tpu.memory_space<vmem>>, vector<1024x14xf32>
    %1 = arith.truncf %0 : vector<1024x14xf32> to vector<1024x14xbf16>
    %c0_1 = arith.constant 0 : index
    %c0_2 = arith.constant 0 : index
    %2 = vector.load %arg2[%c0_1, %c0_2] : memref<1024x3xf32, #tpu.memory_space<vmem>>, vector<1024x3xf32>
    %3 = arith.truncf %2 : vector<1024x3xf32> to vector<1024x3xbf16>
    %c0_3 = arith.constant 0 : index
    %c0_4 = arith.constant 0 : index
    %4 = vector.load %arg3[%c0_3, %c0_4] : memref<14x200xbf16, #tpu.memory_space<vmem>>, vector<14x200xbf16>
    %cst = arith.constant dense<0.000000e+00> : vector<1024x200xf32>
    %5 = tpu.matmul %1, %4, %cst {dimension_numbers = #tpu.dot_dimension_numbers<[1], [0], [0], [1], [0, 0, 1, 1], [], []>} : vector<1024x14xbf16>, vector<14x200xbf16>, vector<1024x200xf32> -> vector<1024x200xf32>
    %c0_5 = arith.constant 0 : index
    %c0_6 = arith.constant 0 : index
    %6 = vector.load %arg4[%c0_5, %c0_6] : memref<3x200xbf16, #tpu.memory_space<vmem>>, vector<3x200xbf16>
    %cst_7 = arith.constant dense<0.000000e+00> : vector<1024x200xf32>
    %7 = tpu.matmul %3, %6, %cst_7 {dimension_numbers = #tpu.dot_dimension_numbers<[1], [0], [0], [1], [0, 0, 1, 1], [], []>} : vector<1024x3xbf16>, vector<3x200xbf16>, vector<1024x200xf32> -> vector<1024x200xf32>
    %8 = arith.addf %5, %7 : vector<1024x200xf32>
    %c0_8 = arith.constant 0 : index
    %c0_9 = arith.constant 0 : index
    %9 = vector.load %arg5[%c0_8, %c0_9] : memref<1x200xf32, #tpu.memory_space<vmem>>, vector<1x200xf32>
    %10 = vector.broadcast %9 : vector<1x200xf32> to vector<1024x200xf32>
    %11 = arith.addf %8, %10 : vector<1024x200xf32>
    %cst_10 = arith.constant 0.000000e+00 : f32
    %12 = vector.broadcast %cst_10 : f32 to vector<1024x200xf32>
    %13 = arith.maximumf %11, %12 : vector<1024x200xf32>
    %14 = arith.truncf %13 : vector<1024x200xf32> to vector<1024x200xbf16>
    %c0_11 = arith.constant 0 : index
    %c0_12 = arith.constant 0 : index
    %15 = vector.load %arg6[%c0_11, %c0_12] : memref<200x200xbf16, #tpu.memory_space<vmem>>, vector<200x200xbf16>
    %cst_13 = arith.constant dense<0.000000e+00> : vector<1024x200xf32>
    %16 = tpu.matmul %14, %15, %cst_13 {dimension_numbers = #tpu.dot_dimension_numbers<[1], [0], [0], [1], [0, 0, 1, 1], [], []>} : vector<1024x200xbf16>, vector<200x200xbf16>, vector<1024x200xf32> -> vector<1024x200xf32>
    %c0_14 = arith.constant 0 : index
    %c0_15 = arith.constant 0 : index
    %17 = vector.load %arg7[%c0_14, %c0_15] : memref<1x200xf32, #tpu.memory_space<vmem>>, vector<1x200xf32>
    %18 = vector.broadcast %17 : vector<1x200xf32> to vector<1024x200xf32>
    %19 = arith.addf %16, %18 : vector<1024x200xf32>
    %cst_16 = arith.constant 0.000000e+00 : f32
    %20 = vector.broadcast %cst_16 : f32 to vector<1024x200xf32>
    %21 = arith.maximumf %19, %20 : vector<1024x200xf32>
    %22 = arith.truncf %21 : vector<1024x200xf32> to vector<1024x200xbf16>
    %c0_17 = arith.constant 0 : index
    %c0_18 = arith.constant 0 : index
    %23 = vector.load %arg8[%c0_17, %c0_18] : memref<200x200xbf16, #tpu.memory_space<vmem>>, vector<200x200xbf16>
    %cst_19 = arith.constant dense<0.000000e+00> : vector<1024x200xf32>
    %24 = tpu.matmul %22, %23, %cst_19 {dimension_numbers = #tpu.dot_dimension_numbers<[1], [0], [0], [1], [0, 0, 1, 1], [], []>} : vector<1024x200xbf16>, vector<200x200xbf16>, vector<1024x200xf32> -> vector<1024x200xf32>
    %c0_20 = arith.constant 0 : index
    %c0_21 = arith.constant 0 : index
    %25 = vector.load %arg9[%c0_20, %c0_21] : memref<1x200xf32, #tpu.memory_space<vmem>>, vector<1x200xf32>
    %26 = vector.broadcast %25 : vector<1x200xf32> to vector<1024x200xf32>
    %27 = arith.addf %24, %26 : vector<1024x200xf32>
    %cst_22 = arith.constant 0.000000e+00 : f32
    %28 = vector.broadcast %cst_22 : f32 to vector<1024x200xf32>
    %29 = arith.maximumf %27, %28 : vector<1024x200xf32>
    %c0_23 = arith.constant 0 : index
    %c0_24 = arith.constant 0 : index
    %30 = vector.load %arg10[%c0_23, %c0_24] : memref<1x200xf32, #tpu.memory_space<vmem>>, vector<1x200xf32>
    %31 = vector.broadcast %30 : vector<1x200xf32> to vector<1024x200xf32>
    %32 = arith.mulf %29, %31 : vector<1024x200xf32>
    %cst_25 = arith.constant dense<0.000000e+00> : vector<1024xf32>
    %33 = vector.multi_reduction <add>, %32, %cst_25 [1] : vector<1024x200xf32> to vector<1024xf32>
    %34 = vector.shape_cast %33 : vector<1024xf32> to vector<1024x1xf32>
    %c0_26 = arith.constant 0 : index
    %c0_27 = arith.constant 0 : index
    %35 = vector.load %arg11[%c0_26, %c0_27] : memref<1x1xf32, #tpu.memory_space<vmem>>, vector<1x1xf32>
    %36 = vector.broadcast %35 : vector<1x1xf32> to vector<1024x1xf32>
    %37 = arith.addf %34, %36 : vector<1024x1xf32>
    %38 = arith.negf %37 : vector<1024x1xf32>
    %39 = math.exp %38 : vector<1024x1xf32>
    %cst_28 = arith.constant 1.000000e+00 : f32
    %40 = vector.broadcast %cst_28 : f32 to vector<1024x1xf32>
    %41 = arith.addf %40, %39 : vector<1024x1xf32>
    %42 = arith.divf %40, %41 : vector<1024x1xf32>
    %c0_29 = arith.constant 0 : index
    %c0_30 = arith.constant 0 : index
    %43 = vector.load %arg12[%c0_29, %c0_30] : memref<1024x1xf32, #tpu.memory_space<vmem>>, vector<1024x1xf32>
    tpu.vector_store %arg12[%c0_29, %c0_30], %42 {strides = array<i32>} : memref<1024x1xf32, #tpu.memory_space<vmem>>, vector<1024x1xf32>,
    return
  }
  func.func @transform_0(%arg0: i32) -> (i32, i32) {
    %c0_i32 = arith.constant 0 : i32
    %c0_i32_0 = arith.constant 0 : i32
    return %arg0, %c0_i32 : i32, i32
  }
  func.func @transform_1(%arg0: i32) -> (i32, i32) {
    %c0_i32 = arith.constant 0 : i32
    %c0_i32_0 = arith.constant 0 : i32
    return %arg0, %c0_i32 : i32, i32
  }
  func.func @transform_2(%arg0: i32) -> (i32, i32) {
    %c0_i32 = arith.constant 0 : i32
    %c0_i32_0 = arith.constant 0 : i32
    %c0_i32_1 = arith.constant 0 : i32
    return %c0_i32, %c0_i32_0 : i32, i32
  }
  func.func @transform_3(%arg0: i32) -> (i32, i32) {
    %c0_i32 = arith.constant 0 : i32
    %c0_i32_0 = arith.constant 0 : i32
    %c0_i32_1 = arith.constant 0 : i32
    return %c0_i32, %c0_i32_0 : i32, i32
  }
  func.func @transform_4(%arg0: i32) -> (i32, i32) {
    %c0_i32 = arith.constant 0 : i32
    %c0_i32_0 = arith.constant 0 : i32
    %c0_i32_1 = arith.constant 0 : i32
    return %c0_i32, %c0_i32_0 : i32, i32
  }
  func.func @transform_5(%arg0: i32) -> (i32, i32) {
    %c0_i32 = arith.constant 0 : i32
    %c0_i32_0 = arith.constant 0 : i32
    %c0_i32_1 = arith.constant 0 : i32
    return %c0_i32, %c0_i32_0 : i32, i32
  }
  func.func @transform_6(%arg0: i32) -> (i32, i32) {
    %c0_i32 = arith.constant 0 : i32
    %c0_i32_0 = arith.constant 0 : i32
    %c0_i32_1 = arith.constant 0 : i32
    return %c0_i32, %c0_i32_0 : i32, i32
  }
  func.func @transform_7(%arg0: i32) -> (i32, i32) {
    %c0_i32 = arith.constant 0 : i32
    %c0_i32_0 = arith.constant 0 : i32
    %c0_i32_1 = arith.constant 0 : i32
    return %c0_i32, %c0_i32_0 : i32, i32
  }
  func.func @transform_8(%arg0: i32) -> (i32, i32) {
    %c0_i32 = arith.constant 0 : i32
    %c0_i32_0 = arith.constant 0 : i32
    %c0_i32_1 = arith.constant 0 : i32
    return %c0_i32, %c0_i32_0 : i32, i32
  }
  func.func @transform_9(%arg0: i32) -> (i32, i32) {
    %c0_i32 = arith.constant 0 : i32
    %c0_i32_0 = arith.constant 0 : i32
    %c0_i32_1 = arith.constant 0 : i32
    return %c0_i32, %c0_i32_0 : i32, i32
  }
  func.func @transform_10(%arg0: i32) -> (i32, i32) {
    %c0_i32 = arith.constant 0 : i32
    %c0_i32_0 = arith.constant 0 : i32
    %c0_i32_1 = arith.constant 0 : i32
    return %c0_i32, %c0_i32_0 : i32, i32
  }
  func.func @transform_11(%arg0: i32) -> (i32, i32) {
    %c0_i32 = arith.constant 0 : i32
    %c0_i32_0 = arith.constant 0 : i32
    return %arg0, %c0_i32 : i32, i32
  }
}

</mosaic_0001>

<bundles_post_ra>
// kernel: _forward_impl.1
= control target key start
LH: loop header
LB: loop body
LE: loop exit
PB: predicated region body
PF: predicated region fallthrough
CT: control target
= control target key end

     0   :  { %vm630_vm0 = vcmask 1040384   ;;  %vm631_vm1 = vcmask 1041408   ;;  %v8692_v1 = vmov 65535   ;;  %v8693_v3 = vmov 0   ;;  %s12302_s3 = inlined_call_operand.vmem [shape: bf16[3,200], index: 3, kind: input, shape index: {}]   ;;  %s12303_s1 = inlined_call_operand.vmem [shape: f32[1024,3], index: 1, kind: input, shape index: {}]   ;;  %s12304_s2 = inlined_call_operand.vmem [shape: bf16[14,200], index: 2, kind: input, shape index: {}]   ;;  %s12305_s5 = inlined_call_operand.vmem [shape: bf16[200,200], index: 5, kind: input, shape index: {}]   ;;  %s12306_s0 = inlined_call_operand.vmem [shape: f32[1024,14], index: 0, kind: input, shape index: {}]   ;;  %s12307_s7 = inlined_call_operand.vmem [shape: bf16[200,200], index: 7, kind: input, shape index: {}]   ;;  %s12308_s4 = inlined_call_operand.vmem [shape: f32[1,200], index: 4, kind: input, shape index: {}]   ;;  %s12309_s6 = inlined_call_operand.vmem [shape: f32[1,200], index: 6, kind: input, shape index: {}]   ;;  %s12310_s8 = inlined_call_operand.vmem [shape: f32[1,200], index: 8, kind: input, shape index: {}]   ;;  %s12311_s9 = inlined_call_operand.vmem [shape: f32[1,200], index: 9, kind: input, shape index: {}]   ;;  %s12312_s10 = inlined_call_operand.<no memory space> [shape: f32[1,1], index: 10, kind: input, shape index: {}]   ;;  %s12313_s11 = inlined_call_operand.vmem [shape: f32[1024,1], index: 11, kind: output, shape index: {}]  }
   0x1   :  { %v7370_v0 = vld.sshfl [vmem:[%s12302_s3] sm:$0x33 pattern:$0x76325410]  ;;  %v632_v2 = vsel %vm630_vm0, 4294967295, %v8692_v1  ;;  %672 = vmatprep.mubr.bf16.mxu0 %v8693_v3  ;;  %v234_v8 = vld [vmem:[%s12303_s1 + $0x8] sm:$0xff] }
   0x2   :  { %v436_v4 = vcombine.high %v7370_v0, %v7370_v0  ;;  %v633_v5 = vsel %vm631_vm1, %v632_v2, 0  ;;  %v233_v7 = vld [vmem:[%s12303_s1] sm:$0xff]  ;;  %vm1514_vm2 = vcmask 1046528   ;;  %vm437_vm3 = vcmask 23552   ;;  %v235_v14 = vld [vmem:[%s12303_s1 + $0x10] sm:$0xff]  ;;  %v236_v15 = vld [vmem:[%s12303_s1 + $0x18] sm:$0xff] }
   0x3   :  { %v635_v6 = vand.u32 %v7370_v0, %v633_v5  ;;  %v8097_v10 = vld [vmem:[%s12304_s2 + $0x4] ss:$8 sps:$4 sm:$0x7f]   ;;  %v8099_v11 = vld [vmem:[%s12304_s2] ss:$8 sps:$4 sm:$0x7f]   ;;  %v361_v12 = vpack.c.bf16 %v234_v8, %v233_v7  ;;  %v362_v16 = vpack.c.bf16 %v236_v15, %v235_v14 }
   0x4   :  { %v638_v9 = vand.u32 %v633_v5, %v436_v4  ;;  %v1516_v13 = vsel %vm1514_vm2, %v8099_v11, 0  ;;  %v237_v17 = vld [vmem:[%s12303_s1 + $0x20] sm:$0xff]  ;;  %v238_v18 = vld [vmem:[%s12303_s1 + $0x28] sm:$0xff]  ;;  %v239_v20 = vld [vmem:[%s12303_s1 + $0x30] sm:$0xff]  ;;  %vm1321_vm4 = vcmask 113664   ;;  %vm3201_vm5 = vcmask 1043456  }
   0x5   :  { %v363_v19 = vpack.c.bf16 %v238_v18, %v237_v17  ;;  %v240_v21 = vld [vmem:[%s12303_s1 + $0x38] sm:$0xff]  ;;  %v241_v23 = vld [vmem:[%s12303_s1 + $0x40] sm:$0xff]  ;;  %v242_v24 = vld [vmem:[%s12303_s1 + $0x48] sm:$0xff]  ;;  %vm3008_vm6 = vcmask 588800   ;;  %vm7237_vm7 = vcmask 7168  }
   0x6   :  { %640 = vmatprep.subr.bf16.mxu0 %v638_v9  ;;  %v364_v22 = vpack.c.bf16 %v240_v21, %v239_v20  ;;  %v365_v25 = vpack.c.bf16 %v242_v24, %v241_v23  ;;  %v243_v26 = vld [vmem:[%s12303_s1 + $0x50] sm:$0xff]  ;;  %v244_v27 = vld [vmem:[%s12303_s1 + $0x58] sm:$0xff]  ;;  %v245_v29 = vld [vmem:[%s12303_s1 + $0x60] sm:$0xff] }
   0x7   :  { %641 = vmatpush1.bf16.msra.mxu0 %v635_v6  ;;  %v366_v28 = vpack.c.bf16 %v244_v27, %v243_v26  ;;  %v246_v30 = vld [vmem:[%s12303_s1 + $0x68] sm:$0xff]  ;;  %v247_v32 = vld [vmem:[%s12303_s1 + $0x70] sm:$0xff]  ;;  %v248_v33 = vld [vmem:[%s12303_s1 + $0x78] sm:$0xff] }
   0x8   :  { %7437 = vmatprep.subr.msk.bf16.mxu0 %vm1514_vm2, %v8097_v10  ;;  %v367_v31 = vpack.c.bf16 %v246_v30, %v245_v29  ;;  %v368_v34 = vpack.c.bf16 %v248_v33, %v247_v32  ;;  %v249_v35 = vld [vmem:[%s12303_s1 + $0x80] sm:$0xff]  ;;  %v250_v36 = vld [vmem:[%s12303_s1 + $0x88] sm:$0xff]  ;;  %v251_v38 = vld [vmem:[%s12303_s1 + $0x90] sm:$0xff] }
   0x9   :  { %v369_v37 = vpack.c.bf16 %v250_v36, %v249_v35  ;;  %v252_v39 = vld [vmem:[%s12303_s1 + $0x98] sm:$0xff]  ;;  %v253_v41 = vld [vmem:[%s12303_s1 + $0xa0] sm:$0xff]  ;;  %v254_v42 = vld [vmem:[%s12303_s1 + $0xa8] sm:$0xff] }
   0xa   :  { %7371 = vmatmul.mubr.msk.bf16.vlgmr.msra.gmra.mrb[0].mxu0 %vm437_vm3, %v361_v12  ;;  %v370_v40 = vpack.c.bf16 %v252_v39, %v251_v38  ;;  %v371_v43 = vpack.c.bf16 %v254_v42, %v253_v41  ;;  %v255_v44 = vld [vmem:[%s12303_s1 + $0xb0] sm:$0xff]  ;;  %v256_v45 = vld [vmem:[%s12303_s1 + $0xb8] sm:$0xff]  ;;  %v257_v47 = vld [vmem:[%s12303_s1 + $0xc0] sm:$0xff] }
   0xb   :  { %1522 = vmatpush1.bf16.msra.mxu0 %v1516_v13  ;;  %682 = vmatprep.mubr.bf16.mxu0 %v8693_v3  ;;  %v372_v46 = vpack.c.bf16 %v256_v45, %v255_v44  ;;  %v258_v48 = vld [vmem:[%s12303_s1 + $0xc8] sm:$0xff]  ;;  %v259_v50 = vld [vmem:[%s12303_s1 + $0xd0] sm:$0xff]  ;;  %v260_v51 = vld [vmem:[%s12303_s1 + $0xd8] sm:$0xff] }
   0xc   :  { %v373_v49 = vpack.c.bf16 %v258_v48, %v257_v47  ;;  %v374_v52 = vpack.c.bf16 %v260_v51, %v259_v50  ;;  %v261_v53 = vld [vmem:[%s12303_s1 + $0xe0] sm:$0xff]  ;;  %v262_v54 = vld [vmem:[%s12303_s1 + $0xe8] sm:$0xff]  ;;  %v263_v56 = vld [vmem:[%s12303_s1 + $0xf0] sm:$0xff] }
   0xd   :  { %v375_v55 = vpack.c.bf16 %v262_v54, %v261_v53  ;;  %v264_v57 = vld [vmem:[%s12303_s1 + $0xf8] sm:$0xff]  ;;  %v265_v59 = vld [vmem:[%s12303_s1 + $0x100] sm:$0xff]  ;;  %v266_v60 = vld [vmem:[%s12303_s1 + $0x108] sm:$0xff] }
   0xe   :  { %v376_v58 = vpack.c.bf16 %v264_v57, %v263_v56  ;;  %v377_v61 = vpack.c.bf16 %v266_v60, %v265_v59  ;;  %v267_v62 = vld [vmem:[%s12303_s1 + $0x110] sm:$0xff]  ;;  %v268_v63 = vld [vmem:[%s12303_s1 + $0x118] sm:$0xff]  ;;  %v269_v1 = vld [vmem:[%s12303_s1 + $0x120] sm:$0xff] }
   0xf   :  { %v378_v0 = vpack.c.bf16 %v268_v63, %v267_v62  ;;  %v270_v2 = vld [vmem:[%s12303_s1 + $0x128] sm:$0xff]  ;;  %v271_v5 = vld [vmem:[%s12303_s1 + $0x130] sm:$0xff]  ;;  %v272_v6 = vld [vmem:[%s12303_s1 + $0x138] sm:$0xff] }
  0x10   :  { %v379_v4 = vpack.c.bf16 %v270_v2, %v269_v1  ;;  %v380_v7 = vpack.c.bf16 %v272_v6, %v271_v5  ;;  %v273_v8 = vld [vmem:[%s12303_s1 + $0x140] sm:$0xff]  ;;  %v274_v9 = vld [vmem:[%s12303_s1 + $0x148] sm:$0xff]  ;;  %v275_v11 = vld [vmem:[%s12303_s1 + $0x150] sm:$0xff] }
  0x11   :  { %v381_v10 = vpack.c.bf16 %v274_v9, %v273_v8  ;;  %v276_v12 = vld [vmem:[%s12303_s1 + $0x158] sm:$0xff]  ;;  %v277_v14 = vld [vmem:[%s12303_s1 + $0x160] sm:$0xff]  ;;  %v278_v15 = vld [vmem:[%s12303_s1 + $0x168] sm:$0xff] }
  0x12   :  { %7372 = vmatmul.mubr.msk.bf16.gmra.mrb[4].mxu0 %vm437_vm3, %v362_v16  ;;  %v382_v13 = vpack.c.bf16 %v276_v12, %v275_v11  ;;  %v383_v16 = vpack.c.bf16 %v278_v15, %v277_v14  ;;  %v279_v17 = vld [vmem:[%s12303_s1 + $0x170] sm:$0xff]  ;;  %v280_v18 = vld [vmem:[%s12303_s1 + $0x178] sm:$0xff]  ;;  %v281_v20 = vld [vmem:[%s12303_s1 + $0x180] sm:$0xff] }
  0x13   :  { %692 = vmatprep.mubr.bf16.mxu0 %v8693_v3  ;;  %v282_v21 = vld [vmem:[%s12303_s1 + $0x188] sm:$0xff]  ;;  %v283_v23 = vld [vmem:[%s12303_s1 + $0x190] sm:$0xff]  ;;  %v284_v24 = vld [vmem:[%s12303_s1 + $0x198] sm:$0xff] }
  0x14   :  { %v285_v26 = vld [vmem:[%s12303_s1 + $0x1a0] sm:$0xff]  ;;  %v286_v27 = vld [vmem:[%s12303_s1 + $0x1a8] sm:$0xff]  ;;  %v287_v29 = vld [vmem:[%s12303_s1 + $0x1b0] sm:$0xff] }
  0x15   :  { %v288_v30 = vld [vmem:[%s12303_s1 + $0x1b8] sm:$0xff]  ;;  %v289_v32 = vld [vmem:[%s12303_s1 + $0x1c0] sm:$0xff]  ;;  %v290_v33 = vld [vmem:[%s12303_s1 + $0x1c8] sm:$0xff] }
  0x16   :  { %v291_v35 = vld [vmem:[%s12303_s1 + $0x1d0] sm:$0xff]  ;;  %v292_v36 = vld [vmem:[%s12303_s1 + $0x1d8] sm:$0xff]  ;;  %v293_v38 = vld [vmem:[%s12303_s1 + $0x1e0] sm:$0xff] }
  0x17   :  { %v294_v39 = vld [vmem:[%s12303_s1 + $0x1e8] sm:$0xff]  ;;  %v295_v41 = vld [vmem:[%s12303_s1 + $0x1f0] sm:$0xff]  ;;  %v296_v42 = vld [vmem:[%s12303_s1 + $0x1f8] sm:$0xff] }
  0x18   :  { %v297_v44 = vld [vmem:[%s12303_s1 + $0x200] sm:$0xff]  ;;  %v298_v45 = vld [vmem:[%s12303_s1 + $0x208] sm:$0xff]  ;;  %v299_v47 = vld [vmem:[%s12303_s1 + $0x210] sm:$0xff] }
  0x19   :  { %v300_v48 = vld [vmem:[%s12303_s1 + $0x218] sm:$0xff]  ;;  %v301_v50 = vld [vmem:[%s12303_s1 + $0x220] sm:$0xff]  ;;  %v302_v51 = vld [vmem:[%s12303_s1 + $0x228] sm:$0xff] }
  0x1a   :  { %7373 = vmatmul.mubr.msk.bf16.gmra.mrb[8].mxu0 %vm437_vm3, %v363_v19  ;;  %v384_v19 = vpack.c.bf16 %v280_v18, %v279_v17  ;;  %v303_v53 = vld [vmem:[%s12303_s1 + $0x230] sm:$0xff]  ;;  %v304_v54 = vld [vmem:[%s12303_s1 + $0x238] sm:$0xff]  ;;  %v305_v56 = vld [vmem:[%s12303_s1 + $0x240] sm:$0xff] }
  0x1b   :  { %702 = vmatprep.mubr.bf16.mxu0 %v8693_v3  ;;  %v306_v57 = vld [vmem:[%s12303_s1 + $0x248] sm:$0xff]  ;;  %v307_v59 = vld [vmem:[%s12303_s1 + $0x250] sm:$0xff]  ;;  %v308_v60 = vld [vmem:[%s12303_s1 + $0x258] sm:$0xff] }
  0x1c   :  { %v309_v62 = vld [vmem:[%s12303_s1 + $0x260] sm:$0xff]  ;;  %v310_v63 = vld [vmem:[%s12303_s1 + $0x268] sm:$0xff]  ;;  %v311_v1 = vld [vmem:[%s12303_s1 + $0x270] sm:$0xff] }
  0x1d   :  { %v312_v2 = vld [vmem:[%s12303_s1 + $0x278] sm:$0xff]  ;;  %v313_v5 = vld [vmem:[%s12303_s1 + $0x280] sm:$0xff]  ;;  %v314_v6 = vld [vmem:[%s12303_s1 + $0x288] sm:$0xff] }
  0x1e   :  { %v315_v8 = vld [vmem:[%s12303_s1 + $0x290] sm:$0xff]  ;;  %v316_v9 = vld [vmem:[%s12303_s1 + $0x298] sm:$0xff]  ;;  %v317_v11 = vld [vmem:[%s12303_s1 + $0x2a0] sm:$0xff] }
  0x1f   :  { %v318_v12 = vld [vmem:[%s12303_s1 + $0x2a8] sm:$0xff]  ;;  %v319_v14 = vld [vmem:[%s12303_s1 + $0x2b0] sm:$0xff]  ;;  %v320_v15 = vld [vmem:[%s12303_s1 + $0x2b8] sm:$0xff] }
  0x20   :  { %v321_v17 = vld [vmem:[%s12303_s1 + $0x2c0] sm:$0xff]  ;;  %v322_v18 = vld [vmem:[%s12303_s1 + $0x2c8] sm:$0xff] }
  0x22   :  { %7374 = vmatmul.mubr.msk.bf16.gmra.mrb[12].mxu0 %vm437_vm3, %v364_v22  ;;  %v385_v22 = vpack.c.bf16 %v282_v21, %v281_v20  ;;  %v323_v20 = vld [vmem:[%s12303_s1 + $0x2d0] sm:$0xff]  ;;  %v324_v21 = vld [vmem:[%s12303_s1 + $0x2d8] sm:$0xff] }
  0x23   :  { %712 = vmatprep.mubr.bf16.mxu0 %v8693_v3 }
  0x2a   :  { %7375 = vmatmul.mubr.msk.bf16.gmra.mrb[16].mxu0 %vm437_vm3, %v365_v25  ;;  %v386_v25 = vpack.c.bf16 %v284_v24, %v283_v23  ;;  %v325_v23 = vld [vmem:[%s12303_s1 + $0x2e0] sm:$0xff]  ;;  %v326_v24 = vld [vmem:[%s12303_s1 + $0x2e8] sm:$0xff] }
  0x2b   :  { %722 = vmatprep.mubr.bf16.mxu0 %v8693_v3 }
  0x32   :  { %7376 = vmatmul.mubr.msk.bf16.gmra.mrb[20].mxu0 %vm437_vm3, %v366_v28  ;;  %v387_v28 = vpack.c.bf16 %v286_v27, %v285_v26  ;;  %v327_v26 = vld [vmem:[%s12303_s1 + $0x2f0] sm:$0xff]  ;;  %v328_v27 = vld [vmem:[%s12303_s1 + $0x2f8] sm:$0xff] }
  0x33   :  { %732 = vmatprep.mubr.bf16.mxu0 %v8693_v3 }
  0x3a   :  { %7377 = vmatmul.mubr.msk.bf16.gmra.mrb[24].mxu0 %vm437_vm3, %v367_v31  ;;  %v388_v31 = vpack.c.bf16 %v288_v30, %v287_v29  ;;  %v329_v29 = vld [vmem:[%s12303_s1 + $0x300] sm:$0xff]  ;;  %v330_v30 = vld [vmem:[%s12303_s1 + $0x308] sm:$0xff] }
  0x3b   :  { %742 = vmatprep.mubr.bf16.mxu0 %v8693_v3 }
  0x42   :  { %7378 = vmatmul.mubr.msk.bf16.gmra.mrb[28].mxu0 %vm437_vm3, %v368_v34  ;;  %v389_v34 = vpack.c.bf16 %v290_v33, %v289_v32  ;;  %v331_v32 = vld [vmem:[%s12303_s1 + $0x310] sm:$0xff]  ;;  %v332_v33 = vld [vmem:[%s12303_s1 + $0x318] sm:$0xff] }
  0x43   :  { %752 = vmatprep.mubr.bf16.mxu0 %v8693_v3 }
  0x4a   :  { %7379 = vmatmul.mubr.msk.bf16.gmra.mrb[32].mxu0 %vm437_vm3, %v369_v37  ;;  %v390_v37 = vpack.c.bf16 %v292_v36, %v291_v35  ;;  %v8102_v35 = vld [vmem:[%s12305_s5 + $0x4] ss:$8 sps:$4 sm:$0xff]   ;;  %v410_v36 = vpack.c.bf16 %v332_v33, %v331_v32  ;;  %v48_v32 = vld [vmem:[%s12306_s0 + $0x38] sm:$0xff] }
  0x4b   :  { %762 = vmatprep.mubr.bf16.mxu0 %v8693_v3  ;;  %3208 = vmatprep.subr.bf16.mxu0 %v8102_v35 }
  0x4c   :  { %7813 = vmatprep.subr.bf16.mxu1 %v8102_v35  ;;  %v8114_v35 = vld [vmem:[%s12305_s5 + $0x44] ss:$8 sps:$4 sm:$0xff]  }
  0x52   :  { %7380 = vmatmul.mubr.msk.bf16.gmra.mrb[36].mxu0 %vm437_vm3, %v370_v40  ;;  %v391_v40 = vpack.c.bf16 %v294_v39, %v293_v38  ;;  %v334_v38 = vld [vmem:[%s12303_s1 + $0x328] sm:$0xff] }
  0x53   :  { %772 = vmatprep.mubr.bf16.mxu0 %v8693_v3 }
  0x5a   :  { %7381 = vmatmul.mubr.msk.bf16.gmra.mrb[40].mxu0 %vm437_vm3, %v371_v43  ;;  %v392_v43 = vpack.c.bf16 %v296_v42, %v295_v41  ;;  %v336_v41 = vld [vmem:[%s12303_s1 + $0x338] sm:$0xff] }
  0x5b   :  { %782 = vmatprep.mubr.bf16.mxu0 %v8693_v3 }
  0x62   :  { %7382 = vmatmul.mubr.msk.bf16.gmra.mrb[44].mxu0 %vm437_vm3, %v372_v46  ;;  %v393_v46 = vpack.c.bf16 %v298_v45, %v297_v44  ;;  %v338_v44 = vld [vmem:[%s12303_s1 + $0x348] sm:$0xff] }
  0x63   :  { %792 = vmatprep.mubr.bf16.mxu0 %v8693_v3 }
  0x6a   :  { %7383 = vmatmul.mubr.msk.bf16.gmra.mrb[48].mxu0 %vm437_vm3, %v373_v49  ;;  %v394_v49 = vpack.c.bf16 %v300_v48, %v299_v47  ;;  %v340_v47 = vld [vmem:[%s12303_s1 + $0x358] sm:$0xff] }
  0x6b   :  { %802 = vmatprep.mubr.bf16.mxu0 %v8693_v3 }
  0x72   :  { %7384 = vmatmul.mubr.msk.bf16.gmra.mrb[52].mxu0 %vm437_vm3, %v374_v52  ;;  %v395_v52 = vpack.c.bf16 %v302_v51, %v301_v50  ;;  %v9212_v50 = vld [vmem:[%s12305_s5 + $0x14] ss:$8 sps:$4 sm:$0xff]   ;;  %v341_v51 = vld [vmem:[%s12303_s1 + $0x360] sm:$0xff] }
  0x73   :  { %812 = vmatprep.mubr.bf16.mxu0 %v8693_v3 }
  0x7a   :  { %7385 = vmatmul.mubr.msk.bf16.gmra.mrb[56].mxu0 %vm437_vm3, %v375_v55  ;;  %v396_v55 = vpack.c.bf16 %v304_v54, %v303_v53  ;;  %v343_v54 = vld [vmem:[%s12303_s1 + $0x370] sm:$0xff] }
  0x7b   :  { %822 = vmatprep.mubr.bf16.mxu0 %v8693_v3 }
  0x82   :  { %7386 = vmatmul.mubr.msk.bf16.gmra.mrb[60].mxu0 %vm437_vm3, %v376_v58  ;;  %v397_v58 = vpack.c.bf16 %v306_v57, %v305_v56  ;;  %v345_v57 = vld [vmem:[%s12303_s1 + $0x380] sm:$0xff] }
  0x83   :  { %832 = vmatprep.mubr.bf16.mxu0 %v8693_v3 }
  0x8a   :  { %7387 = vmatmul.mubr.msk.bf16.gmra.mrb[64].mxu0 %vm437_vm3, %v377_v61  ;;  %v398_v61 = vpack.c.bf16 %v308_v60, %v307_v59  ;;  %v347_v60 = vld [vmem:[%s12303_s1 + $0x390] sm:$0xff] }
  0x8b   :  { %842 = vmatprep.mubr.bf16.mxu0 %v8693_v3 }
  0x92   :  { %7388 = vmatmul.mubr.msk.bf16.gmra.mrb[68].mxu0 %vm437_vm3, %v378_v0  ;;  %v399_v0 = vpack.c.bf16 %v310_v63, %v309_v62  ;;  %v349_v63 = vld [vmem:[%s12303_s1 + $0x3a0] sm:$0xff] }
  0x93   :  { %852 = vmatprep.mubr.bf16.mxu0 %v8693_v3 }
  0x9a   :  { %7389 = vmatmul.mubr.msk.bf16.gmra.mrb[72].mxu0 %vm437_vm3, %v379_v4  ;;  %v400_v4 = vpack.c.bf16 %v312_v2, %v311_v1  ;;  %v8106_v1 = vld [vmem:[%s12305_s5 + $0x20] ss:$8 sps:$4 sm:$0xff]   ;;  %v8108_v2 = vld [vmem:[%s12305_s5 + $0x24] ss:$8 sps:$4 sm:$0xff]  }
  0x9b   :  { %862 = vmatprep.mubr.bf16.mxu0 %v8693_v3 }
  0xa2   :  { %7390 = vmatmul.mubr.msk.bf16.gmra.mrb[76].mxu0 %vm437_vm3, %v380_v7  ;;  %v401_v7 = vpack.c.bf16 %v314_v6, %v313_v5  ;;  %v351_v5 = vld [vmem:[%s12303_s1 + $0x3b0] sm:$0xff]  ;;  %v352_v6 = vld [vmem:[%s12303_s1 + $0x3b8] sm:$0xff] }
  0xa3   :  { %872 = vmatprep.mubr.bf16.mxu0 %v8693_v3 }
  0xaa   :  { %7391 = vmatmul.mubr.msk.bf16.gmra.mrb[80].mxu0 %vm437_vm3, %v381_v10  ;;  %v402_v10 = vpack.c.bf16 %v316_v9, %v315_v8  ;;  %v353_v8 = vld [vmem:[%s12303_s1 + $0x3c0] sm:$0xff]  ;;  %v354_v9 = vld [vmem:[%s12303_s1 + $0x3c8] sm:$0xff] }
  0xab   :  { %882 = vmatprep.mubr.bf16.mxu0 %v8693_v3 }
  0xb2   :  { %7392 = vmatmul.mubr.msk.bf16.gmra.mrb[84].mxu0 %vm437_vm3, %v382_v13  ;;  %v403_v13 = vpack.c.bf16 %v318_v12, %v317_v11  ;;  %v355_v11 = vld [vmem:[%s12303_s1 + $0x3d0] sm:$0xff]  ;;  %v356_v12 = vld [vmem:[%s12303_s1 + $0x3d8] sm:$0xff] }
  0xb3   :  { %892 = vmatprep.mubr.bf16.mxu0 %v8693_v3 }
  0xba   :  { %7393 = vmatmul.mubr.msk.bf16.gmra.mrb[88].mxu0 %vm437_vm3, %v383_v16  ;;  %v404_v16 = vpack.c.bf16 %v320_v15, %v319_v14  ;;  %v357_v14 = vld [vmem:[%s12303_s1 + $0x3e0] sm:$0xff]  ;;  %v358_v15 = vld [vmem:[%s12303_s1 + $0x3e8] sm:$0xff] }
  0xbb   :  { %902 = vmatprep.mubr.bf16.mxu0 %v8693_v3 }
  0xc2   :  { %7394 = vmatmul.mubr.msk.bf16.gmra.mrb[92].mxu0 %vm437_vm3, %v384_v19  ;;  %v405_v19 = vpack.c.bf16 %v322_v18, %v321_v17  ;;  %v359_v17 = vld [vmem:[%s12303_s1 + $0x3f0] sm:$0xff]  ;;  %v360_v18 = vld [vmem:[%s12303_s1 + $0x3f8] sm:$0xff] }
  0xc3   :  { %912 = vmatprep.mubr.bf16.mxu0 %v8693_v3 }
  0xca   :  { %7395 = vmatmul.mubr.msk.bf16.gmra.mrb[96].mxu0 %vm437_vm3, %v385_v22  ;;  %v406_v22 = vpack.c.bf16 %v324_v21, %v323_v20  ;;  %v8111_v20 = vld [vmem:[%s12305_s5 + $0x34] ss:$8 sps:$4 sm:$0xff]   ;;  %v424_v21 = vpack.c.bf16 %v360_v18, %v359_v17 }
  0xcb   :  { %922 = vmatprep.mubr.bf16.mxu0 %v8693_v3  ;;  %v8133_v18 = vld [vmem:[%s12305_s5 + $0xb4] ss:$8 sps:$4 sm:$0xff]  }
  0xd2   :  { %7396 = vmatmul.mubr.msk.bf16.gmra.mrb[100].mxu0 %vm437_vm3, %v386_v25  ;;  %v407_v25 = vpack.c.bf16 %v326_v24, %v325_v23  ;;  %v42_v23 = vld [vmem:[%s12306_s0 + $0x8] sm:$0xff] }
  0xd3   :  { %932 = vmatprep.mubr.bf16.mxu0 %v8693_v3 }
  0xda   :  { %7397 = vmatmul.mubr.msk.bf16.gmra.mrb[104].mxu0 %vm437_vm3, %v387_v28  ;;  %v408_v28 = vpack.c.bf16 %v328_v27, %v327_v26  ;;  %v44_v26 = vld [vmem:[%s12306_s0 + $0x18] sm:$0xff] }
  0xdb   :  { %942 = vmatprep.mubr.bf16.mxu0 %v8693_v3 }
  0xe2   :  { %7398 = vmatmul.mubr.msk.bf16.gmra.mrb[108].mxu0 %vm437_vm3, %v388_v31  ;;  %v409_v31 = vpack.c.bf16 %v330_v30, %v329_v29  ;;  %v46_v29 = vld [vmem:[%s12306_s0 + $0x28] sm:$0xff] }
  0xe3   :  { %952 = vmatprep.mubr.bf16.mxu0 %v8693_v3 }
  0xea   :  { %7399 = vmatmul.mubr.msk.bf16.gmra.mrb[112].mxu0 %vm437_vm3, %v389_v34  ;;  %v9165_v34 = vld [vmem:[%s12305_s5] ss:$8 sps:$4 sm:$0xff]  }
  0xeb   :  { %962 = vmatprep.mubr.bf16.mxu0 %v8693_v3  ;;  %7826 = vmatpush1.bf16.msra.mxu1 %v9165_v34 }
  0xec   :  { %7814 = vmatprep.subr.bf16.mxu1 %v9212_v50 }
  0xf2   :  { %7400 = vmatmul.mubr.msk.bf16.gmra.mrb[116].mxu0 %vm437_vm3, %v390_v37  ;;  %v333_v37 = vld [vmem:[%s12303_s1 + $0x320] sm:$0xff] }
  0xf3   :  { %972 = vmatprep.mubr.bf16.mxu0 %v8693_v3  ;;  %v411_v39 = vpack.c.bf16 %v334_v38, %v333_v37  ;;  %v50_v37 = vld [vmem:[%s12306_s0 + $0x48] sm:$0xff] }
  0xfa   :  { %7401 = vmatmul.mubr.msk.bf16.gmra.mrb[120].mxu0 %vm437_vm3, %v391_v40  ;;  %v335_v40 = vld [vmem:[%s12303_s1 + $0x330] sm:$0xff] }
  0xfb   :  { %982 = vmatprep.mubr.bf16.mxu0 %v8693_v3  ;;  %v412_v42 = vpack.c.bf16 %v336_v41, %v335_v40  ;;  %v52_v40 = vld [vmem:[%s12306_s0 + $0x58] sm:$0xff] }
 0x102   :  { %7402 = vmatmul.mubr.msk.bf16.gmra.mrb[124].mxu0 %vm437_vm3, %v392_v43  ;;  %v337_v43 = vld [vmem:[%s12303_s1 + $0x340] sm:$0xff] }
 0x103   :  { %992 = vmatprep.mubr.bf16.mxu0 %v8693_v3  ;;  %v413_v45 = vpack.c.bf16 %v338_v44, %v337_v43  ;;  %v54_v43 = vld [vmem:[%s12306_s0 + $0x68] sm:$0xff] }
 0x10a   :  { %7403 = vmatmul.mubr.msk.bf16.gmra.mrb[128].mxu0 %vm437_vm3, %v393_v46  ;;  %v339_v46 = vld [vmem:[%s12303_s1 + $0x350] sm:$0xff] }
 0x10b   :  { %1002 = vmatprep.mubr.bf16.mxu0 %v8693_v3  ;;  %v414_v48 = vpack.c.bf16 %v340_v47, %v339_v46  ;;  %v56_v46 = vld [vmem:[%s12306_s0 + $0x78] sm:$0xff] }
 0x112   :  { %7404 = vmatmul.mubr.msk.bf16.gmra.mrb[132].mxu0 %vm437_vm3, %v394_v49  ;;  %v9207_v49 = vld [vmem:[%s12305_s5 + $0x10] ss:$8 sps:$4 sm:$0xff]  }
 0x113   :  { %1012 = vmatprep.mubr.bf16.mxu0 %v8693_v3  ;;  %7827 = vmatpush1.bf16.msra.mxu1 %v9207_v49 }
 0x114   :  { %7815 = vmatprep.subr.bf16.mxu1 %v8108_v2 }
 0x117   :  { %7828 = vmatpush1.bf16.msra.mxu1 %v8106_v1 }
 0x118   :  { %7816 = vmatprep.subr.bf16.mxu1 %v8111_v20 }
 0x11a   :  { %7405 = vmatmul.mubr.msk.bf16.gmra.mrb[136].mxu0 %vm437_vm3, %v395_v52  ;;  %v342_v52 = vld [vmem:[%s12303_s1 + $0x368] sm:$0xff] }
 0x11b   :  { %1022 = vmatprep.mubr.bf16.mxu0 %v8693_v3  ;;  %v415_v53 = vpack.c.bf16 %v342_v52, %v341_v51  ;;  %v8115_v51 = vld [vmem:[%s12305_s5 + $0x50] ss:$8 sps:$4 sm:$0xff]   ;;  %v8117_v52 = vld [vmem:[%s12305_s5 + $0x54] ss:$8 sps:$4 sm:$0xff]  }
 0x122   :  { %7406 = vmatmul.mubr.msk.bf16.gmra.mrb[140].mxu0 %vm437_vm3, %v396_v55  ;;  %v344_v55 = vld [vmem:[%s12303_s1 + $0x378] sm:$0xff] }
 0x123   :  { %1032 = vmatprep.mubr.bf16.mxu0 %v8693_v3  ;;  %v416_v56 = vpack.c.bf16 %v344_v55, %v343_v54  ;;  %v60_v54 = vld [vmem:[%s12306_s0 + $0x98] sm:$0xff] }
 0x12a   :  { %7407 = vmatmul.mubr.msk.bf16.gmra.mrb[144].mxu0 %vm437_vm3, %v397_v58  ;;  %v346_v58 = vld [vmem:[%s12303_s1 + $0x388] sm:$0xff] }
 0x12b   :  { %1042 = vmatprep.mubr.bf16.mxu0 %v8693_v3  ;;  %v417_v59 = vpack.c.bf16 %v346_v58, %v345_v57  ;;  %v62_v57 = vld [vmem:[%s12306_s0 + $0xa8] sm:$0xff] }
 0x132   :  { %7408 = vmatmul.mubr.msk.bf16.gmra.mrb[148].mxu0 %vm437_vm3, %v398_v61  ;;  %v348_v61 = vld [vmem:[%s12303_s1 + $0x398] sm:$0xff] }
 0x133   :  { %1052 = vmatprep.mubr.bf16.mxu0 %v8693_v3  ;;  %v418_v62 = vpack.c.bf16 %v348_v61, %v347_v60  ;;  %v64_v60 = vld [vmem:[%s12306_s0 + $0xb8] sm:$0xff] }
 0x13a   :  { %7409 = vmatmul.mubr.msk.bf16.gmra.mrb[152].mxu0 %vm437_vm3, %v399_v0  ;;  %v350_v0 = vld [vmem:[%s12303_s1 + $0x3a8] sm:$0xff] }
 0x13b   :  { %1062 = vmatprep.mubr.bf16.mxu0 %v8693_v3 }
 0x142   :  { %7410 = vmatmul.mubr.msk.bf16.gmra.mrb[156].mxu0 %vm437_vm3, %v400_v4  ;;  %v419_v4 = vpack.c.bf16 %v350_v0, %v349_v63  ;;  %v65_v63 = vld [vmem:[%s12306_s0 + $0xc0] sm:$0xff]  ;;  %v66_v0 = vld [vmem:[%s12306_s0 + $0xc8] sm:$0xff] }
 0x143   :  { %1072 = vmatprep.mubr.bf16.mxu0 %v8693_v3 }
 0x14a   :  { %7411 = vmatmul.mubr.msk.bf16.gmra.mrb[160].mxu0 %vm437_vm3, %v401_v7  ;;  %v420_v7 = vpack.c.bf16 %v352_v6, %v351_v5  ;;  %v8123_v5 = vld [vmem:[%s12305_s5 + $0x70] ss:$8 sps:$4 sm:$0xff]   ;;  %v8124_v6 = vld [vmem:[%s12305_s5 + $0x84] ss:$8 sps:$4 sm:$0xff]  }
 0x14b   :  { %1082 = vmatprep.mubr.bf16.mxu0 %v8693_v3 }
 0x152   :  { %7412 = vmatmul.mubr.msk.bf16.gmra.mrb[164].mxu0 %vm437_vm3, %v402_v10  ;;  %v421_v10 = vpack.c.bf16 %v354_v9, %v353_v8  ;;  %v68_v8 = vld [vmem:[%s12306_s0 + $0xd8] sm:$0xff]  ;;  %v8126_v9 = vld [vmem:[%s12305_s5 + $0x80] ss:$8 sps:$4 sm:$0xff]  }
 0x153   :  { %1092 = vmatprep.mubr.bf16.mxu0 %v8693_v3 }
 0x15a   :  { %7413 = vmatmul.mubr.msk.bf16.gmra.mrb[168].mxu0 %vm437_vm3, %v403_v13  ;;  %v422_v13 = vpack.c.bf16 %v356_v12, %v355_v11  ;;  %v8127_v11 = vld [vmem:[%s12305_s5 + $0x94] ss:$8 sps:$4 sm:$0xff]   ;;  %v8129_v12 = vld [vmem:[%s12305_s5 + $0x90] ss:$8 sps:$4 sm:$0xff]  }
 0x15b   :  { %1102 = vmatprep.mubr.bf16.mxu0 %v8693_v3 }
 0x162   :  { %7414 = vmatmul.mubr.msk.bf16.gmra.mrb[172].mxu0 %vm437_vm3, %v404_v16  ;;  %v423_v16 = vpack.c.bf16 %v358_v15, %v357_v14  ;;  %v69_v14 = vld [vmem:[%s12306_s0 + $0xe0] sm:$0xff]  ;;  %v70_v15 = vld [vmem:[%s12306_s0 + $0xe8] sm:$0xff] }
 0x163   :  { %1112 = vmatprep.mubr.bf16.mxu0 %v8693_v3  ;;  %v183_v17 = vpack.c.bf16 %v70_v15, %v69_v14 }
 0x16a   :  { %7415 = vmatmul.mubr.msk.bf16.gmra.mrb[176].mxu0 %vm437_vm3, %v405_v19  ;;  %v8109_v19 = vld [vmem:[%s12305_s5 + $0x30] ss:$8 sps:$4 sm:$0xff]  }
 0x16b   :  { %1122 = vmatprep.mubr.bf16.mxu0 %v8693_v3  ;;  %7829 = vmatpush1.bf16.msra.mxu1 %v8109_v19 }
 0x16c   :  { %7817 = vmatprep.subr.bf16.mxu1 %v8114_v35 }
 0x172   :  { %7416 = vmatmul.mubr.msk.bf16.gmra.mrb[180].mxu0 %vm437_vm3, %v406_v22  ;;  %v41_v22 = vld [vmem:[%s12306_s0] sm:$0xff] }
 0x173   :  { %1132 = vmatprep.mubr.bf16.mxu0 %v8693_v3  ;;  %v169_v24 = vpack.c.bf16 %v42_v23, %v41_v22  ;;  %v71_v23 = vld [vmem:[%s12306_s0 + $0xf0] sm:$0xff] }
 0x17a   :  { %7417 = vmatmul.mubr.msk.bf16.gmra.mrb[184].mxu0 %vm437_vm3, %v407_v25  ;;  %v43_v25 = vld [vmem:[%s12306_s0 + $0x10] sm:$0xff] }
 0x17b   :  { %1142 = vmatprep.mubr.bf16.mxu0 %v8693_v3  ;;  %v170_v27 = vpack.c.bf16 %v44_v26, %v43_v25 }
 0x182   :  { %7418 = vmatmul.mubr.msk.bf16.gmra.mrb[188].mxu0 %vm437_vm3, %v408_v28  ;;  %v45_v28 = vld [vmem:[%s12306_s0 + $0x20] sm:$0xff] }
 0x183   :  { %1152 = vmatprep.mubr.bf16.mxu0 %v8693_v3  ;;  %v171_v30 = vpack.c.bf16 %v46_v29, %v45_v28  ;;  %v74_v28 = vld [vmem:[%s12306_s0 + $0x108] sm:$0xff] }
 0x18a   :  { %7419 = vmatmul.mubr.msk.bf16.gmra.mrb[192].mxu0 %vm437_vm3, %v409_v31  ;;  %v47_v31 = vld [vmem:[%s12306_s0 + $0x30] sm:$0xff] }
 0x18b   :  { %1162 = vmatprep.mubr.bf16.mxu0 %v8693_v3  ;;  %v172_v33 = vpack.c.bf16 %v48_v32, %v47_v31  ;;  %v75_v31 = vld [vmem:[%s12306_s0 + $0x110] sm:$0xff]  ;;  %v76_v32 = vld [vmem:[%s12306_s0 + $0x118] sm:$0xff] }
 0x192   :  { %7420 = vmatmul.mubr.msk.bf16.gmra.mrb[196].mxu0 %vm437_vm3, %v410_v36  ;;  %v49_v36 = vld [vmem:[%s12306_s0 + $0x40] sm:$0xff] }
 0x193   :  { %1172 = vmatprep.mubr.bf16.mxu0 %v8693_v3  ;;  %v173_v38 = vpack.c.bf16 %v50_v37, %v49_v36  ;;  %v79_v37 = vld [vmem:[%s12306_s0 + $0x130] sm:$0xff] }
 0x19a   :  { %7421 = vmatmul.mubr.msk.bf16.gmra.mrb[200].mxu0 %vm437_vm3, %v411_v39  ;;  %v51_v39 = vld [vmem:[%s12306_s0 + $0x50] sm:$0xff] }
 0x19b   :  { %1182 = vmatprep.mubr.bf16.mxu0 %v8693_v3  ;;  %v174_v41 = vpack.c.bf16 %v52_v40, %v51_v39  ;;  %v81_v40 = vld [vmem:[%s12306_s0 + $0x140] sm:$0xff] }
 0x1a2   :  { %7422 = vmatmul.mubr.msk.bf16.gmra.mrb[204].mxu0 %vm437_vm3, %v412_v42  ;;  %v53_v42 = vld [vmem:[%s12306_s0 + $0x60] sm:$0xff] }
 0x1a3   :  { %1192 = vmatprep.mubr.bf16.mxu0 %v8693_v3  ;;  %v175_v44 = vpack.c.bf16 %v54_v43, %v53_v42  ;;  %v83_v43 = vld [vmem:[%s12306_s0 + $0x150] sm:$0xff] }
 0x1aa   :  { %7423 = vmatmul.mubr.msk.bf16.gmra.mrb[208].mxu0 %vm437_vm3, %v413_v45  ;;  %v55_v45 = vld [vmem:[%s12306_s0 + $0x70] sm:$0xff] }
 0x1ab   :  { %1202 = vmatprep.mubr.bf16.mxu0 %v8693_v3  ;;  %v176_v47 = vpack.c.bf16 %v56_v46, %v55_v45  ;;  %v85_v46 = vld [vmem:[%s12306_s0 + $0x160] sm:$0xff] }
 0x1b2   :  { %7424 = vmatmul.mubr.msk.bf16.gmra.mrb[212].mxu0 %vm437_vm3, %v414_v48  ;;  %v57_v48 = vld [vmem:[%s12306_s0 + $0x80] sm:$0xff] }
 0x1b3   :  { %1212 = vmatprep.mubr.bf16.mxu0 %v8693_v3 }
 0x1ba   :  { %7425 = vmatmul.mubr.msk.bf16.gmra.mrb[216].mxu0 %vm437_vm3, %v415_v53  ;;  %v59_v53 = vld [vmem:[%s12306_s0 + $0x90] sm:$0xff] }
 0x1bb   :  { %1222 = vmatprep.mubr.bf16.mxu0 %v8693_v3  ;;  %v178_v55 = vpack.c.bf16 %v60_v54, %v59_v53  ;;  %v90_v53 = vld [vmem:[%s12306_s0 + $0x188] sm:$0xff] }
 0x1c2   :  { %7426 = vmatmul.mubr.msk.bf16.gmra.mrb[220].mxu0 %vm437_vm3, %v416_v56  ;;  %v61_v56 = vld [vmem:[%s12306_s0 + $0xa0] sm:$0xff] }
 0x1c3   :  { %1232 = vmatprep.mubr.bf16.mxu0 %v8693_v3  ;;  %v179_v58 = vpack.c.bf16 %v62_v57, %v61_v56  ;;  %v92_v56 = vld [vmem:[%s12306_s0 + $0x198] sm:$0xff] }
 0x1ca   :  { %7427 = vmatmul.mubr.msk.bf16.gmra.mrb[224].mxu0 %vm437_vm3, %v417_v59  ;;  %v63_v59 = vld [vmem:[%s12306_s0 + $0xb0] sm:$0xff] }
 0x1cb   :  { %1242 = vmatprep.mubr.bf16.mxu0 %v8693_v3  ;;  %v180_v61 = vpack.c.bf16 %v64_v60, %v63_v59  ;;  %v93_v60 = vld [vmem:[%s12306_s0 + $0x1a0] sm:$0xff] }
 0x1d2   :  { %7428 = vmatmul.mubr.msk.bf16.gmra.mrb[228].mxu0 %vm437_vm3, %v418_v62  ;;  %v8118_v62 = vld [vmem:[%s12305_s5 + $0x64] ss:$8 sps:$4 sm:$0xff]  }
 0x1d3   :  { %1252 = vmatprep.mubr.bf16.mxu0 %v8693_v3 }
 0x1da   :  { %7429 = vmatmul.mubr.msk.bf16.gmra.mrb[232].mxu0 %vm437_vm3, %v419_v4  ;;  %v8121_v4 = vld [vmem:[%s12305_s5 + $0x74] ss:$8 sps:$4 sm:$0xff]  }
 0x1db   :  { %1262 = vmatprep.mubr.bf16.mxu0 %v8693_v3 }
 0x1e2   :  { %7430 = vmatmul.mubr.msk.bf16.gmra.mrb[236].mxu0 %vm437_vm3, %v420_v7  ;;  %v67_v7 = vld [vmem:[%s12306_s0 + $0xd0] sm:$0xff] }
 0x1e3   :  { %1272 = vmatprep.mubr.bf16.mxu0 %v8693_v3 }
 0x1ea   :  { %7431 = vmatmul.mubr.msk.bf16.gmra.mrb[240].mxu0 %vm437_vm3, %v421_v10  ;;  %v182_v10 = vpack.c.bf16 %v68_v8, %v67_v7 }
 0x1eb   :  { %1282 = vmatprep.mubr.bf16.mxu0 %v8693_v3 }
 0x1f2   :  { %7432 = vmatmul.mubr.msk.bf16.gmra.mrb[244].mxu0 %vm437_vm3, %v422_v13  ;;  %v8130_v13 = vld [vmem:[%s12305_s5 + $0xa4] ss:$8 sps:$4 sm:$0xff]  }
 0x1f3   :  { %1292 = vmatprep.mubr.bf16.mxu0 %v8693_v3 }
 0x1fa   :  { %7433 = vmatmul.mubr.msk.bf16.gmra.mrb[248].mxu0 %vm437_vm3, %v423_v16  ;;  %v8132_v16 = vld [vmem:[%s12305_s5 + $0xa0] ss:$8 sps:$4 sm:$0xff]  }
 0x1fb   :  { %1302 = vmatprep.mubr.bf16.mxu0 %v8693_v3 }
 0x202   :  { %7434 = vmatmul.mubr.msk.bf16.gmra.mrb[252].mxu0 %vm437_vm3, %v424_v21 }
 0x203   :  { %1553 = vmatprep.mubr.bf16.mxu0 %v8693_v3 }
 0x20a   :  { %7438 = vmatmul.mubr.msk.bf16.vlgmr.msra.gmra.mrb[0].mxu0 %vm1321_vm4, %v169_v24  ;;  %v72_v24 = vld [vmem:[%s12306_s0 + $0xf8] sm:$0xff] }
 0x20b   :  { %3209 = vmatpush1.bf16.msra.mxu0 %v9165_v34  ;;  %1563 = vmatprep.mubr.bf16.mxu0 %v8693_v3  ;;  %v8112_v34 = vld [vmem:[%s12305_s5 + $0x40] ss:$8 sps:$4 sm:$0xff]   ;;  %v184_v26 = vpack.c.bf16 %v72_v24, %v71_v23 }
 0x20c   :  { %3210 = vmatprep.subr.bf16.mxu0 %v9212_v50  ;;  %7830 = vmatpush1.bf16.msra.mxu1 %v8112_v34 }
 0x20d   :  { %7818 = vmatprep.subr.bf16.mxu1 %v8117_v52 }
 0x20f   :  { %3211 = vmatpush1.bf16.msra.mxu0 %v9207_v49  ;;  %v58_v49 = vld [vmem:[%s12306_s0 + $0x88] sm:$0xff] }
 0x210   :  { %3212 = vmatprep.subr.bf16.mxu0 %v8108_v2  ;;  %v177_v50 = vpack.c.bf16 %v58_v49, %v57_v48  ;;  %7831 = vmatpush1.bf16.msra.mxu1 %v8115_v51  ;;  %v181_v2 = vpack.c.bf16 %v66_v0, %v65_v63  ;;  %v87_v49 = vld [vmem:[%s12306_s0 + $0x170] sm:$0xff]  ;;  %v2194_v0 = vld [vmem:[%s12308_s4] sm:$0x3] }
 0x211   :  { %7819 = vmatprep.subr.bf16.mxu1 %v8118_v62 }
 0x212   :  { %7439 = vmatmul.mubr.msk.bf16.gmra.mrb[4].mxu0 %vm1321_vm4, %v170_v27  ;;  %v73_v27 = vld [vmem:[%s12306_s0 + $0x100] sm:$0xff] }
 0x213   :  { %1573 = vmatprep.mubr.bf16.mxu0 %v8693_v3  ;;  %3213 = vmatpush1.bf16.msra.mxu0 %v8106_v1  ;;  %v8120_v1 = vld [vmem:[%s12305_s5 + $0x60] ss:$8 sps:$4 sm:$0xff]   ;;  %v185_v29 = vpack.c.bf16 %v74_v28, %v73_v27 }
 0x214   :  { %3214 = vmatprep.subr.bf16.mxu0 %v8111_v20  ;;  %7832 = vmatpush1.bf16.msra.mxu1 %v8120_v1  ;;  %v2870_v20 = vld [vmem:[%s12305_s5 + $0xc0] sm:$0xff] }
 0x215   :  { %7820 = vmatprep.subr.bf16.mxu1 %v8121_v4  ;;  %v7527_v21 = vcombine.high %v2870_v20, %v2870_v20  ;;  %v7526_v22 = vcombine.low %v2870_v20, %v2870_v20  ;;  %v97_v20 = vld [vmem:[%s12306_s0 + $0x1c0] sm:$0xff] }
 0x217   :  { %3215 = vmatpush1.bf16.msra.mxu0 %v8109_v19  ;;  %v8135_v19 = vld [vmem:[%s12305_s5 + $0xb0] ss:$8 sps:$4 sm:$0xff]   ;;  %v3203_v25 = vsel %vm3201_vm5, %v7526_v22, 0 }
 0x218   :  { %3216 = vmatprep.subr.bf16.mxu0 %v8114_v35  ;;  %7833 = vmatpush1.bf16.msra.mxu1 %v8123_v5  ;;  %v78_v35 = vld [vmem:[%s12306_s0 + $0x128] sm:$0xff] }
 0x219   :  { %7821 = vmatprep.subr.bf16.mxu1 %v8124_v6 }
 0x21a   :  { %7440 = vmatmul.mubr.msk.bf16.gmra.mrb[8].mxu0 %vm1321_vm4, %v171_v30  ;;  %v8140_v30 = vld [vmem:[%s12307_s7 + $0x4] ss:$8 sps:$4 sm:$0xff]  }
 0x21b   :  { %1583 = vmatprep.mubr.bf16.mxu0 %v8693_v3  ;;  %3217 = vmatpush1.bf16.msra.mxu0 %v8112_v34  ;;  %v77_v34 = vld [vmem:[%s12306_s0 + $0x120] sm:$0xff] }
 0x21c   :  { %3218 = vmatprep.subr.bf16.mxu0 %v8117_v52  ;;  %7834 = vmatpush1.bf16.msra.mxu1 %v8126_v9  ;;  %v187_v36 = vpack.c.bf16 %v78_v35, %v77_v34  ;;  %v89_v52 = vld [vmem:[%s12306_s0 + $0x180] sm:$0xff] }
 0x21d   :  { %7822 = vmatprep.subr.bf16.mxu1 %v8127_v11  ;;  %v193_v54 = vpack.c.bf16 %v90_v53, %v89_v52 }
 0x21f   :  { %3219 = vmatpush1.bf16.msra.mxu0 %v8115_v51 }
 0x220   :  { %3220 = vmatprep.subr.bf16.mxu0 %v8118_v62  ;;  %7835 = vmatpush1.bf16.msra.mxu1 %v8129_v12 }
 0x221   :  { %7823 = vmatprep.subr.bf16.mxu1 %v8130_v13 }
 0x222   :  { %7441 = vmatmul.mubr.msk.bf16.gmra.mrb[12].mxu0 %vm1321_vm4, %v172_v33  ;;  %v186_v33 = vpack.c.bf16 %v76_v32, %v75_v31 }
 0x223   :  { %1593 = vmatprep.mubr.bf16.mxu0 %v8693_v3  ;;  %3221 = vmatpush1.bf16.msra.mxu0 %v8120_v1 }
 0x224   :  { %3222 = vmatprep.subr.bf16.mxu0 %v8121_v4  ;;  %7836 = vmatpush1.bf16.msra.mxu1 %v8132_v16 }
 0x225   :  { %7824 = vmatprep.subr.bf16.mxu1 %v8133_v18 }
 0x227   :  { %3223 = vmatpush1.bf16.msra.mxu0 %v8123_v5  ;;  %v95_v5 = vld [vmem:[%s12306_s0 + $0x1b0] sm:$0xff] }
 0x228   :  { %3224 = vmatprep.subr.bf16.mxu0 %v8124_v6  ;;  %7837 = vmatpush1.bf16.msra.mxu1 %v8135_v19  ;;  %v96_v6 = vld [vmem:[%s12306_s0 + $0x1b8] sm:$0xff] }
 0x229   :  { %7825 = vmatprep.subr.msk.bf16.mxu1 %vm3201_vm5, %v7527_v21 }
 0x22a   :  { %7442 = vmatmul.mubr.msk.bf16.gmra.mrb[16].mxu0 %vm1321_vm4, %v173_v38  ;;  %v80_v38 = vld [vmem:[%s12306_s0 + $0x138] sm:$0xff] }
 0x22b   :  { %1603 = vmatprep.mubr.bf16.mxu0 %v8693_v3  ;;  %3225 = vmatpush1.bf16.msra.mxu0 %v8126_v9  ;;  %v188_v39 = vpack.c.bf16 %v80_v38, %v79_v37  ;;  %v99_v37 = vld [vmem:[%s12306_s0 + $0x1d0] sm:$0xff]  ;;  %v100_v38 = vld [vmem:[%s12306_s0 + $0x1d8] sm:$0xff] }
 0x22c   :  { %3226 = vmatprep.subr.bf16.mxu0 %v8127_v11  ;;  %7838 = vmatpush1.bf16.msra.mxu1 %v3203_v25 }
 0x22d   :  { %4625 = vmatprep.subr.bf16.mxu1 %v8140_v30 }
 0x22f   :  { %3227 = vmatpush1.bf16.msra.mxu0 %v8129_v12 }
 0x230   :  { %3228 = vmatprep.subr.bf16.mxu0 %v8130_v13 }
 0x232   :  { %7443 = vmatmul.mubr.msk.bf16.gmra.mrb[20].mxu0 %vm1321_vm4, %v174_v41  ;;  %v82_v41 = vld [vmem:[%s12306_s0 + $0x148] sm:$0xff] }
 0x233   :  { %1613 = vmatprep.mubr.bf16.mxu0 %v8693_v3  ;;  %3229 = vmatpush1.bf16.msra.mxu0 %v8132_v16  ;;  %v189_v42 = vpack.c.bf16 %v82_v41, %v81_v40 }
 0x234   :  { %3230 = vmatprep.subr.bf16.mxu0 %v8133_v18 }
 0x237   :  { %3231 = vmatpush1.bf16.msra.mxu0 %v8135_v19 }
 0x238   :  { %7528 = vmatprep.subr.msk.bf16.mxu0 %vm3201_vm5, %v7527_v21  ;;  %v98_v21 = vld [vmem:[%s12306_s0 + $0x1c8] sm:$0xff] }
 0x239   :  { %v197_v27 = vpack.c.bf16 %v98_v21, %v97_v20  ;;  %v8143_v21 = vld [vmem:[%s12307_s7 + $0x14] ss:$8 sps:$4 sm:$0xff]  }
 0x23a   :  { %7444 = vmatmul.mubr.msk.bf16.gmra.mrb[24].mxu0 %vm1321_vm4, %v175_v44  ;;  %v84_v44 = vld [vmem:[%s12306_s0 + $0x158] sm:$0xff] }
 0x23b   :  { %1623 = vmatprep.mubr.bf16.mxu0 %v8693_v3  ;;  %3233 = vmatpush1.bf16.msra.mxu0 %v3203_v25  ;;  %v190_v45 = vpack.c.bf16 %v84_v44, %v83_v43  ;;  %v198_v44 = vpack.c.bf16 %v100_v38, %v99_v37 }
 0x242   :  { %7445 = vmatmul.mubr.msk.bf16.gmra.mrb[28].mxu0 %vm1321_vm4, %v176_v47  ;;  %v86_v47 = vld [vmem:[%s12306_s0 + $0x168] sm:$0xff] }
 0x243   :  { %1633 = vmatprep.mubr.bf16.mxu0 %v8693_v3  ;;  %v191_v48 = vpack.c.bf16 %v86_v47, %v85_v46 }
 0x24a   :  { %7446 = vmatmul.mubr.msk.bf16.gmra.mrb[32].mxu0 %vm1321_vm4, %v177_v50  ;;  %v88_v50 = vld [vmem:[%s12306_s0 + $0x178] sm:$0xff] }
 0x24b   :  { %1643 = vmatprep.mubr.bf16.mxu0 %v8693_v3  ;;  %v192_v51 = vpack.c.bf16 %v88_v50, %v87_v49 }
 0x252   :  { %7447 = vmatmul.mubr.msk.bf16.gmra.mrb[36].mxu0 %vm1321_vm4, %v178_v55  ;;  %v91_v55 = vld [vmem:[%s12306_s0 + $0x190] sm:$0xff] }
 0x253   :  { %1653 = vmatprep.mubr.bf16.mxu0 %v8693_v3  ;;  %v194_v57 = vpack.c.bf16 %v92_v56, %v91_v55  ;;  %v102_v55 = vld [vmem:[%s12306_s0 + $0x1e8] sm:$0xff] }
 0x25a   :  { %7448 = vmatmul.mubr.msk.bf16.gmra.mrb[40].mxu0 %vm1321_vm4, %v179_v58  ;;  %v2196_v58 = vlaneseq }
 0x25b   :  { %1663 = vmatprep.mubr.bf16.mxu0 %v8693_v3 }
 0x25c   :  { %v2197_v59 = vshrl.u32 %v2196_v58, 7 }
 0x25e   :  { %v9583_v63 = vsub.s32 0, %v2197_v59  ;;  %v9588_v1 = vsub.s32 1, %v2197_v59 }
 0x260   :  { %12318 = vst [vmem:[#allocation3_spill] sm:$0xff] %v9583_v63  ;;  %12319 = vst [vmem:[#allocation4_spill] sm:$0xff] %v9588_v1  ;;  %v9595_v4 = vrot.slane %v2194_v0, %v9588_v1 }
 0x262   :  { %7449 = vmatmul.mubr.msk.bf16.gmra.mrb[44].mxu0 %vm1321_vm4, %v180_v61  ;;  %v94_v61 = vld [vmem:[%s12306_s0 + $0x1a8] sm:$0xff] }
 0x263   :  { %1673 = vmatprep.mubr.bf16.mxu0 %v8693_v3  ;;  %v195_v62 = vpack.c.bf16 %v94_v61, %v93_v60 }
 0x26a   :  { %7450 = vmatmul.mubr.msk.bf16.gmra.mrb[48].mxu0 %vm1321_vm4, %v181_v2  ;;  %v9592_v2 = vrot.slane %v2194_v0, %v9583_v63 }
 0x26b   :  { %1683 = vmatprep.mubr.bf16.mxu0 %v8693_v3 }
 0x272   :  { %7451 = vmatmul.mubr.msk.bf16.gmra.mrb[52].mxu0 %vm1321_vm4, %v182_v10  ;;  %v196_v10 = vpack.c.bf16 %v96_v6, %v95_v5 }
 0x273   :  { %1693 = vmatprep.mubr.bf16.mxu0 %v8693_v3 }
 0x27a   :  { %7452 = vmatmul.mubr.msk.bf16.gmra.mrb[56].mxu0 %vm1321_vm4, %v183_v17 }
 0x27b   :  { %1703 = vmatprep.mubr.bf16.mxu0 %v8693_v3 }
 0x282   :  { %7453 = vmatmul.mubr.msk.bf16.gmra.mrb[60].mxu0 %vm1321_vm4, %v184_v26 }
 0x283   :  { %1713 = vmatprep.mubr.bf16.mxu0 %v8693_v3 }
 0x28a   :  { %7454 = vmatmul.mubr.msk.bf16.gmra.mrb[64].mxu0 %vm1321_vm4, %v185_v29 }
 0x28b   :  { %1723 = vmatprep.mubr.bf16.mxu0 %v8693_v3 }
 0x292   :  { %7455 = vmatmul.mubr.msk.bf16.gmra.mrb[68].mxu0 %vm1321_vm4, %v186_v33 }
 0x293   :  { %1733 = vmatprep.mubr.bf16.mxu0 %v8693_v3 }
 0x29a   :  { %7456 = vmatmul.mubr.msk.bf16.gmra.mrb[72].mxu0 %vm1321_vm4, %v187_v36 }
 0x29b   :  { %1743 = vmatprep.mubr.bf16.mxu0 %v8693_v3 }
 0x2a2   :  { %7457 = vmatmul.mubr.msk.bf16.gmra.mrb[76].mxu0 %vm1321_vm4, %v188_v39 }
 0x2a3   :  { %1753 = vmatprep.mubr.bf16.mxu0 %v8693_v3 }
 0x2aa   :  { %7458 = vmatmul.mubr.msk.bf16.gmra.mrb[80].mxu0 %vm1321_vm4, %v189_v42 }
 0x2ab   :  { %1763 = vmatprep.mubr.bf16.mxu0 %v8693_v3 }
 0x2b2   :  { %7459 = vmatmul.mubr.msk.bf16.gmra.mrb[84].mxu0 %vm1321_vm4, %v190_v45 }
 0x2b3   :  { %1773 = vmatprep.mubr.bf16.mxu0 %v8693_v3 }
 0x2ba   :  { %7460 = vmatmul.mubr.msk.bf16.gmra.mrb[88].mxu0 %vm1321_vm4, %v191_v48 }
 0x2bb   :  { %1783 = vmatprep.mubr.bf16.mxu0 %v8693_v3 }
 0x2c2   :  { %7461 = vmatmul.mubr.msk.bf16.gmra.mrb[92].mxu0 %vm1321_vm4, %v192_v51 }
 0x2c3   :  { %1793 = vmatprep.mubr.bf16.mxu0 %v8693_v3 }
 0x2ca   :  { %7462 = vmatmul.mubr.msk.bf16.gmra.mrb[96].mxu0 %vm1321_vm4, %v193_v54  ;;  %v101_v54 = vld [vmem:[%s12306_s0 + $0x1e0] sm:$0xff] }
 0x2cb   :  { %1803 = vmatprep.mubr.bf16.mxu0 %v8693_v3  ;;  %v199_v61 = vpack.c.bf16 %v102_v55, %v101_v54 }
 0x2d2   :  { %7463 = vmatmul.mubr.msk.bf16.gmra.mrb[100].mxu0 %vm1321_vm4, %v194_v57 }
 0x2d3   :  { %1813 = vmatprep.mubr.bf16.mxu0 %v8693_v3 }
 0x2da   :  { %7464 = vmatmul.mubr.msk.bf16.gmra.mrb[104].mxu0 %vm1321_vm4, %v195_v62 }
 0x2db   :  { %1823 = vmatprep.mubr.bf16.mxu0 %v8693_v3 }
 0x2dd   :  { %v1555_v7 = vpop.f32.mrb[0].mxu0 }
 0x2de   :  { %v2206_v8 = vadd.f32 %v9592_v2, %v1555_v7  ;;  %v1557_v9 = vpop.f32.mrb[1].mxu0 }
 0x2df   :  { %v2207_v11 = vadd.f32 %v9595_v4, %v1557_v9  ;;  %v1559_v12 = vpop.f32.mrb[2].mxu0 }
 0x2e0   :  { %v2208_v13 = vadd.f32 %v9592_v2, %v1559_v12  ;;  %v1561_v14 = vpop.f32.mrb[3].mxu0  ;;  %v2462_v16 = vmax.f32 %v2206_v8, 0.0  ;;  %v103_v12 = vld [vmem:[%s12306_s0 + $0x1f0] sm:$0xff] }
 0x2e1   :  { %v2209_v15 = vadd.f32 %v9595_v4, %v1561_v14  ;;  %v2463_v18 = vmax.f32 %v2207_v11, 0.0 }
 0x2e2   :  { %v2464_v17 = vmax.f32 %v2208_v13, 0.0  ;;  %7465 = vmatmul.mubr.msk.bf16.gmra.mrb[108].mxu0 %vm1321_vm4, %v196_v10  ;;  %v104_v13 = vld [vmem:[%s12306_s0 + $0x1f8] sm:$0xff] }
 0x2e3   :  { %v2465_v19 = vmax.f32 %v2209_v15, 0.0  ;;  %1833 = vmatprep.mubr.bf16.mxu0 %v8693_v3  ;;  %v200_v20 = vpack.c.bf16 %v104_v13, %v103_v12 }
 0x2e4   :  { %v9616_v22 = vpack.c.bf16 %v2464_v17, %v2462_v16  ;;  %v8138_v17 = vld [vmem:[%s12307_s7] ss:$8 sps:$4 sm:$0xff]  }
 0x2e5   :  { %v9618_v23 = vpack.c.bf16 %v2465_v19, %v2463_v18  ;;  %v1565_v24 = vpop.f32.mrb[4].mxu0 }
 0x2e6   :  { %v2210_v25 = vadd.f32 %v9592_v2, %v1565_v24  ;;  %v1567_v26 = vpop.f32.mrb[5].mxu0 }
 0x2e7   :  { %v2211_v28 = vadd.f32 %v9595_v4, %v1567_v26  ;;  %v1569_v29 = vpop.f32.mrb[6].mxu0 }
 0x2e8   :  { %v2212_v30 = vadd.f32 %v9592_v2, %v1569_v29  ;;  %v1571_v31 = vpop.f32.mrb[7].mxu0  ;;  %v2466_v33 = vmax.f32 %v2210_v25, 0.0  ;;  %v8141_v29 = vld [vmem:[%s12307_s7 + $0x10] ss:$8 sps:$4 sm:$0xff]  }
 0x2e9   :  { %v2213_v32 = vadd.f32 %v9595_v4, %v1571_v31  ;;  %v2467_v35 = vmax.f32 %v2211_v28, 0.0 }
 0x2ea   :  { %v2468_v34 = vmax.f32 %v2212_v30, 0.0  ;;  %7466 = vmatmul.mubr.msk.bf16.gmra.mrb[112].mxu0 %vm1321_vm4, %v197_v27 }
 0x2eb   :  { %v2469_v36 = vmax.f32 %v2213_v32, 0.0  ;;  %1843 = vmatprep.mubr.bf16.mxu0 %v8693_v3  ;;  %v8146_v32 = vld [vmem:[%s12307_s7 + $0x24] ss:$8 sps:$4 sm:$0xff]  }
 0x2ec   :  { %v9632_v39 = vpack.c.bf16 %v2468_v34, %v2466_v33 }
 0x2ed   :  { %v9634_v40 = vpack.c.bf16 %v2469_v36, %v2467_v35  ;;  %v1575_v41 = vpop.f32.mrb[8].mxu0  ;;  %v105_v35 = vld [vmem:[%s12306_s0 + $0x200] sm:$0xff]  ;;  %v106_v36 = vld [vmem:[%s12306_s0 + $0x208] sm:$0xff] }
 0x2ee   :  { %v2214_v42 = vadd.f32 %v9592_v2, %v1575_v41  ;;  %v1577_v43 = vpop.f32.mrb[9].mxu0 }
 0x2ef   :  { %v2215_v45 = vadd.f32 %v9595_v4, %v1577_v43  ;;  %v1579_v46 = vpop.f32.mrb[10].mxu0 }
 0x2f0   :  { %v2216_v47 = vadd.f32 %v9592_v2, %v1579_v46  ;;  %v1581_v48 = vpop.f32.mrb[11].mxu0  ;;  %v2470_v50 = vmax.f32 %v2214_v42, 0.0  ;;  %v8144_v42 = vld [vmem:[%s12307_s7 + $0x20] ss:$8 sps:$4 sm:$0xff]   ;;  %v8149_v46 = vld [vmem:[%s12307_s7 + $0x34] ss:$8 sps:$4 sm:$0xff]  }
 0x2f1   :  { %v2217_v49 = vadd.f32 %v9595_v4, %v1581_v48  ;;  %v2471_v52 = vmax.f32 %v2215_v45, 0.0  ;;  %v201_v45 = vpack.c.bf16 %v106_v36, %v105_v35  ;;  %v111_v36 = vld [vmem:[%s12306_s0 + $0x230] sm:$0xff] }
 0x2f2   :  { %v2472_v51 = vmax.f32 %v2216_v47, 0.0  ;;  %7467 = vmatmul.mubr.msk.bf16.gmra.mrb[116].mxu0 %vm1321_vm4, %v198_v44 }
 0x2f3   :  { %v2473_v53 = vmax.f32 %v2217_v49, 0.0  ;;  %1853 = vmatprep.mubr.bf16.mxu0 %v8693_v3 }
 0x2f4   :  { %v9648_v56 = vpack.c.bf16 %v2472_v51, %v2470_v50 }
 0x2f5   :  { %v9650_v57 = vpack.c.bf16 %v2473_v53, %v2471_v52  ;;  %v1585_v58 = vpop.f32.mrb[12].mxu0  ;;  %v8147_v52 = vld [vmem:[%s12307_s7 + $0x30] ss:$8 sps:$4 sm:$0xff]  }
 0x2f6   :  { %v2218_v59 = vadd.f32 %v9592_v2, %v1585_v58  ;;  %v1587_v60 = vpop.f32.mrb[13].mxu0 }
 0x2f7   :  { %v2219_v62 = vadd.f32 %v9595_v4, %v1587_v60  ;;  %v1589_v0 = vpop.f32.mrb[14].mxu0  ;;  %v108_v60 = vld [vmem:[%s12306_s0 + $0x218] sm:$0xff] }
 0x2f8   :  { %v2220_v5 = vadd.f32 %v9592_v2, %v1589_v0  ;;  %v1591_v6 = vpop.f32.mrb[15].mxu0  ;;  %v2474_v8 = vmax.f32 %v2218_v59, 0.0  ;;  %v107_v59 = vld [vmem:[%s12306_s0 + $0x210] sm:$0xff] }
 0x2f9   :  { %v2221_v7 = vadd.f32 %v9595_v4, %v1591_v6  ;;  %v2475_v10 = vmax.f32 %v2219_v62, 0.0 }
 0x2fa   :  { %v2476_v9 = vmax.f32 %v2220_v5, 0.0  ;;  %7468 = vmatmul.mubr.msk.bf16.gmra.mrb[120].mxu0 %vm1321_vm4, %v199_v61 }
 0x2fb   :  { %v2477_v11 = vmax.f32 %v2221_v7, 0.0  ;;  %1863 = vmatprep.mubr.bf16.mxu0 %v8693_v3  ;;  %v202_v7 = vpack.c.bf16 %v108_v60, %v107_v59  ;;  %v113_v59 = vld [vmem:[%s12306_s0 + $0x240] sm:$0xff]  ;;  %v114_v60 = vld [vmem:[%s12306_s0 + $0x248] sm:$0xff] }
 0x2fc   :  { %v2724_v14 = vpack.c.bf16 %v2476_v9, %v2474_v8 }
 0x2fd   :  { %v1595_v15 = vpop.f32.mrb[16].mxu0  ;;  %v2725_v16 = vpack.c.bf16 %v2477_v11, %v2475_v10 }
 0x2fe   :  { %v2222_v18 = vadd.f32 %v9592_v2, %v1595_v15  ;;  %v1597_v19 = vpop.f32.mrb[17].mxu0 }
 0x2ff   :  { %v2223_v24 = vadd.f32 %v9595_v4, %v1597_v19  ;;  %v1599_v25 = vpop.f32.mrb[18].mxu0  ;;  %7532 = vmatprep.mubr.msk.bf16.mxu1 %vm3008_vm6, %v2725_v16 }
 0x300   :  { %v2224_v26 = vadd.f32 %v9592_v2, %v1599_v25  ;;  %v1601_v27 = vpop.f32.mrb[19].mxu0  ;;  %3271 = vmatmul.mubr.bf16.vlgmr.msra.gmra.mrb[0].mxu1 %v2724_v14  ;;  %v2478_v30 = vmax.f32 %v2222_v18, 0.0  ;;  %v110_v18 = vld [vmem:[%s12306_s0 + $0x228] sm:$0xff] }
 0x301   :  { %v2225_v28 = vadd.f32 %v9595_v4, %v1601_v27  ;;  %4626 = vmatpush1.bf16.msra.mxu1 %v8138_v17  ;;  %v2479_v33 = vmax.f32 %v2223_v24, 0.0  ;;  %v109_v17 = vld [vmem:[%s12306_s0 + $0x220] sm:$0xff] }
 0x302   :  { %v2480_v31 = vmax.f32 %v2224_v26, 0.0  ;;  %7469 = vmatmul.mubr.msk.bf16.gmra.mrb[124].mxu0 %vm1321_vm4, %v200_v20  ;;  %4627 = vmatprep.subr.bf16.mxu1 %v8143_v21  ;;  %v203_v26 = vpack.c.bf16 %v110_v18, %v109_v17  ;;  %v115_v17 = vld [vmem:[%s12306_s0 + $0x250] sm:$0xff]  ;;  %v116_v18 = vld [vmem:[%s12306_s0 + $0x258] sm:$0xff] }
 0x303   :  { %v2481_v34 = vmax.f32 %v2225_v28, 0.0  ;;  %1873 = vmatprep.mubr.bf16.mxu0 %v8693_v3 }
 0x304   :  { %v2726_v37 = vpack.c.bf16 %v2480_v31, %v2478_v30 }
 0x305   :  { %v2727_v38 = vpack.c.bf16 %v2481_v34, %v2479_v33  ;;  %v1605_v41 = vpop.f32.mrb[20].mxu0  ;;  %4628 = vmatpush1.bf16.msra.mxu1 %v8141_v29 }
 0x306   :  { %v2226_v43 = vadd.f32 %v9592_v2, %v1605_v41  ;;  %v1607_v44 = vpop.f32.mrb[21].mxu0  ;;  %4629 = vmatprep.subr.bf16.mxu1 %v8146_v32  ;;  %v8150_v41 = vld [vmem:[%s12307_s7 + $0x40] ss:$8 sps:$4 sm:$0xff]  }
 0x307   :  { %v2227_v47 = vadd.f32 %v9595_v4, %v1607_v44  ;;  %v1609_v48 = vpop.f32.mrb[22].mxu0  ;;  %7533 = vmatprep.mubr.msk.bf16.mxu1 %vm3008_vm6, %v2727_v38 }
 0x308   :  { %v2228_v49 = vadd.f32 %v9592_v2, %v1609_v48  ;;  %v1611_v50 = vpop.f32.mrb[23].mxu0  ;;  %3281 = vmatmul.mubr.bf16.gmra.mrb[4].mxu1 %v2726_v37  ;;  %v2482_v53 = vmax.f32 %v2226_v43, 0.0  ;;  %v112_v37 = vld [vmem:[%s12306_s0 + $0x238] sm:$0xff] }
 0x309   :  { %v2229_v51 = vadd.f32 %v9595_v4, %v1611_v50  ;;  %4630 = vmatpush1.bf16.msra.mxu1 %v8144_v42  ;;  %v2483_v55 = vmax.f32 %v2227_v47, 0.0  ;;  %v8152_v42 = vld [vmem:[%s12307_s7 + $0x44] ss:$8 sps:$4 sm:$0xff]   ;;  %v204_v47 = vpack.c.bf16 %v112_v37, %v111_v36 }
 0x30a   :  { %v2484_v54 = vmax.f32 %v2228_v49, 0.0  ;;  %7470 = vmatmul.mubr.msk.bf16.gmra.mrb[128].mxu0 %vm1321_vm4, %v201_v45  ;;  %4631 = vmatprep.subr.bf16.mxu1 %v8149_v46  ;;  %v117_v36 = vld [vmem:[%s12306_s0 + $0x260] sm:$0xff]  ;;  %v118_v37 = vld [vmem:[%s12306_s0 + $0x268] sm:$0xff] }
 0x30b   :  { %v2485_v58 = vmax.f32 %v2229_v51, 0.0  ;;  %1883 = vmatprep.mubr.bf16.mxu0 %v8693_v3 }
 0x30c   :  { %v2728_v61 = vpack.c.bf16 %v2484_v54, %v2482_v53 }
 0x30d   :  { %v2729_v62 = vpack.c.bf16 %v2485_v58, %v2483_v55  ;;  %v1615_v0 = vpop.f32.mrb[24].mxu0  ;;  %4632 = vmatpush1.bf16.msra.mxu1 %v8147_v52 }
 0x30e   :  { %v2230_v5 = vadd.f32 %v9592_v2, %v1615_v0  ;;  %v1617_v6 = vpop.f32.mrb[25].mxu0  ;;  %4633 = vmatprep.subr.bf16.mxu1 %v8152_v42 }
 0x30f   :  { %v2231_v8 = vadd.f32 %v9595_v4, %v1617_v6  ;;  %v1619_v9 = vpop.f32.mrb[26].mxu0  ;;  %7534 = vmatprep.mubr.msk.bf16.mxu1 %vm3008_vm6, %v2729_v62 }
 0x310   :  { %v2232_v10 = vadd.f32 %v9592_v2, %v1619_v9  ;;  %v1621_v11 = vpop.f32.mrb[27].mxu0  ;;  %3291 = vmatmul.mubr.bf16.gmra.mrb[8].mxu1 %v2728_v61  ;;  %v2486_v13 = vmax.f32 %v2230_v5, 0.0 }
 0x311   :  { %v2233_v12 = vadd.f32 %v9595_v4, %v1621_v11  ;;  %v2487_v15 = vmax.f32 %v2231_v8, 0.0  ;;  %4634 = vmatpush1.bf16.msra.mxu1 %v8150_v41 }
 0x312   :  { %v2488_v14 = vmax.f32 %v2232_v10, 0.0  ;;  %7471 = vmatmul.mubr.msk.bf16.gmra.mrb[132].mxu0 %vm1321_vm4, %v202_v7  ;;  %v205_v7 = vpack.c.bf16 %v114_v60, %v113_v59 }
 0x313   :  { %v2489_v16 = vmax.f32 %v2233_v12, 0.0  ;;  %1893 = vmatprep.mubr.bf16.mxu0 %v8693_v3 }
 0x314   :  { %v2730_v19 = vpack.c.bf16 %v2488_v14, %v2486_v13 }
 0x315   :  { %v2731_v20 = vpack.c.bf16 %v2489_v16, %v2487_v15  ;;  %v1625_v21 = vpop.f32.mrb[28].mxu0 }
 0x316   :  { %v2234_v24 = vadd.f32 %v9592_v2, %v1625_v21  ;;  %v1627_v25 = vpop.f32.mrb[29].mxu0 }
 0x317   :  { %v2235_v27 = vadd.f32 %v9595_v4, %v1627_v25  ;;  %v1629_v28 = vpop.f32.mrb[30].mxu0  ;;  %7535 = vmatprep.mubr.msk.bf16.mxu1 %vm3008_vm6, %v2731_v20 }
 0x318   :  { %v2236_v29 = vadd.f32 %v9592_v2, %v1629_v28  ;;  %v1631_v30 = vpop.f32.mrb[31].mxu0  ;;  %3301 = vmatmul.mubr.bf16.gmra.mrb[12].mxu1 %v2730_v19  ;;  %v2490_v32 = vmax.f32 %v2234_v24, 0.0 }
 0x319   :  { %v2237_v31 = vadd.f32 %v9595_v4, %v1631_v30  ;;  %v2491_v34 = vmax.f32 %v2235_v27, 0.0 }
 0x31a   :  { %v2492_v33 = vmax.f32 %v2236_v29, 0.0  ;;  %7472 = vmatmul.mubr.msk.bf16.gmra.mrb[136].mxu0 %vm1321_vm4, %v203_v26  ;;  %v206_v26 = vpack.c.bf16 %v116_v18, %v115_v17  ;;  %v121_v17 = vld [vmem:[%s12306_s0 + $0x280] sm:$0xff]  ;;  %v122_v18 = vld [vmem:[%s12306_s0 + $0x288] sm:$0xff] }
 0x31b   :  { %v2493_v35 = vmax.f32 %v2237_v31, 0.0  ;;  %1903 = vmatprep.mubr.bf16.mxu0 %v8693_v3 }
 0x31c   :  { %v2732_v38 = vpack.c.bf16 %v2492_v33, %v2490_v32 }
 0x31d   :  { %v2733_v43 = vpack.c.bf16 %v2493_v35, %v2491_v34  ;;  %v1635_v44 = vpop.f32.mrb[32].mxu0 }
 0x31e   :  { %v2238_v45 = vadd.f32 %v9592_v2, %v1635_v44  ;;  %v1637_v46 = vpop.f32.mrb[33].mxu0 }
 0x31f   :  { %v2239_v48 = vadd.f32 %v9595_v4, %v1637_v46  ;;  %v1639_v49 = vpop.f32.mrb[34].mxu0  ;;  %7536 = vmatprep.mubr.msk.bf16.mxu1 %vm3008_vm6, %v2733_v43 }
 0x320   :  { %v2240_v50 = vadd.f32 %v9592_v2, %v1639_v49  ;;  %v1641_v51 = vpop.f32.mrb[35].mxu0  ;;  %3311 = vmatmul.mubr.bf16.gmra.mrb[16].mxu1 %v2732_v38  ;;  %v2494_v53 = vmax.f32 %v2238_v45, 0.0  ;;  %v207_v45 = vpack.c.bf16 %v118_v37, %v117_v36  ;;  %v123_v36 = vld [vmem:[%s12306_s0 + $0x290] sm:$0xff]  ;;  %v124_v37 = vld [vmem:[%s12306_s0 + $0x298] sm:$0xff] }
 0x321   :  { %v2241_v52 = vadd.f32 %v9595_v4, %v1641_v51  ;;  %v2495_v55 = vmax.f32 %v2239_v48, 0.0 }
 0x322   :  { %v2496_v54 = vmax.f32 %v2240_v50, 0.0  ;;  %7473 = vmatmul.mubr.msk.bf16.gmra.mrb[140].mxu0 %vm1321_vm4, %v204_v47 }
 0x323   :  { %v2497_v58 = vmax.f32 %v2241_v52, 0.0  ;;  %1913 = vmatprep.mubr.bf16.mxu0 %v8693_v3 }
 0x324   :  { %v2734_v61 = vpack.c.bf16 %v2496_v54, %v2494_v53 }
 0x325   :  { %v2735_v62 = vpack.c.bf16 %v2497_v58, %v2495_v55  ;;  %v1645_v0 = vpop.f32.mrb[36].mxu0  ;;  %v119_v55 = vld [vmem:[%s12306_s0 + $0x270] sm:$0xff]  ;;  %v120_v58 = vld [vmem:[%s12306_s0 + $0x278] sm:$0xff] }
 0x326   :  { %v2242_v5 = vadd.f32 %v9592_v2, %v1645_v0  ;;  %v1647_v6 = vpop.f32.mrb[37].mxu0  ;;  %v8155_v0 = vld [vmem:[%s12307_s7 + $0x54] ss:$8 sps:$4 sm:$0xff]  }
 0x327   :  { %v2243_v8 = vadd.f32 %v9595_v4, %v1647_v6  ;;  %v1649_v9 = vpop.f32.mrb[38].mxu0  ;;  %7537 = vmatprep.mubr.msk.bf16.mxu1 %vm3008_vm6, %v2735_v62  ;;  %v8153_v62 = vld [vmem:[%s12307_s7 + $0x50] ss:$8 sps:$4 sm:$0xff]   ;;  %4635 = vmatprep.subr.bf16.mxu1 %v8155_v0 }
 0x328   :  { %v2244_v10 = vadd.f32 %v9592_v2, %v1649_v9  ;;  %v1651_v11 = vpop.f32.mrb[39].mxu0  ;;  %3321 = vmatmul.mubr.bf16.gmra.mrb[20].mxu1 %v2734_v61  ;;  %v2498_v13 = vmax.f32 %v2242_v5, 0.0 }
 0x329   :  { %v2245_v12 = vadd.f32 %v9595_v4, %v1651_v11  ;;  %v2499_v15 = vmax.f32 %v2243_v8, 0.0  ;;  %4636 = vmatpush1.bf16.msra.mxu1 %v8153_v62 }
 0x32a   :  { %v2500_v14 = vmax.f32 %v2244_v10, 0.0  ;;  %7474 = vmatmul.mubr.msk.bf16.gmra.mrb[144].mxu0 %vm1321_vm4, %v205_v7  ;;  %v208_v7 = vpack.c.bf16 %v120_v58, %v119_v55  ;;  %v125_v55 = vld [vmem:[%s12306_s0 + $0x2a0] sm:$0xff]  ;;  %v126_v58 = vld [vmem:[%s12306_s0 + $0x2a8] sm:$0xff] }
 0x32b   :  { %v2501_v16 = vmax.f32 %v2245_v12, 0.0  ;;  %1923 = vmatprep.mubr.bf16.mxu0 %v8693_v3 }
 0x32c   :  { %v2736_v19 = vpack.c.bf16 %v2500_v14, %v2498_v13 }
 0x32d   :  { %v2737_v20 = vpack.c.bf16 %v2501_v16, %v2499_v15  ;;  %v1655_v21 = vpop.f32.mrb[40].mxu0 }
 0x32e   :  { %v2246_v24 = vadd.f32 %v9592_v2, %v1655_v21  ;;  %v1657_v25 = vpop.f32.mrb[41].mxu0 }
 0x32f   :  { %v2247_v27 = vadd.f32 %v9595_v4, %v1657_v25  ;;  %v1659_v28 = vpop.f32.mrb[42].mxu0  ;;  %7538 = vmatprep.mubr.msk.bf16.mxu1 %vm3008_vm6, %v2737_v20 }
 0x330   :  { %v2248_v29 = vadd.f32 %v9592_v2, %v1659_v28  ;;  %v1661_v30 = vpop.f32.mrb[43].mxu0  ;;  %3331 = vmatmul.mubr.bf16.gmra.mrb[24].mxu1 %v2736_v19  ;;  %v2502_v32 = vmax.f32 %v2246_v24, 0.0 }
 0x331   :  { %v2249_v31 = vadd.f32 %v9595_v4, %v1661_v30  ;;  %v2503_v34 = vmax.f32 %v2247_v27, 0.0 }
 0x332   :  { %v2504_v33 = vmax.f32 %v2248_v29, 0.0  ;;  %7475 = vmatmul.mubr.msk.bf16.gmra.mrb[148].mxu0 %vm1321_vm4, %v206_v26  ;;  %v209_v26 = vpack.c.bf16 %v122_v18, %v121_v17 }
 0x333   :  { %v2505_v35 = vmax.f32 %v2249_v31, 0.0  ;;  %1933 = vmatprep.mubr.bf16.mxu0 %v8693_v3 }
 0x334   :  { %v2738_v38 = vpack.c.bf16 %v2504_v33, %v2502_v32 }
 0x335   :  { %v2739_v41 = vpack.c.bf16 %v2505_v35, %v2503_v34  ;;  %v1665_v42 = vpop.f32.mrb[44].mxu0 }
 0x336   :  { %v2250_v43 = vadd.f32 %v9592_v2, %v1665_v42  ;;  %v1667_v44 = vpop.f32.mrb[45].mxu0 }
 0x337   :  { %v2251_v46 = vadd.f32 %v9595_v4, %v1667_v44  ;;  %v1669_v47 = vpop.f32.mrb[46].mxu0  ;;  %7539 = vmatprep.mubr.msk.bf16.mxu1 %vm3008_vm6, %v2739_v41 }
 0x338   :  { %v2252_v48 = vadd.f32 %v9592_v2, %v1669_v47  ;;  %v1671_v49 = vpop.f32.mrb[47].mxu0  ;;  %3341 = vmatmul.mubr.bf16.gmra.mrb[28].mxu1 %v2738_v38  ;;  %v2506_v51 = vmax.f32 %v2250_v43, 0.0 }
 0x339   :  { %v2253_v50 = vadd.f32 %v9595_v4, %v1671_v49  ;;  %v2507_v53 = vmax.f32 %v2251_v46, 0.0 }
 0x33a   :  { %v2508_v52 = vmax.f32 %v2252_v48, 0.0  ;;  %7476 = vmatmul.mubr.msk.bf16.gmra.mrb[152].mxu0 %vm1321_vm4, %v207_v45  ;;  %v210_v45 = vpack.c.bf16 %v124_v37, %v123_v36 }
 0x33b   :  { %v2509_v54 = vmax.f32 %v2253_v50, 0.0  ;;  %1943 = vmatprep.mubr.bf16.mxu0 %v8693_v3 }
 0x33c   :  { %v2740_v59 = vpack.c.bf16 %v2508_v52, %v2506_v51 }
 0x33d   :  { %v2741_v60 = vpack.c.bf16 %v2509_v54, %v2507_v53  ;;  %v1675_v61 = vpop.f32.mrb[48].mxu0 }
 0x33e   :  { %v2254_v5 = vadd.f32 %v9592_v2, %v1675_v61  ;;  %v1677_v6 = vpop.f32.mrb[49].mxu0 }
 0x33f   :  { %v2255_v8 = vadd.f32 %v9595_v4, %v1677_v6  ;;  %v1679_v9 = vpop.f32.mrb[50].mxu0  ;;  %7540 = vmatprep.mubr.msk.bf16.mxu1 %vm3008_vm6, %v2741_v60 }
 0x340   :  { %v2256_v10 = vadd.f32 %v9592_v2, %v1679_v9  ;;  %v1681_v11 = vpop.f32.mrb[51].mxu0  ;;  %3351 = vmatmul.mubr.bf16.gmra.mrb[32].mxu1 %v2740_v59  ;;  %v2510_v13 = vmax.f32 %v2254_v5, 0.0  ;;  %v211_v5 = vpack.c.bf16 %v126_v58, %v125_v55  ;;  %v131_v55 = vld [vmem:[%s12306_s0 + $0x2d0] sm:$0xff]  ;;  %v132_v58 = vld [vmem:[%s12306_s0 + $0x2d8] sm:$0xff] }
 0x341   :  { %v2257_v12 = vadd.f32 %v9595_v4, %v1681_v11  ;;  %v2511_v15 = vmax.f32 %v2255_v8, 0.0 }
 0x342   :  { %v2512_v14 = vmax.f32 %v2256_v10, 0.0  ;;  %7477 = vmatmul.mubr.msk.bf16.gmra.mrb[156].mxu0 %vm1321_vm4, %v208_v7 }
 0x343   :  { %v2513_v16 = vmax.f32 %v2257_v12, 0.0  ;;  %1953 = vmatprep.mubr.bf16.mxu0 %v8693_v3 }
 0x344   :  { %v2742_v19 = vpack.c.bf16 %v2512_v14, %v2510_v13 }
 0x345   :  { %v2743_v20 = vpack.c.bf16 %v2513_v16, %v2511_v15  ;;  %v1685_v21 = vpop.f32.mrb[52].mxu0  ;;  %v127_v15 = vld [vmem:[%s12306_s0 + $0x2b0] sm:$0xff]  ;;  %v128_v16 = vld [vmem:[%s12306_s0 + $0x2b8] sm:$0xff] }
 0x346   :  { %v2258_v24 = vadd.f32 %v9592_v2, %v1685_v21  ;;  %v1687_v25 = vpop.f32.mrb[53].mxu0 }
 0x347   :  { %v2259_v27 = vadd.f32 %v9595_v4, %v1687_v25  ;;  %v1689_v28 = vpop.f32.mrb[54].mxu0  ;;  %7541 = vmatprep.mubr.msk.bf16.mxu1 %vm3008_vm6, %v2743_v20 }
 0x348   :  { %v2260_v29 = vadd.f32 %v9592_v2, %v1689_v28  ;;  %v1691_v30 = vpop.f32.mrb[55].mxu0  ;;  %3361 = vmatmul.mubr.bf16.gmra.mrb[36].mxu1 %v2742_v19  ;;  %v2514_v32 = vmax.f32 %v2258_v24, 0.0  ;;  %v212_v24 = vpack.c.bf16 %v128_v16, %v127_v15  ;;  %v133_v15 = vld [vmem:[%s12306_s0 + $0x2e0] sm:$0xff]  ;;  %v134_v16 = vld [vmem:[%s12306_s0 + $0x2e8] sm:$0xff] }
 0x349   :  { %v2261_v31 = vadd.f32 %v9595_v4, %v1691_v30  ;;  %v2515_v34 = vmax.f32 %v2259_v27, 0.0 }
 0x34a   :  { %v2516_v33 = vmax.f32 %v2260_v29, 0.0  ;;  %7478 = vmatmul.mubr.msk.bf16.gmra.mrb[160].mxu0 %vm1321_vm4, %v209_v26 }
 0x34b   :  { %v2517_v35 = vmax.f32 %v2261_v31, 0.0  ;;  %1963 = vmatprep.mubr.bf16.mxu0 %v8693_v3 }
 0x34c   :  { %v2744_v38 = vpack.c.bf16 %v2516_v33, %v2514_v32 }
 0x34d   :  { %v2745_v41 = vpack.c.bf16 %v2517_v35, %v2515_v34  ;;  %v1695_v42 = vpop.f32.mrb[56].mxu0  ;;  %v129_v34 = vld [vmem:[%s12306_s0 + $0x2c0] sm:$0xff]  ;;  %v130_v35 = vld [vmem:[%s12306_s0 + $0x2c8] sm:$0xff] }
 0x34e   :  { %v2262_v43 = vadd.f32 %v9592_v2, %v1695_v42  ;;  %v1697_v44 = vpop.f32.mrb[57].mxu0  ;;  %v8158_v42 = vld [vmem:[%s12307_s7 + $0x64] ss:$8 sps:$4 sm:$0xff]  }
 0x34f   :  { %v2263_v46 = vadd.f32 %v9595_v4, %v1697_v44  ;;  %v1699_v47 = vpop.f32.mrb[58].mxu0  ;;  %7542 = vmatprep.mubr.msk.bf16.mxu1 %vm3008_vm6, %v2745_v41  ;;  %v8156_v41 = vld [vmem:[%s12307_s7 + $0x60] ss:$8 sps:$4 sm:$0xff]   ;;  %4637 = vmatprep.subr.bf16.mxu1 %v8158_v42 }
 0x350   :  { %v2264_v48 = vadd.f32 %v9592_v2, %v1699_v47  ;;  %v1701_v49 = vpop.f32.mrb[59].mxu0  ;;  %3371 = vmatmul.mubr.bf16.gmra.mrb[40].mxu1 %v2744_v38  ;;  %v2518_v51 = vmax.f32 %v2262_v43, 0.0 }
 0x351   :  { %v2265_v50 = vadd.f32 %v9595_v4, %v1701_v49  ;;  %v2519_v53 = vmax.f32 %v2263_v46, 0.0  ;;  %4638 = vmatpush1.bf16.msra.mxu1 %v8156_v41 }
 0x352   :  { %v2520_v52 = vmax.f32 %v2264_v48, 0.0  ;;  %7479 = vmatmul.mubr.msk.bf16.gmra.mrb[164].mxu0 %vm1321_vm4, %v210_v45  ;;  %v213_v45 = vpack.c.bf16 %v130_v35, %v129_v34  ;;  %v135_v34 = vld [vmem:[%s12306_s0 + $0x2f0] sm:$0xff]  ;;  %v136_v35 = vld [vmem:[%s12306_s0 + $0x2f8] sm:$0xff] }
 0x353   :  { %v2521_v54 = vmax.f32 %v2265_v50, 0.0  ;;  %1973 = vmatprep.mubr.bf16.mxu0 %v8693_v3 }
 0x354   :  { %v2746_v59 = vpack.c.bf16 %v2520_v52, %v2518_v51 }
 0x355   :  { %v2747_v60 = vpack.c.bf16 %v2521_v54, %v2519_v53  ;;  %v1705_v61 = vpop.f32.mrb[60].mxu0 }
 0x356   :  { %v2266_v62 = vadd.f32 %v9592_v2, %v1705_v61  ;;  %v1707_v0 = vpop.f32.mrb[61].mxu0 }
 0x357   :  { %v2267_v6 = vadd.f32 %v9595_v4, %v1707_v0  ;;  %v1709_v7 = vpop.f32.mrb[62].mxu0  ;;  %7543 = vmatprep.mubr.msk.bf16.mxu1 %vm3008_vm6, %v2747_v60 }
 0x358   :  { %v2268_v8 = vadd.f32 %v9592_v2, %v1709_v7  ;;  %v1711_v9 = vpop.f32.mrb[63].mxu0  ;;  %3381 = vmatmul.mubr.bf16.gmra.mrb[44].mxu1 %v2746_v59  ;;  %v2522_v11 = vmax.f32 %v2266_v62, 0.0 }
 0x359   :  { %v2269_v10 = vadd.f32 %v9595_v4, %v1711_v9  ;;  %v2523_v13 = vmax.f32 %v2267_v6, 0.0 }
 0x35a   :  { %v2524_v12 = vmax.f32 %v2268_v8, 0.0  ;;  %7480 = vmatmul.mubr.msk.bf16.gmra.mrb[168].mxu0 %vm1321_vm4, %v211_v5  ;;  %v214_v5 = vpack.c.bf16 %v132_v58, %v131_v55 }
 0x35b   :  { %v2525_v14 = vmax.f32 %v2269_v10, 0.0  ;;  %1983 = vmatprep.mubr.bf16.mxu0 %v8693_v3 }
 0x35c   :  { %v2748_v17 = vpack.c.bf16 %v2524_v12, %v2522_v11 }
 0x35d   :  { %v2749_v18 = vpack.c.bf16 %v2525_v14, %v2523_v13  ;;  %v1715_v19 = vpop.f32.mrb[64].mxu0 }
 0x35e   :  { %v2270_v20 = vadd.f32 %v9592_v2, %v1715_v19  ;;  %v1717_v21 = vpop.f32.mrb[65].mxu0 }
 0x35f   :  { %v2271_v25 = vadd.f32 %v9595_v4, %v1717_v21  ;;  %v1719_v26 = vpop.f32.mrb[66].mxu0  ;;  %7544 = vmatprep.mubr.msk.bf16.mxu1 %vm3008_vm6, %v2749_v18 }
 0x360   :  { %v2272_v27 = vadd.f32 %v9592_v2, %v1719_v26  ;;  %v1721_v28 = vpop.f32.mrb[67].mxu0  ;;  %3391 = vmatmul.mubr.bf16.gmra.mrb[48].mxu1 %v2748_v17  ;;  %v2526_v30 = vmax.f32 %v2270_v20, 0.0 }
 0x361   :  { %v2273_v29 = vadd.f32 %v9595_v4, %v1721_v28  ;;  %v2527_v32 = vmax.f32 %v2271_v25, 0.0 }
 0x362   :  { %v2528_v31 = vmax.f32 %v2272_v27, 0.0  ;;  %7481 = vmatmul.mubr.msk.bf16.gmra.mrb[172].mxu0 %vm1321_vm4, %v212_v24  ;;  %v215_v24 = vpack.c.bf16 %v134_v16, %v133_v15  ;;  %v8159_v16 = vld [vmem:[%s12307_s7 + $0x70] ss:$8 sps:$4 sm:$0xff]  }
 0x363   :  { %v2529_v33 = vmax.f32 %v2273_v29, 0.0  ;;  %1993 = vmatprep.mubr.bf16.mxu0 %v8693_v3 }
 0x364   :  { %v2750_v36 = vpack.c.bf16 %v2528_v31, %v2526_v30 }
 0x365   :  { %v2751_v37 = vpack.c.bf16 %v2529_v33, %v2527_v32  ;;  %v1725_v38 = vpop.f32.mrb[68].mxu0 }
 0x366   :  { %v2274_v43 = vadd.f32 %v9592_v2, %v1725_v38  ;;  %v1727_v44 = vpop.f32.mrb[69].mxu0 }
 0x367   :  { %v2275_v46 = vadd.f32 %v9595_v4, %v1727_v44  ;;  %v1729_v47 = vpop.f32.mrb[70].mxu0  ;;  %7545 = vmatprep.mubr.msk.bf16.mxu1 %vm3008_vm6, %v2751_v37 }
 0x368   :  { %v2276_v48 = vadd.f32 %v9592_v2, %v1729_v47  ;;  %v1731_v49 = vpop.f32.mrb[71].mxu0  ;;  %3401 = vmatmul.mubr.bf16.gmra.mrb[52].mxu1 %v2750_v36  ;;  %v2530_v51 = vmax.f32 %v2274_v43, 0.0  ;;  %v216_v43 = vpack.c.bf16 %v136_v35, %v135_v34  ;;  %v141_v34 = vld [vmem:[%s12306_s0 + $0x320] sm:$0xff]  ;;  %v142_v35 = vld [vmem:[%s12306_s0 + $0x328] sm:$0xff] }
 0x369   :  { %v2277_v50 = vadd.f32 %v9595_v4, %v1731_v49  ;;  %v2531_v53 = vmax.f32 %v2275_v46, 0.0 }
 0x36a   :  { %v2532_v52 = vmax.f32 %v2276_v48, 0.0  ;;  %7482 = vmatmul.mubr.msk.bf16.gmra.mrb[176].mxu0 %vm1321_vm4, %v213_v45 }
 0x36b   :  { %v2533_v54 = vmax.f32 %v2277_v50, 0.0  ;;  %2003 = vmatprep.mubr.bf16.mxu0 %v8693_v3 }
 0x36c   :  { %v2752_v59 = vpack.c.bf16 %v2532_v52, %v2530_v51 }
 0x36d   :  { %v2753_v60 = vpack.c.bf16 %v2533_v54, %v2531_v53  ;;  %v1735_v61 = vpop.f32.mrb[72].mxu0  ;;  %v137_v53 = vld [vmem:[%s12306_s0 + $0x300] sm:$0xff]  ;;  %v138_v54 = vld [vmem:[%s12306_s0 + $0x308] sm:$0xff] }
 0x36e   :  { %v2278_v62 = vadd.f32 %v9592_v2, %v1735_v61  ;;  %v1737_v0 = vpop.f32.mrb[73].mxu0 }
 0x36f   :  { %v2279_v6 = vadd.f32 %v9595_v4, %v1737_v0  ;;  %v1739_v7 = vpop.f32.mrb[74].mxu0  ;;  %7546 = vmatprep.mubr.msk.bf16.mxu1 %vm3008_vm6, %v2753_v60 }
 0x370   :  { %v2280_v8 = vadd.f32 %v9592_v2, %v1739_v7  ;;  %v1741_v9 = vpop.f32.mrb[75].mxu0  ;;  %3411 = vmatmul.mubr.bf16.gmra.mrb[56].mxu1 %v2752_v59  ;;  %v2534_v11 = vmax.f32 %v2278_v62, 0.0  ;;  %v217_v62 = vpack.c.bf16 %v138_v54, %v137_v53  ;;  %v143_v53 = vld [vmem:[%s12306_s0 + $0x330] sm:$0xff]  ;;  %v144_v54 = vld [vmem:[%s12306_s0 + $0x338] sm:$0xff] }
 0x371   :  { %v2281_v10 = vadd.f32 %v9595_v4, %v1741_v9  ;;  %v2535_v13 = vmax.f32 %v2279_v6, 0.0 }
 0x372   :  { %v2536_v12 = vmax.f32 %v2280_v8, 0.0  ;;  %7483 = vmatmul.mubr.msk.bf16.gmra.mrb[180].mxu0 %vm1321_vm4, %v214_v5 }
 0x373   :  { %v2537_v14 = vmax.f32 %v2281_v10, 0.0  ;;  %2013 = vmatprep.mubr.bf16.mxu0 %v8693_v3 }
 0x374   :  { %v2754_v17 = vpack.c.bf16 %v2536_v12, %v2534_v11 }
 0x375   :  { %v2755_v18 = vpack.c.bf16 %v2537_v14, %v2535_v13  ;;  %v1745_v19 = vpop.f32.mrb[76].mxu0  ;;  %v139_v13 = vld [vmem:[%s12306_s0 + $0x310] sm:$0xff]  ;;  %v140_v14 = vld [vmem:[%s12306_s0 + $0x318] sm:$0xff] }
 0x376   :  { %v2282_v20 = vadd.f32 %v9592_v2, %v1745_v19  ;;  %v1747_v21 = vpop.f32.mrb[77].mxu0 }
 0x377   :  { %v2283_v25 = vadd.f32 %v9595_v4, %v1747_v21  ;;  %v1749_v26 = vpop.f32.mrb[78].mxu0  ;;  %7547 = vmatprep.mubr.msk.bf16.mxu1 %vm3008_vm6, %v2755_v18 }
 0x378   :  { %v2284_v27 = vadd.f32 %v9592_v2, %v1749_v26  ;;  %v1751_v28 = vpop.f32.mrb[79].mxu0  ;;  %3421 = vmatmul.mubr.bf16.gmra.mrb[60].mxu1 %v2754_v17  ;;  %v2538_v30 = vmax.f32 %v2282_v20, 0.0  ;;  %v8161_v17 = vld [vmem:[%s12307_s7 + $0x74] ss:$8 sps:$4 sm:$0xff]  }
 0x379   :  { %v2285_v29 = vadd.f32 %v9595_v4, %v1751_v28  ;;  %v2539_v32 = vmax.f32 %v2283_v25, 0.0  ;;  %4639 = vmatprep.subr.bf16.mxu1 %v8161_v17 }
 0x37a   :  { %v2540_v31 = vmax.f32 %v2284_v27, 0.0  ;;  %7484 = vmatmul.mubr.msk.bf16.gmra.mrb[184].mxu0 %vm1321_vm4, %v215_v24  ;;  %v218_v24 = vpack.c.bf16 %v140_v14, %v139_v13  ;;  %4640 = vmatpush1.bf16.msra.mxu1 %v8159_v16  ;;  %v145_v13 = vld [vmem:[%s12306_s0 + $0x340] sm:$0xff]  ;;  %v146_v14 = vld [vmem:[%s12306_s0 + $0x348] sm:$0xff] }
 0x37b   :  { %v2541_v33 = vmax.f32 %v2285_v29, 0.0  ;;  %2023 = vmatprep.mubr.bf16.mxu0 %v8693_v3 }
 0x37c   :  { %v2756_v36 = vpack.c.bf16 %v2540_v31, %v2538_v30 }
 0x37d   :  { %v2757_v37 = vpack.c.bf16 %v2541_v33, %v2539_v32  ;;  %v1755_v38 = vpop.f32.mrb[80].mxu0 }
 0x37e   :  { %v2286_v41 = vadd.f32 %v9592_v2, %v1755_v38  ;;  %v1757_v42 = vpop.f32.mrb[81].mxu0 }
 0x37f   :  { %v2287_v44 = vadd.f32 %v9595_v4, %v1757_v42  ;;  %v1759_v45 = vpop.f32.mrb[82].mxu0  ;;  %7548 = vmatprep.mubr.msk.bf16.mxu1 %vm3008_vm6, %v2757_v37 }
 0x380   :  { %v2288_v46 = vadd.f32 %v9592_v2, %v1759_v45  ;;  %v1761_v47 = vpop.f32.mrb[83].mxu0  ;;  %3431 = vmatmul.mubr.bf16.gmra.mrb[64].mxu1 %v2756_v36  ;;  %v2542_v49 = vmax.f32 %v2286_v41, 0.0 }
 0x381   :  { %v2289_v48 = vadd.f32 %v9595_v4, %v1761_v47  ;;  %v2543_v51 = vmax.f32 %v2287_v44, 0.0 }
 0x382   :  { %v2544_v50 = vmax.f32 %v2288_v46, 0.0  ;;  %7485 = vmatmul.mubr.msk.bf16.gmra.mrb[188].mxu0 %vm1321_vm4, %v216_v43  ;;  %v219_v43 = vpack.c.bf16 %v142_v35, %v141_v34 }
 0x383   :  { %v2545_v52 = vmax.f32 %v2289_v48, 0.0  ;;  %2033 = vmatprep.mubr.bf16.mxu0 %v8693_v3 }
 0x384   :  { %v2758_v55 = vpack.c.bf16 %v2544_v50, %v2542_v49 }
 0x385   :  { %v2759_v58 = vpack.c.bf16 %v2545_v52, %v2543_v51  ;;  %v1765_v59 = vpop.f32.mrb[84].mxu0 }
 0x386   :  { %v2290_v60 = vadd.f32 %v9592_v2, %v1765_v59  ;;  %v1767_v61 = vpop.f32.mrb[85].mxu0 }
 0x387   :  { %v2291_v0 = vadd.f32 %v9595_v4, %v1767_v61  ;;  %v1769_v5 = vpop.f32.mrb[86].mxu0  ;;  %7549 = vmatprep.mubr.msk.bf16.mxu1 %vm3008_vm6, %v2759_v58 }
 0x388   :  { %v2292_v6 = vadd.f32 %v9592_v2, %v1769_v5  ;;  %v1771_v7 = vpop.f32.mrb[87].mxu0  ;;  %3441 = vmatmul.mubr.bf16.gmra.mrb[68].mxu1 %v2758_v55  ;;  %v2546_v9 = vmax.f32 %v2290_v60, 0.0 }
 0x389   :  { %v2293_v8 = vadd.f32 %v9595_v4, %v1771_v7  ;;  %v2547_v11 = vmax.f32 %v2291_v0, 0.0 }
 0x38a   :  { %v2548_v10 = vmax.f32 %v2292_v6, 0.0  ;;  %7486 = vmatmul.mubr.msk.bf16.gmra.mrb[192].mxu0 %vm1321_vm4, %v217_v62  ;;  %v220_v62 = vpack.c.bf16 %v144_v54, %v143_v53  ;;  %v149_v53 = vld [vmem:[%s12306_s0 + $0x360] sm:$0xff]  ;;  %v150_v54 = vld [vmem:[%s12306_s0 + $0x368] sm:$0xff] }
 0x38b   :  { %v2549_v12 = vmax.f32 %v2293_v8, 0.0  ;;  %2043 = vmatprep.mubr.bf16.mxu0 %v8693_v3 }
 0x38c   :  { %v2760_v15 = vpack.c.bf16 %v2548_v10, %v2546_v9 }
 0x38d   :  { %v2761_v18 = vpack.c.bf16 %v2549_v12, %v2547_v11  ;;  %v1775_v19 = vpop.f32.mrb[88].mxu0 }
 0x38e   :  { %v2294_v20 = vadd.f32 %v9592_v2, %v1775_v19  ;;  %v1777_v21 = vpop.f32.mrb[89].mxu0 }
 0x38f   :  { %v2295_v25 = vadd.f32 %v9595_v4, %v1777_v21  ;;  %v1779_v26 = vpop.f32.mrb[90].mxu0  ;;  %7550 = vmatprep.mubr.msk.bf16.mxu1 %vm3008_vm6, %v2761_v18 }
 0x390   :  { %v2296_v27 = vadd.f32 %v9592_v2, %v1779_v26  ;;  %v1781_v28 = vpop.f32.mrb[91].mxu0  ;;  %3451 = vmatmul.mubr.bf16.gmra.mrb[72].mxu1 %v2760_v15  ;;  %v2550_v30 = vmax.f32 %v2294_v20, 0.0  ;;  %v221_v20 = vpack.c.bf16 %v146_v14, %v145_v13  ;;  %v151_v13 = vld [vmem:[%s12306_s0 + $0x370] sm:$0xff]  ;;  %v152_v14 = vld [vmem:[%s12306_s0 + $0x378] sm:$0xff] }
 0x391   :  { %v2297_v29 = vadd.f32 %v9595_v4, %v1781_v28  ;;  %v2551_v32 = vmax.f32 %v2295_v25, 0.0 }
 0x392   :  { %v2552_v31 = vmax.f32 %v2296_v27, 0.0  ;;  %7487 = vmatmul.mubr.msk.bf16.gmra.mrb[196].mxu0 %vm1321_vm4, %v218_v24 }
 0x393   :  { %v2553_v33 = vmax.f32 %v2297_v29, 0.0  ;;  %2053 = vmatprep.mubr.bf16.mxu0 %v8693_v3 }
 0x394   :  { %v2762_v36 = vpack.c.bf16 %v2552_v31, %v2550_v30 }
 0x395   :  { %v2763_v37 = vpack.c.bf16 %v2553_v33, %v2551_v32  ;;  %v1785_v38 = vpop.f32.mrb[92].mxu0  ;;  %v147_v32 = vld [vmem:[%s12306_s0 + $0x350] sm:$0xff]  ;;  %v148_v33 = vld [vmem:[%s12306_s0 + $0x358] sm:$0xff] }
 0x396   :  { %v2298_v41 = vadd.f32 %v9592_v2, %v1785_v38  ;;  %v1787_v42 = vpop.f32.mrb[93].mxu0 }
 0x397   :  { %v2299_v44 = vadd.f32 %v9595_v4, %v1787_v42  ;;  %v1789_v45 = vpop.f32.mrb[94].mxu0  ;;  %7551 = vmatprep.mubr.msk.bf16.mxu1 %vm3008_vm6, %v2763_v37 }
 0x398   :  { %v2300_v46 = vadd.f32 %v9592_v2, %v1789_v45  ;;  %v1791_v47 = vpop.f32.mrb[95].mxu0  ;;  %3461 = vmatmul.mubr.bf16.gmra.mrb[76].mxu1 %v2762_v36  ;;  %v2554_v49 = vmax.f32 %v2298_v41, 0.0  ;;  %v222_v41 = vpack.c.bf16 %v148_v33, %v147_v32  ;;  %v153_v32 = vld [vmem:[%s12306_s0 + $0x380] sm:$0xff]  ;;  %v154_v33 = vld [vmem:[%s12306_s0 + $0x388] sm:$0xff] }
 0x399   :  { %v2301_v48 = vadd.f32 %v9595_v4, %v1791_v47  ;;  %v2555_v51 = vmax.f32 %v2299_v44, 0.0 }
 0x39a   :  { %v2556_v50 = vmax.f32 %v2300_v46, 0.0  ;;  %7488 = vmatmul.mubr.msk.bf16.gmra.mrb[200].mxu0 %vm1321_vm4, %v219_v43 }
 0x39b   :  { %v2557_v52 = vmax.f32 %v2301_v48, 0.0  ;;  %2063 = vmatprep.mubr.bf16.mxu0 %v8693_v3 }
 0x39c   :  { %v2764_v55 = vpack.c.bf16 %v2556_v50, %v2554_v49  ;;  %v8162_v49 = vld [vmem:[%s12307_s7 + $0x80] ss:$8 sps:$4 sm:$0xff]   ;;  %v8164_v50 = vld [vmem:[%s12307_s7 + $0x84] ss:$8 sps:$4 sm:$0xff]  }
 0x39d   :  { %v2765_v58 = vpack.c.bf16 %v2557_v52, %v2555_v51  ;;  %v1795_v59 = vpop.f32.mrb[96].mxu0  ;;  %4641 = vmatprep.subr.bf16.mxu1 %v8164_v50 }
 0x39e   :  { %v2302_v60 = vadd.f32 %v9592_v2, %v1795_v59  ;;  %v1797_v61 = vpop.f32.mrb[97].mxu0  ;;  %4642 = vmatpush1.bf16.msra.mxu1 %v8162_v49 }
 0x39f   :  { %v2303_v0 = vadd.f32 %v9595_v4, %v1797_v61  ;;  %v1799_v5 = vpop.f32.mrb[98].mxu0  ;;  %7552 = vmatprep.mubr.msk.bf16.mxu1 %vm3008_vm6, %v2765_v58 }
 0x3a0   :  { %v2304_v6 = vadd.f32 %v9592_v2, %v1799_v5  ;;  %v1801_v7 = vpop.f32.mrb[99].mxu0  ;;  %3471 = vmatmul.mubr.bf16.gmra.mrb[80].mxu1 %v2764_v55  ;;  %v2558_v9 = vmax.f32 %v2302_v60, 0.0 }
 0x3a1   :  { %v2305_v8 = vadd.f32 %v9595_v4, %v1801_v7  ;;  %v2559_v11 = vmax.f32 %v2303_v0, 0.0 }
 0x3a2   :  { %v2560_v10 = vmax.f32 %v2304_v6, 0.0  ;;  %7489 = vmatmul.mubr.msk.bf16.gmra.mrb[204].mxu0 %vm1321_vm4, %v220_v62  ;;  %v223_v62 = vpack.c.bf16 %v150_v54, %v149_v53 }
 0x3a3   :  { %v2561_v12 = vmax.f32 %v2305_v8, 0.0  ;;  %2073 = vmatprep.mubr.bf16.mxu0 %v8693_v3 }
 0x3a4   :  { %v2766_v15 = vpack.c.bf16 %v2560_v10, %v2558_v9 }
 0x3a5   :  { %v2767_v16 = vpack.c.bf16 %v2561_v12, %v2559_v11  ;;  %v1805_v17 = vpop.f32.mrb[100].mxu0 }
 0x3a6   :  { %v2306_v18 = vadd.f32 %v9592_v2, %v1805_v17  ;;  %v1807_v19 = vpop.f32.mrb[101].mxu0 }
 0x3a7   :  { %v2307_v21 = vadd.f32 %v9595_v4, %v1807_v19  ;;  %v1809_v24 = vpop.f32.mrb[102].mxu0  ;;  %7553 = vmatprep.mubr.msk.bf16.mxu1 %vm3008_vm6, %v2767_v16 }
 0x3a8   :  { %v2308_v25 = vadd.f32 %v9592_v2, %v1809_v24  ;;  %v1811_v26 = vpop.f32.mrb[103].mxu0  ;;  %3481 = vmatmul.mubr.bf16.gmra.mrb[84].mxu1 %v2766_v15  ;;  %v2562_v28 = vmax.f32 %v2306_v18, 0.0 }
 0x3a9   :  { %v2309_v27 = vadd.f32 %v9595_v4, %v1811_v26  ;;  %v2563_v30 = vmax.f32 %v2307_v21, 0.0 }
 0x3aa   :  { %v2564_v29 = vmax.f32 %v2308_v25, 0.0  ;;  %7490 = vmatmul.mubr.msk.bf16.gmra.mrb[208].mxu0 %vm1321_vm4, %v221_v20  ;;  %v224_v20 = vpack.c.bf16 %v152_v14, %v151_v13 }
 0x3ab   :  { %v2565_v31 = vmax.f32 %v2309_v27, 0.0  ;;  %2083 = vmatprep.mubr.bf16.mxu0 %v8693_v3 }
 0x3ac   :  { %v2768_v34 = vpack.c.bf16 %v2564_v29, %v2562_v28 }
 0x3ad   :  { %v2769_v35 = vpack.c.bf16 %v2565_v31, %v2563_v30  ;;  %v1815_v36 = vpop.f32.mrb[104].mxu0 }
 0x3ae   :  { %v2310_v37 = vadd.f32 %v9592_v2, %v1815_v36  ;;  %v1817_v38 = vpop.f32.mrb[105].mxu0 }
 0x3af   :  { %v2311_v42 = vadd.f32 %v9595_v4, %v1817_v38  ;;  %v1819_v43 = vpop.f32.mrb[106].mxu0  ;;  %7554 = vmatprep.mubr.msk.bf16.mxu1 %vm3008_vm6, %v2769_v35 }
 0x3b0   :  { %v2312_v44 = vadd.f32 %v9592_v2, %v1819_v43  ;;  %v1821_v45 = vpop.f32.mrb[107].mxu0  ;;  %3491 = vmatmul.mubr.bf16.gmra.mrb[88].mxu1 %v2768_v34  ;;  %v2566_v47 = vmax.f32 %v2310_v37, 0.0 }
 0x3b1   :  { %v2313_v46 = vadd.f32 %v9595_v4, %v1821_v45  ;;  %v2567_v51 = vmax.f32 %v2311_v42, 0.0 }
 0x3b2   :  { %v2568_v48 = vmax.f32 %v2312_v44, 0.0  ;;  %7491 = vmatmul.mubr.msk.bf16.gmra.mrb[212].mxu0 %vm1321_vm4, %v222_v41  ;;  %v225_v41 = vpack.c.bf16 %v154_v33, %v153_v32 }
 0x3b3   :  { %v2569_v52 = vmax.f32 %v2313_v46, 0.0  ;;  %2093 = vmatprep.mubr.bf16.mxu0 %v8693_v3 }
 0x3b4   :  { %v2770_v55 = vpack.c.bf16 %v2568_v48, %v2566_v47 }
 0x3b5   :  { %v2771_v58 = vpack.c.bf16 %v2569_v52, %v2567_v51  ;;  %v1825_v59 = vpop.f32.mrb[108].mxu0  ;;  %v155_v51 = vld [vmem:[%s12306_s0 + $0x390] sm:$0xff]  ;;  %v156_v52 = vld [vmem:[%s12306_s0 + $0x398] sm:$0xff] }
 0x3b6   :  { %v2314_v60 = vadd.f32 %v9592_v2, %v1825_v59  ;;  %v1827_v61 = vpop.f32.mrb[109].mxu0 }
 0x3b7   :  { %v2315_v0 = vadd.f32 %v9595_v4, %v1827_v61  ;;  %v1829_v5 = vpop.f32.mrb[110].mxu0  ;;  %7555 = vmatprep.mubr.msk.bf16.mxu1 %vm3008_vm6, %v2771_v58  ;;  %v2871_v58 = vld [vmem:[%s12309_s6] sm:$0x3]  ;;  %v226_v61 = vpack.c.bf16 %v156_v52, %v155_v51  ;;  %v159_v52 = vld [vmem:[%s12306_s0 + $0x3b0] sm:$0xff] }
 0x3b8   :  { %v2316_v6 = vadd.f32 %v9592_v2, %v1829_v5  ;;  %v1831_v7 = vpop.f32.mrb[111].mxu0  ;;  %3501 = vmatmul.mubr.bf16.gmra.mrb[92].mxu1 %v2770_v55  ;;  %v2570_v9 = vmax.f32 %v2314_v60, 0.0 }
 0x3b9   :  { %v2317_v8 = vadd.f32 %v9595_v4, %v1831_v7  ;;  %v2571_v11 = vmax.f32 %v2315_v0, 0.0  ;;  %v10061_v7 = vrot.slane %v2871_v58, %v9583_v63 }
 0x3ba   :  { %v2572_v10 = vmax.f32 %v2316_v6, 0.0  ;;  %7492 = vmatmul.mubr.msk.bf16.gmra.mrb[216].mxu0 %vm1321_vm4, %v223_v62 }
 0x3bb   :  { %v2573_v12 = vmax.f32 %v2317_v8, 0.0  ;;  %2103 = vmatprep.mubr.bf16.mxu0 %v8693_v3 }
 0x3bc   :  { %v2772_v15 = vpack.c.bf16 %v2572_v10, %v2570_v9  ;;  %v10065_v9 = vrot.slane %v2871_v58, %v9588_v1 }
 0x3bd   :  { %v2773_v16 = vpack.c.bf16 %v2573_v12, %v2571_v11  ;;  %v1835_v17 = vpop.f32.mrb[112].mxu0 }
 0x3be   :  { %v2318_v18 = vadd.f32 %v9592_v2, %v1835_v17  ;;  %v1837_v19 = vpop.f32.mrb[113].mxu0 }
 0x3bf   :  { %v2319_v21 = vadd.f32 %v9595_v4, %v1837_v19  ;;  %v1839_v24 = vpop.f32.mrb[114].mxu0  ;;  %7556 = vmatprep.mubr.msk.bf16.mxu1 %vm3008_vm6, %v2773_v16  ;;  %v158_v16 = vld [vmem:[%s12306_s0 + $0x3a8] sm:$0xff] }
 0x3c0   :  { %v2320_v25 = vadd.f32 %v9592_v2, %v1839_v24  ;;  %v1841_v26 = vpop.f32.mrb[115].mxu0  ;;  %3511 = vmatmul.mubr.bf16.gmra.mrb[96].mxu1 %v2772_v15  ;;  %v2574_v28 = vmax.f32 %v2318_v18, 0.0  ;;  %v157_v15 = vld [vmem:[%s12306_s0 + $0x3a0] sm:$0xff] }
 0x3c1   :  { %v2321_v27 = vadd.f32 %v9595_v4, %v1841_v26  ;;  %v2575_v30 = vmax.f32 %v2319_v21, 0.0  ;;  %v8165_v26 = vld [vmem:[%s12307_s7 + $0x90] ss:$8 sps:$4 sm:$0xff]   ;;  %v227_v32 = vpack.c.bf16 %v158_v16, %v157_v15 }
 0x3c2   :  { %v2576_v29 = vmax.f32 %v2320_v25, 0.0  ;;  %7493 = vmatmul.mubr.msk.bf16.gmra.mrb[220].mxu0 %vm1321_vm4, %v224_v20 }
 0x3c3   :  { %v2577_v31 = vmax.f32 %v2321_v27, 0.0  ;;  %2113 = vmatprep.mubr.bf16.mxu0 %v8693_v3  ;;  %v8167_v27 = vld [vmem:[%s12307_s7 + $0x94] ss:$8 sps:$4 sm:$0xff]  }
 0x3c4   :  { %v2774_v34 = vpack.c.bf16 %v2576_v29, %v2574_v28  ;;  %4643 = vmatprep.subr.bf16.mxu1 %v8167_v27 }
 0x3c5   :  { %v2775_v35 = vpack.c.bf16 %v2577_v31, %v2575_v30  ;;  %v1845_v36 = vpop.f32.mrb[116].mxu0  ;;  %4644 = vmatpush1.bf16.msra.mxu1 %v8165_v26 }
 0x3c6   :  { %v2322_v37 = vadd.f32 %v9592_v2, %v1845_v36  ;;  %v1847_v38 = vpop.f32.mrb[117].mxu0 }
 0x3c7   :  { %v2323_v42 = vadd.f32 %v9595_v4, %v1847_v38  ;;  %v1849_v43 = vpop.f32.mrb[118].mxu0  ;;  %7557 = vmatprep.mubr.msk.bf16.mxu1 %vm3008_vm6, %v2775_v35 }
 0x3c8   :  { %v2324_v44 = vadd.f32 %v9592_v2, %v1849_v43  ;;  %v1851_v45 = vpop.f32.mrb[119].mxu0  ;;  %3521 = vmatmul.mubr.bf16.gmra.mrb[100].mxu1 %v2774_v34  ;;  %v2578_v47 = vmax.f32 %v2322_v37, 0.0 }
 0x3c9   :  { %v2325_v46 = vadd.f32 %v9595_v4, %v1851_v45  ;;  %v2579_v49 = vmax.f32 %v2323_v42, 0.0 }
 0x3ca   :  { %v2580_v48 = vmax.f32 %v2324_v44, 0.0  ;;  %7494 = vmatmul.mubr.msk.bf16.gmra.mrb[224].mxu0 %vm1321_vm4, %v225_v41 }
 0x3cb   :  { %v2581_v50 = vmax.f32 %v2325_v46, 0.0  ;;  %2123 = vmatprep.mubr.bf16.mxu0 %v8693_v3 }
 0x3cc   :  { %v2776_v53 = vpack.c.bf16 %v2580_v48, %v2578_v47 }
 0x3cd   :  { %v2777_v54 = vpack.c.bf16 %v2581_v50, %v2579_v49  ;;  %v1855_v55 = vpop.f32.mrb[120].mxu0 }
 0x3ce   :  { %v2326_v59 = vadd.f32 %v9592_v2, %v1855_v55  ;;  %v1857_v60 = vpop.f32.mrb[121].mxu0 }
 0x3cf   :  { %v2327_v62 = vadd.f32 %v9595_v4, %v1857_v60  ;;  %v1859_v0 = vpop.f32.mrb[122].mxu0  ;;  %7558 = vmatprep.mubr.msk.bf16.mxu1 %vm3008_vm6, %v2777_v54 }
 0x3d0   :  { %v2328_v5 = vadd.f32 %v9592_v2, %v1859_v0  ;;  %v1861_v6 = vpop.f32.mrb[123].mxu0  ;;  %3531 = vmatmul.mubr.bf16.gmra.mrb[104].mxu1 %v2776_v53  ;;  %v2582_v10 = vmax.f32 %v2326_v59, 0.0  ;;  %v160_v53 = vld [vmem:[%s12306_s0 + $0x3b8] sm:$0xff] }
 0x3d1   :  { %v2329_v8 = vadd.f32 %v9595_v4, %v1861_v6  ;;  %v2583_v12 = vmax.f32 %v2327_v62, 0.0 }
 0x3d2   :  { %v2584_v11 = vmax.f32 %v2328_v5, 0.0  ;;  %7495 = vmatmul.mubr.msk.bf16.gmra.mrb[228].mxu0 %vm1321_vm4, %v226_v61 }
 0x3d3   :  { %v2585_v13 = vmax.f32 %v2329_v8, 0.0  ;;  %v3272_v14 = vpop.f32.mrb[0].mxu1  ;;  %2133 = vmatprep.mubr.bf16.mxu0 %v8693_v3 }
 0x3d4   :  { %v2778_v17 = vpack.c.bf16 %v2584_v11, %v2582_v10  ;;  %v3273_v18 = vadd.f32 %v3272_v14, %v10061_v7  ;;  %v3274_v19 = vpop.f32.mrb[1].mxu1  ;;  %v228_v10 = vpack.c.bf16 %v160_v53, %v159_v52 }
 0x3d5   :  { %v2779_v20 = vpack.c.bf16 %v2585_v13, %v2583_v12  ;;  %v3275_v21 = vadd.f32 %v3274_v19, %v10065_v9  ;;  %v1865_v24 = vpop.f32.mrb[124].mxu0  ;;  %v3276_v25 = vpop.f32.mrb[2].mxu1 }
 0x3d6   :  { %v2330_v28 = vadd.f32 %v9592_v2, %v1865_v24  ;;  %v3277_v29 = vadd.f32 %v3276_v25, %v10061_v7  ;;  %v1867_v30 = vpop.f32.mrb[125].mxu0  ;;  %v3278_v31 = vpop.f32.mrb[3].mxu1  ;;  %v3893_v36 = vmax.f32 %v3273_v18, 0.0 }
 0x3d7   :  { %v2331_v33 = vadd.f32 %v9595_v4, %v1867_v30  ;;  %v3279_v34 = vadd.f32 %v3278_v31, %v10065_v9  ;;  %v1869_v35 = vpop.f32.mrb[126].mxu0  ;;  %7559 = vmatprep.mubr.msk.bf16.mxu1 %vm3008_vm6, %v2779_v20  ;;  %v3894_v42 = vmax.f32 %v3275_v21, 0.0  ;;  %v161_v30 = vld [vmem:[%s12306_s0 + $0x3c0] sm:$0xff]  ;;  %v162_v31 = vld [vmem:[%s12306_s0 + $0x3c8] sm:$0xff] }
 0x3d8   :  { %v3895_v37 = vmax.f32 %v3277_v29, 0.0  ;;  %v2332_v38 = vadd.f32 %v9592_v2, %v1869_v35  ;;  %v1871_v41 = vpop.f32.mrb[127].mxu0  ;;  %3541 = vmatmul.mubr.bf16.gmra.mrb[108].mxu1 %v2778_v17  ;;  %v2586_v45 = vmax.f32 %v2330_v28, 0.0 }
 0x3d9   :  { %v3896_v43 = vmax.f32 %v3279_v34, 0.0  ;;  %v2333_v44 = vadd.f32 %v9595_v4, %v1871_v41  ;;  %v2587_v48 = vmax.f32 %v2331_v33, 0.0 }
 0x3da   :  { %v10090_v46 = vpack.c.bf16 %v3895_v37, %v3893_v36  ;;  %v2588_v47 = vmax.f32 %v2332_v38, 0.0  ;;  %7496 = vmatmul.mubr.msk.bf16.gmra.mrb[232].mxu0 %vm1321_vm4, %v227_v32 }
 0x3db   :  { %v10093_v49 = vpack.c.bf16 %v3896_v43, %v3894_v42  ;;  %v2589_v50 = vmax.f32 %v2333_v44, 0.0  ;;  %v3282_v51 = vpop.f32.mrb[4].mxu1  ;;  %2143 = vmatprep.mubr.bf16.mxu0 %v8693_v3 }
 0x3dc   :  { %v2780_v54 = vpack.c.bf16 %v2588_v47, %v2586_v45  ;;  %v3283_v55 = vadd.f32 %v3282_v51, %v10061_v7  ;;  %v3284_v58 = vpop.f32.mrb[5].mxu1  ;;  %v229_v45 = vpack.c.bf16 %v162_v31, %v161_v30 }
 0x3dd   :  { %v2781_v59 = vpack.c.bf16 %v2589_v50, %v2587_v48  ;;  %v3285_v60 = vadd.f32 %v3284_v58, %v10065_v9  ;;  %v1875_v61 = vpop.f32.mrb[128].mxu0  ;;  %v3286_v62 = vpop.f32.mrb[6].mxu1 }
 0x3de   :  { %v2334_v0 = vadd.f32 %v9592_v2, %v1875_v61  ;;  %v3287_v5 = vadd.f32 %v3286_v62, %v10061_v7  ;;  %v1877_v6 = vpop.f32.mrb[129].mxu0  ;;  %v3288_v8 = vpop.f32.mrb[7].mxu1  ;;  %v3897_v14 = vmax.f32 %v3283_v55, 0.0 }
 0x3df   :  { %v2335_v11 = vadd.f32 %v9595_v4, %v1877_v6  ;;  %v3289_v12 = vadd.f32 %v3288_v8, %v10065_v9  ;;  %v1879_v13 = vpop.f32.mrb[130].mxu0  ;;  %7560 = vmatprep.mubr.msk.bf16.mxu1 %vm3008_vm6, %v2781_v59  ;;  %v3898_v18 = vmax.f32 %v3285_v60, 0.0 }
 0x3e0   :  { %v3899_v15 = vmax.f32 %v3287_v5, 0.0  ;;  %v2336_v16 = vadd.f32 %v9592_v2, %v1879_v13  ;;  %v1881_v17 = vpop.f32.mrb[131].mxu0  ;;  %3551 = vmatmul.mubr.bf16.gmra.mrb[112].mxu1 %v2780_v54  ;;  %v2590_v21 = vmax.f32 %v2334_v0, 0.0 }
 0x3e1   :  { %v3900_v19 = vmax.f32 %v3289_v12, 0.0  ;;  %v2337_v20 = vadd.f32 %v9595_v4, %v1881_v17  ;;  %v2591_v26 = vmax.f32 %v2335_v11, 0.0  ;;  %v164_v11 = vld [vmem:[%s12306_s0 + $0x3d8] sm:$0xff] }
 0x3e2   :  { %v10111_v24 = vpack.c.bf16 %v3899_v15, %v3897_v14  ;;  %v2592_v25 = vmax.f32 %v2336_v16, 0.0  ;;  %7497 = vmatmul.mubr.msk.bf16.gmra.mrb[236].mxu0 %vm1321_vm4, %v228_v10  ;;  %v163_v10 = vld [vmem:[%s12306_s0 + $0x3d0] sm:$0xff] }
 0x3e3   :  { %v10114_v27 = vpack.c.bf16 %v3900_v19, %v3898_v18  ;;  %v2593_v28 = vmax.f32 %v2337_v20, 0.0  ;;  %v3292_v29 = vpop.f32.mrb[8].mxu1  ;;  %2153 = vmatprep.mubr.bf16.mxu0 %v8693_v3 }
 0x3e4   :  { %v2782_v32 = vpack.c.bf16 %v2592_v25, %v2590_v21  ;;  %v3293_v33 = vadd.f32 %v3292_v29, %v10061_v7  ;;  %v3294_v34 = vpop.f32.mrb[9].mxu1 }
 0x3e5   :  { %v2783_v35 = vpack.c.bf16 %v2593_v28, %v2591_v26  ;;  %v3295_v36 = vadd.f32 %v3294_v34, %v10065_v9  ;;  %v1885_v37 = vpop.f32.mrb[132].mxu0  ;;  %v3296_v38 = vpop.f32.mrb[10].mxu1  ;;  %v230_v26 = vpack.c.bf16 %v164_v11, %v163_v10 }
 0x3e6   :  { %v2338_v41 = vadd.f32 %v9592_v2, %v1885_v37  ;;  %v3297_v42 = vadd.f32 %v3296_v38, %v10061_v7  ;;  %v1887_v43 = vpop.f32.mrb[133].mxu0  ;;  %v3298_v44 = vpop.f32.mrb[11].mxu1  ;;  %v3901_v51 = vmax.f32 %v3293_v33, 0.0 }
 0x3e7   :  { %v2339_v47 = vadd.f32 %v9595_v4, %v1887_v43  ;;  %v3299_v48 = vadd.f32 %v3298_v44, %v10065_v9  ;;  %v1889_v50 = vpop.f32.mrb[134].mxu0  ;;  %7561 = vmatprep.mubr.msk.bf16.mxu1 %vm3008_vm6, %v2783_v35  ;;  %v3902_v55 = vmax.f32 %v3295_v36, 0.0 }
 0x3e8   :  { %v3903_v52 = vmax.f32 %v3297_v42, 0.0  ;;  %v2340_v53 = vadd.f32 %v9592_v2, %v1889_v50  ;;  %v1891_v54 = vpop.f32.mrb[135].mxu0  ;;  %3561 = vmatmul.mubr.bf16.gmra.mrb[116].mxu1 %v2782_v32  ;;  %v2594_v60 = vmax.f32 %v2338_v41, 0.0  ;;  %v166_v50 = vld [vmem:[%s12306_s0 + $0x3e8] sm:$0xff] }
 0x3e9   :  { %v3904_v58 = vmax.f32 %v3299_v48, 0.0  ;;  %v2341_v59 = vadd.f32 %v9595_v4, %v1891_v54  ;;  %v2595_v0 = vmax.f32 %v2339_v47, 0.0  ;;  %v165_v48 = vld [vmem:[%s12306_s0 + $0x3e0] sm:$0xff] }
 0x3ea   :  { %v10132_v61 = vpack.c.bf16 %v3903_v52, %v3901_v51  ;;  %v2596_v62 = vmax.f32 %v2340_v53, 0.0  ;;  %7498 = vmatmul.mubr.msk.bf16.gmra.mrb[240].mxu0 %vm1321_vm4, %v229_v45 }
 0x3eb   :  { %v10135_v5 = vpack.c.bf16 %v3904_v58, %v3902_v55  ;;  %v2597_v6 = vmax.f32 %v2341_v59, 0.0  ;;  %v3302_v8 = vpop.f32.mrb[12].mxu1  ;;  %2163 = vmatprep.mubr.bf16.mxu0 %v8693_v3 }
 0x3ec   :  { %v2784_v12 = vpack.c.bf16 %v2596_v62, %v2594_v60  ;;  %v3303_v13 = vadd.f32 %v3302_v8, %v10061_v7  ;;  %v3304_v14 = vpop.f32.mrb[13].mxu1  ;;  %v231_v8 = vpack.c.bf16 %v166_v50, %v165_v48 }
 0x3ed   :  { %v2785_v15 = vpack.c.bf16 %v2597_v6, %v2595_v0  ;;  %v3305_v16 = vadd.f32 %v3304_v14, %v10065_v9  ;;  %v1895_v17 = vpop.f32.mrb[136].mxu0  ;;  %v3306_v18 = vpop.f32.mrb[14].mxu1 }
 0x3ee   :  { %v2342_v19 = vadd.f32 %v9592_v2, %v1895_v17  ;;  %v3307_v20 = vadd.f32 %v3306_v18, %v10061_v7  ;;  %v1897_v21 = vpop.f32.mrb[137].mxu0  ;;  %v3308_v25 = vpop.f32.mrb[15].mxu1  ;;  %v3905_v31 = vmax.f32 %v3303_v13, 0.0 }
 0x3ef   :  { %v2343_v28 = vadd.f32 %v9595_v4, %v1897_v21  ;;  %v3309_v29 = vadd.f32 %v3308_v25, %v10065_v9  ;;  %v1899_v30 = vpop.f32.mrb[138].mxu0  ;;  %7562 = vmatprep.mubr.msk.bf16.mxu1 %vm3008_vm6, %v2785_v15  ;;  %v3906_v35 = vmax.f32 %v3305_v16, 0.0 }
 0x3f0   :  { %v3907_v32 = vmax.f32 %v3307_v20, 0.0  ;;  %v2344_v33 = vadd.f32 %v9592_v2, %v1899_v30  ;;  %v1901_v34 = vpop.f32.mrb[139].mxu0  ;;  %3571 = vmatmul.mubr.bf16.gmra.mrb[120].mxu1 %v2784_v12  ;;  %v2598_v38 = vmax.f32 %v2342_v19, 0.0 }
 0x3f1   :  { %v3908_v36 = vmax.f32 %v3309_v29, 0.0  ;;  %v2345_v37 = vadd.f32 %v9595_v4, %v1901_v34  ;;  %v2599_v43 = vmax.f32 %v2343_v28, 0.0 }
 0x3f2   :  { %v10153_v41 = vpack.c.bf16 %v3907_v32, %v3905_v31  ;;  %v2600_v42 = vmax.f32 %v2344_v33, 0.0  ;;  %7499 = vmatmul.mubr.msk.bf16.gmra.mrb[244].mxu0 %vm1321_vm4, %v230_v26  ;;  %v167_v31 = vld [vmem:[%s12306_s0 + $0x3f0] sm:$0xff]  ;;  %v168_v32 = vld [vmem:[%s12306_s0 + $0x3f8] sm:$0xff] }
 0x3f3   :  { %v10156_v44 = vpack.c.bf16 %v3908_v36, %v3906_v35  ;;  %v2601_v45 = vmax.f32 %v2345_v37, 0.0  ;;  %v3312_v47 = vpop.f32.mrb[16].mxu1  ;;  %2173 = vmatprep.mubr.bf16.mxu0 %v8693_v3 }
 0x3f4   :  { %v2786_v51 = vpack.c.bf16 %v2600_v42, %v2598_v38  ;;  %v3313_v52 = vadd.f32 %v3312_v47, %v10061_v7  ;;  %v3314_v53 = vpop.f32.mrb[17].mxu1 }
 0x3f5   :  { %v2787_v54 = vpack.c.bf16 %v2601_v45, %v2599_v43  ;;  %v3315_v55 = vadd.f32 %v3314_v53, %v10065_v9  ;;  %v1905_v58 = vpop.f32.mrb[140].mxu0  ;;  %v3316_v59 = vpop.f32.mrb[18].mxu1  ;;  %v8170_v43 = vld [vmem:[%s12307_s7 + $0xa4] ss:$8 sps:$4 sm:$0xff]  }
 0x3f6   :  { %v2346_v60 = vadd.f32 %v9592_v2, %v1905_v58  ;;  %v3317_v62 = vadd.f32 %v3316_v59, %v10061_v7  ;;  %v1907_v0 = vpop.f32.mrb[141].mxu0  ;;  %v3318_v6 = vpop.f32.mrb[19].mxu1  ;;  %v3909_v13 = vmax.f32 %v3313_v52, 0.0  ;;  %4645 = vmatprep.subr.bf16.mxu1 %v8170_v43 }
 0x3f7   :  { %v2347_v10 = vadd.f32 %v9595_v4, %v1907_v0  ;;  %v3319_v11 = vadd.f32 %v3318_v6, %v10065_v9  ;;  %v1909_v12 = vpop.f32.mrb[142].mxu0  ;;  %7563 = vmatprep.mubr.msk.bf16.mxu1 %vm3008_vm6, %v2787_v54  ;;  %v3910_v17 = vmax.f32 %v3315_v55, 0.0 }
 0x3f8   :  { %v3911_v14 = vmax.f32 %v3317_v62, 0.0  ;;  %v2348_v15 = vadd.f32 %v9592_v2, %v1909_v12  ;;  %v1911_v16 = vpop.f32.mrb[143].mxu0  ;;  %3581 = vmatmul.mubr.bf16.gmra.mrb[124].mxu1 %v2786_v51  ;;  %v2602_v20 = vmax.f32 %v2346_v60, 0.0  ;;  %v232_v51 = vpack.c.bf16 %v168_v32, %v167_v31 }
 0x3f9   :  { %v3912_v18 = vmax.f32 %v3319_v11, 0.0  ;;  %v2349_v19 = vadd.f32 %v9595_v4, %v1911_v16  ;;  %v2603_v26 = vmax.f32 %v2347_v10, 0.0 }
 0x3fa   :  { %v10174_v21 = vpack.c.bf16 %v3911_v14, %v3909_v13  ;;  %v2604_v25 = vmax.f32 %v2348_v15, 0.0  ;;  %7500 = vmatmul.mubr.msk.bf16.gmra.mrb[248].mxu0 %vm1321_vm4, %v231_v8 }
 0x3fb   :  { %v10177_v28 = vpack.c.bf16 %v3912_v18, %v3910_v17  ;;  %v2605_v29 = vmax.f32 %v2349_v19, 0.0  ;;  %v3322_v30 = vpop.f32.mrb[20].mxu1  ;;  %2183 = vmatprep.mubr.bf16.mxu0 %v8693_v3  ;;  %v8168_v3 = vld [vmem:[%s12307_s7 + $0xa0] ss:$8 sps:$4 sm:$0xff]  }
 0x3fc   :  { %v2788_v33 = vpack.c.bf16 %v2604_v25, %v2602_v20  ;;  %v3323_v34 = vadd.f32 %v3322_v30, %v10061_v7  ;;  %v3324_v35 = vpop.f32.mrb[21].mxu1  ;;  %4646 = vmatpush1.bf16.msra.mxu1 %v8168_v3 }
 0x3fd   :  { %v2789_v36 = vpack.c.bf16 %v2605_v29, %v2603_v26  ;;  %v3325_v37 = vadd.f32 %v3324_v35, %v10065_v9  ;;  %v1915_v38 = vpop.f32.mrb[144].mxu0  ;;  %v3326_v42 = vpop.f32.mrb[22].mxu1 }
 0x3fe   :  { %v2350_v45 = vadd.f32 %v9592_v2, %v1915_v38  ;;  %v3327_v47 = vadd.f32 %v3326_v42, %v10061_v7  ;;  %v1917_v48 = vpop.f32.mrb[145].mxu0  ;;  %v3328_v50 = vpop.f32.mrb[23].mxu1  ;;  %v3913_v55 = vmax.f32 %v3323_v34, 0.0 }
 0x3ff   :  { %v2351_v52 = vadd.f32 %v9595_v4, %v1917_v48  ;;  %v3329_v53 = vadd.f32 %v3328_v50, %v10065_v9  ;;  %v1919_v54 = vpop.f32.mrb[146].mxu0  ;;  %7564 = vmatprep.mubr.msk.bf16.mxu1 %vm3008_vm6, %v2789_v36  ;;  %v3914_v62 = vmax.f32 %v3325_v37, 0.0 }
 0x400   :  { %v3915_v58 = vmax.f32 %v3327_v47, 0.0  ;;  %v2352_v59 = vadd.f32 %v9592_v2, %v1919_v54  ;;  %v1921_v60 = vpop.f32.mrb[147].mxu0  ;;  %3591 = vmatmul.mubr.bf16.gmra.mrb[128].mxu1 %v2788_v33  ;;  %v2606_v8 = vmax.f32 %v2350_v45, 0.0 }
 0x401   :  { %v3916_v0 = vmax.f32 %v3329_v53, 0.0  ;;  %v2353_v6 = vadd.f32 %v9595_v4, %v1921_v60  ;;  %v2607_v12 = vmax.f32 %v2351_v52, 0.0 }
 0x402   :  { %v10201_v10 = vpack.c.bf16 %v3915_v58, %v3913_v55  ;;  %v2608_v11 = vmax.f32 %v2352_v59, 0.0  ;;  %7501 = vmatmul.mubr.msk.bf16.gmra.mrb[252].mxu0 %vm1321_vm4, %v232_v51 }
 0x403   :  { %v10204_v13 = vpack.c.bf16 %v3916_v0, %v3914_v62  ;;  %v2609_v14 = vmax.f32 %v2353_v6, 0.0  ;;  %7529 = vmatprep.mubr.msk.bf16.mxu0 %vm3008_vm6, %v9618_v23  ;;  %v3332_v15 = vpop.f32.mrb[24].mxu1 }
 0x404   :  { %v2790_v16 = vpack.c.bf16 %v2608_v11, %v2606_v8  ;;  %v3333_v17 = vadd.f32 %v3332_v15, %v10061_v7  ;;  %v3334_v18 = vpop.f32.mrb[25].mxu1 }
 0x405   :  { %v2791_v19 = vpack.c.bf16 %v2609_v14, %v2607_v12  ;;  %v3335_v20 = vadd.f32 %v3334_v18, %v10065_v9  ;;  %v1925_v25 = vpop.f32.mrb[148].mxu0  ;;  %v3336_v26 = vpop.f32.mrb[26].mxu1 }
 0x406   :  { %v2354_v29 = vadd.f32 %v9592_v2, %v1925_v25  ;;  %v3337_v30 = vadd.f32 %v3336_v26, %v10061_v7  ;;  %v1927_v31 = vpop.f32.mrb[149].mxu0  ;;  %v3338_v32 = vpop.f32.mrb[27].mxu1  ;;  %v3917_v35 = vmax.f32 %v3333_v17, 0.0 }
 0x407   :  { %v2355_v33 = vadd.f32 %v9595_v4, %v1927_v31  ;;  %v3339_v23 = vadd.f32 %v3338_v32, %v10065_v9  ;;  %v1929_v34 = vpop.f32.mrb[150].mxu0  ;;  %7565 = vmatprep.mubr.msk.bf16.mxu1 %vm3008_vm6, %v2791_v19  ;;  %v3918_v42 = vmax.f32 %v3335_v20, 0.0 }
 0x408   :  { %v3919_v36 = vmax.f32 %v3337_v30, 0.0  ;;  %v2356_v37 = vadd.f32 %v9592_v2, %v1929_v34  ;;  %v1931_v38 = vpop.f32.mrb[151].mxu0  ;;  %3601 = vmatmul.mubr.bf16.gmra.mrb[132].mxu1 %v2790_v16  ;;  %v2610_v45 = vmax.f32 %v2354_v29, 0.0 }
 0x409   :  { %v3920_v3 = vmax.f32 %v3339_v23, 0.0  ;;  %v2357_v43 = vadd.f32 %v9595_v4, %v1931_v38  ;;  %v2611_v50 = vmax.f32 %v2355_v33, 0.0 }
 0x40a   :  { %v10217_v47 = vpack.c.bf16 %v3919_v36, %v3917_v35  ;;  %v2612_v48 = vmax.f32 %v2356_v37, 0.0  ;;  %3241 = vmatmul.mubr.bf16.vlgmr.msra.gmra.mrb[0].mxu0 %v9616_v22 }
 0x40b   :  { %v10220_v51 = vpack.c.bf16 %v3920_v3, %v3918_v42  ;;  %v2613_v52 = vmax.f32 %v2357_v43, 0.0  ;;  %7530 = vmatprep.mubr.msk.bf16.mxu0 %vm3008_vm6, %v9634_v40  ;;  %v3342_v53 = vpop.f32.mrb[28].mxu1 }
 0x40c   :  { %v2792_v54 = vpack.c.bf16 %v2612_v48, %v2610_v45  ;;  %v3343_v55 = vadd.f32 %v3342_v53, %v10061_v7  ;;  %v3344_v58 = vpop.f32.mrb[29].mxu1 }
 0x40d   :  { %v2793_v59 = vpack.c.bf16 %v2613_v52, %v2611_v50  ;;  %v3345_v60 = vadd.f32 %v3344_v58, %v10065_v9  ;;  %v1935_v62 = vpop.f32.mrb[152].mxu0  ;;  %v3346_v0 = vpop.f32.mrb[30].mxu1 }
 0x40e   :  { %v2358_v6 = vadd.f32 %v9592_v2, %v1935_v62  ;;  %v3347_v22 = vadd.f32 %v3346_v0, %v10061_v7  ;;  %v1937_v8 = vpop.f32.mrb[153].mxu0  ;;  %v3348_v11 = vpop.f32.mrb[31].mxu1  ;;  %v3921_v15 = vmax.f32 %v3343_v55, 0.0 }
 0x40f   :  { %v2359_v12 = vadd.f32 %v9595_v4, %v1937_v8  ;;  %v3349_v40 = vadd.f32 %v3348_v11, %v10065_v9  ;;  %v1939_v14 = vpop.f32.mrb[154].mxu0  ;;  %7566 = vmatprep.mubr.msk.bf16.mxu1 %vm3008_vm6, %v2793_v59  ;;  %v3922_v19 = vmax.f32 %v3345_v60, 0.0 }
 0x410   :  { %v3923_v16 = vmax.f32 %v3347_v22, 0.0  ;;  %v2360_v17 = vadd.f32 %v9592_v2, %v1939_v14  ;;  %v1941_v18 = vpop.f32.mrb[155].mxu0  ;;  %3611 = vmatmul.mubr.bf16.gmra.mrb[136].mxu1 %v2792_v54  ;;  %v2614_v26 = vmax.f32 %v2358_v6, 0.0 }
 0x411   :  { %v3924_v20 = vmax.f32 %v3349_v40, 0.0  ;;  %v2361_v25 = vadd.f32 %v9595_v4, %v1941_v18  ;;  %v2615_v31 = vmax.f32 %v2359_v12, 0.0 }
 0x412   :  { %v10233_v29 = vpack.c.bf16 %v3923_v16, %v3921_v15  ;;  %v2616_v30 = vmax.f32 %v2360_v17, 0.0  ;;  %3251 = vmatmul.mubr.bf16.gmra.mrb[4].mxu0 %v9632_v39 }
 0x413   :  { %v10236_v32 = vpack.c.bf16 %v3924_v20, %v3922_v19  ;;  %v2617_v33 = vmax.f32 %v2361_v25, 0.0  ;;  %7531 = vmatprep.mubr.msk.bf16.mxu0 %vm3008_vm6, %v9650_v57  ;;  %v3352_v23 = vpop.f32.mrb[32].mxu1 }
 0x414   :  { %v2794_v34 = vpack.c.bf16 %v2616_v30, %v2614_v26  ;;  %v3353_v35 = vadd.f32 %v3352_v23, %v10061_v7  ;;  %v3354_v36 = vpop.f32.mrb[33].mxu1 }
 0x415   :  { %v2795_v37 = vpack.c.bf16 %v2617_v33, %v2615_v31  ;;  %v3355_v38 = vadd.f32 %v3354_v36, %v10065_v9  ;;  %v1945_v42 = vpop.f32.mrb[156].mxu0  ;;  %v3356_v3 = vpop.f32.mrb[34].mxu1 }
 0x416   :  { %v2362_v43 = vadd.f32 %v9592_v2, %v1945_v42  ;;  %v3357_v39 = vadd.f32 %v3356_v3, %v10061_v7  ;;  %v1947_v45 = vpop.f32.mrb[157].mxu0  ;;  %v3358_v48 = vpop.f32.mrb[35].mxu1  ;;  %v3925_v53 = vmax.f32 %v3353_v35, 0.0 }
 0x417   :  { %v2363_v50 = vadd.f32 %v9595_v4, %v1947_v45  ;;  %v3359_v57 = vadd.f32 %v3358_v48, %v10065_v9  ;;  %v1949_v52 = vpop.f32.mrb[158].mxu0  ;;  %7567 = vmatprep.mubr.msk.bf16.mxu1 %vm3008_vm6, %v2795_v37  ;;  %v3926_v59 = vmax.f32 %v3355_v38, 0.0  ;;  %v8171_v48 = vld [vmem:[%s12307_s7 + $0xb0] ss:$8 sps:$4 sm:$0xff]  }
 0x418   :  { %v3927_v54 = vmax.f32 %v3357_v39, 0.0  ;;  %v2364_v55 = vadd.f32 %v9592_v2, %v1949_v52  ;;  %v1951_v58 = vpop.f32.mrb[159].mxu0  ;;  %3621 = vmatmul.mubr.bf16.gmra.mrb[140].mxu1 %v2794_v34  ;;  %v2618_v0 = vmax.f32 %v2362_v43, 0.0 }
 0x419   :  { %v3928_v60 = vmax.f32 %v3359_v57, 0.0  ;;  %v2365_v62 = vadd.f32 %v9595_v4, %v1951_v58  ;;  %v2619_v8 = vmax.f32 %v2363_v50, 0.0  ;;  %v8173_v50 = vld [vmem:[%s12307_s7 + $0xb4] ss:$8 sps:$4 sm:$0xff]  }
 0x41a   :  { %v10249_v6 = vpack.c.bf16 %v3927_v54, %v3925_v53  ;;  %v2620_v22 = vmax.f32 %v2364_v55, 0.0  ;;  %3261 = vmatmul.mubr.bf16.gmra.mrb[8].mxu0 %v9648_v56  ;;  %4647 = vmatprep.subr.bf16.mxu1 %v8173_v50 }
 0x41b   :  { %v10252_v11 = vpack.c.bf16 %v3928_v60, %v3926_v59  ;;  %v2621_v12 = vmax.f32 %v2365_v62, 0.0  ;;  %v3362_v40 = vpop.f32.mrb[36].mxu1  ;;  %4648 = vmatpush1.bf16.msra.mxu1 %v8171_v48 }
 0x41c   :  { %v2796_v14 = vpack.c.bf16 %v2620_v22, %v2618_v0  ;;  %v3363_v15 = vadd.f32 %v3362_v40, %v10061_v7  ;;  %v3364_v16 = vpop.f32.mrb[37].mxu1 }
 0x41d   :  { %v2797_v17 = vpack.c.bf16 %v2621_v12, %v2619_v8  ;;  %v3365_v18 = vadd.f32 %v3364_v16, %v10065_v9  ;;  %v1955_v19 = vpop.f32.mrb[160].mxu0  ;;  %v3366_v20 = vpop.f32.mrb[38].mxu1 }
 0x41e   :  { %v2366_v25 = vadd.f32 %v9592_v2, %v1955_v19  ;;  %v3367_v26 = vadd.f32 %v3366_v20, %v10061_v7  ;;  %v1957_v30 = vpop.f32.mrb[161].mxu0  ;;  %v3368_v56 = vpop.f32.mrb[39].mxu1  ;;  %v3929_v34 = vmax.f32 %v3363_v15, 0.0 }
 0x41f   :  { %v2367_v31 = vadd.f32 %v9595_v4, %v1957_v30  ;;  %v3369_v33 = vadd.f32 %v3368_v56, %v10065_v9  ;;  %v1959_v23 = vpop.f32.mrb[162].mxu0  ;;  %7568 = vmatprep.mubr.msk.bf16.mxu1 %vm3008_vm6, %v2797_v17  ;;  %v3930_v38 = vmax.f32 %v3365_v18, 0.0 }
 0x420   :  { %v3931_v35 = vmax.f32 %v3367_v26, 0.0  ;;  %v2368_v36 = vadd.f32 %v9592_v2, %v1959_v23  ;;  %v1961_v37 = vpop.f32.mrb[163].mxu0  ;;  %3631 = vmatmul.mubr.bf16.gmra.mrb[144].mxu1 %v2796_v14  ;;  %v2622_v43 = vmax.f32 %v2366_v25, 0.0 }
 0x421   :  { %v3932_v42 = vmax.f32 %v3369_v33, 0.0  ;;  %v2369_v3 = vadd.f32 %v9595_v4, %v1961_v37  ;;  %v2623_v57 = vmax.f32 %v2367_v31, 0.0 }
 0x422   :  { %v10263_v39 = vpack.c.bf16 %v3931_v35, %v3929_v34  ;;  %v2624_v45 = vmax.f32 %v2368_v36, 0.0 }
 0x423   :  { %v10271_v52 = vpack.c.bf16 %v3932_v42, %v3930_v38  ;;  %v2625_v53 = vmax.f32 %v2369_v3, 0.0  ;;  %v3372_v54 = vpop.f32.mrb[40].mxu1 }
 0x424   :  { %v2798_v55 = vpack.c.bf16 %v2624_v45, %v2622_v43  ;;  %v3373_v58 = vadd.f32 %v3372_v54, %v10061_v7  ;;  %v3374_v59 = vpop.f32.mrb[41].mxu1 }
 0x425   :  { %v2799_v60 = vpack.c.bf16 %v2625_v53, %v2623_v57  ;;  %v3375_v62 = vadd.f32 %v3374_v59, %v10065_v9  ;;  %v1965_v0 = vpop.f32.mrb[164].mxu0  ;;  %v3376_v22 = vpop.f32.mrb[42].mxu1 }
 0x426   :  { %v2370_v8 = vadd.f32 %v9592_v2, %v1965_v0  ;;  %v3377_v12 = vadd.f32 %v3376_v22, %v10061_v7  ;;  %v1967_v40 = vpop.f32.mrb[165].mxu0  ;;  %v3378_v14 = vpop.f32.mrb[43].mxu1  ;;  %v3933_v18 = vmax.f32 %v3373_v58, 0.0 }
 0x427   :  { %v2371_v15 = vadd.f32 %v9595_v4, %v1967_v40  ;;  %v3379_v16 = vadd.f32 %v3378_v14, %v10065_v9  ;;  %v1969_v17 = vpop.f32.mrb[166].mxu0  ;;  %7569 = vmatprep.mubr.msk.bf16.mxu1 %vm3008_vm6, %v2799_v60  ;;  %v3934_v26 = vmax.f32 %v3375_v62, 0.0 }
 0x428   :  { %v3935_v19 = vmax.f32 %v3377_v12, 0.0  ;;  %v2372_v20 = vadd.f32 %v9592_v2, %v1969_v17  ;;  %v1971_v25 = vpop.f32.mrb[167].mxu0  ;;  %3641 = vmatmul.mubr.bf16.gmra.mrb[148].mxu1 %v2798_v55  ;;  %v2626_v31 = vmax.f32 %v2370_v8, 0.0 }
 0x429   :  { %v3936_v30 = vmax.f32 %v3379_v16, 0.0  ;;  %v2373_v56 = vadd.f32 %v9595_v4, %v1971_v25  ;;  %v2627_v34 = vmax.f32 %v2371_v15, 0.0 }
 0x42a   :  { %v10282_v33 = vpack.c.bf16 %v3935_v19, %v3933_v18  ;;  %v2628_v23 = vmax.f32 %v2372_v20, 0.0 }
 0x42b   :  { %v10284_v35 = vpack.c.bf16 %v3936_v30, %v3934_v26  ;;  %v2629_v36 = vmax.f32 %v2373_v56, 0.0  ;;  %v3382_v37 = vpop.f32.mrb[44].mxu1 }
 0x42c   :  { %v2800_v38 = vpack.c.bf16 %v2628_v23, %v2626_v31  ;;  %v3383_v42 = vadd.f32 %v3382_v37, %v10061_v7  ;;  %v3384_v3 = vpop.f32.mrb[45].mxu1 }
 0x42d   :  { %v2801_v43 = vpack.c.bf16 %v2629_v36, %v2627_v34  ;;  %v3385_v45 = vadd.f32 %v3384_v3, %v10065_v9  ;;  %v1975_v48 = vpop.f32.mrb[168].mxu0  ;;  %v3386_v50 = vpop.f32.mrb[46].mxu1 }
 0x42e   :  { %v2374_v57 = vadd.f32 %v9592_v2, %v1975_v48  ;;  %v3387_v53 = vadd.f32 %v3386_v50, %v10061_v7  ;;  %v1977_v54 = vpop.f32.mrb[169].mxu0  ;;  %v3388_v55 = vpop.f32.mrb[47].mxu1  ;;  %v3937_v62 = vmax.f32 %v3383_v42, 0.0 }
 0x42f   :  { %v2375_v58 = vadd.f32 %v9595_v4, %v1977_v54  ;;  %v3389_v59 = vadd.f32 %v3388_v55, %v10065_v9  ;;  %v1979_v60 = vpop.f32.mrb[170].mxu0  ;;  %7570 = vmatprep.mubr.msk.bf16.mxu1 %vm3008_vm6, %v2801_v43  ;;  %v3938_v12 = vmax.f32 %v3385_v45, 0.0 }
 0x430   :  { %v3939_v0 = vmax.f32 %v3387_v53, 0.0  ;;  %v2376_v22 = vadd.f32 %v9592_v2, %v1979_v60  ;;  %v1981_v8 = vpop.f32.mrb[171].mxu0  ;;  %3651 = vmatmul.mubr.bf16.gmra.mrb[152].mxu1 %v2800_v38  ;;  %v2630_v15 = vmax.f32 %v2374_v57, 0.0 }
 0x431   :  { %v3940_v40 = vmax.f32 %v3389_v59, 0.0  ;;  %v2377_v14 = vadd.f32 %v9595_v4, %v1981_v8  ;;  %v2631_v18 = vmax.f32 %v2375_v58, 0.0 }
 0x432   :  { %v10295_v16 = vpack.c.bf16 %v3939_v0, %v3937_v62  ;;  %v2632_v17 = vmax.f32 %v2376_v22, 0.0 }
 0x433   :  { %v10297_v19 = vpack.c.bf16 %v3940_v40, %v3938_v12  ;;  %v2633_v20 = vmax.f32 %v2377_v14, 0.0  ;;  %v3392_v25 = vpop.f32.mrb[48].mxu1 }
 0x434   :  { %v2802_v26 = vpack.c.bf16 %v2632_v17, %v2630_v15  ;;  %v3393_v30 = vadd.f32 %v3392_v25, %v10061_v7  ;;  %v3394_v56 = vpop.f32.mrb[49].mxu1 }
 0x435   :  { %v2803_v31 = vpack.c.bf16 %v2633_v20, %v2631_v18  ;;  %v3395_v23 = vadd.f32 %v3394_v56, %v10065_v9  ;;  %v1985_v34 = vpop.f32.mrb[172].mxu0  ;;  %v3396_v36 = vpop.f32.mrb[50].mxu1 }
 0x436   :  { %v2378_v37 = vadd.f32 %v9592_v2, %v1985_v34  ;;  %v3397_v38 = vadd.f32 %v3396_v36, %v10061_v7  ;;  %v1987_v42 = vpop.f32.mrb[173].mxu0  ;;  %v3398_v3 = vpop.f32.mrb[51].mxu1  ;;  %v3941_v50 = vmax.f32 %v3393_v30, 0.0 }
 0x437   :  { %v2379_v43 = vadd.f32 %v9595_v4, %v1987_v42  ;;  %v3399_v45 = vadd.f32 %v3398_v3, %v10065_v9  ;;  %v1989_v48 = vpop.f32.mrb[174].mxu0  ;;  %7571 = vmatprep.mubr.msk.bf16.mxu1 %vm3008_vm6, %v2803_v31  ;;  %v3942_v55 = vmax.f32 %v3395_v23, 0.0 }
 0x438   :  { %v3943_v57 = vmax.f32 %v3397_v38, 0.0  ;;  %v2380_v53 = vadd.f32 %v9592_v2, %v1989_v48  ;;  %v1991_v54 = vpop.f32.mrb[175].mxu0  ;;  %3661 = vmatmul.mubr.bf16.gmra.mrb[156].mxu1 %v2802_v26  ;;  %v2634_v60 = vmax.f32 %v2378_v37, 0.0 }
 0x439   :  { %v3944_v58 = vmax.f32 %v3399_v45, 0.0  ;;  %v2381_v59 = vadd.f32 %v9595_v4, %v1991_v54  ;;  %v2635_v22 = vmax.f32 %v2379_v43, 0.0 }
 0x43a   :  { %v10308_v62 = vpack.c.bf16 %v3943_v57, %v3941_v50  ;;  %v2636_v0 = vmax.f32 %v2380_v53, 0.0 }
 0x43b   :  { %v10310_v8 = vpack.c.bf16 %v3944_v58, %v3942_v55  ;;  %v2637_v12 = vmax.f32 %v2381_v59, 0.0  ;;  %v3402_v40 = vpop.f32.mrb[52].mxu1 }
 0x43c   :  { %v2804_v14 = vpack.c.bf16 %v2636_v0, %v2634_v60  ;;  %v3403_v15 = vadd.f32 %v3402_v40, %v10061_v7  ;;  %v3404_v17 = vpop.f32.mrb[53].mxu1 }
 0x43d   :  { %v2805_v18 = vpack.c.bf16 %v2637_v12, %v2635_v22  ;;  %v3405_v20 = vadd.f32 %v3404_v17, %v10065_v9  ;;  %v1995_v25 = vpop.f32.mrb[176].mxu0  ;;  %v3406_v26 = vpop.f32.mrb[54].mxu1 }
 0x43e   :  { %v2382_v30 = vadd.f32 %v9592_v2, %v1995_v25  ;;  %v3407_v56 = vadd.f32 %v3406_v26, %v10061_v7  ;;  %v1997_v31 = vpop.f32.mrb[177].mxu0  ;;  %v3408_v23 = vpop.f32.mrb[55].mxu1  ;;  %v3945_v38 = vmax.f32 %v3403_v15, 0.0 }
 0x43f   :  { %v2383_v34 = vadd.f32 %v9595_v4, %v1997_v31  ;;  %v3409_v36 = vadd.f32 %v3408_v23, %v10065_v9  ;;  %v1999_v37 = vpop.f32.mrb[178].mxu0  ;;  %7572 = vmatprep.mubr.msk.bf16.mxu1 %vm3008_vm6, %v2805_v18  ;;  %v3946_v45 = vmax.f32 %v3405_v20, 0.0 }
 0x440   :  { %v3947_v42 = vmax.f32 %v3407_v56, 0.0  ;;  %v2384_v3 = vadd.f32 %v9592_v2, %v1999_v37  ;;  %v2001_v43 = vpop.f32.mrb[179].mxu0  ;;  %3671 = vmatmul.mubr.bf16.gmra.mrb[160].mxu1 %v2804_v14  ;;  %v2638_v57 = vmax.f32 %v2382_v30, 0.0  ;;  %v4289_v30 = vld [vmem:[%s12307_s7 + $0xc0] sm:$0xff] }
 0x441   :  { %v3948_v48 = vmax.f32 %v3409_v36, 0.0  ;;  %v2385_v50 = vadd.f32 %v9595_v4, %v2001_v43  ;;  %v2639_v55 = vmax.f32 %v2383_v34, 0.0  ;;  %v7618_v34 = vcombine.high %v4289_v30, %v4289_v30 }
 0x442   :  { %v10321_v53 = vpack.c.bf16 %v3947_v42, %v3945_v38  ;;  %v2640_v54 = vmax.f32 %v2384_v3, 0.0  ;;  %v7617_v3 = vcombine.low %v4289_v30, %v4289_v30 }
 0x443   :  { %v10323_v58 = vpack.c.bf16 %v3948_v48, %v3946_v45  ;;  %v2641_v59 = vmax.f32 %v2385_v50, 0.0  ;;  %v3412_v60 = vpop.f32.mrb[56].mxu1  ;;  %7619 = vmatprep.subr.msk.bf16.mxu1 %vm3201_vm5, %v7618_v34 }
 0x444   :  { %v2806_v0 = vpack.c.bf16 %v2640_v54, %v2638_v57  ;;  %v3413_v22 = vadd.f32 %v3412_v60, %v10061_v7  ;;  %v3414_v12 = vpop.f32.mrb[57].mxu1 }
 0x445   :  { %v2807_v40 = vpack.c.bf16 %v2641_v59, %v2639_v55  ;;  %v3415_v14 = vadd.f32 %v3414_v12, %v10065_v9  ;;  %v2005_v15 = vpop.f32.mrb[180].mxu0  ;;  %v3416_v17 = vpop.f32.mrb[58].mxu1  ;;  %v4620_v55 = vsel %vm3201_vm5, %v7617_v3, 0 }
 0x446   :  { %v2386_v18 = vadd.f32 %v9592_v2, %v2005_v15  ;;  %v3417_v20 = vadd.f32 %v3416_v17, %v10061_v7  ;;  %v2007_v25 = vpop.f32.mrb[181].mxu0  ;;  %v3418_v26 = vpop.f32.mrb[59].mxu1  ;;  %v3949_v36 = vmax.f32 %v3413_v22, 0.0  ;;  %4650 = vmatpush1.bf16.msra.mxu1 %v4620_v55 }
 0x447   :  { %v2387_v56 = vadd.f32 %v9595_v4, %v2007_v25  ;;  %v3419_v31 = vadd.f32 %v3418_v26, %v10065_v9  ;;  %v2009_v23 = vpop.f32.mrb[182].mxu0  ;;  %7573 = vmatprep.mubr.msk.bf16.mxu1 %vm3008_vm6, %v2807_v40  ;;  %v3950_v43 = vmax.f32 %v3415_v14, 0.0 }
 0x448   :  { %v3951_v37 = vmax.f32 %v3417_v20, 0.0  ;;  %v2388_v38 = vadd.f32 %v9592_v2, %v2009_v23  ;;  %v2011_v42 = vpop.f32.mrb[183].mxu0  ;;  %3681 = vmatmul.mubr.bf16.gmra.mrb[164].mxu1 %v2806_v0  ;;  %v2642_v50 = vmax.f32 %v2386_v18, 0.0 }
 0x449   :  { %v3952_v45 = vmax.f32 %v3419_v31, 0.0  ;;  %v2389_v48 = vadd.f32 %v9595_v4, %v2011_v42  ;;  %v2643_v59 = vmax.f32 %v2387_v56, 0.0 }
 0x44a   :  { %v10338_v57 = vpack.c.bf16 %v3951_v37, %v3949_v36  ;;  %v2644_v54 = vmax.f32 %v2388_v38, 0.0 }
 0x44b   :  { %v10341_v60 = vpack.c.bf16 %v3952_v45, %v3950_v43  ;;  %v2645_v22 = vmax.f32 %v2389_v48, 0.0  ;;  %v3422_v12 = vpop.f32.mrb[60].mxu1 }
 0x44c   :  { %v2808_v0 = vpack.c.bf16 %v2644_v54, %v2642_v50  ;;  %v3423_v40 = vadd.f32 %v3422_v12, %v10061_v7  ;;  %v3424_v14 = vpop.f32.mrb[61].mxu1 }
 0x44d   :  { %v2809_v15 = vpack.c.bf16 %v2645_v22, %v2643_v59  ;;  %v3425_v17 = vadd.f32 %v3424_v14, %v10065_v9  ;;  %v2015_v20 = vpop.f32.mrb[184].mxu0  ;;  %v3426_v18 = vpop.f32.mrb[62].mxu1 }
 0x44e   :  { %v2390_v25 = vadd.f32 %v9592_v2, %v2015_v20  ;;  %v3427_v26 = vadd.f32 %v3426_v18, %v10061_v7  ;;  %v2017_v30 = vpop.f32.mrb[185].mxu0  ;;  %v3428_v56 = vpop.f32.mrb[63].mxu1  ;;  %v3953_v36 = vmax.f32 %v3423_v40, 0.0 }
 0x44f   :  { %v2391_v31 = vadd.f32 %v9595_v4, %v2017_v30  ;;  %v3429_v23 = vadd.f32 %v3428_v56, %v10065_v9  ;;  %v2019_v34 = vpop.f32.mrb[186].mxu0  ;;  %7574 = vmatprep.mubr.msk.bf16.mxu1 %vm3008_vm6, %v2809_v15  ;;  %v3954_v3 = vmax.f32 %v3425_v17, 0.0 }
 0x450   :  { %v3955_v37 = vmax.f32 %v3427_v26, 0.0  ;;  %v2392_v38 = vadd.f32 %v9592_v2, %v2019_v34  ;;  %v2021_v42 = vpop.f32.mrb[187].mxu0  ;;  %3691 = vmatmul.mubr.bf16.gmra.mrb[168].mxu1 %v2808_v0  ;;  %v2646_v48 = vmax.f32 %v2390_v25, 0.0 }
 0x451   :  { %v3956_v43 = vmax.f32 %v3429_v23, 0.0  ;;  %v2393_v45 = vadd.f32 %v9595_v4, %v2021_v42  ;;  %v2647_v55 = vmax.f32 %v2391_v31, 0.0 }
 0x452   :  { %v10352_v50 = vpack.c.bf16 %v3955_v37, %v3953_v36  ;;  %v2648_v54 = vmax.f32 %v2392_v38, 0.0 }
 0x453   :  { %v10354_v59 = vpack.c.bf16 %v3956_v43, %v3954_v3  ;;  %v2649_v22 = vmax.f32 %v2393_v45, 0.0  ;;  %v3432_v12 = vpop.f32.mrb[64].mxu1 }
 0x454   :  { %v2810_v14 = vpack.c.bf16 %v2648_v54, %v2646_v48  ;;  %v3433_v40 = vadd.f32 %v3432_v12, %v10061_v7  ;;  %v3434_v15 = vpop.f32.mrb[65].mxu1 }
 0x455   :  { %v2811_v20 = vpack.c.bf16 %v2649_v22, %v2647_v55  ;;  %v3435_v0 = vadd.f32 %v3434_v15, %v10065_v9  ;;  %v2025_v17 = vpop.f32.mrb[188].mxu0  ;;  %v3436_v18 = vpop.f32.mrb[66].mxu1 }
 0x456   :  { %v2394_v26 = vadd.f32 %v9592_v2, %v2025_v17  ;;  %v3437_v25 = vadd.f32 %v3436_v18, %v10061_v7  ;;  %v2027_v30 = vpop.f32.mrb[189].mxu0  ;;  %v3438_v56 = vpop.f32.mrb[67].mxu1  ;;  %v3957_v36 = vmax.f32 %v3433_v40, 0.0 }
 0x457   :  { %v2395_v31 = vadd.f32 %v9595_v4, %v2027_v30  ;;  %v3439_v23 = vadd.f32 %v3438_v56, %v10065_v9  ;;  %v2029_v34 = vpop.f32.mrb[190].mxu0  ;;  %7575 = vmatprep.mubr.msk.bf16.mxu1 %vm3008_vm6, %v2811_v20  ;;  %v3958_v3 = vmax.f32 %v3435_v0, 0.0 }
 0x458   :  { %v3959_v37 = vmax.f32 %v3437_v25, 0.0  ;;  %v2396_v38 = vadd.f32 %v9592_v2, %v2029_v34  ;;  %v2031_v42 = vpop.f32.mrb[191].mxu0  ;;  %3701 = vmatmul.mubr.bf16.gmra.mrb[172].mxu1 %v2810_v14  ;;  %v2650_v48 = vmax.f32 %v2394_v26, 0.0 }
 0x459   :  { %v3960_v43 = vmax.f32 %v3439_v23, 0.0  ;;  %v2397_v45 = vadd.f32 %v9595_v4, %v2031_v42  ;;  %v2651_v22 = vmax.f32 %v2395_v31, 0.0 }
 0x45a   :  { %v10365_v54 = vpack.c.bf16 %v3959_v37, %v3957_v36  ;;  %v2652_v55 = vmax.f32 %v2396_v38, 0.0 }
 0x45b   :  { %v10367_v12 = vpack.c.bf16 %v3960_v43, %v3958_v3  ;;  %v2653_v15 = vmax.f32 %v2397_v45, 0.0  ;;  %v3442_v17 = vpop.f32.mrb[68].mxu1 }
 0x45c   :  { %v2812_v20 = vpack.c.bf16 %v2652_v55, %v2650_v48  ;;  %v3443_v40 = vadd.f32 %v3442_v17, %v10061_v7  ;;  %v3444_v18 = vpop.f32.mrb[69].mxu1 }
 0x45d   :  { %v2813_v25 = vpack.c.bf16 %v2653_v15, %v2651_v22  ;;  %v3445_v14 = vadd.f32 %v3444_v18, %v10065_v9  ;;  %v2035_v0 = vpop.f32.mrb[192].mxu0  ;;  %v3446_v30 = vpop.f32.mrb[70].mxu1 }
 0x45e   :  { %v2398_v56 = vadd.f32 %v9592_v2, %v2035_v0  ;;  %v3447_v26 = vadd.f32 %v3446_v30, %v10061_v7  ;;  %v2037_v23 = vpop.f32.mrb[193].mxu0  ;;  %v3448_v34 = vpop.f32.mrb[71].mxu1  ;;  %v3961_v38 = vmax.f32 %v3443_v40, 0.0 }
 0x45f   :  { %v2399_v31 = vadd.f32 %v9595_v4, %v2037_v23  ;;  %v3449_v36 = vadd.f32 %v3448_v34, %v10065_v9  ;;  %v2039_v37 = vpop.f32.mrb[194].mxu0  ;;  %7576 = vmatprep.mubr.msk.bf16.mxu1 %vm3008_vm6, %v2813_v25  ;;  %v3962_v45 = vmax.f32 %v3445_v14, 0.0 }
 0x460   :  { %v3963_v42 = vmax.f32 %v3447_v26, 0.0  ;;  %v2400_v3 = vadd.f32 %v9592_v2, %v2039_v37  ;;  %v2041_v43 = vpop.f32.mrb[195].mxu0  ;;  %3711 = vmatmul.mubr.bf16.gmra.mrb[176].mxu1 %v2812_v20  ;;  %v2654_v22 = vmax.f32 %v2398_v56, 0.0 }
 0x461   :  { %v3964_v48 = vmax.f32 %v3449_v36, 0.0  ;;  %v2401_v55 = vadd.f32 %v9595_v4, %v2041_v43  ;;  %v2655_v18 = vmax.f32 %v2399_v31, 0.0 }
 0x462   :  { %v10378_v15 = vpack.c.bf16 %v3963_v42, %v3961_v38  ;;  %v2656_v17 = vmax.f32 %v2400_v3, 0.0 }
 0x463   :  { %v10380_v0 = vpack.c.bf16 %v3964_v48, %v3962_v45  ;;  %v2657_v30 = vmax.f32 %v2401_v55, 0.0  ;;  %v3452_v23 = vpop.f32.mrb[72].mxu1 }
 0x464   :  { %v2814_v25 = vpack.c.bf16 %v2656_v17, %v2654_v22  ;;  %v3453_v40 = vadd.f32 %v3452_v23, %v10061_v7  ;;  %v3454_v26 = vpop.f32.mrb[73].mxu1 }
 0x465   :  { %v2815_v34 = vpack.c.bf16 %v2657_v30, %v2655_v18  ;;  %v3455_v20 = vadd.f32 %v3454_v26, %v10065_v9  ;;  %v2045_v14 = vpop.f32.mrb[196].mxu0  ;;  %v3456_v36 = vpop.f32.mrb[74].mxu1 }
 0x466   :  { %v2402_v37 = vadd.f32 %v9592_v2, %v2045_v14  ;;  %v3457_v56 = vadd.f32 %v3456_v36, %v10061_v7  ;;  %v2047_v38 = vpop.f32.mrb[197].mxu0  ;;  %v3458_v42 = vpop.f32.mrb[75].mxu1  ;;  %v3965_v45 = vmax.f32 %v3453_v40, 0.0 }
 0x467   :  { %v2403_v31 = vadd.f32 %v9595_v4, %v2047_v38  ;;  %v3459_v3 = vadd.f32 %v3458_v42, %v10065_v9  ;;  %v2049_v43 = vpop.f32.mrb[198].mxu0  ;;  %7577 = vmatprep.mubr.msk.bf16.mxu1 %vm3008_vm6, %v2815_v34  ;;  %v3966_v17 = vmax.f32 %v3455_v20, 0.0 }
 0x468   :  { %v3967_v48 = vmax.f32 %v3457_v56, 0.0  ;;  %v2404_v55 = vadd.f32 %v9592_v2, %v2049_v43  ;;  %v2051_v22 = vpop.f32.mrb[199].mxu0  ;;  %3721 = vmatmul.mubr.bf16.gmra.mrb[180].mxu1 %v2814_v25  ;;  %v2658_v23 = vmax.f32 %v2402_v37, 0.0 }
 0x469   :  { %v3968_v18 = vmax.f32 %v3459_v3, 0.0  ;;  %v2405_v30 = vadd.f32 %v9595_v4, %v2051_v22  ;;  %v2659_v36 = vmax.f32 %v2403_v31, 0.0 }
 0x46a   :  { %v10391_v26 = vpack.c.bf16 %v3967_v48, %v3965_v45  ;;  %v2660_v14 = vmax.f32 %v2404_v55, 0.0 }
 0x46b   :  { %v10393_v38 = vpack.c.bf16 %v3968_v18, %v3966_v17  ;;  %v2661_v42 = vmax.f32 %v2405_v30, 0.0  ;;  %v3462_v1 = vpop.f32.mrb[76].mxu1 }
 0x46c   :  { %12320 = vst [vmem:[#allocation5_spill] sm:$0xff] %v10391_v26  ;;  %v2816_v34 = vpack.c.bf16 %v2660_v14, %v2658_v23  ;;  %v3463_v40 = vadd.f32 %v3462_v1, %v10061_v7  ;;  %v3464_v56 = vpop.f32.mrb[77].mxu1 }
 0x46d   :  { %v2817_v43 = vpack.c.bf16 %v2661_v42, %v2659_v36  ;;  %v3465_v25 = vadd.f32 %v3464_v56, %v10065_v9  ;;  %v2055_v20 = vpop.f32.mrb[200].mxu0  ;;  %v3466_v3 = vpop.f32.mrb[78].mxu1 }
 0x46e   :  { %v2406_v22 = vadd.f32 %v9592_v2, %v2055_v20  ;;  %v3467_v37 = vadd.f32 %v3466_v3, %v10061_v7  ;;  %v2057_v45 = vpop.f32.mrb[201].mxu0  ;;  %v3468_v48 = vpop.f32.mrb[79].mxu1  ;;  %v3969_v1 = vmax.f32 %v3463_v40, 0.0 }
 0x46f   :  { %v2407_v31 = vadd.f32 %v9595_v4, %v2057_v45  ;;  %v3469_v55 = vadd.f32 %v3468_v48, %v10065_v9  ;;  %v2059_v17 = vpop.f32.mrb[202].mxu0  ;;  %7578 = vmatprep.mubr.msk.bf16.mxu1 %vm3008_vm6, %v2817_v43  ;;  %v3970_v14 = vmax.f32 %v3465_v25, 0.0 }
 0x470   :  { %v3971_v18 = vmax.f32 %v3467_v37, 0.0  ;;  %v2408_v30 = vadd.f32 %v9592_v2, %v2059_v17  ;;  %v2061_v23 = vpop.f32.mrb[203].mxu0  ;;  %3731 = vmatmul.mubr.bf16.gmra.mrb[184].mxu1 %v2816_v34  ;;  %v2662_v56 = vmax.f32 %v2406_v22, 0.0 }
 0x471   :  { %v3972_v36 = vmax.f32 %v3469_v55, 0.0  ;;  %v2409_v42 = vadd.f32 %v9595_v4, %v2061_v23  ;;  %v2663_v45 = vmax.f32 %v2407_v31, 0.0 }
 0x472   :  { %v10404_v20 = vpack.c.bf16 %v3971_v18, %v3969_v1  ;;  %v2664_v3 = vmax.f32 %v2408_v30, 0.0 }
 0x473   :  { %v10406_v63 = vpack.c.bf16 %v3972_v36, %v3970_v14  ;;  %v2665_v48 = vmax.f32 %v2409_v42, 0.0  ;;  %v3472_v26 = vpop.f32.mrb[80].mxu1 }
 0x474   :  { %12321 = vst [vmem:[#allocation6_spill] sm:$0xff] %v10404_v20  ;;  %v2818_v43 = vpack.c.bf16 %v2664_v3, %v2662_v56  ;;  %v3473_v40 = vadd.f32 %v3472_v26, %v10061_v7  ;;  %v3474_v37 = vpop.f32.mrb[81].mxu1 }
 0x475   :  { %12322 = vst [vmem:[#allocation7_spill] sm:$0xff] %v10406_v63  ;;  %v2819_v17 = vpack.c.bf16 %v2665_v48, %v2663_v45  ;;  %v3475_v34 = vadd.f32 %v3474_v37, %v10065_v9  ;;  %v2065_v25 = vpop.f32.mrb[204].mxu0  ;;  %v3476_v55 = vpop.f32.mrb[82].mxu1 }
 0x476   :  { %v2410_v23 = vadd.f32 %v9592_v2, %v2065_v25  ;;  %v3477_v22 = vadd.f32 %v3476_v55, %v10061_v7  ;;  %v2067_v1 = vpop.f32.mrb[205].mxu0  ;;  %v3478_v18 = vpop.f32.mrb[83].mxu1  ;;  %v3973_v26 = vmax.f32 %v3473_v40, 0.0 }
 0x477   :  { %v2411_v31 = vadd.f32 %v9595_v4, %v2067_v1  ;;  %v3479_v30 = vadd.f32 %v3478_v18, %v10065_v9  ;;  %v2069_v14 = vpop.f32.mrb[206].mxu0  ;;  %7579 = vmatprep.mubr.msk.bf16.mxu1 %vm3008_vm6, %v2819_v17  ;;  %v3974_v3 = vmax.f32 %v3475_v34, 0.0 }
 0x478   :  { %v3975_v36 = vmax.f32 %v3477_v22, 0.0  ;;  %v2412_v42 = vadd.f32 %v9592_v2, %v2069_v14  ;;  %v2071_v56 = vpop.f32.mrb[207].mxu0  ;;  %3741 = vmatmul.mubr.bf16.gmra.mrb[188].mxu1 %v2818_v43  ;;  %v2666_v37 = vmax.f32 %v2410_v23, 0.0 }
 0x479   :  { %v3976_v45 = vmax.f32 %v3479_v30, 0.0  ;;  %v2413_v48 = vadd.f32 %v9595_v4, %v2071_v56  ;;  %v2667_v1 = vmax.f32 %v2411_v31, 0.0 }
 0x47a   :  { %v10417_v25 = vpack.c.bf16 %v3975_v36, %v3973_v26  ;;  %v2668_v55 = vmax.f32 %v2412_v42, 0.0 }
 0x47b   :  { %v10419_v20 = vpack.c.bf16 %v3976_v45, %v3974_v3  ;;  %v2669_v18 = vmax.f32 %v2413_v48, 0.0  ;;  %v3482_v63 = vpop.f32.mrb[84].mxu1 }
 0x47c   :  { %12323 = vst [vmem:[#allocation8_spill] sm:$0xff] %v10417_v25  ;;  %v2820_v17 = vpack.c.bf16 %v2668_v55, %v2666_v37  ;;  %v3483_v40 = vadd.f32 %v3482_v63, %v10061_v7  ;;  %v3484_v22 = vpop.f32.mrb[85].mxu1 }
 0x47d   :  { %12324 = vst [vmem:[#allocation9_spill] sm:$0xff] %v10419_v20  ;;  %v2821_v14 = vpack.c.bf16 %v2669_v18, %v2667_v1  ;;  %v3485_v43 = vadd.f32 %v3484_v22, %v10065_v9  ;;  %v2075_v34 = vpop.f32.mrb[208].mxu0  ;;  %v3486_v30 = vpop.f32.mrb[86].mxu1 }
 0x47e   :  { %v2414_v56 = vadd.f32 %v9592_v2, %v2075_v34  ;;  %v3487_v23 = vadd.f32 %v3486_v30, %v10061_v7  ;;  %v2077_v26 = vpop.f32.mrb[209].mxu0  ;;  %v3488_v36 = vpop.f32.mrb[87].mxu1  ;;  %v3977_v63 = vmax.f32 %v3483_v40, 0.0 }
 0x47f   :  { %v2415_v31 = vadd.f32 %v9595_v4, %v2077_v26  ;;  %v3489_v42 = vadd.f32 %v3488_v36, %v10065_v9  ;;  %v2079_v3 = vpop.f32.mrb[210].mxu0  ;;  %7580 = vmatprep.mubr.msk.bf16.mxu1 %vm3008_vm6, %v2821_v14  ;;  %v3978_v55 = vmax.f32 %v3485_v43, 0.0 }
 0x480   :  { %v3979_v45 = vmax.f32 %v3487_v23, 0.0  ;;  %v2416_v48 = vadd.f32 %v9592_v2, %v2079_v3  ;;  %v2081_v37 = vpop.f32.mrb[211].mxu0  ;;  %3751 = vmatmul.mubr.bf16.gmra.mrb[192].mxu1 %v2820_v17  ;;  %v2670_v22 = vmax.f32 %v2414_v56, 0.0 }
 0x481   :  { %v3980_v1 = vmax.f32 %v3489_v42, 0.0  ;;  %v2417_v18 = vadd.f32 %v9595_v4, %v2081_v37  ;;  %v2671_v26 = vmax.f32 %v2415_v31, 0.0 }
 0x482   :  { %v10430_v34 = vpack.c.bf16 %v3979_v45, %v3977_v63  ;;  %v2672_v30 = vmax.f32 %v2416_v48, 0.0 }
 0x483   :  { %v10432_v25 = vpack.c.bf16 %v3980_v1, %v3978_v55  ;;  %v2673_v36 = vmax.f32 %v2417_v18, 0.0  ;;  %v3492_v20 = vpop.f32.mrb[88].mxu1 }
 0x484   :  { %12325 = vst [vmem:[#allocation10_spill] sm:$0xff] %v10430_v34  ;;  %v2822_v14 = vpack.c.bf16 %v2672_v30, %v2670_v22  ;;  %v3493_v40 = vadd.f32 %v3492_v20, %v10061_v7  ;;  %v3494_v23 = vpop.f32.mrb[89].mxu1 }
 0x485   :  { %12326 = vst [vmem:[#allocation11_spill] sm:$0xff] %v10432_v25  ;;  %v2823_v3 = vpack.c.bf16 %v2673_v36, %v2671_v26  ;;  %v3495_v17 = vadd.f32 %v3494_v23, %v10065_v9  ;;  %v2085_v43 = vpop.f32.mrb[212].mxu0  ;;  %v3496_v42 = vpop.f32.mrb[90].mxu1 }
 0x486   :  { %v2418_v37 = vadd.f32 %v9592_v2, %v2085_v43  ;;  %v3497_v56 = vadd.f32 %v3496_v42, %v10061_v7  ;;  %v2087_v63 = vpop.f32.mrb[213].mxu0  ;;  %v3498_v45 = vpop.f32.mrb[91].mxu1  ;;  %v3981_v20 = vmax.f32 %v3493_v40, 0.0 }
 0x487   :  { %v2419_v31 = vadd.f32 %v9595_v4, %v2087_v63  ;;  %v3499_v48 = vadd.f32 %v3498_v45, %v10065_v9  ;;  %v2089_v55 = vpop.f32.mrb[214].mxu0  ;;  %7581 = vmatprep.mubr.msk.bf16.mxu1 %vm3008_vm6, %v2823_v3  ;;  %v3982_v30 = vmax.f32 %v3495_v17, 0.0 }
 0x488   :  { %v3983_v1 = vmax.f32 %v3497_v56, 0.0  ;;  %v2420_v18 = vadd.f32 %v9592_v2, %v2089_v55  ;;  %v2091_v22 = vpop.f32.mrb[215].mxu0  ;;  %3761 = vmatmul.mubr.bf16.gmra.mrb[196].mxu1 %v2822_v14  ;;  %v2674_v23 = vmax.f32 %v2418_v37, 0.0 }
 0x489   :  { %v3984_v26 = vmax.f32 %v3499_v48, 0.0  ;;  %v2421_v36 = vadd.f32 %v9595_v4, %v2091_v22  ;;  %v2675_v63 = vmax.f32 %v2419_v31, 0.0 }
 0x48a   :  { %v10443_v43 = vpack.c.bf16 %v3983_v1, %v3981_v20  ;;  %v2676_v42 = vmax.f32 %v2420_v18, 0.0 }
 0x48b   :  { %v10445_v34 = vpack.c.bf16 %v3984_v26, %v3982_v30  ;;  %v2677_v45 = vmax.f32 %v2421_v36, 0.0  ;;  %v3502_v25 = vpop.f32.mrb[92].mxu1 }
 0x48c   :  { %12327 = vst [vmem:[#allocation12_spill] sm:$0xff] %v10443_v43  ;;  %v2824_v3 = vpack.c.bf16 %v2676_v42, %v2674_v23  ;;  %v3503_v40 = vadd.f32 %v3502_v25, %v10061_v7  ;;  %v3504_v56 = vpop.f32.mrb[93].mxu1 }
 0x48d   :  { %12328 = vst [vmem:[#allocation13_spill] sm:$0xff] %v10445_v34  ;;  %v2825_v55 = vpack.c.bf16 %v2677_v45, %v2675_v63  ;;  %v3505_v14 = vadd.f32 %v3504_v56, %v10065_v9  ;;  %v2095_v17 = vpop.f32.mrb[216].mxu0  ;;  %v3506_v48 = vpop.f32.mrb[94].mxu1 }
 0x48e   :  { %v2422_v22 = vadd.f32 %v9592_v2, %v2095_v17  ;;  %v3507_v37 = vadd.f32 %v3506_v48, %v10061_v7  ;;  %v2097_v20 = vpop.f32.mrb[217].mxu0  ;;  %v3508_v1 = vpop.f32.mrb[95].mxu1  ;;  %v3985_v25 = vmax.f32 %v3503_v40, 0.0 }
 0x48f   :  { %v2423_v31 = vadd.f32 %v9595_v4, %v2097_v20  ;;  %v3509_v18 = vadd.f32 %v3508_v1, %v10065_v9  ;;  %v2099_v30 = vpop.f32.mrb[218].mxu0  ;;  %7582 = vmatprep.mubr.msk.bf16.mxu1 %vm3008_vm6, %v2825_v55  ;;  %v3986_v42 = vmax.f32 %v3505_v14, 0.0 }
 0x490   :  { %v3987_v26 = vmax.f32 %v3507_v37, 0.0  ;;  %v2424_v36 = vadd.f32 %v9592_v2, %v2099_v30  ;;  %v2101_v23 = vpop.f32.mrb[219].mxu0  ;;  %3771 = vmatmul.mubr.bf16.gmra.mrb[200].mxu1 %v2824_v3  ;;  %v2678_v56 = vmax.f32 %v2422_v22, 0.0 }
 0x491   :  { %v3988_v63 = vmax.f32 %v3509_v18, 0.0  ;;  %v2425_v45 = vadd.f32 %v9595_v4, %v2101_v23  ;;  %v2679_v20 = vmax.f32 %v2423_v31, 0.0 }
 0x492   :  { %v10456_v17 = vpack.c.bf16 %v3987_v26, %v3985_v25  ;;  %v2680_v48 = vmax.f32 %v2424_v36, 0.0 }
 0x493   :  { %v10458_v43 = vpack.c.bf16 %v3988_v63, %v3986_v42  ;;  %v2681_v1 = vmax.f32 %v2425_v45, 0.0  ;;  %v3512_v34 = vpop.f32.mrb[96].mxu1 }
 0x494   :  { %12329 = vst [vmem:[#allocation14_spill] sm:$0xff] %v10456_v17  ;;  %v2826_v55 = vpack.c.bf16 %v2680_v48, %v2678_v56  ;;  %v3513_v40 = vadd.f32 %v3512_v34, %v10061_v7  ;;  %v3514_v37 = vpop.f32.mrb[97].mxu1 }
 0x495   :  { %12330 = vst [vmem:[#allocation15_spill] sm:$0xff] %v10458_v43  ;;  %v2827_v30 = vpack.c.bf16 %v2681_v1, %v2679_v20  ;;  %v3515_v3 = vadd.f32 %v3514_v37, %v10065_v9  ;;  %v2105_v14 = vpop.f32.mrb[220].mxu0  ;;  %v3516_v18 = vpop.f32.mrb[98].mxu1 }
 0x496   :  { %v2426_v23 = vadd.f32 %v9592_v2, %v2105_v14  ;;  %v3517_v22 = vadd.f32 %v3516_v18, %v10061_v7  ;;  %v2107_v25 = vpop.f32.mrb[221].mxu0  ;;  %v3518_v26 = vpop.f32.mrb[99].mxu1  ;;  %v3989_v34 = vmax.f32 %v3513_v40, 0.0 }
 0x497   :  { %v2427_v31 = vadd.f32 %v9595_v4, %v2107_v25  ;;  %v3519_v36 = vadd.f32 %v3518_v26, %v10065_v9  ;;  %v2109_v42 = vpop.f32.mrb[222].mxu0  ;;  %7583 = vmatprep.mubr.msk.bf16.mxu1 %vm3008_vm6, %v2827_v30  ;;  %v3990_v48 = vmax.f32 %v3515_v3, 0.0 }
 0x498   :  { %v3991_v63 = vmax.f32 %v3517_v22, 0.0  ;;  %v2428_v45 = vadd.f32 %v9592_v2, %v2109_v42  ;;  %v2111_v56 = vpop.f32.mrb[223].mxu0  ;;  %3781 = vmatmul.mubr.bf16.gmra.mrb[204].mxu1 %v2826_v55  ;;  %v2682_v37 = vmax.f32 %v2426_v23, 0.0 }
 0x499   :  { %v3992_v20 = vmax.f32 %v3519_v36, 0.0  ;;  %v2429_v1 = vadd.f32 %v9595_v4, %v2111_v56  ;;  %v2683_v25 = vmax.f32 %v2427_v31, 0.0 }
 0x49a   :  { %v10469_v14 = vpack.c.bf16 %v3991_v63, %v3989_v34  ;;  %v2684_v18 = vmax.f32 %v2428_v45, 0.0 }
 0x49b   :  { %v10471_v17 = vpack.c.bf16 %v3992_v20, %v3990_v48  ;;  %v2685_v26 = vmax.f32 %v2429_v1, 0.0  ;;  %v3522_v43 = vpop.f32.mrb[100].mxu1 }
 0x49c   :  { %12331 = vst [vmem:[#allocation16_spill] sm:$0xff] %v10469_v14  ;;  %v2828_v30 = vpack.c.bf16 %v2684_v18, %v2682_v37  ;;  %v3523_v40 = vadd.f32 %v3522_v43, %v10061_v7  ;;  %v3524_v22 = vpop.f32.mrb[101].mxu1 }
 0x49d   :  { %12332 = vst [vmem:[#allocation17_spill] sm:$0xff] %v10471_v17  ;;  %v2829_v42 = vpack.c.bf16 %v2685_v26, %v2683_v25  ;;  %v3525_v55 = vadd.f32 %v3524_v22, %v10065_v9  ;;  %v2115_v3 = vpop.f32.mrb[224].mxu0  ;;  %v3526_v36 = vpop.f32.mrb[102].mxu1 }
 0x49e   :  { %v2430_v56 = vadd.f32 %v9592_v2, %v2115_v3  ;;  %v3527_v23 = vadd.f32 %v3526_v36, %v10061_v7  ;;  %v2117_v34 = vpop.f32.mrb[225].mxu0  ;;  %v3528_v63 = vpop.f32.mrb[103].mxu1  ;;  %v3993_v43 = vmax.f32 %v3523_v40, 0.0 }
 0x49f   :  { %v2431_v31 = vadd.f32 %v9595_v4, %v2117_v34  ;;  %v3529_v45 = vadd.f32 %v3528_v63, %v10065_v9  ;;  %v2119_v48 = vpop.f32.mrb[226].mxu0  ;;  %7584 = vmatprep.mubr.msk.bf16.mxu1 %vm3008_vm6, %v2829_v42  ;;  %v3994_v18 = vmax.f32 %v3525_v55, 0.0 }
 0x4a0   :  { %v3995_v20 = vmax.f32 %v3527_v23, 0.0  ;;  %v2432_v1 = vadd.f32 %v9592_v2, %v2119_v48  ;;  %v2121_v37 = vpop.f32.mrb[227].mxu0  ;;  %3791 = vmatmul.mubr.bf16.gmra.mrb[208].mxu1 %v2828_v30  ;;  %v2686_v22 = vmax.f32 %v2430_v56, 0.0 }
 0x4a1   :  { %v3996_v25 = vmax.f32 %v3529_v45, 0.0  ;;  %v2433_v26 = vadd.f32 %v9595_v4, %v2121_v37  ;;  %v2687_v34 = vmax.f32 %v2431_v31, 0.0 }
 0x4a2   :  { %v10482_v3 = vpack.c.bf16 %v3995_v20, %v3993_v43  ;;  %v2688_v36 = vmax.f32 %v2432_v1, 0.0 }
 0x4a3   :  { %v10484_v14 = vpack.c.bf16 %v3996_v25, %v3994_v18  ;;  %v2689_v63 = vmax.f32 %v2433_v26, 0.0  ;;  %v3532_v17 = vpop.f32.mrb[104].mxu1 }
 0x4a4   :  { %12333 = vst [vmem:[#allocation18_spill] sm:$0xff] %v10482_v3  ;;  %v2830_v42 = vpack.c.bf16 %v2688_v36, %v2686_v22  ;;  %v3533_v40 = vadd.f32 %v3532_v17, %v10061_v7  ;;  %v3534_v23 = vpop.f32.mrb[105].mxu1 }
 0x4a5   :  { %12334 = vst [vmem:[#allocation19_spill] sm:$0xff] %v10484_v14  ;;  %v2831_v48 = vpack.c.bf16 %v2689_v63, %v2687_v34  ;;  %v3535_v30 = vadd.f32 %v3534_v23, %v10065_v9  ;;  %v2125_v55 = vpop.f32.mrb[228].mxu0  ;;  %v3536_v45 = vpop.f32.mrb[106].mxu1 }
 0x4a6   :  { %v2434_v37 = vadd.f32 %v9592_v2, %v2125_v55  ;;  %v3537_v56 = vadd.f32 %v3536_v45, %v10061_v7  ;;  %v2127_v43 = vpop.f32.mrb[229].mxu0  ;;  %v3538_v20 = vpop.f32.mrb[107].mxu1  ;;  %v3997_v17 = vmax.f32 %v3533_v40, 0.0 }
 0x4a7   :  { %v2435_v31 = vadd.f32 %v9595_v4, %v2127_v43  ;;  %v3539_v1 = vadd.f32 %v3538_v20, %v10065_v9  ;;  %v2129_v18 = vpop.f32.mrb[230].mxu0  ;;  %7585 = vmatprep.mubr.msk.bf16.mxu1 %vm3008_vm6, %v2831_v48  ;;  %v3998_v36 = vmax.f32 %v3535_v30, 0.0 }
 0x4a8   :  { %v3999_v25 = vmax.f32 %v3537_v56, 0.0  ;;  %v2436_v26 = vadd.f32 %v9592_v2, %v2129_v18  ;;  %v2131_v22 = vpop.f32.mrb[231].mxu0  ;;  %3801 = vmatmul.mubr.bf16.gmra.mrb[212].mxu1 %v2830_v42  ;;  %v2690_v23 = vmax.f32 %v2434_v37, 0.0 }
 0x4a9   :  { %v4000_v34 = vmax.f32 %v3539_v1, 0.0  ;;  %v2437_v63 = vadd.f32 %v9595_v4, %v2131_v22  ;;  %v2691_v43 = vmax.f32 %v2435_v31, 0.0 }
 0x4aa   :  { %v10495_v55 = vpack.c.bf16 %v3999_v25, %v3997_v17  ;;  %v2692_v45 = vmax.f32 %v2436_v26, 0.0 }
 0x4ab   :  { %v10497_v3 = vpack.c.bf16 %v4000_v34, %v3998_v36  ;;  %v2693_v20 = vmax.f32 %v2437_v63, 0.0  ;;  %v3542_v14 = vpop.f32.mrb[108].mxu1 }
 0x4ac   :  { %12335 = vst [vmem:[#allocation20_spill] sm:$0xff] %v10495_v55  ;;  %v2832_v48 = vpack.c.bf16 %v2692_v45, %v2690_v23  ;;  %v3543_v40 = vadd.f32 %v3542_v14, %v10061_v7  ;;  %v3544_v56 = vpop.f32.mrb[109].mxu1 }
 0x4ad   :  { %12336 = vst [vmem:[#allocation21_spill] sm:$0xff] %v10497_v3  ;;  %v2833_v18 = vpack.c.bf16 %v2693_v20, %v2691_v43  ;;  %v3545_v42 = vadd.f32 %v3544_v56, %v10065_v9  ;;  %v2135_v30 = vpop.f32.mrb[232].mxu0  ;;  %v3546_v1 = vpop.f32.mrb[110].mxu1 }
 0x4ae   :  { %v2438_v22 = vadd.f32 %v9592_v2, %v2135_v30  ;;  %v3547_v37 = vadd.f32 %v3546_v1, %v10061_v7  ;;  %v2137_v17 = vpop.f32.mrb[233].mxu0  ;;  %v3548_v25 = vpop.f32.mrb[111].mxu1  ;;  %v4001_v14 = vmax.f32 %v3543_v40, 0.0 }
 0x4af   :  { %v2439_v31 = vadd.f32 %v9595_v4, %v2137_v17  ;;  %v3549_v26 = vadd.f32 %v3548_v25, %v10065_v9  ;;  %v2139_v36 = vpop.f32.mrb[234].mxu0  ;;  %7586 = vmatprep.mubr.msk.bf16.mxu1 %vm3008_vm6, %v2833_v18  ;;  %v4002_v45 = vmax.f32 %v3545_v42, 0.0 }
 0x4b0   :  { %v4003_v34 = vmax.f32 %v3547_v37, 0.0  ;;  %v2440_v63 = vadd.f32 %v9592_v2, %v2139_v36  ;;  %v2141_v23 = vpop.f32.mrb[235].mxu0  ;;  %3811 = vmatmul.mubr.bf16.gmra.mrb[216].mxu1 %v2832_v48  ;;  %v2694_v56 = vmax.f32 %v2438_v22, 0.0 }
 0x4b1   :  { %v4004_v43 = vmax.f32 %v3549_v26, 0.0  ;;  %v2441_v20 = vadd.f32 %v9595_v4, %v2141_v23  ;;  %v2695_v17 = vmax.f32 %v2439_v31, 0.0 }
 0x4b2   :  { %v10508_v30 = vpack.c.bf16 %v4003_v34, %v4001_v14  ;;  %v2696_v1 = vmax.f32 %v2440_v63, 0.0 }
 0x4b3   :  { %v10510_v55 = vpack.c.bf16 %v4004_v43, %v4002_v45  ;;  %v2697_v25 = vmax.f32 %v2441_v20, 0.0  ;;  %v3552_v3 = vpop.f32.mrb[112].mxu1 }
 0x4b4   :  { %12337 = vst [vmem:[#allocation22_spill] sm:$0xff] %v10508_v30  ;;  %v2834_v18 = vpack.c.bf16 %v2696_v1, %v2694_v56  ;;  %v3553_v40 = vadd.f32 %v3552_v3, %v10061_v7  ;;  %v3554_v37 = vpop.f32.mrb[113].mxu1 }
 0x4b5   :  { %12338 = vst [vmem:[#allocation23_spill] sm:$0xff] %v10510_v55  ;;  %v2835_v36 = vpack.c.bf16 %v2697_v25, %v2695_v17  ;;  %v3555_v48 = vadd.f32 %v3554_v37, %v10065_v9  ;;  %v2145_v42 = vpop.f32.mrb[236].mxu0  ;;  %v3556_v26 = vpop.f32.mrb[114].mxu1 }
 0x4b6   :  { %v2442_v23 = vadd.f32 %v9592_v2, %v2145_v42  ;;  %v3557_v22 = vadd.f32 %v3556_v26, %v10061_v7  ;;  %v2147_v14 = vpop.f32.mrb[237].mxu0  ;;  %v3558_v34 = vpop.f32.mrb[115].mxu1  ;;  %v4005_v3 = vmax.f32 %v3553_v40, 0.0 }
 0x4b7   :  { %v2443_v31 = vadd.f32 %v9595_v4, %v2147_v14  ;;  %v3559_v63 = vadd.f32 %v3558_v34, %v10065_v9  ;;  %v2149_v45 = vpop.f32.mrb[238].mxu0  ;;  %7587 = vmatprep.mubr.msk.bf16.mxu1 %vm3008_vm6, %v2835_v36  ;;  %v4006_v1 = vmax.f32 %v3555_v48, 0.0 }
 0x4b8   :  { %v4007_v43 = vmax.f32 %v3557_v22, 0.0  ;;  %v2444_v20 = vadd.f32 %v9592_v2, %v2149_v45  ;;  %v2151_v56 = vpop.f32.mrb[239].mxu0  ;;  %3821 = vmatmul.mubr.bf16.gmra.mrb[220].mxu1 %v2834_v18  ;;  %v2698_v37 = vmax.f32 %v2442_v23, 0.0 }
 0x4b9   :  { %v4008_v17 = vmax.f32 %v3559_v63, 0.0  ;;  %v2445_v25 = vadd.f32 %v9595_v4, %v2151_v56  ;;  %v2699_v14 = vmax.f32 %v2443_v31, 0.0 }
 0x4ba   :  { %v10521_v42 = vpack.c.bf16 %v4007_v43, %v4005_v3  ;;  %v2700_v26 = vmax.f32 %v2444_v20, 0.0 }
 0x4bb   :  { %v10523_v30 = vpack.c.bf16 %v4008_v17, %v4006_v1  ;;  %v2701_v34 = vmax.f32 %v2445_v25, 0.0  ;;  %v3562_v55 = vpop.f32.mrb[116].mxu1 }
 0x4bc   :  { %12339 = vst [vmem:[#allocation24_spill] sm:$0xff] %v10521_v42  ;;  %v2836_v36 = vpack.c.bf16 %v2700_v26, %v2698_v37  ;;  %v3563_v40 = vadd.f32 %v3562_v55, %v10061_v7  ;;  %v3564_v22 = vpop.f32.mrb[117].mxu1 }
 0x4bd   :  { %12340 = vst [vmem:[#allocation25_spill] sm:$0xff] %v10523_v30  ;;  %v2837_v45 = vpack.c.bf16 %v2701_v34, %v2699_v14  ;;  %v3565_v18 = vadd.f32 %v3564_v22, %v10065_v9  ;;  %v2155_v48 = vpop.f32.mrb[240].mxu0  ;;  %v3566_v63 = vpop.f32.mrb[118].mxu1 }
 0x4be   :  { %v2446_v56 = vadd.f32 %v9592_v2, %v2155_v48  ;;  %v3567_v23 = vadd.f32 %v3566_v63, %v10061_v7  ;;  %v2157_v3 = vpop.f32.mrb[241].mxu0  ;;  %v3568_v43 = vpop.f32.mrb[119].mxu1  ;;  %v4009_v55 = vmax.f32 %v3563_v40, 0.0 }
 0x4bf   :  { %v2447_v31 = vadd.f32 %v9595_v4, %v2157_v3  ;;  %v3569_v20 = vadd.f32 %v3568_v43, %v10065_v9  ;;  %v2159_v1 = vpop.f32.mrb[242].mxu0  ;;  %7588 = vmatprep.mubr.msk.bf16.mxu1 %vm3008_vm6, %v2837_v45  ;;  %v4010_v26 = vmax.f32 %v3565_v18, 0.0 }
 0x4c0   :  { %v4011_v17 = vmax.f32 %v3567_v23, 0.0  ;;  %v2448_v25 = vadd.f32 %v9592_v2, %v2159_v1  ;;  %v2161_v37 = vpop.f32.mrb[243].mxu0  ;;  %3831 = vmatmul.mubr.bf16.gmra.mrb[224].mxu1 %v2836_v36  ;;  %v2702_v22 = vmax.f32 %v2446_v56, 0.0 }
 0x4c1   :  { %v4012_v14 = vmax.f32 %v3569_v20, 0.0  ;;  %v2449_v34 = vadd.f32 %v9595_v4, %v2161_v37  ;;  %v2703_v3 = vmax.f32 %v2447_v31, 0.0 }
 0x4c2   :  { %v10534_v48 = vpack.c.bf16 %v4011_v17, %v4009_v55  ;;  %v2704_v63 = vmax.f32 %v2448_v25, 0.0 }
 0x4c3   :  { %v10536_v42 = vpack.c.bf16 %v4012_v14, %v4010_v26  ;;  %v2705_v43 = vmax.f32 %v2449_v34, 0.0  ;;  %v3572_v30 = vpop.f32.mrb[120].mxu1 }
 0x4c4   :  { %12341 = vst [vmem:[#allocation26_spill] sm:$0xff] %v10534_v48  ;;  %v2838_v45 = vpack.c.bf16 %v2704_v63, %v2702_v22  ;;  %v3573_v40 = vadd.f32 %v3572_v30, %v10061_v7  ;;  %v3574_v23 = vpop.f32.mrb[121].mxu1 }
 0x4c5   :  { %12342 = vst [vmem:[#allocation27_spill] sm:$0xff] %v10536_v42  ;;  %v2839_v1 = vpack.c.bf16 %v2705_v43, %v2703_v3  ;;  %v3575_v36 = vadd.f32 %v3574_v23, %v10065_v9  ;;  %v2165_v18 = vpop.f32.mrb[244].mxu0  ;;  %v3576_v20 = vpop.f32.mrb[122].mxu1 }
 0x4c6   :  { %v2450_v37 = vadd.f32 %v9592_v2, %v2165_v18  ;;  %v3577_v56 = vadd.f32 %v3576_v20, %v10061_v7  ;;  %v2167_v55 = vpop.f32.mrb[245].mxu0  ;;  %v3578_v17 = vpop.f32.mrb[123].mxu1  ;;  %v4013_v30 = vmax.f32 %v3573_v40, 0.0 }
 0x4c7   :  { %v2451_v31 = vadd.f32 %v9595_v4, %v2167_v55  ;;  %v3579_v25 = vadd.f32 %v3578_v17, %v10065_v9  ;;  %v2169_v26 = vpop.f32.mrb[246].mxu0  ;;  %7589 = vmatprep.mubr.msk.bf16.mxu1 %vm3008_vm6, %v2839_v1  ;;  %v4014_v63 = vmax.f32 %v3575_v36, 0.0 }
 0x4c8   :  { %v4015_v14 = vmax.f32 %v3577_v56, 0.0  ;;  %v2452_v34 = vadd.f32 %v9592_v2, %v2169_v26  ;;  %v2171_v22 = vpop.f32.mrb[247].mxu0  ;;  %3841 = vmatmul.mubr.bf16.gmra.mrb[228].mxu1 %v2838_v45  ;;  %v2706_v23 = vmax.f32 %v2450_v37, 0.0 }
 0x4c9   :  { %v4016_v3 = vmax.f32 %v3579_v25, 0.0  ;;  %v2453_v43 = vadd.f32 %v9595_v4, %v2171_v22  ;;  %v2707_v55 = vmax.f32 %v2451_v31, 0.0 }
 0x4ca   :  { %v10547_v18 = vpack.c.bf16 %v4015_v14, %v4013_v30  ;;  %v2708_v20 = vmax.f32 %v2452_v34, 0.0 }
 0x4cb   :  { %v10549_v48 = vpack.c.bf16 %v4016_v3, %v4014_v63  ;;  %v2709_v17 = vmax.f32 %v2453_v43, 0.0  ;;  %v3582_v42 = vpop.f32.mrb[124].mxu1 }
 0x4cc   :  { %12343 = vst [vmem:[#allocation28_spill] sm:$0xff] %v10547_v18  ;;  %v2840_v1 = vpack.c.bf16 %v2708_v20, %v2706_v23  ;;  %v3583_v40 = vadd.f32 %v3582_v42, %v10061_v7  ;;  %v3584_v56 = vpop.f32.mrb[125].mxu1 }
 0x4cd   :  { %12344 = vst [vmem:[#allocation29_spill] sm:$0xff] %v10549_v48  ;;  %v2841_v26 = vpack.c.bf16 %v2709_v17, %v2707_v55  ;;  %v3585_v45 = vadd.f32 %v3584_v56, %v10065_v9  ;;  %v2175_v36 = vpop.f32.mrb[248].mxu0  ;;  %v3586_v25 = vpop.f32.mrb[126].mxu1 }
 0x4ce   :  { %v2454_v22 = vadd.f32 %v9592_v2, %v2175_v36  ;;  %v3587_v37 = vadd.f32 %v3586_v25, %v10061_v7  ;;  %v2177_v30 = vpop.f32.mrb[249].mxu0  ;;  %v3588_v14 = vpop.f32.mrb[127].mxu1  ;;  %v4017_v42 = vmax.f32 %v3583_v40, 0.0 }
 0x4cf   :  { %v2455_v31 = vadd.f32 %v9595_v4, %v2177_v30  ;;  %v3589_v34 = vadd.f32 %v3588_v14, %v10065_v9  ;;  %v2179_v63 = vpop.f32.mrb[250].mxu0  ;;  %7590 = vmatprep.mubr.msk.bf16.mxu1 %vm3008_vm6, %v2841_v26  ;;  %v4018_v20 = vmax.f32 %v3585_v45, 0.0 }
 0x4d0   :  { %v4019_v3 = vmax.f32 %v3587_v37, 0.0  ;;  %v2456_v43 = vadd.f32 %v9592_v2, %v2179_v63  ;;  %v2181_v23 = vpop.f32.mrb[251].mxu0  ;;  %3851 = vmatmul.mubr.bf16.gmra.mrb[232].mxu1 %v2840_v1  ;;  %v2710_v56 = vmax.f32 %v2454_v22, 0.0 }
 0x4d1   :  { %v4020_v55 = vmax.f32 %v3589_v34, 0.0  ;;  %v2457_v17 = vadd.f32 %v9595_v4, %v2181_v23  ;;  %v2711_v30 = vmax.f32 %v2455_v31, 0.0 }
 0x4d2   :  { %v10560_v36 = vpack.c.bf16 %v4019_v3, %v4017_v42  ;;  %v2712_v25 = vmax.f32 %v2456_v43, 0.0 }
 0x4d3   :  { %v10562_v18 = vpack.c.bf16 %v4020_v55, %v4018_v20  ;;  %v2713_v14 = vmax.f32 %v2457_v17, 0.0  ;;  %v3592_v48 = vpop.f32.mrb[128].mxu1 }
 0x4d4   :  { %12345 = vst [vmem:[#allocation30_spill] sm:$0xff] %v10560_v36  ;;  %v2842_v26 = vpack.c.bf16 %v2712_v25, %v2710_v56  ;;  %v3593_v40 = vadd.f32 %v3592_v48, %v10061_v7  ;;  %v3594_v37 = vpop.f32.mrb[129].mxu1 }
 0x4d5   :  { %12346 = vst [vmem:[#allocation31_spill] sm:$0xff] %v10562_v18  ;;  %v2843_v63 = vpack.c.bf16 %v2713_v14, %v2711_v30  ;;  %v3595_v1 = vadd.f32 %v3594_v37, %v10065_v9  ;;  %v2185_v45 = vpop.f32.mrb[252].mxu0  ;;  %v3596_v34 = vpop.f32.mrb[130].mxu1 }
 0x4d6   :  { %v2458_v23 = vadd.f32 %v9592_v2, %v2185_v45  ;;  %v3597_v22 = vadd.f32 %v3596_v34, %v10061_v7  ;;  %v2187_v42 = vpop.f32.mrb[253].mxu0  ;;  %v3598_v3 = vpop.f32.mrb[131].mxu1  ;;  %v4021_v48 = vmax.f32 %v3593_v40, 0.0 }
 0x4d7   :  { %v2459_v31 = vadd.f32 %v9595_v4, %v2187_v42  ;;  %v3599_v43 = vadd.f32 %v3598_v3, %v10065_v9  ;;  %v2189_v20 = vpop.f32.mrb[254].mxu0  ;;  %7591 = vmatprep.mubr.msk.bf16.mxu1 %vm3008_vm6, %v2843_v63  ;;  %v4022_v25 = vmax.f32 %v3595_v1, 0.0 }
 0x4d8   :  { %v4023_v55 = vmax.f32 %v3597_v22, 0.0  ;;  %v2460_v17 = vadd.f32 %v9592_v2, %v2189_v20  ;;  %v2191_v56 = vpop.f32.mrb[255].mxu0  ;;  %3861 = vmatmul.mubr.bf16.gmra.mrb[236].mxu1 %v2842_v26  ;;  %v2714_v37 = vmax.f32 %v2458_v23, 0.0 }
 0x4d9   :  { %v4024_v30 = vmax.f32 %v3599_v43, 0.0  ;;  %v2461_v14 = vadd.f32 %v9595_v4, %v2191_v56  ;;  %v2715_v42 = vmax.f32 %v2459_v31, 0.0 }
 0x4da   :  { %v10573_v45 = vpack.c.bf16 %v4023_v55, %v4021_v48  ;;  %v2716_v34 = vmax.f32 %v2460_v17, 0.0 }
 0x4db   :  { %v10575_v36 = vpack.c.bf16 %v4024_v30, %v4022_v25  ;;  %v2717_v3 = vmax.f32 %v2461_v14, 0.0  ;;  %v3602_v18 = vpop.f32.mrb[132].mxu1 }
 0x4dc   :  { %v2844_v63 = vpack.c.bf16 %v2716_v34, %v2714_v37  ;;  %v3603_v40 = vadd.f32 %v3602_v18, %v10061_v7  ;;  %v3604_v22 = vpop.f32.mrb[133].mxu1 }
 0x4dd   :  { %v2845_v2 = vpack.c.bf16 %v2717_v3, %v2715_v42  ;;  %v3605_v26 = vadd.f32 %v3604_v22, %v10065_v9  ;;  %v3242_v1 = vpop.f32.mrb[0].mxu0  ;;  %v3606_v43 = vpop.f32.mrb[134].mxu1 }
 0x4de   :  { %v3243_v4 = vadd.f32 %v3242_v1, %v10061_v7  ;;  %v3607_v23 = vadd.f32 %v3606_v43, %v10061_v7  ;;  %v3244_v20 = vpop.f32.mrb[1].mxu0  ;;  %v3608_v48 = vpop.f32.mrb[135].mxu1  ;;  %v4025_v18 = vmax.f32 %v3603_v40, 0.0 }
 0x4df   :  { %v3245_v31 = vadd.f32 %v3244_v20, %v10065_v9  ;;  %v3609_v55 = vadd.f32 %v3608_v48, %v10065_v9  ;;  %v3246_v17 = vpop.f32.mrb[2].mxu0  ;;  %7592 = vmatprep.mubr.msk.bf16.mxu1 %vm3008_vm6, %v2845_v2  ;;  %v4026_v14 = vmax.f32 %v3605_v26, 0.0 }
 0x4e0   :  { %v4027_v56 = vmax.f32 %v3607_v23, 0.0  ;;  %v3247_v25 = vadd.f32 %v3246_v17, %v10061_v7  ;;  %v3248_v30 = vpop.f32.mrb[3].mxu0  ;;  %3871 = vmatmul.mubr.bf16.gmra.mrb[240].mxu1 %v2844_v63  ;;  %v3881_v42 = vmax.f32 %v3243_v4, 0.0 }
 0x4e1   :  { %v4028_v37 = vmax.f32 %v3609_v55, 0.0  ;;  %v3249_v34 = vadd.f32 %v3248_v30, %v10065_v9  ;;  %v3882_v1 = vmax.f32 %v3245_v31, 0.0 }
 0x4e2   :  { %v10586_v3 = vpack.c.bf16 %v4027_v56, %v4025_v18  ;;  %v3883_v22 = vmax.f32 %v3247_v25, 0.0 }
 0x4e3   :  { %v10588_v43 = vpack.c.bf16 %v4028_v37, %v4026_v14  ;;  %v3884_v20 = vmax.f32 %v3249_v34, 0.0  ;;  %v3612_v48 = vpop.f32.mrb[136].mxu1 }
 0x4e4   :  { %12347 = vst [vmem:[#allocation32_spill] sm:$0xff] %v10586_v3  ;;  %v4137_v2 = vpack.c.bf16 %v3883_v22, %v3881_v42  ;;  %v3613_v40 = vadd.f32 %v3612_v48, %v10061_v7  ;;  %v3614_v23 = vpop.f32.mrb[137].mxu1 }
 0x4e5   :  { %12348 = vst [vmem:[#allocation33_spill] sm:$0xff] %v10588_v43  ;;  %v4138_v17 = vpack.c.bf16 %v3884_v20, %v3882_v1  ;;  %v3615_v63 = vadd.f32 %v3614_v23, %v10065_v9  ;;  %v3252_v26 = vpop.f32.mrb[4].mxu0  ;;  %v3616_v55 = vpop.f32.mrb[138].mxu1 }
 0x4e6   :  { %v3253_v30 = vadd.f32 %v3252_v26, %v10061_v7  ;;  %v3617_v4 = vadd.f32 %v3616_v55, %v10061_v7  ;;  %v3254_v18 = vpop.f32.mrb[5].mxu0  ;;  %v3618_v56 = vpop.f32.mrb[139].mxu1  ;;  %v4029_v37 = vmax.f32 %v3613_v40, 0.0 }
 0x4e7   :  { %v3255_v31 = vadd.f32 %v3254_v18, %v10065_v9  ;;  %v3619_v25 = vadd.f32 %v3618_v56, %v10065_v9  ;;  %v3256_v14 = vpop.f32.mrb[6].mxu0  ;;  %7620 = vmatprep.mubr.msk.bf16.mxu1 %vm3008_vm6, %v4138_v17  ;;  %v4030_v1 = vmax.f32 %v3615_v63, 0.0 }
 0x4e8   :  { %v4031_v34 = vmax.f32 %v3617_v4, 0.0  ;;  %v3257_v42 = vadd.f32 %v3256_v14, %v10061_v7  ;;  %v3258_v22 = vpop.f32.mrb[7].mxu0  ;;  %4658 = vmatmul.mubr.bf16.vlgmr.msra.gmra.mrb[244].mxu1 %v4137_v2  ;;  %v3885_v23 = vmax.f32 %v3253_v30, 0.0 }
 0x4e9   :  { %v4032_v20 = vmax.f32 %v3619_v25, 0.0  ;;  %v3259_v48 = vadd.f32 %v3258_v22, %v10065_v9  ;;  %v3886_v18 = vmax.f32 %v3255_v31, 0.0 }
 0x4ea   :  { %v10599_v26 = vpack.c.bf16 %v4031_v34, %v4029_v37  ;;  %v3887_v55 = vmax.f32 %v3257_v42, 0.0 }
 0x4eb   :  { %v10601_v3 = vpack.c.bf16 %v4032_v20, %v4030_v1  ;;  %v3888_v56 = vmax.f32 %v3259_v48, 0.0  ;;  %v3622_v43 = vpop.f32.mrb[140].mxu1 }
 0x4ec   :  { %12349 = vst [vmem:[#allocation34_spill] sm:$0xff] %v10599_v26  ;;  %v4139_v17 = vpack.c.bf16 %v3887_v55, %v3885_v23  ;;  %v3623_v40 = vadd.f32 %v3622_v43, %v10061_v7  ;;  %v3624_v4 = vpop.f32.mrb[141].mxu1 }
 0x4ed   :  { %12350 = vst [vmem:[#allocation35_spill] sm:$0xff] %v10601_v3  ;;  %v4140_v14 = vpack.c.bf16 %v3888_v56, %v3886_v18  ;;  %v3625_v2 = vadd.f32 %v3624_v4, %v10065_v9  ;;  %v3262_v63 = vpop.f32.mrb[8].mxu0  ;;  %v3626_v25 = vpop.f32.mrb[142].mxu1 }
 0x4ee   :  { %v3263_v22 = vadd.f32 %v3262_v63, %v10061_v7  ;;  %v3627_v30 = vadd.f32 %v3626_v25, %v10061_v7  ;;  %v3264_v37 = vpop.f32.mrb[9].mxu0  ;;  %v3628_v34 = vpop.f32.mrb[143].mxu1  ;;  %v4033_v43 = vmax.f32 %v3623_v40, 0.0 }
 0x4ef   :  { %v3265_v31 = vadd.f32 %v3264_v37, %v10065_v9  ;;  %v3629_v42 = vadd.f32 %v3628_v34, %v10065_v9  ;;  %v3266_v1 = vpop.f32.mrb[10].mxu0  ;;  %7621 = vmatprep.mubr.msk.bf16.mxu1 %vm3008_vm6, %v4140_v14  ;;  %v4034_v55 = vmax.f32 %v3625_v2, 0.0 }
 0x4f0   :  { %v4035_v20 = vmax.f32 %v3627_v30, 0.0  ;;  %v3267_v48 = vadd.f32 %v3266_v1, %v10061_v7  ;;  %v3268_v23 = vpop.f32.mrb[11].mxu0  ;;  %4668 = vmatmul.mubr.bf16.gmra.mrb[248].mxu1 %v4139_v17  ;;  %v3889_v4 = vmax.f32 %v3263_v22, 0.0 }
 0x4f1   :  { %v4036_v18 = vmax.f32 %v3629_v42, 0.0  ;;  %v3269_v56 = vadd.f32 %v3268_v23, %v10065_v9  ;;  %v3890_v37 = vmax.f32 %v3265_v31, 0.0 }
 0x4f2   :  { %v10612_v63 = vpack.c.bf16 %v4035_v20, %v4033_v43  ;;  %v3891_v25 = vmax.f32 %v3267_v48, 0.0 }
 0x4f3   :  { %v10614_v26 = vpack.c.bf16 %v4036_v18, %v4034_v55  ;;  %v3892_v34 = vmax.f32 %v3269_v56, 0.0  ;;  %v3632_v3 = vpop.f32.mrb[144].mxu1 }
 0x4f4   :  { %v4141_v14 = vpack.c.bf16 %v3891_v25, %v3889_v4  ;;  %v3633_v40 = vadd.f32 %v3632_v3, %v10061_v7  ;;  %v3634_v30 = vpop.f32.mrb[145].mxu1 }
 0x4f5   :  { %v4142_v1 = vpack.c.bf16 %v3892_v34, %v3890_v37  ;;  %v3635_v17 = vadd.f32 %v3634_v30, %v10065_v9  ;;  %v3636_v2 = vpop.f32.mrb[146].mxu1 }
 0x4f6   :  { %v3637_v42 = vadd.f32 %v3636_v2, %v10061_v7  ;;  %v3638_v23 = vpop.f32.mrb[147].mxu1  ;;  %v4037_v31 = vmax.f32 %v3633_v40, 0.0 }
 0x4f7   :  { %v3639_v22 = vadd.f32 %v3638_v23, %v10065_v9  ;;  %7622 = vmatprep.mubr.msk.bf16.mxu1 %vm3008_vm6, %v4142_v1  ;;  %v4038_v20 = vmax.f32 %v3635_v17, 0.0 }
 0x4f8   :  { %v4039_v43 = vmax.f32 %v3637_v42, 0.0  ;;  %4678 = vmatmul.mubr.bf16.gmra.mrb[252].mxu1 %v4141_v14 }
 0x4f9   :  { %v4040_v48 = vmax.f32 %v3639_v22, 0.0  ;;  %7623 = vmatprep.mubr.msk.bf16.mxu1 %vm3008_vm6, %v10093_v49 }
 0x4fa   :  { %v10623_v3 = vpack.c.bf16 %v4039_v43, %v4037_v31 }
 0x4fb   :  { %v10625_v55 = vpack.c.bf16 %v4040_v48, %v4038_v20  ;;  %v3642_v18 = vpop.f32.mrb[148].mxu1 }
 0x4fc   :  { %v3643_v56 = vadd.f32 %v3642_v18, %v10061_v7  ;;  %v3644_v4 = vpop.f32.mrb[149].mxu1 }
 0x4fd   :  { %v3645_v25 = vadd.f32 %v3644_v4, %v10065_v9  ;;  %v3646_v37 = vpop.f32.mrb[150].mxu1 }
 0x4fe   :  { %v3647_v34 = vadd.f32 %v3646_v37, %v10061_v7  ;;  %v3648_v40 = vpop.f32.mrb[151].mxu1  ;;  %v4041_v30 = vmax.f32 %v3643_v56, 0.0 }
 0x4ff   :  { %v3649_v14 = vadd.f32 %v3648_v40, %v10065_v9  ;;  %v4042_v49 = vmax.f32 %v3645_v25, 0.0 }
 0x500   :  { %v4043_v1 = vmax.f32 %v3647_v34, 0.0  ;;  %4688 = vmatmul.mubr.bf16.gmra.mrb[0].mxu1 %v10090_v46 }
 0x501   :  { %v4044_v17 = vmax.f32 %v3649_v14, 0.0  ;;  %7624 = vmatprep.mubr.msk.bf16.mxu1 %vm3008_vm6, %v10114_v27 }
 0x502   :  { %v10634_v2 = vpack.c.bf16 %v4043_v1, %v4041_v30 }
 0x503   :  { %v10636_v42 = vpack.c.bf16 %v4044_v17, %v4042_v49  ;;  %v3652_v23 = vpop.f32.mrb[152].mxu1 }
 0x504   :  { %v3653_v22 = vadd.f32 %v3652_v23, %v10061_v7  ;;  %v3654_v31 = vpop.f32.mrb[153].mxu1 }
 0x505   :  { %v3655_v43 = vadd.f32 %v3654_v31, %v10065_v9  ;;  %v3656_v20 = vpop.f32.mrb[154].mxu1 }
 0x506   :  { %v3657_v48 = vadd.f32 %v3656_v20, %v10061_v7  ;;  %v3658_v18 = vpop.f32.mrb[155].mxu1  ;;  %v4045_v56 = vmax.f32 %v3653_v22, 0.0 }
 0x507   :  { %v3659_v46 = vadd.f32 %v3658_v18, %v10065_v9  ;;  %v4046_v27 = vmax.f32 %v3655_v43, 0.0 }
 0x508   :  { %v4047_v4 = vmax.f32 %v3657_v48, 0.0  ;;  %4698 = vmatmul.mubr.bf16.gmra.mrb[4].mxu1 %v10111_v24 }
 0x509   :  { %v4048_v25 = vmax.f32 %v3659_v46, 0.0  ;;  %7625 = vmatprep.mubr.msk.bf16.mxu1 %vm3008_vm6, %v10135_v5 }
 0x50a   :  { %v10645_v37 = vpack.c.bf16 %v4047_v4, %v4045_v56 }
 0x50b   :  { %v10647_v34 = vpack.c.bf16 %v4048_v25, %v4046_v27  ;;  %v3662_v40 = vpop.f32.mrb[156].mxu1 }
 0x50c   :  { %v3663_v14 = vadd.f32 %v3662_v40, %v10061_v7  ;;  %v3664_v30 = vpop.f32.mrb[157].mxu1 }
 0x50d   :  { %v3665_v1 = vadd.f32 %v3664_v30, %v10065_v9  ;;  %v3666_v49 = vpop.f32.mrb[158].mxu1 }
 0x50e   :  { %v3667_v17 = vadd.f32 %v3666_v49, %v10061_v7  ;;  %v3668_v23 = vpop.f32.mrb[159].mxu1  ;;  %v4049_v22 = vmax.f32 %v3663_v14, 0.0 }
 0x50f   :  { %v3669_v24 = vadd.f32 %v3668_v23, %v10065_v9  ;;  %v4050_v5 = vmax.f32 %v3665_v1, 0.0 }
 0x510   :  { %v4051_v31 = vmax.f32 %v3667_v17, 0.0  ;;  %4708 = vmatmul.mubr.bf16.gmra.mrb[8].mxu1 %v10132_v61 }
 0x511   :  { %v4052_v43 = vmax.f32 %v3669_v24, 0.0  ;;  %7626 = vmatprep.mubr.msk.bf16.mxu1 %vm3008_vm6, %v10156_v44 }
 0x512   :  { %v10656_v20 = vpack.c.bf16 %v4051_v31, %v4049_v22 }
 0x513   :  { %v10658_v48 = vpack.c.bf16 %v4052_v43, %v4050_v5  ;;  %v3672_v18 = vpop.f32.mrb[160].mxu1 }
 0x514   :  { %v3673_v46 = vadd.f32 %v3672_v18, %v10061_v7  ;;  %v3674_v56 = vpop.f32.mrb[161].mxu1 }
 0x515   :  { %v3675_v4 = vadd.f32 %v3674_v56, %v10065_v9  ;;  %v3676_v27 = vpop.f32.mrb[162].mxu1 }
 0x516   :  { %v3677_v25 = vadd.f32 %v3676_v27, %v10061_v7  ;;  %v3678_v40 = vpop.f32.mrb[163].mxu1  ;;  %v4053_v14 = vmax.f32 %v3673_v46, 0.0 }
 0x517   :  { %v3679_v61 = vadd.f32 %v3678_v40, %v10065_v9  ;;  %v4054_v44 = vmax.f32 %v3675_v4, 0.0 }
 0x518   :  { %v4055_v30 = vmax.f32 %v3677_v25, 0.0  ;;  %4718 = vmatmul.mubr.bf16.gmra.mrb[12].mxu1 %v10153_v41 }
 0x519   :  { %v4056_v1 = vmax.f32 %v3679_v61, 0.0  ;;  %7627 = vmatprep.mubr.msk.bf16.mxu1 %vm3008_vm6, %v10177_v28 }
 0x51a   :  { %v10667_v49 = vpack.c.bf16 %v4055_v30, %v4053_v14 }
 0x51b   :  { %v10669_v17 = vpack.c.bf16 %v4056_v1, %v4054_v44  ;;  %v3682_v23 = vpop.f32.mrb[164].mxu1 }
 0x51c   :  { %v3683_v24 = vadd.f32 %v3682_v23, %v10061_v7  ;;  %v3684_v22 = vpop.f32.mrb[165].mxu1 }
 0x51d   :  { %v3685_v31 = vadd.f32 %v3684_v22, %v10065_v9  ;;  %v3686_v5 = vpop.f32.mrb[166].mxu1 }
 0x51e   :  { %v3687_v43 = vadd.f32 %v3686_v5, %v10061_v7  ;;  %v3688_v18 = vpop.f32.mrb[167].mxu1  ;;  %v4057_v46 = vmax.f32 %v3683_v24, 0.0 }
 0x51f   :  { %v3689_v41 = vadd.f32 %v3688_v18, %v10065_v9  ;;  %v4058_v28 = vmax.f32 %v3685_v31, 0.0 }
 0x520   :  { %v4059_v56 = vmax.f32 %v3687_v43, 0.0  ;;  %4728 = vmatmul.mubr.bf16.gmra.mrb[16].mxu1 %v10174_v21 }
 0x521   :  { %v4060_v4 = vmax.f32 %v3689_v41, 0.0  ;;  %7628 = vmatprep.mubr.msk.bf16.mxu1 %vm3008_vm6, %v10204_v13 }
 0x522   :  { %v10678_v27 = vpack.c.bf16 %v4059_v56, %v4057_v46 }
 0x523   :  { %v10680_v25 = vpack.c.bf16 %v4060_v4, %v4058_v28  ;;  %v3692_v40 = vpop.f32.mrb[168].mxu1 }
 0x524   :  { %v3693_v61 = vadd.f32 %v3692_v40, %v10061_v7  ;;  %v3694_v14 = vpop.f32.mrb[169].mxu1 }
 0x525   :  { %v3695_v30 = vadd.f32 %v3694_v14, %v10065_v9  ;;  %v3696_v44 = vpop.f32.mrb[170].mxu1 }
 0x526   :  { %v3697_v1 = vadd.f32 %v3696_v44, %v10061_v7  ;;  %v3698_v23 = vpop.f32.mrb[171].mxu1  ;;  %v4061_v24 = vmax.f32 %v3693_v61, 0.0 }
 0x527   :  { %v3699_v21 = vadd.f32 %v3698_v23, %v10065_v9  ;;  %v4062_v13 = vmax.f32 %v3695_v30, 0.0 }
 0x528   :  { %v4063_v22 = vmax.f32 %v3697_v1, 0.0  ;;  %4738 = vmatmul.mubr.bf16.gmra.mrb[20].mxu1 %v10201_v10 }
 0x529   :  { %v4064_v31 = vmax.f32 %v3699_v21, 0.0  ;;  %7629 = vmatprep.mubr.msk.bf16.mxu1 %vm3008_vm6, %v10220_v51 }
 0x52a   :  { %v10689_v5 = vpack.c.bf16 %v4063_v22, %v4061_v24 }
 0x52b   :  { %v10691_v43 = vpack.c.bf16 %v4064_v31, %v4062_v13  ;;  %v3702_v18 = vpop.f32.mrb[172].mxu1 }
 0x52c   :  { %v3703_v41 = vadd.f32 %v3702_v18, %v10061_v7  ;;  %v3704_v46 = vpop.f32.mrb[173].mxu1 }
 0x52d   :  { %v3705_v56 = vadd.f32 %v3704_v46, %v10065_v9  ;;  %v3706_v28 = vpop.f32.mrb[174].mxu1 }
 0x52e   :  { %v3707_v4 = vadd.f32 %v3706_v28, %v10061_v7  ;;  %v3708_v40 = vpop.f32.mrb[175].mxu1  ;;  %v4065_v61 = vmax.f32 %v3703_v41, 0.0 }
 0x52f   :  { %v3709_v10 = vadd.f32 %v3708_v40, %v10065_v9  ;;  %v4066_v51 = vmax.f32 %v3705_v56, 0.0 }
 0x530   :  { %v4067_v14 = vmax.f32 %v3707_v4, 0.0  ;;  %4748 = vmatmul.mubr.bf16.gmra.mrb[24].mxu1 %v10217_v47 }
 0x531   :  { %v4068_v30 = vmax.f32 %v3709_v10, 0.0  ;;  %7630 = vmatprep.mubr.msk.bf16.mxu1 %vm3008_vm6, %v10236_v32 }
 0x532   :  { %v10700_v44 = vpack.c.bf16 %v4067_v14, %v4065_v61 }
 0x533   :  { %v10702_v1 = vpack.c.bf16 %v4068_v30, %v4066_v51  ;;  %v3712_v23 = vpop.f32.mrb[176].mxu1 }
 0x534   :  { %v3713_v21 = vadd.f32 %v3712_v23, %v10061_v7  ;;  %v3714_v24 = vpop.f32.mrb[177].mxu1 }
 0x535   :  { %v3715_v22 = vadd.f32 %v3714_v24, %v10065_v9  ;;  %v3716_v13 = vpop.f32.mrb[178].mxu1 }
 0x536   :  { %v3717_v31 = vadd.f32 %v3716_v13, %v10061_v7  ;;  %v3718_v18 = vpop.f32.mrb[179].mxu1  ;;  %v4069_v41 = vmax.f32 %v3713_v21, 0.0 }
 0x537   :  { %v3719_v47 = vadd.f32 %v3718_v18, %v10065_v9  ;;  %v4070_v32 = vmax.f32 %v3715_v22, 0.0 }
 0x538   :  { %v4071_v46 = vmax.f32 %v3717_v31, 0.0  ;;  %4758 = vmatmul.mubr.bf16.gmra.mrb[28].mxu1 %v10233_v29 }
 0x539   :  { %v4072_v56 = vmax.f32 %v3719_v47, 0.0  ;;  %7631 = vmatprep.mubr.msk.bf16.mxu1 %vm3008_vm6, %v10252_v11 }
 0x53a   :  { %v10711_v28 = vpack.c.bf16 %v4071_v46, %v4069_v41 }
 0x53b   :  { %v10713_v4 = vpack.c.bf16 %v4072_v56, %v4070_v32  ;;  %v3722_v40 = vpop.f32.mrb[180].mxu1 }
 0x53c   :  { %v3723_v10 = vadd.f32 %v3722_v40, %v10061_v7  ;;  %v3724_v61 = vpop.f32.mrb[181].mxu1 }
 0x53d   :  { %v3725_v14 = vadd.f32 %v3724_v61, %v10065_v9  ;;  %v3726_v51 = vpop.f32.mrb[182].mxu1 }
 0x53e   :  { %v3727_v30 = vadd.f32 %v3726_v51, %v10061_v7  ;;  %v3728_v23 = vpop.f32.mrb[183].mxu1  ;;  %v4073_v21 = vmax.f32 %v3723_v10, 0.0 }
 0x53f   :  { %v3729_v29 = vadd.f32 %v3728_v23, %v10065_v9  ;;  %v4074_v11 = vmax.f32 %v3725_v14, 0.0 }
 0x540   :  { %v4075_v24 = vmax.f32 %v3727_v30, 0.0  ;;  %4768 = vmatmul.mubr.bf16.gmra.mrb[32].mxu1 %v10249_v6 }
 0x541   :  { %v4076_v22 = vmax.f32 %v3729_v29, 0.0  ;;  %7632 = vmatprep.mubr.msk.bf16.mxu1 %vm3008_vm6, %v10271_v52 }
 0x542   :  { %v10722_v13 = vpack.c.bf16 %v4075_v24, %v4073_v21 }
 0x543   :  { %v10724_v31 = vpack.c.bf16 %v4076_v22, %v4074_v11  ;;  %v3732_v18 = vpop.f32.mrb[184].mxu1 }
 0x544   :  { %v3733_v47 = vadd.f32 %v3732_v18, %v10061_v7  ;;  %v3734_v41 = vpop.f32.mrb[185].mxu1 }
 0x545   :  { %v3735_v46 = vadd.f32 %v3734_v41, %v10065_v9  ;;  %v3736_v32 = vpop.f32.mrb[186].mxu1 }
 0x546   :  { %v3737_v56 = vadd.f32 %v3736_v32, %v10061_v7  ;;  %v3738_v40 = vpop.f32.mrb[187].mxu1  ;;  %v4077_v10 = vmax.f32 %v3733_v47, 0.0 }
 0x547   :  { %v3739_v6 = vadd.f32 %v3738_v40, %v10065_v9  ;;  %v4078_v52 = vmax.f32 %v3735_v46, 0.0 }
 0x548   :  { %v4079_v61 = vmax.f32 %v3737_v56, 0.0  ;;  %4778 = vmatmul.mubr.bf16.gmra.mrb[36].mxu1 %v10263_v39 }
 0x549   :  { %v4080_v14 = vmax.f32 %v3739_v6, 0.0  ;;  %7633 = vmatprep.mubr.msk.bf16.mxu1 %vm3008_vm6, %v10284_v35 }
 0x54a   :  { %v10733_v51 = vpack.c.bf16 %v4079_v61, %v4077_v10 }
 0x54b   :  { %v10735_v30 = vpack.c.bf16 %v4080_v14, %v4078_v52  ;;  %v3742_v23 = vpop.f32.mrb[188].mxu1 }
 0x54c   :  { %v3743_v29 = vadd.f32 %v3742_v23, %v10061_v7  ;;  %v3744_v21 = vpop.f32.mrb[189].mxu1 }
 0x54d   :  { %v3745_v24 = vadd.f32 %v3744_v21, %v10065_v9  ;;  %v3746_v11 = vpop.f32.mrb[190].mxu1 }
 0x54e   :  { %v3747_v22 = vadd.f32 %v3746_v11, %v10061_v7  ;;  %v3748_v18 = vpop.f32.mrb[191].mxu1  ;;  %v4081_v47 = vmax.f32 %v3743_v29, 0.0 }
 0x54f   :  { %v3749_v39 = vadd.f32 %v3748_v18, %v10065_v9  ;;  %v4082_v35 = vmax.f32 %v3745_v24, 0.0 }
 0x550   :  { %v4083_v41 = vmax.f32 %v3747_v22, 0.0  ;;  %4788 = vmatmul.mubr.bf16.gmra.mrb[40].mxu1 %v10282_v33 }
 0x551   :  { %v4084_v46 = vmax.f32 %v3749_v39, 0.0  ;;  %7634 = vmatprep.mubr.msk.bf16.mxu1 %vm3008_vm6, %v10297_v19 }
 0x552   :  { %v10744_v32 = vpack.c.bf16 %v4083_v41, %v4081_v47 }
 0x553   :  { %v10746_v56 = vpack.c.bf16 %v4084_v46, %v4082_v35  ;;  %v3752_v40 = vpop.f32.mrb[192].mxu1 }
 0x554   :  { %v3753_v6 = vadd.f32 %v3752_v40, %v10061_v7  ;;  %v3754_v10 = vpop.f32.mrb[193].mxu1 }
 0x555   :  { %v3755_v61 = vadd.f32 %v3754_v10, %v10065_v9  ;;  %v3756_v52 = vpop.f32.mrb[194].mxu1 }
 0x556   :  { %v3757_v14 = vadd.f32 %v3756_v52, %v10061_v7  ;;  %v3758_v23 = vpop.f32.mrb[195].mxu1  ;;  %v4085_v29 = vmax.f32 %v3753_v6, 0.0 }
 0x557   :  { %v3759_v33 = vadd.f32 %v3758_v23, %v10065_v9  ;;  %v4086_v19 = vmax.f32 %v3755_v61, 0.0 }
 0x558   :  { %v4087_v21 = vmax.f32 %v3757_v14, 0.0  ;;  %4798 = vmatmul.mubr.bf16.gmra.mrb[44].mxu1 %v10295_v16 }
 0x559   :  { %v4088_v24 = vmax.f32 %v3759_v33, 0.0  ;;  %7635 = vmatprep.mubr.msk.bf16.mxu1 %vm3008_vm6, %v10310_v8 }
 0x55a   :  { %v10755_v11 = vpack.c.bf16 %v4087_v21, %v4085_v29 }
 0x55b   :  { %v10757_v22 = vpack.c.bf16 %v4088_v24, %v4086_v19  ;;  %v3762_v18 = vpop.f32.mrb[196].mxu1 }
 0x55c   :  { %v3763_v39 = vadd.f32 %v3762_v18, %v10061_v7  ;;  %v3764_v47 = vpop.f32.mrb[197].mxu1 }
 0x55d   :  { %v3765_v41 = vadd.f32 %v3764_v47, %v10065_v9  ;;  %v3766_v35 = vpop.f32.mrb[198].mxu1 }
 0x55e   :  { %v3767_v46 = vadd.f32 %v3766_v35, %v10061_v7  ;;  %v3768_v40 = vpop.f32.mrb[199].mxu1  ;;  %v4089_v6 = vmax.f32 %v3763_v39, 0.0 }
 0x55f   :  { %v3769_v16 = vadd.f32 %v3768_v40, %v10065_v9  ;;  %v4090_v8 = vmax.f32 %v3765_v41, 0.0 }
 0x560   :  { %v4091_v10 = vmax.f32 %v3767_v46, 0.0  ;;  %4808 = vmatmul.mubr.bf16.gmra.mrb[48].mxu1 %v10308_v62 }
 0x561   :  { %v4092_v61 = vmax.f32 %v3769_v16, 0.0  ;;  %7636 = vmatprep.mubr.msk.bf16.mxu1 %vm3008_vm6, %v10323_v58 }
 0x562   :  { %v10766_v52 = vpack.c.bf16 %v4091_v10, %v4089_v6 }
 0x563   :  { %v10768_v14 = vpack.c.bf16 %v4092_v61, %v4090_v8  ;;  %v3772_v23 = vpop.f32.mrb[200].mxu1 }
 0x564   :  { %v3773_v33 = vadd.f32 %v3772_v23, %v10061_v7  ;;  %v3774_v29 = vpop.f32.mrb[201].mxu1 }
 0x565   :  { %v3775_v21 = vadd.f32 %v3774_v29, %v10065_v9  ;;  %v3776_v19 = vpop.f32.mrb[202].mxu1 }
 0x566   :  { %v3777_v24 = vadd.f32 %v3776_v19, %v10061_v7  ;;  %v3778_v18 = vpop.f32.mrb[203].mxu1  ;;  %v4093_v39 = vmax.f32 %v3773_v33, 0.0 }
 0x567   :  { %v3779_v62 = vadd.f32 %v3778_v18, %v10065_v9  ;;  %v4094_v58 = vmax.f32 %v3775_v21, 0.0 }
 0x568   :  { %v4095_v47 = vmax.f32 %v3777_v24, 0.0  ;;  %4818 = vmatmul.mubr.bf16.gmra.mrb[52].mxu1 %v10321_v53 }
 0x569   :  { %v4096_v41 = vmax.f32 %v3779_v62, 0.0  ;;  %7637 = vmatprep.mubr.msk.bf16.mxu1 %vm3008_vm6, %v10341_v60 }
 0x56a   :  { %v10777_v35 = vpack.c.bf16 %v4095_v47, %v4093_v39 }
 0x56b   :  { %v10779_v46 = vpack.c.bf16 %v4096_v41, %v4094_v58  ;;  %v3782_v40 = vpop.f32.mrb[204].mxu1 }
 0x56c   :  { %v3783_v16 = vadd.f32 %v3782_v40, %v10061_v7  ;;  %v3784_v6 = vpop.f32.mrb[205].mxu1 }
 0x56d   :  { %v3785_v10 = vadd.f32 %v3784_v6, %v10065_v9  ;;  %v3786_v8 = vpop.f32.mrb[206].mxu1 }
 0x56e   :  { %v3787_v61 = vadd.f32 %v3786_v8, %v10061_v7  ;;  %v3788_v23 = vpop.f32.mrb[207].mxu1  ;;  %v4097_v33 = vmax.f32 %v3783_v16, 0.0 }
 0x56f   :  { %v3789_v53 = vadd.f32 %v3788_v23, %v10065_v9  ;;  %v4098_v60 = vmax.f32 %v3785_v10, 0.0 }
 0x570   :  { %v4099_v29 = vmax.f32 %v3787_v61, 0.0  ;;  %4828 = vmatmul.mubr.bf16.gmra.mrb[56].mxu1 %v10338_v57 }
 0x571   :  { %v4100_v21 = vmax.f32 %v3789_v53, 0.0  ;;  %7638 = vmatprep.mubr.msk.bf16.mxu1 %vm3008_vm6, %v10354_v59 }
 0x572   :  { %v10788_v19 = vpack.c.bf16 %v4099_v29, %v4097_v33 }
 0x573   :  { %v10790_v24 = vpack.c.bf16 %v4100_v21, %v4098_v60  ;;  %v3792_v18 = vpop.f32.mrb[208].mxu1 }
 0x574   :  { %v3793_v62 = vadd.f32 %v3792_v18, %v10061_v7  ;;  %v3794_v39 = vpop.f32.mrb[209].mxu1 }
 0x575   :  { %v3795_v47 = vadd.f32 %v3794_v39, %v10065_v9  ;;  %v3796_v58 = vpop.f32.mrb[210].mxu1 }
 0x576   :  { %v3797_v41 = vadd.f32 %v3796_v58, %v10061_v7  ;;  %v3798_v40 = vpop.f32.mrb[211].mxu1  ;;  %v4101_v16 = vmax.f32 %v3793_v62, 0.0 }
 0x577   :  { %v3799_v57 = vadd.f32 %v3798_v40, %v10065_v9  ;;  %v4102_v59 = vmax.f32 %v3795_v47, 0.0 }
 0x578   :  { %v4103_v6 = vmax.f32 %v3797_v41, 0.0  ;;  %4838 = vmatmul.mubr.bf16.gmra.mrb[60].mxu1 %v10352_v50 }
 0x579   :  { %v4104_v10 = vmax.f32 %v3799_v57, 0.0  ;;  %7639 = vmatprep.mubr.msk.bf16.mxu1 %vm3008_vm6, %v10367_v12 }
 0x57a   :  { %v10799_v8 = vpack.c.bf16 %v4103_v6, %v4101_v16 }
 0x57b   :  { %v10801_v61 = vpack.c.bf16 %v4104_v10, %v4102_v59  ;;  %v3802_v23 = vpop.f32.mrb[212].mxu1 }
 0x57c   :  { %v3803_v53 = vadd.f32 %v3802_v23, %v10061_v7  ;;  %v3804_v33 = vpop.f32.mrb[213].mxu1 }
 0x57d   :  { %v3805_v29 = vadd.f32 %v3804_v33, %v10065_v9  ;;  %v3806_v60 = vpop.f32.mrb[214].mxu1 }
 0x57e   :  { %v3807_v21 = vadd.f32 %v3806_v60, %v10061_v7  ;;  %v3808_v18 = vpop.f32.mrb[215].mxu1  ;;  %v4105_v62 = vmax.f32 %v3803_v53, 0.0 }
 0x57f   :  { %v3809_v50 = vadd.f32 %v3808_v18, %v10065_v9  ;;  %v4106_v12 = vmax.f32 %v3805_v29, 0.0 }
 0x580   :  { %v4107_v39 = vmax.f32 %v3807_v21, 0.0  ;;  %4848 = vmatmul.mubr.bf16.gmra.mrb[64].mxu1 %v10365_v54 }
 0x581   :  { %v4108_v47 = vmax.f32 %v3809_v50, 0.0  ;;  %7640 = vmatprep.mubr.msk.bf16.mxu1 %vm3008_vm6, %v10380_v0 }
 0x582   :  { %v10810_v58 = vpack.c.bf16 %v4107_v39, %v4105_v62 }
 0x583   :  { %v10812_v41 = vpack.c.bf16 %v4108_v47, %v4106_v12  ;;  %v3812_v40 = vpop.f32.mrb[216].mxu1 }
 0x584   :  { %v3813_v57 = vadd.f32 %v3812_v40, %v10061_v7  ;;  %v3814_v16 = vpop.f32.mrb[217].mxu1 }
 0x585   :  { %v3815_v6 = vadd.f32 %v3814_v16, %v10065_v9  ;;  %v3816_v59 = vpop.f32.mrb[218].mxu1 }
 0x586   :  { %v3817_v10 = vadd.f32 %v3816_v59, %v10061_v7  ;;  %v3818_v23 = vpop.f32.mrb[219].mxu1  ;;  %v4109_v53 = vmax.f32 %v3813_v57, 0.0 }
 0x587   :  { %v3819_v54 = vadd.f32 %v3818_v23, %v10065_v9  ;;  %v4110_v0 = vmax.f32 %v3815_v6, 0.0  ;;  %v12353_v6 = vld [vmem:[#allocation5_spill] sm:$0xff] }
 0x588   :  { %v4111_v33 = vmax.f32 %v3817_v10, 0.0  ;;  %4858 = vmatmul.mubr.bf16.gmra.mrb[68].mxu1 %v10378_v15  ;;  %v12354_v10 = vld [vmem:[#allocation7_spill] sm:$0xff] }
 0x589   :  { %v4112_v29 = vmax.f32 %v3819_v54, 0.0  ;;  %7641 = vmatprep.mubr.msk.bf16.mxu1 %vm3008_vm6, %v10393_v38 }
 0x58a   :  { %v10821_v60 = vpack.c.bf16 %v4111_v33, %v4109_v53 }
 0x58b   :  { %v10823_v21 = vpack.c.bf16 %v4112_v29, %v4110_v0  ;;  %v3822_v18 = vpop.f32.mrb[220].mxu1 }
 0x58c   :  { %12351 = vst [vmem:[#allocation36_spill] sm:$0xff] %v10821_v60  ;;  %v3823_v50 = vadd.f32 %v3822_v18, %v10061_v7  ;;  %v3824_v62 = vpop.f32.mrb[221].mxu1 }
 0x58d   :  { %12352 = vst [vmem:[#allocation37_spill] sm:$0xff] %v10823_v21  ;;  %v3825_v39 = vadd.f32 %v3824_v62, %v10065_v9  ;;  %v3826_v12 = vpop.f32.mrb[222].mxu1  ;;  %v12382_v21 = vld [vmem:[#allocation21_spill] sm:$0xff] }
 0x58e   :  { %v3827_v47 = vadd.f32 %v3826_v12, %v10061_v7  ;;  %v3828_v40 = vpop.f32.mrb[223].mxu1  ;;  %v4113_v57 = vmax.f32 %v3823_v50, 0.0 }
 0x58f   :  { %v3829_v15 = vadd.f32 %v3828_v40, %v10065_v9  ;;  %v4114_v38 = vmax.f32 %v3825_v39, 0.0  ;;  %v12357_v40 = vld [vmem:[#allocation6_spill] sm:$0xff] }
 0x590   :  { %v4115_v16 = vmax.f32 %v3827_v47, 0.0  ;;  %4868 = vmatmul.mubr.bf16.gmra.mrb[72].mxu1 %v12353_v6 }
 0x591   :  { %v4116_v59 = vmax.f32 %v3829_v15, 0.0  ;;  %7642 = vmatprep.mubr.msk.bf16.mxu1 %vm3008_vm6, %v12354_v10 }
 0x592   :  { %v10832_v23 = vpack.c.bf16 %v4115_v16, %v4113_v57  ;;  %v12358_v16 = vld [vmem:[#allocation9_spill] sm:$0xff] }
 0x593   :  { %v10834_v54 = vpack.c.bf16 %v4116_v59, %v4114_v38  ;;  %v3832_v53 = vpop.f32.mrb[224].mxu1 }
 0x594   :  { %12355 = vst [vmem:[#allocation5_spill] sm:$0xff] %v10832_v23  ;;  %v3833_v33 = vadd.f32 %v3832_v53, %v10061_v7  ;;  %v3834_v0 = vpop.f32.mrb[225].mxu1 }
 0x595   :  { %12356 = vst [vmem:[#allocation7_spill] sm:$0xff] %v10834_v54  ;;  %v3835_v29 = vadd.f32 %v3834_v0, %v10065_v9  ;;  %v3836_v18 = vpop.f32.mrb[226].mxu1 }
 0x596   :  { %v3837_v50 = vadd.f32 %v3836_v18, %v10061_v7  ;;  %v3838_v62 = vpop.f32.mrb[227].mxu1  ;;  %v4117_v12 = vmax.f32 %v3833_v33, 0.0 }
 0x597   :  { %v3839_v39 = vadd.f32 %v3838_v62, %v10065_v9  ;;  %v4118_v15 = vmax.f32 %v3835_v29, 0.0 }
 0x598   :  { %v4119_v47 = vmax.f32 %v3837_v50, 0.0  ;;  %4878 = vmatmul.mubr.bf16.gmra.mrb[76].mxu1 %v12357_v40  ;;  %v12361_v40 = vld [vmem:[#allocation8_spill] sm:$0xff] }
 0x599   :  { %v4120_v57 = vmax.f32 %v3839_v39, 0.0  ;;  %7643 = vmatprep.mubr.msk.bf16.mxu1 %vm3008_vm6, %v12358_v16 }
 0x59a   :  { %v10843_v6 = vpack.c.bf16 %v4119_v47, %v4117_v12 }
 0x59b   :  { %v10845_v38 = vpack.c.bf16 %v4120_v57, %v4118_v15  ;;  %v3842_v59 = vpop.f32.mrb[228].mxu1  ;;  %v12362_v15 = vld [vmem:[#allocation11_spill] sm:$0xff] }
 0x59c   :  { %12359 = vst [vmem:[#allocation6_spill] sm:$0xff] %v10843_v6  ;;  %v3843_v10 = vadd.f32 %v3842_v59, %v10061_v7  ;;  %v3844_v53 = vpop.f32.mrb[229].mxu1 }
 0x59d   :  { %12360 = vst [vmem:[#allocation9_spill] sm:$0xff] %v10845_v38  ;;  %v3845_v0 = vadd.f32 %v3844_v53, %v10065_v9  ;;  %v3846_v18 = vpop.f32.mrb[230].mxu1  ;;  %v12365_v38 = vld [vmem:[#allocation10_spill] sm:$0xff] }
 0x59e   :  { %v3847_v33 = vadd.f32 %v3846_v18, %v10061_v7  ;;  %v3848_v50 = vpop.f32.mrb[231].mxu1  ;;  %v4121_v62 = vmax.f32 %v3843_v10, 0.0 }
 0x59f   :  { %v3849_v29 = vadd.f32 %v3848_v50, %v10065_v9  ;;  %v4122_v12 = vmax.f32 %v3845_v0, 0.0 }
 0x5a0   :  { %v4123_v39 = vmax.f32 %v3847_v33, 0.0  ;;  %4888 = vmatmul.mubr.bf16.gmra.mrb[80].mxu1 %v12361_v40 }
 0x5a1   :  { %v4124_v47 = vmax.f32 %v3849_v29, 0.0  ;;  %7644 = vmatprep.mubr.msk.bf16.mxu1 %vm3008_vm6, %v12362_v15 }
 0x5a2   :  { %v10854_v57 = vpack.c.bf16 %v4123_v39, %v4121_v62 }
 0x5a3   :  { %v10856_v16 = vpack.c.bf16 %v4124_v47, %v4122_v12  ;;  %v3852_v59 = vpop.f32.mrb[232].mxu1  ;;  %v12366_v12 = vld [vmem:[#allocation13_spill] sm:$0xff] }
 0x5a4   :  { %12363 = vst [vmem:[#allocation8_spill] sm:$0xff] %v10854_v57  ;;  %v3853_v53 = vadd.f32 %v3852_v59, %v10061_v7  ;;  %v3854_v18 = vpop.f32.mrb[233].mxu1 }
 0x5a5   :  { %12364 = vst [vmem:[#allocation11_spill] sm:$0xff] %v10856_v16  ;;  %v3855_v6 = vadd.f32 %v3854_v18, %v10065_v9  ;;  %v3856_v50 = vpop.f32.mrb[234].mxu1  ;;  %v12369_v16 = vld [vmem:[#allocation12_spill] sm:$0xff] }
 0x5a6   :  { %v3857_v10 = vadd.f32 %v3856_v50, %v10061_v7  ;;  %v3858_v33 = vpop.f32.mrb[235].mxu1  ;;  %v4125_v29 = vmax.f32 %v3853_v53, 0.0 }
 0x5a7   :  { %v3859_v0 = vadd.f32 %v3858_v33, %v10065_v9  ;;  %v4126_v62 = vmax.f32 %v3855_v6, 0.0 }
 0x5a8   :  { %v4127_v40 = vmax.f32 %v3857_v10, 0.0  ;;  %4898 = vmatmul.mubr.bf16.gmra.mrb[84].mxu1 %v12365_v38 }
 0x5a9   :  { %v4128_v39 = vmax.f32 %v3859_v0, 0.0  ;;  %7645 = vmatprep.mubr.msk.bf16.mxu1 %vm3008_vm6, %v12366_v12 }
 0x5aa   :  { %v10865_v47 = vpack.c.bf16 %v4127_v40, %v4125_v29 }
 0x5ab   :  { %v10867_v15 = vpack.c.bf16 %v4128_v39, %v4126_v62  ;;  %v3862_v59 = vpop.f32.mrb[236].mxu1  ;;  %v12370_v62 = vld [vmem:[#allocation15_spill] sm:$0xff] }
 0x5ac   :  { %12367 = vst [vmem:[#allocation10_spill] sm:$0xff] %v10865_v47  ;;  %v3863_v18 = vadd.f32 %v3862_v59, %v10061_v7  ;;  %v3864_v50 = vpop.f32.mrb[237].mxu1 }
 0x5ad   :  { %12368 = vst [vmem:[#allocation13_spill] sm:$0xff] %v10867_v15  ;;  %v3865_v57 = vadd.f32 %v3864_v50, %v10065_v9  ;;  %v3866_v33 = vpop.f32.mrb[238].mxu1 }
 0x5ae   :  { %v3867_v53 = vadd.f32 %v3866_v33, %v10061_v7  ;;  %v3868_v10 = vpop.f32.mrb[239].mxu1  ;;  %v4129_v38 = vmax.f32 %v3863_v18, 0.0 }
 0x5af   :  { %v3869_v6 = vadd.f32 %v3868_v10, %v10065_v9  ;;  %v4130_v29 = vmax.f32 %v3865_v57, 0.0 }
 0x5b0   :  { %v4131_v0 = vmax.f32 %v3867_v53, 0.0  ;;  %4908 = vmatmul.mubr.bf16.gmra.mrb[88].mxu1 %v12369_v16  ;;  %v4290_v16 = vld [vmem:[%s12310_s8] sm:$0x3] }
 0x5b1   :  { %v4132_v40 = vmax.f32 %v3869_v6, 0.0  ;;  %7646 = vmatprep.mubr.msk.bf16.mxu1 %vm3008_vm6, %v12370_v62 }
 0x5b2   :  { %v10876_v39 = vpack.c.bf16 %v4131_v0, %v4129_v38  ;;  %v12373_v0 = vld [vmem:[#allocation14_spill] sm:$0xff] }
 0x5b3   :  { %v10878_v12 = vpack.c.bf16 %v4132_v40, %v4130_v29  ;;  %v3872_v59 = vpop.f32.mrb[240].mxu1  ;;  %v12374_v29 = vld [vmem:[#allocation3_spill] sm:$0xff] }
 0x5b4   :  { %12371 = vst [vmem:[#allocation12_spill] sm:$0xff] %v10876_v39  ;;  %v3873_v50 = vadd.f32 %v3872_v59, %v10061_v7  ;;  %v3874_v33 = vpop.f32.mrb[241].mxu1  ;;  %v10889_v40 = vrot.slane %v4290_v16, %v12374_v29  ;;  %v12376_v39 = vld [vmem:[#allocation4_spill] sm:$0xff] }
 0x5b5   :  { %12372 = vst [vmem:[#allocation15_spill] sm:$0xff] %v10878_v12  ;;  %v3875_v47 = vadd.f32 %v3874_v33, %v10065_v9  ;;  %v3876_v10 = vpop.f32.mrb[242].mxu1  ;;  %v12375_v33 = vld [vmem:[#allocation17_spill] sm:$0xff]  ;;  %v10894_v12 = vrot.slane %v4290_v16, %v12376_v39 }
 0x5b6   :  { %v3877_v57 = vadd.f32 %v3876_v10, %v10061_v7  ;;  %v3878_v18 = vpop.f32.mrb[243].mxu1  ;;  %v4133_v6 = vmax.f32 %v3873_v50, 0.0  ;;  %v5554_v7 = vld [vmem:[%s12311_s9] sm:$0x3] }
 0x5b7   :  { %v3879_v53 = vadd.f32 %v3878_v18, %v10065_v9  ;;  %v4134_v62 = vmax.f32 %v3875_v47, 0.0 }
 0x5b8   :  { %v4135_v38 = vmax.f32 %v3877_v57, 0.0  ;;  %4918 = vmatmul.mubr.bf16.gmra.mrb[92].mxu1 %v12373_v0 }
 0x5b9   :  { %v4136_v59 = vmax.f32 %v3879_v53, 0.0  ;;  %7647 = vmatprep.mubr.msk.bf16.mxu1 %vm3008_vm6, %v12375_v33  ;;  %v10906_v53 = vrot.slane %v5554_v7, %v12376_v39 }
 0x5ba   :  { %v10896_v15 = vpack.c.bf16 %v4135_v38, %v4133_v6  ;;  %v10910_v38 = vrot.slane %v5554_v7, %v12374_v29 }
 0x5bb   :  { %v10901_v9 = vpack.c.bf16 %v4136_v59, %v4134_v62  ;;  %v4659_v50 = vpop.f32.mrb[244].mxu1 }
 0x5bc   :  { %12377 = vst [vmem:[#allocation14_spill] sm:$0xff] %v10896_v15  ;;  %v4660_v10 = vadd.f32 %v4659_v50, %v10889_v40  ;;  %v4661_v57 = vpop.f32.mrb[245].mxu1  ;;  %v12379_v15 = vld [vmem:[#allocation16_spill] sm:$0xff] }
 0x5bd   :  { %12378 = vst [vmem:[#allocation3_spill] sm:$0xff] %v10901_v9  ;;  %v4662_v47 = vadd.f32 %v4661_v57, %v10894_v12  ;;  %v4663_v18 = vpop.f32.mrb[246].mxu1  ;;  %v12380_v9 = vld [vmem:[#allocation19_spill] sm:$0xff] }
 0x5be   :  { %v5298_v16 = vmax.f32 %v4660_v10, 0.0  ;;  %v4664_v6 = vadd.f32 %v4663_v18, %v10889_v40  ;;  %v4665_v0 = vpop.f32.mrb[247].mxu1 }
 0x5bf   :  { %v5299_v33 = vmax.f32 %v4662_v47, 0.0  ;;  %v4666_v62 = vadd.f32 %v4665_v0, %v10894_v12 }
 0x5c0   :  { %v5300_v59 = vmax.f32 %v4664_v6, 0.0  ;;  %4928 = vmatmul.mubr.bf16.gmra.mrb[96].mxu1 %v12379_v15  ;;  %v5566_v10 = vmul.f32 %v10910_v38, %v5298_v16 }
 0x5c1   :  { %v5301_v50 = vmax.f32 %v4666_v62, 0.0  ;;  %7648 = vmatprep.mubr.msk.bf16.mxu1 %vm3008_vm6, %v12380_v9  ;;  %v5567_v39 = vmul.f32 %v10906_v53, %v5299_v33 }
 0x5c2   :  { %v5568_v7 = vmul.f32 %v10910_v38, %v5300_v59  ;;  %v12381_v59 = vld [vmem:[#allocation18_spill] sm:$0xff] }
 0x5c3   :  { %v5569_v57 = vmul.f32 %v10906_v53, %v5301_v50  ;;  %v4669_v18 = vpop.f32.mrb[248].mxu1  ;;  %v5822_v29 = vsel %vm3008_vm6, %v5567_v39, 0.0 }
 0x5c4   :  { %v4670_v47 = vadd.f32 %v4669_v18, %v10889_v40  ;;  %v4671_v6 = vpop.f32.mrb[249].mxu1  ;;  %v5823_v0 = vadd.f32 %v5822_v29, %v5566_v10 }
 0x5c5   :  { %v4672_v15 = vadd.f32 %v4671_v6, %v10894_v12  ;;  %v4673_v62 = vpop.f32.mrb[250].mxu1  ;;  %v5826_v9 = vsel %vm3008_vm6, %v5569_v57, 0.0  ;;  %v16_v6 = vstv %s12312_s10 }
 0x5c6   :  { %v5302_v23 = vmax.f32 %v4670_v47, 0.0  ;;  %v4674_v33 = vadd.f32 %v4673_v62, %v10889_v40  ;;  %v4675_v16 = vpop.f32.mrb[251].mxu1  ;;  %5824 = vadd.xlane.f32.xlu0 %v5823_v0  ;;  %v5827_v50 = vadd.f32 %v5826_v9, %v5568_v7  ;;  %17 = vst [vmem:[#allocation2] sm:$0x1] %v16_v6 }
 0x5c7   :  { %v5303_v54 = vmax.f32 %v4672_v15, 0.0  ;;  %v4676_v39 = vadd.f32 %v4675_v16, %v10894_v12 }
 0x5c8   :  { %v5304_v60 = vmax.f32 %v4674_v33, 0.0  ;;  %4938 = vmatmul.mubr.bf16.gmra.mrb[100].mxu1 %v12381_v59  ;;  %v5570_v57 = vmul.f32 %v10910_v38, %v5302_v23 }
 0x5c9   :  { %v5305_v18 = vmax.f32 %v4676_v39, 0.0  ;;  %7649 = vmatprep.mubr.msk.bf16.mxu1 %vm3008_vm6, %v12382_v21  ;;  %v5571_v10 = vmul.f32 %v10906_v53, %v5303_v54 }
 0x5ca   :  { %5828 = vadd.xlane.f32.xlu0 %v5827_v50  ;;  %v5572_v0 = vmul.f32 %v10910_v38, %v5304_v60 }
 0x5cb   :  { %v5573_v29 = vmul.f32 %v10906_v53, %v5305_v18  ;;  %v4679_v47 = vpop.f32.mrb[252].mxu1  ;;  %v5830_v7 = vsel %vm3008_vm6, %v5571_v10, 0.0  ;;  %v12383_v10 = vld [vmem:[#allocation20_spill] sm:$0xff] }
 0x5cc   :  { %v4680_v15 = vadd.f32 %v4679_v47, %v10889_v40  ;;  %v4681_v62 = vpop.f32.mrb[253].mxu1  ;;  %v5831_v21 = vadd.f32 %v5830_v7, %v5570_v57  ;;  %v12384_v7 = vld [vmem:[#allocation23_spill] sm:$0xff] }
 0x5cd   :  { %v4682_v54 = vadd.f32 %v4681_v62, %v10894_v12  ;;  %v4683_v9 = vpop.f32.mrb[254].mxu1  ;;  %v5834_v23 = vsel %vm3008_vm6, %v5573_v29, 0.0 }
 0x5ce   :  { %v5306_v33 = vmax.f32 %v4680_v15, 0.0  ;;  %v4684_v16 = vadd.f32 %v4683_v9, %v10889_v40  ;;  %v4685_v50 = vpop.f32.mrb[255].mxu1  ;;  %5832 = vadd.xlane.f32.xlu1 %v5831_v21  ;;  %v5835_v39 = vadd.f32 %v5834_v23, %v5572_v0 }
 0x5cf   :  { %v5307_v59 = vmax.f32 %v4682_v54, 0.0  ;;  %v4686_v18 = vadd.f32 %v4685_v50, %v10894_v12 }
 0x5d0   :  { %v5308_v60 = vmax.f32 %v4684_v16, 0.0  ;;  %4948 = vmatmul.mubr.bf16.gmra.mrb[104].mxu1 %v12383_v10  ;;  %v5574_v29 = vmul.f32 %v10910_v38, %v5306_v33 }
 0x5d1   :  { %v5575_v57 = vmul.f32 %v10906_v53, %v5307_v59  ;;  %v5309_v47 = vmax.f32 %v4686_v18, 0.0  ;;  %7650 = vmatprep.mubr.msk.bf16.mxu1 %vm3008_vm6, %v12384_v7 }
 0x5d2   :  { %5836 = vadd.xlane.f32.xlu1 %v5835_v39  ;;  %v5576_v62 = vmul.f32 %v10910_v38, %v5308_v60  ;;  %v12385_v60 = vld [vmem:[#allocation22_spill] sm:$0xff] }
 0x5d3   :  { %v5577_v6 = vmul.f32 %v10906_v53, %v5309_v47  ;;  %v4689_v15 = vpop.f32.mrb[0].mxu1  ;;  %v5838_v0 = vsel %vm3008_vm6, %v5575_v57, 0.0 }
 0x5d4   :  { %v4690_v21 = vadd.f32 %v4689_v15, %v10889_v40  ;;  %v4691_v54 = vpop.f32.mrb[1].mxu1  ;;  %v5839_v9 = vadd.f32 %v5838_v0, %v5574_v29  ;;  %v12386_v15 = vld [vmem:[#allocation25_spill] sm:$0xff] }
 0x5d5   :  { %v4692_v23 = vadd.f32 %v4691_v54, %v10894_v12  ;;  %v4693_v16 = vpop.f32.mrb[2].mxu1  ;;  %v5842_v50 = vsel %vm3008_vm6, %v5577_v6, 0.0 }
 0x5d6   :  { %v5310_v59 = vmax.f32 %v4690_v21, 0.0  ;;  %v4694_v33 = vadd.f32 %v4693_v16, %v10889_v40  ;;  %v4695_v39 = vpop.f32.mrb[3].mxu1  ;;  %5840 = vadd.xlane.f32.xlu0 %v5839_v9  ;;  %v5843_v18 = vadd.f32 %v5842_v50, %v5576_v62 }
 0x5d7   :  { %v5311_v10 = vmax.f32 %v4692_v23, 0.0  ;;  %v4696_v57 = vadd.f32 %v4695_v39, %v10894_v12 }
 0x5d8   :  { %v5312_v47 = vmax.f32 %v4694_v33, 0.0  ;;  %4958 = vmatmul.mubr.bf16.gmra.mrb[108].mxu1 %v12385_v60  ;;  %5844 = vadd.xlane.f32.xlu1 %v5843_v18  ;;  %v5578_v6 = vmul.f32 %v10910_v38, %v5310_v59 }
 0x5d9   :  { %v5579_v7 = vmul.f32 %v10906_v53, %v5311_v10  ;;  %v5313_v29 = vmax.f32 %v4696_v57, 0.0  ;;  %7651 = vmatprep.mubr.msk.bf16.mxu1 %vm3008_vm6, %v12386_v15 }
 0x5da   :  { %v5580_v54 = vmul.f32 %v10910_v38, %v5312_v47  ;;  %v12387_v47 = vld [vmem:[#allocation24_spill] sm:$0xff] }
 0x5db   :  { %v5581_v0 = vmul.f32 %v10906_v53, %v5313_v29  ;;  %v4699_v21 = vpop.f32.mrb[4].mxu1  ;;  %v5846_v62 = vsel %vm3008_vm6, %v5579_v7, 0.0 }
 0x5dc   :  { %v4700_v9 = vadd.f32 %v4699_v21, %v10889_v40  ;;  %v4701_v23 = vpop.f32.mrb[5].mxu1  ;;  %v5847_v16 = vadd.f32 %v5846_v62, %v5578_v6  ;;  %v12388_v21 = vld [vmem:[#allocation27_spill] sm:$0xff] }
 0x5dd   :  { %v4702_v50 = vadd.f32 %v4701_v23, %v10894_v12  ;;  %v4703_v33 = vpop.f32.mrb[6].mxu1  ;;  %v5850_v39 = vsel %vm3008_vm6, %v5581_v0, 0.0 }
 0x5de   :  { %v5314_v18 = vmax.f32 %v4700_v9, 0.0  ;;  %v4704_v10 = vadd.f32 %v4703_v33, %v10889_v40  ;;  %v4705_v59 = vpop.f32.mrb[7].mxu1  ;;  %5848 = vadd.xlane.f32.xlu0 %v5847_v16  ;;  %v5851_v57 = vadd.f32 %v5850_v39, %v5580_v54 }
 0x5df   :  { %v5315_v60 = vmax.f32 %v4702_v50, 0.0  ;;  %v4706_v7 = vadd.f32 %v4705_v59, %v10894_v12 }
 0x5e0   :  { %v5316_v29 = vmax.f32 %v4704_v10, 0.0  ;;  %4968 = vmatmul.mubr.bf16.gmra.mrb[112].mxu1 %v12387_v47  ;;  %5852 = vadd.xlane.f32.xlu1 %v5851_v57  ;;  %v5582_v0 = vmul.f32 %v10910_v38, %v5314_v18 }
 0x5e1   :  { %v5583_v15 = vmul.f32 %v10906_v53, %v5315_v60  ;;  %v5317_v6 = vmax.f32 %v4706_v7, 0.0  ;;  %7652 = vmatprep.mubr.msk.bf16.mxu1 %vm3008_vm6, %v12388_v21 }
 0x5e2   :  { %v5584_v23 = vmul.f32 %v10910_v38, %v5316_v29  ;;  %v12389_v29 = vld [vmem:[#allocation26_spill] sm:$0xff] }
 0x5e3   :  { %v5585_v62 = vmul.f32 %v10906_v53, %v5317_v6  ;;  %v4709_v9 = vpop.f32.mrb[8].mxu1  ;;  %v5854_v54 = vsel %vm3008_vm6, %v5583_v15, 0.0 }
 0x5e4   :  { %v4710_v16 = vadd.f32 %v4709_v9, %v10889_v40  ;;  %v4711_v50 = vpop.f32.mrb[9].mxu1  ;;  %v5855_v33 = vadd.f32 %v5854_v54, %v5582_v0  ;;  %v12390_v9 = vld [vmem:[#allocation29_spill] sm:$0xff] }
 0x5e5   :  { %v4712_v39 = vadd.f32 %v4711_v50, %v10894_v12  ;;  %v4713_v10 = vpop.f32.mrb[10].mxu1  ;;  %v5858_v59 = vsel %vm3008_vm6, %v5585_v62, 0.0 }
 0x5e6   :  { %v5318_v57 = vmax.f32 %v4710_v16, 0.0  ;;  %v4714_v60 = vadd.f32 %v4713_v10, %v10889_v40  ;;  %v4715_v18 = vpop.f32.mrb[11].mxu1  ;;  %5856 = vadd.xlane.f32.xlu0 %v5855_v33  ;;  %v5859_v7 = vadd.f32 %v5858_v59, %v5584_v23 }
 0x5e7   :  { %v5319_v47 = vmax.f32 %v4712_v39, 0.0  ;;  %v4716_v15 = vadd.f32 %v4715_v18, %v10894_v12 }
 0x5e8   :  { %v5320_v6 = vmax.f32 %v4714_v60, 0.0  ;;  %4978 = vmatmul.mubr.bf16.gmra.mrb[116].mxu1 %v12389_v29  ;;  %5860 = vadd.xlane.f32.xlu1 %v5859_v7  ;;  %v5586_v62 = vmul.f32 %v10910_v38, %v5318_v57 }
 0x5e9   :  { %v5587_v21 = vmul.f32 %v10906_v53, %v5319_v47  ;;  %v5321_v0 = vmax.f32 %v4716_v15, 0.0  ;;  %7653 = vmatprep.mubr.msk.bf16.mxu1 %vm3008_vm6, %v12390_v9 }
 0x5ea   :  { %v5588_v50 = vmul.f32 %v10910_v38, %v5320_v6  ;;  %v12391_v6 = vld [vmem:[#allocation28_spill] sm:$0xff] }
 0x5eb   :  { %v5589_v54 = vmul.f32 %v10906_v53, %v5321_v0  ;;  %v4719_v16 = vpop.f32.mrb[12].mxu1  ;;  %v5862_v23 = vsel %vm3008_vm6, %v5587_v21, 0.0 }
 0x5ec   :  { %v4720_v33 = vadd.f32 %v4719_v16, %v10889_v40  ;;  %v4721_v39 = vpop.f32.mrb[13].mxu1  ;;  %v5863_v10 = vadd.f32 %v5862_v23, %v5586_v62  ;;  %v12392_v16 = vld [vmem:[#allocation31_spill] sm:$0xff] }
 0x5ed   :  { %v4722_v59 = vadd.f32 %v4721_v39, %v10894_v12  ;;  %v4723_v60 = vpop.f32.mrb[14].mxu1  ;;  %v5866_v18 = vsel %vm3008_vm6, %v5589_v54, 0.0 }
 0x5ee   :  { %v5322_v7 = vmax.f32 %v4720_v33, 0.0  ;;  %v4724_v47 = vadd.f32 %v4723_v60, %v10889_v40  ;;  %v4725_v57 = vpop.f32.mrb[15].mxu1  ;;  %5864 = vadd.xlane.f32.xlu0 %v5863_v10  ;;  %v5867_v15 = vadd.f32 %v5866_v18, %v5588_v50 }
 0x5ef   :  { %v5323_v29 = vmax.f32 %v4722_v59, 0.0  ;;  %v4726_v21 = vadd.f32 %v4725_v57, %v10894_v12 }
 0x5f0   :  { %v5324_v0 = vmax.f32 %v4724_v47, 0.0  ;;  %4988 = vmatmul.mubr.bf16.gmra.mrb[120].mxu1 %v12391_v6  ;;  %5868 = vadd.xlane.f32.xlu1 %v5867_v15  ;;  %v5590_v54 = vmul.f32 %v10910_v38, %v5322_v7 }
 0x5f1   :  { %v5591_v9 = vmul.f32 %v10906_v53, %v5323_v29  ;;  %v5325_v62 = vmax.f32 %v4726_v21, 0.0  ;;  %7654 = vmatprep.mubr.msk.bf16.mxu1 %vm3008_vm6, %v12392_v16 }
 0x5f2   :  { %v5592_v39 = vmul.f32 %v10910_v38, %v5324_v0  ;;  %v12393_v0 = vld [vmem:[#allocation30_spill] sm:$0xff] }
 0x5f3   :  { %v5593_v23 = vmul.f32 %v10906_v53, %v5325_v62  ;;  %v4729_v33 = vpop.f32.mrb[16].mxu1  ;;  %v5870_v50 = vsel %vm3008_vm6, %v5591_v9, 0.0 }
 0x5f4   :  { %v4730_v10 = vadd.f32 %v4729_v33, %v10889_v40  ;;  %v4731_v59 = vpop.f32.mrb[17].mxu1  ;;  %v5871_v60 = vadd.f32 %v5870_v50, %v5590_v54 }
 0x5f5   :  { %v4732_v18 = vadd.f32 %v4731_v59, %v10894_v12  ;;  %v4733_v47 = vpop.f32.mrb[18].mxu1  ;;  %v5874_v57 = vsel %vm3008_vm6, %v5593_v23, 0.0 }
 0x5f6   :  { %v5326_v15 = vmax.f32 %v4730_v10, 0.0  ;;  %v4734_v29 = vadd.f32 %v4733_v47, %v10889_v40  ;;  %v4735_v7 = vpop.f32.mrb[19].mxu1  ;;  %5872 = vadd.xlane.f32.xlu0 %v5871_v60  ;;  %v5875_v21 = vadd.f32 %v5874_v57, %v5592_v39 }
 0x5f7   :  { %v5327_v6 = vmax.f32 %v4732_v18, 0.0  ;;  %v4736_v9 = vadd.f32 %v4735_v7, %v10894_v12 }
 0x5f8   :  { %v5328_v62 = vmax.f32 %v4734_v29, 0.0  ;;  %4998 = vmatmul.mubr.bf16.gmra.mrb[124].mxu1 %v12393_v0  ;;  %5876 = vadd.xlane.f32.xlu1 %v5875_v21  ;;  %v5594_v23 = vmul.f32 %v10910_v38, %v5326_v15 }
 0x5f9   :  { %v5595_v16 = vmul.f32 %v10906_v53, %v5327_v6  ;;  %v5329_v54 = vmax.f32 %v4736_v9, 0.0  ;;  %7655 = vmatprep.mubr.msk.bf16.mxu1 %vm3008_vm6, %v10575_v36 }
 0x5fa   :  { %v5596_v10 = vmul.f32 %v10910_v38, %v5328_v62 }
 0x5fb   :  { %v5597_v33 = vmul.f32 %v10906_v53, %v5329_v54  ;;  %v4739_v50 = vpop.f32.mrb[20].mxu1  ;;  %v5878_v39 = vsel %vm3008_vm6, %v5595_v16, 0.0  ;;  %v12394_v54 = vld [vmem:[#allocation33_spill] sm:$0xff] }
 0x5fc   :  { %v4740_v59 = vadd.f32 %v4739_v50, %v10889_v40  ;;  %v4741_v60 = vpop.f32.mrb[21].mxu1  ;;  %v5879_v18 = vadd.f32 %v5878_v39, %v5594_v23 }
 0x5fd   :  { %v4742_v47 = vadd.f32 %v4741_v60, %v10894_v12  ;;  %v4743_v57 = vpop.f32.mrb[22].mxu1  ;;  %v5882_v29 = vsel %vm3008_vm6, %v5597_v33, 0.0 }
 0x5fe   :  { %v5330_v7 = vmax.f32 %v4740_v59, 0.0  ;;  %v4744_v36 = vadd.f32 %v4743_v57, %v10889_v40  ;;  %v4745_v15 = vpop.f32.mrb[23].mxu1  ;;  %5880 = vadd.xlane.f32.xlu0 %v5879_v18  ;;  %v5883_v21 = vadd.f32 %v5882_v29, %v5596_v10 }
 0x5ff   :  { %v5331_v6 = vmax.f32 %v4742_v47, 0.0  ;;  %v4746_v9 = vadd.f32 %v4745_v15, %v10894_v12 }
 0x600   :  { %v5332_v0 = vmax.f32 %v4744_v36, 0.0  ;;  %5008 = vmatmul.mubr.bf16.gmra.mrb[128].mxu1 %v10573_v45  ;;  %5884 = vadd.xlane.f32.xlu1 %v5883_v21  ;;  %v5598_v23 = vmul.f32 %v10910_v38, %v5330_v7 }
 0x601   :  { %v5599_v62 = vmul.f32 %v10906_v53, %v5331_v6  ;;  %v5333_v16 = vmax.f32 %v4746_v9, 0.0  ;;  %7656 = vmatprep.mubr.msk.bf16.mxu1 %vm3008_vm6, %v12394_v54  ;;  %v12396_v54 = vld [vmem:[#allocation35_spill] sm:$0xff] }
 0x602   :  { %v5600_v10 = vmul.f32 %v10910_v38, %v5332_v0  ;;  %v12395_v0 = vld [vmem:[#allocation32_spill] sm:$0xff] }
 0x603   :  { %v5601_v33 = vmul.f32 %v10906_v53, %v5333_v16  ;;  %v4749_v50 = vpop.f32.mrb[24].mxu1  ;;  %v5886_v39 = vsel %vm3008_vm6, %v5599_v62, 0.0 }
 0x604   :  { %v4750_v59 = vadd.f32 %v4749_v50, %v10889_v40  ;;  %v4751_v60 = vpop.f32.mrb[25].mxu1  ;;  %v5887_v45 = vadd.f32 %v5886_v39, %v5598_v23 }
 0x605   :  { %v4752_v18 = vadd.f32 %v4751_v60, %v10894_v12  ;;  %v4753_v47 = vpop.f32.mrb[26].mxu1  ;;  %v5890_v57 = vsel %vm3008_vm6, %v5601_v33, 0.0 }
 0x606   :  { %v5334_v29 = vmax.f32 %v4750_v59, 0.0  ;;  %v4754_v36 = vadd.f32 %v4753_v47, %v10889_v40  ;;  %v4755_v7 = vpop.f32.mrb[27].mxu1  ;;  %5888 = vadd.xlane.f32.xlu0 %v5887_v45  ;;  %v5891_v15 = vadd.f32 %v5890_v57, %v5600_v10 }
 0x607   :  { %v5335_v21 = vmax.f32 %v4752_v18, 0.0  ;;  %v4756_v6 = vadd.f32 %v4755_v7, %v10894_v12 }
 0x608   :  { %v5336_v9 = vmax.f32 %v4754_v36, 0.0  ;;  %5018 = vmatmul.mubr.bf16.gmra.mrb[132].mxu1 %v12395_v0  ;;  %5892 = vadd.xlane.f32.xlu1 %v5891_v15  ;;  %v5602_v23 = vmul.f32 %v10910_v38, %v5334_v29 }
 0x609   :  { %v5603_v62 = vmul.f32 %v10906_v53, %v5335_v21  ;;  %v5337_v16 = vmax.f32 %v4756_v6, 0.0  ;;  %7657 = vmatprep.mubr.msk.bf16.mxu1 %vm3008_vm6, %v12396_v54 }
 0x60a   :  { %v5604_v10 = vmul.f32 %v10910_v38, %v5336_v9  ;;  %v12397_v9 = vld [vmem:[#allocation34_spill] sm:$0xff] }
 0x60b   :  { %v5605_v33 = vmul.f32 %v10906_v53, %v5337_v16  ;;  %v4759_v50 = vpop.f32.mrb[28].mxu1  ;;  %v5894_v39 = vsel %vm3008_vm6, %v5603_v62, 0.0 }
 0x60c   :  { %v4760_v59 = vadd.f32 %v4759_v50, %v10889_v40  ;;  %v4761_v60 = vpop.f32.mrb[29].mxu1  ;;  %v5895_v45 = vadd.f32 %v5894_v39, %v5602_v23 }
 0x60d   :  { %v4762_v18 = vadd.f32 %v4761_v60, %v10894_v12  ;;  %v4763_v47 = vpop.f32.mrb[30].mxu1  ;;  %v5898_v57 = vsel %vm3008_vm6, %v5605_v33, 0.0 }
 0x60e   :  { %v5338_v36 = vmax.f32 %v4760_v59, 0.0  ;;  %v4764_v7 = vadd.f32 %v4763_v47, %v10889_v40  ;;  %v4765_v29 = vpop.f32.mrb[31].mxu1  ;;  %5896 = vadd.xlane.f32.xlu0 %v5895_v45  ;;  %v5899_v15 = vadd.f32 %v5898_v57, %v5604_v10 }
 0x60f   :  { %v5339_v21 = vmax.f32 %v4762_v18, 0.0  ;;  %v4766_v6 = vadd.f32 %v4765_v29, %v10894_v12 }
 0x610   :  { %v5340_v0 = vmax.f32 %v4764_v7, 0.0  ;;  %5028 = vmatmul.mubr.bf16.gmra.mrb[136].mxu1 %v12397_v9  ;;  %5900 = vadd.xlane.f32.xlu1 %v5899_v15  ;;  %v5606_v54 = vmul.f32 %v10910_v38, %v5338_v36 }
 0x611   :  { %v5607_v62 = vmul.f32 %v10906_v53, %v5339_v21  ;;  %v5341_v16 = vmax.f32 %v4766_v6, 0.0  ;;  %7658 = vmatprep.mubr.msk.bf16.mxu1 %vm3008_vm6, %v10614_v26 }
 0x612   :  { %v5608_v39 = vmul.f32 %v10910_v38, %v5340_v0 }
 0x613   :  { %v5609_v23 = vmul.f32 %v10906_v53, %v5341_v16  ;;  %v4769_v33 = vpop.f32.mrb[32].mxu1  ;;  %v5902_v50 = vsel %vm3008_vm6, %v5607_v62, 0.0 }
 0x614   :  { %v4770_v10 = vadd.f32 %v4769_v33, %v10889_v40  ;;  %v4771_v59 = vpop.f32.mrb[33].mxu1  ;;  %v5903_v60 = vadd.f32 %v5902_v50, %v5606_v54 }
 0x615   :  { %v4772_v45 = vadd.f32 %v4771_v59, %v10894_v12  ;;  %v4773_v18 = vpop.f32.mrb[34].mxu1  ;;  %v5906_v47 = vsel %vm3008_vm6, %v5609_v23, 0.0 }
 0x616   :  { %v5342_v57 = vmax.f32 %v4770_v10, 0.0  ;;  %v4774_v26 = vadd.f32 %v4773_v18, %v10889_v40  ;;  %v4775_v36 = vpop.f32.mrb[35].mxu1  ;;  %5904 = vadd.xlane.f32.xlu0 %v5903_v60  ;;  %v5907_v7 = vadd.f32 %v5906_v47, %v5608_v39 }
 0x617   :  { %v5343_v29 = vmax.f32 %v4772_v45, 0.0  ;;  %v4776_v15 = vadd.f32 %v4775_v36, %v10894_v12 }
 0x618   :  { %v5344_v21 = vmax.f32 %v4774_v26, 0.0  ;;  %5038 = vmatmul.mubr.bf16.gmra.mrb[140].mxu1 %v10612_v63  ;;  %5908 = vadd.xlane.f32.xlu1 %v5907_v7  ;;  %v5610_v9 = vmul.f32 %v10910_v38, %v5342_v57 }
 0x619   :  { %v5611_v6 = vmul.f32 %v10906_v53, %v5343_v29  ;;  %v5345_v0 = vmax.f32 %v4776_v15, 0.0  ;;  %7659 = vmatprep.mubr.msk.bf16.mxu1 %vm3008_vm6, %v10625_v55 }
 0x61a   :  { %v5612_v23 = vmul.f32 %v10910_v38, %v5344_v21 }
 0x61b   :  { %v5613_v62 = vmul.f32 %v10906_v53, %v5345_v0  ;;  %v4779_v16 = vpop.f32.mrb[36].mxu1  ;;  %v5910_v54 = vsel %vm3008_vm6, %v5611_v6, 0.0 }
 0x61c   :  { %v4780_v33 = vadd.f32 %v4779_v16, %v10889_v40  ;;  %v4781_v50 = vpop.f32.mrb[37].mxu1  ;;  %v5911_v63 = vadd.f32 %v5910_v54, %v5610_v9 }
 0x61d   :  { %v4782_v39 = vadd.f32 %v4781_v50, %v10894_v12  ;;  %v4783_v10 = vpop.f32.mrb[38].mxu1  ;;  %v5914_v59 = vsel %vm3008_vm6, %v5613_v62, 0.0 }
 0x61e   :  { %v5346_v60 = vmax.f32 %v4780_v33, 0.0  ;;  %v4784_v55 = vadd.f32 %v4783_v10, %v10889_v40  ;;  %v4785_v45 = vpop.f32.mrb[39].mxu1  ;;  %5912 = vadd.xlane.f32.xlu0 %v5911_v63  ;;  %v5915_v18 = vadd.f32 %v5914_v59, %v5612_v23 }
 0x61f   :  { %v5347_v47 = vmax.f32 %v4782_v39, 0.0  ;;  %v4786_v57 = vadd.f32 %v4785_v45, %v10894_v12 }
 0x620   :  { %v5348_v26 = vmax.f32 %v4784_v55, 0.0  ;;  %5048 = vmatmul.mubr.bf16.gmra.mrb[144].mxu1 %v10623_v3  ;;  %5916 = vadd.xlane.f32.xlu1 %v5915_v18  ;;  %v5614_v29 = vmul.f32 %v10910_v38, %v5346_v60 }
 0x621   :  { %v5615_v36 = vmul.f32 %v10906_v53, %v5347_v47  ;;  %v5349_v7 = vmax.f32 %v4786_v57, 0.0  ;;  %7660 = vmatprep.mubr.msk.bf16.mxu1 %vm3008_vm6, %v10636_v42 }
 0x622   :  { %v5616_v0 = vmul.f32 %v10910_v38, %v5348_v26 }
 0x623   :  { %v5617_v15 = vmul.f32 %v10906_v53, %v5349_v7  ;;  %v4789_v21 = vpop.f32.mrb[40].mxu1  ;;  %v5918_v6 = vsel %vm3008_vm6, %v5615_v36, 0.0 }
 0x624   :  { %v4790_v9 = vadd.f32 %v4789_v21, %v10889_v40  ;;  %v4791_v62 = vpop.f32.mrb[41].mxu1  ;;  %v5919_v3 = vadd.f32 %v5918_v6, %v5614_v29 }
 0x625   :  { %v4792_v16 = vadd.f32 %v4791_v62, %v10894_v12  ;;  %v4793_v54 = vpop.f32.mrb[42].mxu1  ;;  %v5922_v23 = vsel %vm3008_vm6, %v5617_v15, 0.0 }
 0x626   :  { %v5350_v33 = vmax.f32 %v4790_v9, 0.0  ;;  %v4794_v42 = vadd.f32 %v4793_v54, %v10889_v40  ;;  %v4795_v50 = vpop.f32.mrb[43].mxu1  ;;  %5920 = vadd.xlane.f32.xlu0 %v5919_v3  ;;  %v5923_v63 = vadd.f32 %v5922_v23, %v5616_v0 }
 0x627   :  { %v5351_v39 = vmax.f32 %v4792_v16, 0.0  ;;  %v4796_v10 = vadd.f32 %v4795_v50, %v10894_v12 }
 0x628   :  { %v5352_v59 = vmax.f32 %v4794_v42, 0.0  ;;  %5058 = vmatmul.mubr.bf16.gmra.mrb[148].mxu1 %v10634_v2  ;;  %5924 = vadd.xlane.f32.xlu1 %v5923_v63  ;;  %v5618_v45 = vmul.f32 %v10910_v38, %v5350_v33 }
 0x629   :  { %v5619_v60 = vmul.f32 %v10906_v53, %v5351_v39  ;;  %v5353_v55 = vmax.f32 %v4796_v10, 0.0  ;;  %7661 = vmatprep.mubr.msk.bf16.mxu1 %vm3008_vm6, %v10647_v34 }
 0x62a   :  { %v5620_v26 = vmul.f32 %v10910_v38, %v5352_v59 }
 0x62b   :  { %v5621_v18 = vmul.f32 %v10906_v53, %v5353_v55  ;;  %v4799_v47 = vpop.f32.mrb[44].mxu1  ;;  %v5926_v57 = vsel %vm3008_vm6, %v5619_v60, 0.0 }
 0x62c   :  { %v4800_v36 = vadd.f32 %v4799_v47, %v10889_v40  ;;  %v4801_v7 = vpop.f32.mrb[45].mxu1  ;;  %v5927_v2 = vadd.f32 %v5926_v57, %v5618_v45 }
 0x62d   :  { %v4802_v29 = vadd.f32 %v4801_v7, %v10894_v12  ;;  %v4803_v15 = vpop.f32.mrb[46].mxu1  ;;  %v5930_v21 = vsel %vm3008_vm6, %v5621_v18, 0.0 }
 0x62e   :  { %v5354_v6 = vmax.f32 %v4800_v36, 0.0  ;;  %v4804_v34 = vadd.f32 %v4803_v15, %v10889_v40  ;;  %v4805_v0 = vpop.f32.mrb[47].mxu1  ;;  %5928 = vadd.xlane.f32.xlu0 %v5927_v2  ;;  %v5931_v9 = vadd.f32 %v5930_v21, %v5620_v26 }
 0x62f   :  { %v5355_v62 = vmax.f32 %v4802_v29, 0.0  ;;  %v4806_v3 = vadd.f32 %v4805_v0, %v10894_v12 }
 0x630   :  { %v5356_v16 = vmax.f32 %v4804_v34, 0.0  ;;  %5068 = vmatmul.mubr.bf16.gmra.mrb[152].mxu1 %v10645_v37  ;;  %5932 = vadd.xlane.f32.xlu1 %v5931_v9  ;;  %v5622_v33 = vmul.f32 %v10910_v38, %v5354_v6 }
 0x631   :  { %v5623_v54 = vmul.f32 %v10906_v53, %v5355_v62  ;;  %v5357_v23 = vmax.f32 %v4806_v3, 0.0  ;;  %7662 = vmatprep.mubr.msk.bf16.mxu1 %vm3008_vm6, %v10658_v48 }
 0x632   :  { %v5624_v39 = vmul.f32 %v10910_v38, %v5356_v16 }
 0x633   :  { %v5625_v42 = vmul.f32 %v10906_v53, %v5357_v23  ;;  %v4809_v50 = vpop.f32.mrb[48].mxu1  ;;  %v5934_v63 = vsel %vm3008_vm6, %v5623_v54, 0.0 }
 0x634   :  { %v4810_v10 = vadd.f32 %v4809_v50, %v10889_v40  ;;  %v4811_v59 = vpop.f32.mrb[49].mxu1  ;;  %v5935_v37 = vadd.f32 %v5934_v63, %v5622_v33 }
 0x635   :  { %v4812_v60 = vadd.f32 %v4811_v59, %v10894_v12  ;;  %v4813_v55 = vpop.f32.mrb[50].mxu1  ;;  %v5938_v45 = vsel %vm3008_vm6, %v5625_v42, 0.0 }
 0x636   :  { %v5358_v18 = vmax.f32 %v4810_v10, 0.0  ;;  %v4814_v48 = vadd.f32 %v4813_v55, %v10889_v40  ;;  %v4815_v47 = vpop.f32.mrb[51].mxu1  ;;  %5936 = vadd.xlane.f32.xlu0 %v5935_v37  ;;  %v5939_v57 = vadd.f32 %v5938_v45, %v5624_v39 }
 0x637   :  { %v5359_v26 = vmax.f32 %v4812_v60, 0.0  ;;  %v4816_v36 = vadd.f32 %v4815_v47, %v10894_v12 }
 0x638   :  { %v5360_v7 = vmax.f32 %v4814_v48, 0.0  ;;  %5078 = vmatmul.mubr.bf16.gmra.mrb[156].mxu1 %v10656_v20  ;;  %5940 = vadd.xlane.f32.xlu1 %v5939_v57  ;;  %v5626_v15 = vmul.f32 %v10910_v38, %v5358_v18 }
 0x639   :  { %v5627_v2 = vmul.f32 %v10906_v53, %v5359_v26  ;;  %v5361_v29 = vmax.f32 %v4816_v36, 0.0  ;;  %7663 = vmatprep.mubr.msk.bf16.mxu1 %vm3008_vm6, %v10669_v17 }
 0x63a   :  { %v5628_v0 = vmul.f32 %v10910_v38, %v5360_v7 }
 0x63b   :  { %v5629_v21 = vmul.f32 %v10906_v53, %v5361_v29  ;;  %v4819_v6 = vpop.f32.mrb[52].mxu1  ;;  %v5942_v34 = vsel %vm3008_vm6, %v5627_v2, 0.0 }
 0x63c   :  { %v4820_v9 = vadd.f32 %v4819_v6, %v10889_v40  ;;  %v4821_v62 = vpop.f32.mrb[53].mxu1  ;;  %v5943_v20 = vadd.f32 %v5942_v34, %v5626_v15 }
 0x63d   :  { %v4822_v3 = vadd.f32 %v4821_v62, %v10894_v12  ;;  %v4823_v16 = vpop.f32.mrb[54].mxu1  ;;  %v5946_v54 = vsel %vm3008_vm6, %v5629_v21, 0.0 }
 0x63e   :  { %v5362_v23 = vmax.f32 %v4820_v9, 0.0  ;;  %v4824_v17 = vadd.f32 %v4823_v16, %v10889_v40  ;;  %v4825_v33 = vpop.f32.mrb[55].mxu1  ;;  %5944 = vadd.xlane.f32.xlu0 %v5943_v20  ;;  %v5947_v42 = vadd.f32 %v5946_v54, %v5628_v0 }
 0x63f   :  { %v5363_v50 = vmax.f32 %v4822_v3, 0.0  ;;  %v4826_v63 = vadd.f32 %v4825_v33, %v10894_v12 }
 0x640   :  { %v5364_v39 = vmax.f32 %v4824_v17, 0.0  ;;  %5088 = vmatmul.mubr.bf16.gmra.mrb[160].mxu1 %v10667_v49  ;;  %5948 = vadd.xlane.f32.xlu1 %v5947_v42  ;;  %v5630_v37 = vmul.f32 %v10910_v38, %v5362_v23 }
 0x641   :  { %v5631_v10 = vmul.f32 %v10906_v53, %v5363_v50  ;;  %v5365_v59 = vmax.f32 %v4826_v63, 0.0  ;;  %7664 = vmatprep.mubr.msk.bf16.mxu1 %vm3008_vm6, %v10680_v25 }
 0x642   :  { %v5632_v18 = vmul.f32 %v10910_v38, %v5364_v39 }
 0x643   :  { %v5633_v60 = vmul.f32 %v10906_v53, %v5365_v59  ;;  %v4829_v55 = vpop.f32.mrb[56].mxu1  ;;  %v5950_v45 = vsel %vm3008_vm6, %v5631_v10, 0.0 }
 0x644   :  { %v4830_v48 = vadd.f32 %v4829_v55, %v10889_v40  ;;  %v4831_v47 = vpop.f32.mrb[57].mxu1  ;;  %v5951_v49 = vadd.f32 %v5950_v45, %v5630_v37  ;;  %v11154_v45 = vld [vmem:[#allocation2] ss:$0 sm:$0xff] }
 0x645   :  { %v4832_v57 = vadd.f32 %v4831_v47, %v10894_v12  ;;  %v4833_v26 = vpop.f32.mrb[58].mxu1  ;;  %v5954_v36 = vsel %vm3008_vm6, %v5633_v60, 0.0 }
 0x646   :  { %v5366_v7 = vmax.f32 %v4830_v48, 0.0  ;;  %v4834_v25 = vadd.f32 %v4833_v26, %v10889_v40  ;;  %v4835_v2 = vpop.f32.mrb[59].mxu1  ;;  %5952 = vadd.xlane.f32.xlu0 %v5951_v49  ;;  %v5955_v29 = vadd.f32 %v5954_v36, %v5632_v18 }
 0x647   :  { %v5367_v15 = vmax.f32 %v4832_v57, 0.0  ;;  %v4836_v21 = vadd.f32 %v4835_v2, %v10894_v12 }
 0x648   :  { %v5368_v6 = vmax.f32 %v4834_v25, 0.0  ;;  %5098 = vmatmul.mubr.bf16.gmra.mrb[164].mxu1 %v10678_v27  ;;  %5956 = vadd.xlane.f32.xlu1 %v5955_v29  ;;  %v5634_v9 = vmul.f32 %v10910_v38, %v5366_v7 }
 0x649   :  { %v5635_v34 = vmul.f32 %v10906_v53, %v5367_v15  ;;  %v5369_v0 = vmax.f32 %v4836_v21, 0.0  ;;  %7665 = vmatprep.mubr.msk.bf16.mxu1 %vm3008_vm6, %v10691_v43 }
 0x64a   :  { %v5636_v16 = vmul.f32 %v10910_v38, %v5368_v6 }
 0x64b   :  { %v5637_v62 = vmul.f32 %v10906_v53, %v5369_v0  ;;  %v4839_v20 = vpop.f32.mrb[60].mxu1  ;;  %v5958_v3 = vsel %vm3008_vm6, %v5635_v34, 0.0 }
 0x64c   :  { %v4840_v54 = vadd.f32 %v4839_v20, %v10889_v40  ;;  %v4841_v23 = vpop.f32.mrb[61].mxu1  ;;  %v5959_v27 = vadd.f32 %v5958_v3, %v5634_v9 }
 0x64d   :  { %v4842_v17 = vadd.f32 %v4841_v23, %v10894_v12  ;;  %v4843_v33 = vpop.f32.mrb[62].mxu1  ;;  %v5962_v42 = vsel %vm3008_vm6, %v5637_v62, 0.0 }
 0x64e   :  { %v5370_v50 = vmax.f32 %v4840_v54, 0.0  ;;  %v4844_v43 = vadd.f32 %v4843_v33, %v10889_v40  ;;  %v4845_v63 = vpop.f32.mrb[63].mxu1  ;;  %5960 = vadd.xlane.f32.xlu0 %v5959_v27  ;;  %v5963_v39 = vadd.f32 %v5962_v42, %v5636_v16 }
 0x64f   :  { %v5371_v10 = vmax.f32 %v4842_v17, 0.0  ;;  %v4846_v59 = vadd.f32 %v4845_v63, %v10894_v12 }
 0x650   :  { %v5372_v37 = vmax.f32 %v4844_v43, 0.0  ;;  %5108 = vmatmul.mubr.bf16.gmra.mrb[168].mxu1 %v10689_v5  ;;  %5964 = vadd.xlane.f32.xlu1 %v5963_v39  ;;  %v5638_v18 = vmul.f32 %v10910_v38, %v5370_v50 }
 0x651   :  { %v5639_v60 = vmul.f32 %v10906_v53, %v5371_v10  ;;  %v5373_v55 = vmax.f32 %v4846_v59, 0.0  ;;  %7666 = vmatprep.mubr.msk.bf16.mxu1 %vm3008_vm6, %v10702_v1 }
 0x652   :  { %v5640_v26 = vmul.f32 %v10910_v38, %v5372_v37 }
 0x653   :  { %v5641_v48 = vmul.f32 %v10906_v53, %v5373_v55  ;;  %v4849_v47 = vpop.f32.mrb[64].mxu1  ;;  %v5825_v49 = vpop.xlane.xlu0 %5824  ;;  %v5966_v57 = vsel %vm3008_vm6, %v5639_v60, 0.0 }
 0x654   :  { %v4850_v5 = vadd.f32 %v4849_v47, %v10889_v40  ;;  %v6341_v36 = vadd.f32 %v11154_v45, %v5825_v49  ;;  %v4851_v7 = vpop.f32.mrb[65].mxu1  ;;  %v5967_v25 = vadd.f32 %v5966_v57, %v5638_v18 }
 0x655   :  { %v4852_v1 = vadd.f32 %v4851_v7, %v10894_v12  ;;  %v4853_v2 = vpop.f32.mrb[66].mxu1  ;;  %v5970_v29 = vsel %vm3008_vm6, %v5641_v48, 0.0 }
 0x656   :  { %v5374_v15 = vmax.f32 %v4850_v5, 0.0  ;;  %v7685_v21 = vmul.f32 -1.442695, %v6341_v36  ;;  %v4854_v6 = vadd.f32 %v4853_v2, %v10889_v40  ;;  %v4855_v34 = vpop.f32.mrb[67].mxu1  ;;  %5968 = vadd.xlane.f32.xlu0 %v5967_v25  ;;  %v5971_v0 = vadd.f32 %v5970_v29, %v5640_v26 }
 0x657   :  { %v5375_v9 = vmax.f32 %v4852_v1, 0.0  ;;  %v4856_v62 = vadd.f32 %v4855_v34, %v10894_v12  ;;  %v5829_v20 = vpop.xlane.xlu0 %5828 }
 0x658   :  { %8176 = vpow2.f32 %v7685_v21  ;;  %v5376_v3 = vmax.f32 %v4854_v6, 0.0  ;;  %v6342_v16 = vadd.f32 %v11154_v45, %v5829_v20  ;;  %5118 = vmatmul.mubr.bf16.gmra.mrb[172].mxu1 %v10700_v44  ;;  %5972 = vadd.xlane.f32.xlu1 %v5971_v0  ;;  %v5642_v27 = vmul.f32 %v10910_v38, %v5374_v15 }
 0x659   :  { %v5643_v54 = vmul.f32 %v10906_v53, %v5375_v9  ;;  %v5377_v23 = vmax.f32 %v4856_v62, 0.0  ;;  %7667 = vmatprep.mubr.msk.bf16.mxu1 %vm3008_vm6, %v10713_v4 }
 0x65a   :  { %v7686_v17 = vmul.f32 -1.442695, %v6342_v16  ;;  %v5644_v33 = vmul.f32 %v10910_v38, %v5376_v3 }
 0x65b   :  { %v5645_v42 = vmul.f32 %v10906_v53, %v5377_v23  ;;  %v4859_v50 = vpop.f32.mrb[68].mxu1  ;;  %v5833_v43 = vpop.xlane.xlu1 %5832  ;;  %v5974_v63 = vsel %vm3008_vm6, %v5643_v54, 0.0 }
 0x65c   :  { %8178 = vpow2.f32 %v7686_v17  ;;  %v4860_v44 = vadd.f32 %v4859_v50, %v10889_v40  ;;  %v6343_v39 = vadd.f32 %v11154_v45, %v5833_v43  ;;  %v4861_v10 = vpop.f32.mrb[69].mxu1  ;;  %v5975_v59 = vadd.f32 %v5974_v63, %v5642_v27 }
 0x65d   :  { %v4862_v4 = vadd.f32 %v4861_v10, %v10894_v12  ;;  %v4863_v37 = vpop.f32.mrb[70].mxu1  ;;  %v5978_v60 = vsel %vm3008_vm6, %v5645_v42, 0.0 }
 0x65e   :  { %v5378_v55 = vmax.f32 %v4860_v44, 0.0  ;;  %v7687_v18 = vmul.f32 -1.442695, %v6343_v39  ;;  %v4864_v48 = vadd.f32 %v4863_v37, %v10889_v40  ;;  %v4865_v47 = vpop.f32.mrb[71].mxu1  ;;  %5976 = vadd.xlane.f32.xlu0 %v5975_v59  ;;  %v5979_v49 = vadd.f32 %v5978_v60, %v5644_v33 }
 0x65f   :  { %v5379_v57 = vmax.f32 %v4862_v4, 0.0  ;;  %v4866_v26 = vadd.f32 %v4865_v47, %v10894_v12  ;;  %v5837_v5 = vpop.xlane.xlu1 %5836 }
 0x660   :  { %8180 = vpow2.f32 %v7687_v18  ;;  %v6344_v36 = vadd.f32 %v11154_v45, %v5837_v5  ;;  %5128 = vmatmul.mubr.bf16.gmra.mrb[176].mxu1 %v10711_v28  ;;  %5980 = vadd.xlane.f32.xlu1 %v5979_v49  ;;  %v5380_v25 = vmax.f32 %v4864_v48, 0.0  ;;  %v5646_v29 = vmul.f32 %v10910_v38, %v5378_v55 }
 0x661   :  { %v5647_v7 = vmul.f32 %v10906_v53, %v5379_v57  ;;  %v5381_v1 = vmax.f32 %v4866_v26, 0.0  ;;  %7668 = vmatprep.mubr.msk.bf16.mxu1 %vm3008_vm6, %v10724_v31 }
 0x662   :  { %v8177_v2 = vpop.eup %8176  ;;  %v7688_v15 = vmul.f32 -1.442695, %v6344_v36  ;;  %v5648_v31 = vmul.f32 %v10910_v38, %v5380_v25 }
 0x663   :  { %v6853_v21 = vadd.f32 1.0, %v8177_v2  ;;  %v5649_v6 = vmul.f32 %v10906_v53, %v5381_v1  ;;  %v4869_v34 = vpop.f32.mrb[72].mxu1  ;;  %v5841_v0 = vpop.xlane.xlu0 %5840  ;;  %v5982_v9 = vsel %vm3008_vm6, %v5647_v7, 0.0 }
 0x664   :  { %8182 = vpow2.f32 %v7688_v15  ;;  %v4870_v28 = vadd.f32 %v4869_v34, %v10889_v40  ;;  %v6345_v62 = vadd.f32 %v11154_v45, %v5841_v0  ;;  %v4871_v20 = vpop.f32.mrb[73].mxu1  ;;  %v5983_v3 = vadd.f32 %v5982_v9, %v5646_v29 }
 0x665   :  { %8184 = vrcp.f32 %v6853_v21  ;;  %v4872_v16 = vadd.f32 %v4871_v20, %v10894_v12  ;;  %v4873_v54 = vpop.f32.mrb[74].mxu1  ;;  %v5845_v23 = vpop.xlane.xlu1 %5844  ;;  %v5986_v27 = vsel %vm3008_vm6, %v5649_v6, 0.0 }
 0x666   :  { %v8179_v17 = vpop.eup %8178  ;;  %v5382_v33 = vmax.f32 %v4870_v28, 0.0  ;;  %v7689_v42 = vmul.f32 -1.442695, %v6345_v62  ;;  %v4874_v50 = vadd.f32 %v4873_v54, %v10889_v40  ;;  %v6346_v43 = vadd.f32 %v11154_v45, %v5845_v23  ;;  %v4875_v63 = vpop.f32.mrb[75].mxu1  ;;  %5984 = vadd.xlane.f32.xlu0 %v5983_v3 }
 0x667   :  { %v6854_v44 = vadd.f32 1.0, %v8179_v17  ;;  %v5383_v39 = vmax.f32 %v4872_v16, 0.0  ;;  %v4876_v10 = vadd.f32 %v4875_v63, %v10894_v12  ;;  %v5987_v59 = vadd.f32 %v5986_v27, %v5648_v31 }
 0x668   :  { %8186 = vpow2.f32 %v7689_v42  ;;  %v7690_v4 = vmul.f32 -1.442695, %v6346_v43  ;;  %5138 = vmatmul.mubr.bf16.gmra.mrb[180].mxu1 %v10722_v13  ;;  %v5384_v60 = vmax.f32 %v4874_v50, 0.0  ;;  %v5650_v48 = vmul.f32 %v10910_v38, %v5382_v33 }
 0x669   :  { %8188 = vrcp.f32 %v6854_v44  ;;  %v5651_v37 = vmul.f32 %v10906_v53, %v5383_v39  ;;  %v5385_v55 = vmax.f32 %v4876_v10, 0.0  ;;  %5988 = vadd.xlane.f32.xlu1 %v5987_v59  ;;  %7669 = vmatprep.mubr.msk.bf16.mxu1 %vm3008_vm6, %v10735_v30 }
 0x66a   :  { %v8181_v18 = vpop.eup %8180  ;;  %8190 = vpow2.f32 %v7690_v4  ;;  %v5652_v30 = vmul.f32 %v10910_v38, %v5384_v60 }
 0x66b   :  { %v6855_v47 = vadd.f32 1.0, %v8181_v18  ;;  %v5653_v49 = vmul.f32 %v10906_v53, %v5385_v55  ;;  %v4879_v57 = vpop.f32.mrb[76].mxu1  ;;  %v5849_v26 = vpop.xlane.xlu0 %5848  ;;  %v5990_v13 = vsel %vm3008_vm6, %v5651_v37, 0.0 }
 0x66c   :  { %v4880_v5 = vadd.f32 %v4879_v57, %v10889_v40  ;;  %v6347_v36 = vadd.f32 %v11154_v45, %v5849_v26  ;;  %v4881_v7 = vpop.f32.mrb[77].mxu1  ;;  %v5991_v25 = vadd.f32 %v5990_v13, %v5650_v48 }
 0x66d   :  { %8192 = vrcp.f32 %v6855_v47  ;;  %v4882_v1 = vadd.f32 %v4881_v7, %v10894_v12  ;;  %v4883_v2 = vpop.f32.mrb[78].mxu1  ;;  %v5853_v29 = vpop.xlane.xlu1 %5852  ;;  %v5994_v15 = vsel %vm3008_vm6, %v5653_v49, 0.0 }
 0x66e   :  { %v8183_v21 = vpop.eup %8182  ;;  %v5386_v6 = vmax.f32 %v4880_v5, 0.0  ;;  %v7691_v34 = vmul.f32 -1.442695, %v6347_v36  ;;  %v4884_v0 = vadd.f32 %v4883_v2, %v10889_v40  ;;  %v6348_v9 = vadd.f32 %v11154_v45, %v5853_v29  ;;  %v4885_v28 = vpop.f32.mrb[79].mxu1  ;;  %5992 = vadd.xlane.f32.xlu0 %v5991_v25 }
 0x66f   :  { %v8185_v62 = vpop.eup %8184  ;;  %v6856_v20 = vadd.f32 1.0, %v8183_v21  ;;  %v5387_v3 = vmax.f32 %v4882_v1, 0.0  ;;  %v4886_v31 = vadd.f32 %v4885_v28, %v10894_v12  ;;  %v5995_v16 = vadd.f32 %v5994_v15, %v5652_v30 }
 0x670   :  { %7238 = vst.msk [vmem:[%s12313_s11] sm:$0xff] %vm7237_vm7, %v8185_v62  ;;  %8194 = vpow2.f32 %v7691_v34  ;;  %v5388_v54 = vmax.f32 %v4884_v0, 0.0  ;;  %v7692_v23 = vmul.f32 -1.442695, %v6348_v9  ;;  %5148 = vmatmul.mubr.bf16.gmra.mrb[184].mxu1 %v10733_v51  ;;  %v5654_v42 = vmul.f32 %v10910_v38, %v5386_v6 }
 0x671   :  { %8196 = vrcp.f32 %v6856_v20  ;;  %v5655_v27 = vmul.f32 %v10906_v53, %v5387_v3  ;;  %v5389_v17 = vmax.f32 %v4886_v31, 0.0  ;;  %5996 = vadd.xlane.f32.xlu1 %v5995_v16  ;;  %7670 = vmatprep.mubr.msk.bf16.mxu1 %vm3008_vm6, %v10746_v56 }
 0x672   :  { %v8187_v33 = vpop.eup %8186  ;;  %8198 = vpow2.f32 %v7692_v23  ;;  %v5656_v56 = vmul.f32 %v10910_v38, %v5388_v54 }
 0x673   :  { %v8189_v50 = vpop.eup %8188  ;;  %v6857_v43 = vadd.f32 1.0, %v8187_v33  ;;  %v5657_v63 = vmul.f32 %v10906_v53, %v5389_v17  ;;  %v4889_v44 = vpop.f32.mrb[80].mxu1  ;;  %v5998_v51 = vsel %vm3008_vm6, %v5655_v27, 0.0 }
 0x674   :  { %v5857_v39 = vpop.xlane.xlu0 %5856  ;;  %v8191_v10 = vpop.eup %8190  ;;  %7239 = vst.msk [vmem:[%s12313_s11 + $0x8] sm:$0xff] %vm7237_vm7, %v8189_v50  ;;  %v4890_v59 = vadd.f32 %v4889_v44, %v10889_v40  ;;  %v5999_v60 = vadd.f32 %v5998_v51, %v5654_v42 }
 0x675   :  { %v6349_v4 = vadd.f32 %v11154_v45, %v5857_v39  ;;  %v4891_v37 = vpop.f32.mrb[81].mxu1  ;;  %8200 = vrcp.f32 %v6857_v43  ;;  %v6858_v55 = vadd.f32 1.0, %v8191_v10  ;;  %v5861_v47 = vpop.xlane.xlu1 %5860  ;;  %v6002_v49 = vsel %vm3008_vm6, %v5657_v63, 0.0 }
 0x676   :  { %v4892_v18 = vadd.f32 %v4891_v37, %v10894_v12  ;;  %v4893_v48 = vpop.f32.mrb[82].mxu1  ;;  %v5390_v57 = vmax.f32 %v4890_v59, 0.0  ;;  %v6350_v5 = vadd.f32 %v11154_v45, %v5861_v47  ;;  %6000 = vadd.xlane.f32.xlu0 %v5999_v60  ;;  %v6003_v1 = vadd.f32 %v6002_v49, %v5656_v56 }
 0x677   :  { %v7693_v26 = vmul.f32 -1.442695, %v6349_v4  ;;  %v4894_v13 = vadd.f32 %v4893_v48, %v10889_v40  ;;  %v4895_v36 = vpop.f32.mrb[83].mxu1  ;;  %v8193_v7 = vpop.eup %8192  ;;  %8202 = vrcp.f32 %v6858_v55 }
 0x678   :  { %v5391_v25 = vmax.f32 %v4892_v18, 0.0  ;;  %v4896_v30 = vadd.f32 %v4895_v36, %v10894_v12  ;;  %7240 = vst.msk [vmem:[%s12313_s11 + $0x10] sm:$0xff] %vm7237_vm7, %v8193_v7  ;;  %v7694_v29 = vmul.f32 -1.442695, %v6350_v5  ;;  %5158 = vmatmul.mubr.bf16.gmra.mrb[188].mxu1 %v10744_v32  ;;  %6004 = vadd.xlane.f32.xlu1 %v6003_v1  ;;  %v5658_v34 = vmul.f32 %v10910_v38, %v5390_v57 }
 0x679   :  { %8204 = vpow2.f32 %v7693_v26  ;;  %v5392_v2 = vmax.f32 %v4894_v13, 0.0  ;;  %7671 = vmatprep.mubr.msk.bf16.mxu1 %vm3008_vm6, %v10757_v22 }
 0x67a   :  { %v5659_v15 = vmul.f32 %v10906_v53, %v5391_v25  ;;  %v5393_v21 = vmax.f32 %v4896_v30, 0.0  ;;  %v8195_v6 = vpop.eup %8194  ;;  %8206 = vpow2.f32 %v7694_v29 }
 0x67b   :  { %v8197_v0 = vpop.eup %8196  ;;  %v6859_v9 = vadd.f32 1.0, %v8195_v6  ;;  %v4899_v62 = vpop.f32.mrb[84].mxu1  ;;  %v5660_v22 = vmul.f32 %v10910_v38, %v5392_v2 }
 0x67c   :  { %v5661_v28 = vmul.f32 %v10906_v53, %v5393_v21  ;;  %v5865_v20 = vpop.xlane.xlu0 %5864  ;;  %v6006_v3 = vsel %vm3008_vm6, %v5659_v15, 0.0  ;;  %v8199_v32 = vpop.eup %8198  ;;  %7241 = vst.msk [vmem:[%s12313_s11 + $0x18] sm:$0xff] %vm7237_vm7, %v8197_v0  ;;  %v4900_v31 = vadd.f32 %v4899_v62, %v10889_v40 }
 0x67d   :  { %v6351_v16 = vadd.f32 %v11154_v45, %v5865_v20  ;;  %v4901_v54 = vpop.f32.mrb[85].mxu1  ;;  %v6007_v23 = vadd.f32 %v6006_v3, %v5658_v34  ;;  %8208 = vrcp.f32 %v6859_v9  ;;  %v6860_v27 = vadd.f32 1.0, %v8199_v32  ;;  %v5869_v42 = vpop.xlane.xlu1 %5868 }
 0x67e   :  { %v4902_v17 = vadd.f32 %v4901_v54, %v10894_v12  ;;  %v4903_v33 = vpop.f32.mrb[86].mxu1  ;;  %v6010_v50 = vsel %vm3008_vm6, %v5661_v28, 0.0  ;;  %v5394_v43 = vmax.f32 %v4900_v31, 0.0  ;;  %v6352_v39 = vadd.f32 %v11154_v45, %v5869_v42 }
 0x67f   :  { %v7695_v63 = vmul.f32 -1.442695, %v6351_v16  ;;  %v4904_v44 = vadd.f32 %v4903_v33, %v10889_v40  ;;  %v4905_v51 = vpop.f32.mrb[87].mxu1  ;;  %6008 = vadd.xlane.f32.xlu0 %v6007_v23  ;;  %v8201_v10 = vpop.eup %8200  ;;  %8210 = vrcp.f32 %v6860_v27  ;;  %v6011_v4 = vadd.f32 %v6010_v50, %v5660_v22 }
 0x680   :  { %v5395_v56 = vmax.f32 %v4902_v17, 0.0  ;;  %v4906_v59 = vadd.f32 %v4905_v51, %v10894_v12  ;;  %7242 = vst.msk [vmem:[%s12313_s11 + $0x20] sm:$0xff] %vm7237_vm7, %v8201_v10  ;;  %v7696_v60 = vmul.f32 -1.442695, %v6352_v39  ;;  %5168 = vmatmul.mubr.bf16.gmra.mrb[192].mxu1 %v10755_v11  ;;  %v5662_v49 = vmul.f32 %v10910_v38, %v5394_v43 }
 0x681   :  { %8212 = vpow2.f32 %v7695_v63  ;;  %v5396_v37 = vmax.f32 %v4904_v44, 0.0  ;;  %v8203_v55 = vpop.eup %8202  ;;  %6012 = vadd.xlane.f32.xlu1 %v6011_v4  ;;  %7672 = vmatprep.mubr.msk.bf16.mxu1 %vm3008_vm6, %v10768_v14 }
 0x682   :  { %v5663_v18 = vmul.f32 %v10906_v53, %v5395_v56  ;;  %v5397_v48 = vmax.f32 %v4906_v59, 0.0  ;;  %7243 = vst.msk [vmem:[%s12313_s11 + $0x28] sm:$0xff] %vm7237_vm7, %v8203_v55  ;;  %8214 = vpow2.f32 %v7696_v60 }
 0x683   :  { %v8205_v47 = vpop.eup %8204  ;;  %v4909_v26 = vpop.f32.mrb[88].mxu1  ;;  %v5664_v7 = vmul.f32 %v10910_v38, %v5396_v37 }
 0x684   :  { %v6861_v57 = vadd.f32 1.0, %v8205_v47  ;;  %v5665_v11 = vmul.f32 %v10906_v53, %v5397_v48  ;;  %v5873_v13 = vpop.xlane.xlu0 %5872  ;;  %v6014_v5 = vsel %vm3008_vm6, %v5663_v18, 0.0  ;;  %v8207_v36 = vpop.eup %8206  ;;  %v4910_v14 = vadd.f32 %v4909_v26, %v10889_v40 }
 0x685   :  { %v6353_v25 = vadd.f32 %v11154_v45, %v5873_v13  ;;  %v4911_v30 = vpop.f32.mrb[89].mxu1  ;;  %v6015_v1 = vadd.f32 %v6014_v5, %v5662_v49  ;;  %v6862_v2 = vadd.f32 1.0, %v8207_v36  ;;  %v5877_v21 = vpop.xlane.xlu1 %5876 }
 0x686   :  { %8216 = vrcp.f32 %v6861_v57  ;;  %v4912_v29 = vadd.f32 %v4911_v30, %v10894_v12  ;;  %v4913_v15 = vpop.f32.mrb[90].mxu1  ;;  %v6018_v6 = vsel %vm3008_vm6, %v5665_v11, 0.0  ;;  %v5398_v34 = vmax.f32 %v4910_v14, 0.0 }
 0x687   :  { %v7697_v0 = vmul.f32 -1.442695, %v6353_v25  ;;  %v4914_v9 = vadd.f32 %v4913_v15, %v10889_v40  ;;  %v6354_v28 = vadd.f32 %v11154_v45, %v5877_v21  ;;  %v4915_v62 = vpop.f32.mrb[91].mxu1  ;;  %6016 = vadd.xlane.f32.xlu0 %v6015_v1  ;;  %v8209_v20 = vpop.eup %8208  ;;  %8218 = vrcp.f32 %v6862_v2 }
 0x688   :  { %v5399_v3 = vmax.f32 %v4912_v29, 0.0  ;;  %v4916_v32 = vadd.f32 %v4915_v62, %v10894_v12  ;;  %v6019_v22 = vadd.f32 %v6018_v6, %v5664_v7  ;;  %7244 = vst.msk [vmem:[%s12313_s11 + $0x30] sm:$0xff] %vm7237_vm7, %v8209_v20  ;;  %5178 = vmatmul.mubr.bf16.gmra.mrb[196].mxu1 %v10766_v52  ;;  %v5666_v33 = vmul.f32 %v10910_v38, %v5398_v34 }
 0x689   :  { %8220 = vpow2.f32 %v7697_v0  ;;  %v5400_v31 = vmax.f32 %v4914_v9, 0.0  ;;  %v7698_v16 = vmul.f32 -1.442695, %v6354_v28  ;;  %v8211_v54 = vpop.eup %8210  ;;  %7673 = vmatprep.mubr.msk.bf16.mxu1 %vm3008_vm6, %v10779_v46 }
 0x68a   :  { %v5667_v23 = vmul.f32 %v10906_v53, %v5399_v3  ;;  %v5401_v27 = vmax.f32 %v4916_v32, 0.0  ;;  %6020 = vadd.xlane.f32.xlu1 %v6019_v22  ;;  %7245 = vst.msk [vmem:[%s12313_s11 + $0x38] sm:$0xff] %vm7237_vm7, %v8211_v54 }
 0x68b   :  { %v8213_v17 = vpop.eup %8212  ;;  %8222 = vpow2.f32 %v7698_v16  ;;  %v4919_v50 = vpop.f32.mrb[92].mxu1  ;;  %v5668_v39 = vmul.f32 %v10910_v38, %v5400_v31 }
 0x68c   :  { %v6863_v42 = vadd.f32 1.0, %v8213_v17  ;;  %v5669_v52 = vmul.f32 %v10906_v53, %v5401_v27  ;;  %v5881_v43 = vpop.xlane.xlu0 %5880  ;;  %v6022_v63 = vsel %vm3008_vm6, %v5667_v23, 0.0  ;;  %v8215_v44 = vpop.eup %8214  ;;  %v4920_v46 = vadd.f32 %v4919_v50, %v10889_v40 }
 0x68d   :  { %v6355_v51 = vadd.f32 %v11154_v45, %v5881_v43  ;;  %v4921_v10 = vpop.f32.mrb[93].mxu1  ;;  %v6023_v56 = vadd.f32 %v6022_v63, %v5666_v33  ;;  %v6864_v59 = vadd.f32 1.0, %v8215_v44  ;;  %v5885_v60 = vpop.xlane.xlu1 %5884 }
 0x68e   :  { %8224 = vrcp.f32 %v6863_v42  ;;  %v4922_v4 = vadd.f32 %v4921_v10, %v10894_v12  ;;  %v4923_v37 = vpop.f32.mrb[94].mxu1  ;;  %v6026_v55 = vsel %vm3008_vm6, %v5669_v52, 0.0  ;;  %v5402_v18 = vmax.f32 %v4920_v46, 0.0 }
 0x68f   :  { %v7699_v48 = vmul.f32 -1.442695, %v6355_v51  ;;  %v4924_v47 = vadd.f32 %v4923_v37, %v10889_v40  ;;  %v6356_v49 = vadd.f32 %v11154_v45, %v5885_v60  ;;  %v4925_v57 = vpop.f32.mrb[95].mxu1  ;;  %6024 = vadd.xlane.f32.xlu0 %v6023_v56  ;;  %8226 = vrcp.f32 %v6864_v59 }
 0x690   :  { %v8217_v11 = vpop.eup %8216  ;;  %v5403_v26 = vmax.f32 %v4922_v4, 0.0  ;;  %v4926_v13 = vadd.f32 %v4925_v57, %v10894_v12  ;;  %v6027_v5 = vadd.f32 %v6026_v55, %v5668_v39  ;;  %5188 = vmatmul.mubr.bf16.gmra.mrb[200].mxu1 %v10777_v35  ;;  %v5670_v2 = vmul.f32 %v10910_v38, %v5402_v18 }
 0x691   :  { %7246 = vst.msk [vmem:[%s12313_s11 + $0x40] sm:$0xff] %vm7237_vm7, %v8217_v11  ;;  %8228 = vpow2.f32 %v7699_v48  ;;  %v5404_v36 = vmax.f32 %v4924_v47, 0.0  ;;  %v7700_v7 = vmul.f32 -1.442695, %v6356_v49  ;;  %v8219_v14 = vpop.eup %8218  ;;  %7674 = vmatprep.mubr.msk.bf16.mxu1 %vm3008_vm6, %v10790_v24 }
 0x692   :  { %v5671_v25 = vmul.f32 %v10906_v53, %v5403_v26  ;;  %v5405_v30 = vmax.f32 %v4926_v13, 0.0  ;;  %6028 = vadd.xlane.f32.xlu1 %v6027_v5  ;;  %7247 = vst.msk [vmem:[%s12313_s11 + $0x48] sm:$0xff] %vm7237_vm7, %v8219_v14 }
 0x693   :  { %v8221_v1 = vpop.eup %8220  ;;  %8230 = vpow2.f32 %v7700_v7  ;;  %v4929_v15 = vpop.f32.mrb[96].mxu1  ;;  %v5672_v0 = vmul.f32 %v10910_v38, %v5404_v36 }
 0x694   :  { %v6865_v29 = vadd.f32 1.0, %v8221_v1  ;;  %v5673_v35 = vmul.f32 %v10906_v53, %v5405_v30  ;;  %v5889_v21 = vpop.xlane.xlu0 %5888  ;;  %v6030_v6 = vsel %vm3008_vm6, %v5671_v25, 0.0  ;;  %v4930_v24 = vadd.f32 %v4929_v15, %v10889_v40  ;;  %v4931_v28 = vpop.f32.mrb[97].mxu1 }
 0x695   :  { %v8223_v34 = vpop.eup %8222  ;;  %v6357_v9 = vadd.f32 %v11154_v45, %v5889_v21  ;;  %v6031_v62 = vadd.f32 %v6030_v6, %v5670_v2  ;;  %v4932_v3 = vadd.f32 %v4931_v28, %v10894_v12  ;;  %v4933_v32 = vpop.f32.mrb[98].mxu1 }
 0x696   :  { %8232 = vrcp.f32 %v6865_v29  ;;  %v6866_v20 = vadd.f32 1.0, %v8223_v34  ;;  %v5893_v22 = vpop.xlane.xlu1 %5892  ;;  %v6034_v31 = vsel %vm3008_vm6, %v5673_v35, 0.0  ;;  %v5406_v16 = vmax.f32 %v4930_v24, 0.0  ;;  %v4935_v17 = vpop.f32.mrb[99].mxu1 }
 0x697   :  { %v7701_v54 = vmul.f32 -1.442695, %v6357_v9  ;;  %v4934_v23 = vadd.f32 %v4933_v32, %v10889_v40  ;;  %v6358_v27 = vadd.f32 %v11154_v45, %v5893_v22  ;;  %6032 = vadd.xlane.f32.xlu0 %v6031_v62  ;;  %v5407_v42 = vmax.f32 %v4932_v3, 0.0 }
 0x698   :  { %v8225_v33 = vpop.eup %8224  ;;  %8234 = vrcp.f32 %v6866_v20  ;;  %v4936_v52 = vadd.f32 %v4935_v17, %v10894_v12  ;;  %v6035_v50 = vadd.f32 %v6034_v31, %v5672_v0  ;;  %5198 = vmatmul.mubr.bf16.gmra.mrb[204].mxu1 %v10788_v19  ;;  %v5674_v10 = vmul.f32 %v10910_v38, %v5406_v16 }
 0x699   :  { %7248 = vst.msk [vmem:[%s12313_s11 + $0x50] sm:$0xff] %vm7237_vm7, %v8225_v33  ;;  %8236 = vpow2.f32 %v7701_v54  ;;  %v5408_v43 = vmax.f32 %v4934_v23, 0.0  ;;  %v7702_v63 = vmul.f32 -1.442695, %v6358_v27  ;;  %v8227_v44 = vpop.eup %8226  ;;  %v5675_v39 = vmul.f32 %v10906_v53, %v5407_v42  ;;  %7675 = vmatprep.mubr.msk.bf16.mxu1 %vm3008_vm6, %v10801_v61 }
 0x69a   :  { %v5409_v46 = vmax.f32 %v4936_v52, 0.0  ;;  %6036 = vadd.xlane.f32.xlu1 %v6035_v50  ;;  %7249 = vst.msk [vmem:[%s12313_s11 + $0x58] sm:$0xff] %vm7237_vm7, %v8227_v44 }
 0x69b   :  { %v8229_v51 = vpop.eup %8228  ;;  %8238 = vpow2.f32 %v7702_v63  ;;  %v4939_v59 = vpop.f32.mrb[100].mxu1  ;;  %v6038_v37 = vsel %vm3008_vm6, %v5675_v39, 0.0  ;;  %v5676_v55 = vmul.f32 %v10910_v38, %v5408_v43 }
 0x69c   :  { %v6867_v56 = vadd.f32 1.0, %v8229_v51  ;;  %v5677_v19 = vmul.f32 %v10906_v53, %v5409_v46  ;;  %v5897_v4 = vpop.xlane.xlu0 %5896  ;;  %v4940_v61 = vadd.f32 %v4939_v59, %v10889_v40  ;;  %v4941_v48 = vpop.f32.mrb[101].mxu1  ;;  %v6039_v47 = vadd.f32 %v6038_v37, %v5674_v10  ;;  %v12398_v37 = vld [vmem:[#allocation37_spill] sm:$0xff] }
 0x69d   :  { %v8231_v60 = vpop.eup %8230  ;;  %v6359_v18 = vadd.f32 %v11154_v45, %v5897_v4  ;;  %v4942_v57 = vadd.f32 %v4941_v48, %v10894_v12  ;;  %v4943_v11 = vpop.f32.mrb[102].mxu1 }
 0x69e   :  { %8240 = vrcp.f32 %v6867_v56  ;;  %v6868_v49 = vadd.f32 1.0, %v8231_v60  ;;  %v5901_v26 = vpop.xlane.xlu1 %5900  ;;  %v6042_v13 = vsel %vm3008_vm6, %v5677_v19, 0.0  ;;  %v5410_v5 = vmax.f32 %v4940_v61, 0.0  ;;  %v4945_v25 = vpop.f32.mrb[103].mxu1  ;;  %6040 = vadd.xlane.f32.xlu0 %v6039_v47 }
 0x69f   :  { %v7703_v36 = vmul.f32 -1.442695, %v6359_v18  ;;  %v4944_v7 = vadd.f32 %v4943_v11, %v10889_v40  ;;  %v6360_v14 = vadd.f32 %v11154_v45, %v5901_v26  ;;  %v5411_v1 = vmax.f32 %v4942_v57, 0.0 }
 0x6a0   :  { %v8233_v30 = vpop.eup %8232  ;;  %8242 = vrcp.f32 %v6868_v49  ;;  %v4946_v2 = vadd.f32 %v4945_v25, %v10894_v12  ;;  %v6043_v29 = vadd.f32 %v6042_v13, %v5676_v55  ;;  %5208 = vmatmul.mubr.bf16.gmra.mrb[208].mxu1 %v10799_v8  ;;  %v5678_v24 = vmul.f32 %v10910_v38, %v5410_v5 }
 0x6a1   :  { %7250 = vst.msk [vmem:[%s12313_s11 + $0x60] sm:$0xff] %vm7237_vm7, %v8233_v30  ;;  %8244 = vpow2.f32 %v7703_v36  ;;  %v5412_v35 = vmax.f32 %v4944_v7, 0.0  ;;  %v7704_v15 = vmul.f32 -1.442695, %v6360_v14  ;;  %v5679_v6 = vmul.f32 %v10906_v53, %v5411_v1  ;;  %7676 = vmatprep.mubr.msk.bf16.mxu1 %vm3008_vm6, %v10812_v41 }
 0x6a2   :  { %v8235_v21 = vpop.eup %8234  ;;  %v5413_v34 = vmax.f32 %v4946_v2, 0.0  ;;  %6044 = vadd.xlane.f32.xlu1 %v6043_v29 }
 0x6a3   :  { %v8237_v0 = vpop.eup %8236  ;;  %7251 = vst.msk [vmem:[%s12313_s11 + $0x68] sm:$0xff] %vm7237_vm7, %v8235_v21  ;;  %8246 = vpow2.f32 %v7704_v15  ;;  %v4949_v28 = vpop.f32.mrb[104].mxu1  ;;  %v6046_v20 = vsel %vm3008_vm6, %v5679_v6, 0.0  ;;  %v5680_v32 = vmul.f32 %v10910_v38, %v5412_v35 }
 0x6a4   :  { %v6869_v9 = vadd.f32 1.0, %v8237_v0  ;;  %v5681_v8 = vmul.f32 %v10906_v53, %v5413_v34  ;;  %v5905_v62 = vpop.xlane.xlu0 %5904  ;;  %v4950_v41 = vadd.f32 %v4949_v28, %v10889_v40  ;;  %v4951_v31 = vpop.f32.mrb[105].mxu1  ;;  %v6047_v16 = vadd.f32 %v6046_v20, %v5678_v24 }
 0x6a5   :  { %v8239_v3 = vpop.eup %8238  ;;  %v6361_v22 = vadd.f32 %v11154_v45, %v5905_v62  ;;  %v4952_v23 = vadd.f32 %v4951_v31, %v10894_v12  ;;  %v4953_v27 = vpop.f32.mrb[106].mxu1 }
 0x6a6   :  { %8248 = vrcp.f32 %v6869_v9  ;;  %v6870_v54 = vadd.f32 1.0, %v8239_v3  ;;  %v5909_v17 = vpop.xlane.xlu1 %5908  ;;  %v6050_v33 = vsel %vm3008_vm6, %v5681_v8, 0.0  ;;  %v5414_v42 = vmax.f32 %v4950_v41, 0.0  ;;  %v4955_v63 = vpop.f32.mrb[107].mxu1  ;;  %6048 = vadd.xlane.f32.xlu0 %v6047_v16  ;;  %v12399_v8 = vld [vmem:[#allocation36_spill] sm:$0xff]  ;;  %v12400_v3 = vld [vmem:[#allocation7_spill] sm:$0xff] }
 0x6a7   :  { %v7705_v52 = vmul.f32 -1.442695, %v6361_v22  ;;  %v4954_v50 = vadd.f32 %v4953_v27, %v10889_v40  ;;  %v6362_v43 = vadd.f32 %v11154_v45, %v5909_v17  ;;  %v5415_v39 = vmax.f32 %v4952_v23, 0.0 }
 0x6a8   :  { %v8241_v44 = vpop.eup %8240  ;;  %8250 = vrcp.f32 %v6870_v54  ;;  %v4956_v46 = vadd.f32 %v4955_v63, %v10894_v12  ;;  %v6051_v51 = vadd.f32 %v6050_v33, %v5680_v32  ;;  %5218 = vmatmul.mubr.bf16.gmra.mrb[212].mxu1 %v10810_v58  ;;  %v5682_v55 = vmul.f32 %v10910_v38, %v5414_v42 }
 0x6a9   :  { %7252 = vst.msk [vmem:[%s12313_s11 + $0x70] sm:$0xff] %vm7237_vm7, %v8241_v44  ;;  %8252 = vpow2.f32 %v7705_v52  ;;  %v5416_v10 = vmax.f32 %v4954_v50, 0.0  ;;  %v7706_v56 = vmul.f32 -1.442695, %v6362_v43  ;;  %v5683_v59 = vmul.f32 %v10906_v53, %v5415_v39  ;;  %7677 = vmatprep.mubr.msk.bf16.mxu1 %vm3008_vm6, %v12398_v37 }
 0x6aa   :  { %v8243_v19 = vpop.eup %8242  ;;  %v5417_v4 = vmax.f32 %v4956_v46, 0.0  ;;  %6052 = vadd.xlane.f32.xlu1 %v6051_v51 }
 0x6ab   :  { %v8245_v60 = vpop.eup %8244  ;;  %7253 = vst.msk [vmem:[%s12313_s11 + $0x78] sm:$0xff] %vm7237_vm7, %v8243_v19  ;;  %8254 = vpow2.f32 %v7706_v56  ;;  %v4959_v18 = vpop.f32.mrb[108].mxu1  ;;  %v6054_v47 = vsel %vm3008_vm6, %v5683_v59, 0.0  ;;  %v5684_v57 = vmul.f32 %v10910_v38, %v5416_v10 }
 0x6ac   :  { %v6871_v61 = vadd.f32 1.0, %v8245_v60  ;;  %v5685_v58 = vmul.f32 %v10906_v53, %v5417_v4  ;;  %v5913_v48 = vpop.xlane.xlu0 %5912  ;;  %v4960_v11 = vadd.f32 %v4959_v18, %v10889_v40  ;;  %v4961_v13 = vpop.f32.mrb[109].mxu1  ;;  %v6055_v5 = vadd.f32 %v6054_v47, %v5682_v55  ;;  %v12401_v18 = vld [vmem:[#allocation5_spill] sm:$0xff] }
 0x6ad   :  { %v8247_v49 = vpop.eup %8246  ;;  %v6363_v26 = vadd.f32 %v11154_v45, %v5913_v48  ;;  %v4962_v7 = vadd.f32 %v4961_v13, %v10894_v12  ;;  %v4963_v14 = vpop.f32.mrb[110].mxu1 }
 0x6ae   :  { %8256 = vrcp.f32 %v6871_v61  ;;  %v6872_v36 = vadd.f32 1.0, %v8247_v49  ;;  %v5917_v25 = vpop.xlane.xlu1 %5916  ;;  %v6058_v30 = vsel %vm3008_vm6, %v5685_v58, 0.0  ;;  %v5418_v1 = vmax.f32 %v4960_v11, 0.0  ;;  %v4965_v15 = vpop.f32.mrb[111].mxu1  ;;  %6056 = vadd.xlane.f32.xlu0 %v6055_v5  ;;  %v12402_v49 = vld [vmem:[#allocation9_spill] sm:$0xff] }
 0x6af   :  { %v7707_v2 = vmul.f32 -1.442695, %v6363_v26  ;;  %v4964_v29 = vadd.f32 %v4963_v14, %v10889_v40  ;;  %v6364_v35 = vadd.f32 %v11154_v45, %v5917_v25  ;;  %v5419_v6 = vmax.f32 %v4962_v7, 0.0 }
 0x6b0   :  { %v8249_v21 = vpop.eup %8248  ;;  %8258 = vrcp.f32 %v6872_v36  ;;  %v4966_v34 = vadd.f32 %v4965_v15, %v10894_v12  ;;  %v6059_v0 = vadd.f32 %v6058_v30, %v5684_v57  ;;  %5228 = vmatmul.mubr.bf16.gmra.mrb[216].mxu1 %v12399_v8  ;;  %v5686_v41 = vmul.f32 %v10910_v38, %v5418_v1  ;;  %v11436_v1 = vld [vmem:[#allocation2] ss:$0 sm:$0xff] }
 0x6b1   :  { %7254 = vst.msk [vmem:[%s12313_s11 + $0x80] sm:$0xff] %vm7237_vm7, %v8249_v21  ;;  %8260 = vpow2.f32 %v7707_v2  ;;  %v5420_v24 = vmax.f32 %v4964_v29, 0.0  ;;  %v7708_v9 = vmul.f32 -1.442695, %v6364_v35  ;;  %v5687_v62 = vmul.f32 %v10906_v53, %v5419_v6  ;;  %7678 = vmatprep.mubr.msk.bf16.mxu1 %vm3008_vm6, %v12400_v3 }
 0x6b2   :  { %v8251_v28 = vpop.eup %8250  ;;  %v5421_v20 = vmax.f32 %v4966_v34, 0.0  ;;  %6060 = vadd.xlane.f32.xlu1 %v6059_v0 }
 0x6b3   :  { %v8253_v32 = vpop.eup %8252  ;;  %7255 = vst.msk [vmem:[%s12313_s11 + $0x88] sm:$0xff] %vm7237_vm7, %v8251_v28  ;;  %8262 = vpow2.f32 %v7708_v9  ;;  %v4969_v16 = vpop.f32.mrb[112].mxu1  ;;  %v6062_v23 = vsel %vm3008_vm6, %v5687_v62, 0.0  ;;  %v5688_v17 = vmul.f32 %v10910_v38, %v5420_v24 }
 0x6b4   :  { %v6873_v22 = vadd.f32 1.0, %v8253_v32  ;;  %v5689_v31 = vmul.f32 %v10906_v53, %v5421_v20  ;;  %v5921_v54 = vpop.xlane.xlu0 %5920  ;;  %v4970_v33 = vadd.f32 %v4969_v16, %v10889_v40  ;;  %v4971_v52 = vpop.f32.mrb[113].mxu1  ;;  %v6063_v50 = vadd.f32 %v6062_v23, %v5686_v41  ;;  %v12403_v16 = vld [vmem:[#allocation6_spill] sm:$0xff] }
 0x6b5   :  { %v8255_v27 = vpop.eup %8254  ;;  %v6365_v42 = vadd.f32 %v11154_v45, %v5921_v54  ;;  %v4972_v63 = vadd.f32 %v4971_v52, %v10894_v12  ;;  %v4973_v44 = vpop.f32.mrb[114].mxu1 }
 0x6b6   :  { %8264 = vrcp.f32 %v6873_v22  ;;  %v6874_v43 = vadd.f32 1.0, %v8255_v27  ;;  %v5925_v39 = vpop.xlane.xlu1 %5924  ;;  %v6066_v46 = vsel %vm3008_vm6, %v5689_v31, 0.0  ;;  %v5422_v51 = vmax.f32 %v4970_v33, 0.0  ;;  %v4975_v59 = vpop.f32.mrb[115].mxu1  ;;  %6064 = vadd.xlane.f32.xlu0 %v6063_v50 }
 0x6b7   :  { %v7709_v10 = vmul.f32 -1.442695, %v6365_v42  ;;  %v4974_v56 = vadd.f32 %v4973_v44, %v10889_v40  ;;  %v6366_v19 = vadd.f32 %v11154_v45, %v5925_v39  ;;  %v5423_v37 = vmax.f32 %v4972_v63, 0.0 }
 0x6b8   :  { %v8257_v4 = vpop.eup %8256  ;;  %8266 = vrcp.f32 %v6874_v43  ;;  %v4976_v60 = vadd.f32 %v4975_v59, %v10894_v12  ;;  %v6067_v55 = vadd.f32 %v6066_v46, %v5688_v17  ;;  %5238 = vmatmul.mubr.bf16.gmra.mrb[220].mxu1 %v12401_v18  ;;  %v5690_v11 = vmul.f32 %v10910_v38, %v5422_v51  ;;  %v12404_v17 = vld [vmem:[#allocation11_spill] sm:$0xff] }
 0x6b9   :  { %7256 = vst.msk [vmem:[%s12313_s11 + $0x90] sm:$0xff] %vm7237_vm7, %v8257_v4  ;;  %8268 = vpow2.f32 %v7709_v10  ;;  %v5424_v61 = vmax.f32 %v4974_v56, 0.0  ;;  %v7710_v58 = vmul.f32 -1.442695, %v6366_v19  ;;  %v5691_v45 = vmul.f32 %v10906_v53, %v5423_v37  ;;  %7679 = vmatprep.mubr.msk.bf16.mxu1 %vm3008_vm6, %v12402_v49 }
 0x6ba   :  { %v8259_v48 = vpop.eup %8258  ;;  %v5425_v47 = vmax.f32 %v4976_v60, 0.0  ;;  %6068 = vadd.xlane.f32.xlu1 %v6067_v55 }
 0x6bb   :  { %v8261_v57 = vpop.eup %8260  ;;  %7257 = vst.msk [vmem:[%s12313_s11 + $0x98] sm:$0xff] %vm7237_vm7, %v8259_v48  ;;  %8270 = vpow2.f32 %v7710_v58  ;;  %v4979_v5 = vpop.f32.mrb[116].mxu1  ;;  %v6070_v7 = vsel %vm3008_vm6, %v5691_v45, 0.0  ;;  %v5692_v25 = vmul.f32 %v10910_v38, %v5424_v61 }
 0x6bc   :  { %v6875_v26 = vadd.f32 1.0, %v8261_v57  ;;  %v5693_v13 = vmul.f32 %v10906_v53, %v5425_v47  ;;  %v5929_v36 = vpop.xlane.xlu0 %5928  ;;  %v4980_v30 = vadd.f32 %v4979_v5, %v10889_v40  ;;  %v4981_v29 = vpop.f32.mrb[117].mxu1  ;;  %v6071_v35 = vadd.f32 %v6070_v7, %v5690_v11  ;;  %v12405_v5 = vld [vmem:[#allocation8_spill] sm:$0xff] }
 0x6bd   :  { %v8263_v14 = vpop.eup %8262  ;;  %v6367_v2 = vadd.f32 %v11436_v1, %v5929_v36  ;;  %v4982_v21 = vadd.f32 %v4981_v29, %v10894_v12  ;;  %v4983_v6 = vpop.f32.mrb[118].mxu1 }
 0x6be   :  { %8272 = vrcp.f32 %v6875_v26  ;;  %v6876_v15 = vadd.f32 1.0, %v8263_v14  ;;  %v5933_v34 = vpop.xlane.xlu1 %5932  ;;  %v6074_v0 = vsel %vm3008_vm6, %v5693_v13, 0.0  ;;  %v5426_v24 = vmax.f32 %v4980_v30, 0.0  ;;  %v4985_v62 = vpop.f32.mrb[119].mxu1  ;;  %6072 = vadd.xlane.f32.xlu0 %v6071_v35 }
 0x6bf   :  { %v7711_v9 = vmul.f32 -1.442695, %v6367_v2  ;;  %v4984_v8 = vadd.f32 %v4983_v6, %v10889_v40  ;;  %v6368_v28 = vadd.f32 %v11436_v1, %v5933_v34  ;;  %v5427_v3 = vmax.f32 %v4982_v21, 0.0 }
 0x6c0   :  { %v8265_v20 = vpop.eup %8264  ;;  %8274 = vrcp.f32 %v6876_v15  ;;  %v4986_v32 = vadd.f32 %v4985_v62, %v10894_v12  ;;  %v6075_v41 = vadd.f32 %v6074_v0, %v5692_v25  ;;  %5248 = vmatmul.mubr.bf16.gmra.mrb[224].mxu1 %v12403_v16  ;;  %v5694_v42 = vmul.f32 %v10910_v38, %v5426_v24  ;;  %v12406_v25 = vld [vmem:[#allocation13_spill] sm:$0xff] }
 0x6c1   :  { %7258 = vst.msk [vmem:[%s12313_s11 + $0xa0] sm:$0xff] %vm7237_vm7, %v8265_v20  ;;  %8276 = vpow2.f32 %v7711_v9  ;;  %v5428_v22 = vmax.f32 %v4984_v8, 0.0  ;;  %v7712_v31 = vmul.f32 -1.442695, %v6368_v28  ;;  %v5695_v23 = vmul.f32 %v10906_v53, %v5427_v3  ;;  %7680 = vmatprep.mubr.msk.bf16.mxu1 %vm3008_vm6, %v12404_v17 }
 0x6c2   :  { %v8267_v54 = vpop.eup %8266  ;;  %v5429_v27 = vmax.f32 %v4986_v32, 0.0  ;;  %6076 = vadd.xlane.f32.xlu1 %v6075_v41 }
 0x6c3   :  { %v8269_v33 = vpop.eup %8268  ;;  %7259 = vst.msk [vmem:[%s12313_s11 + $0xa8] sm:$0xff] %vm7237_vm7, %v8267_v54  ;;  %8278 = vpow2.f32 %v7712_v31  ;;  %v4989_v43 = vpop.f32.mrb[120].mxu1  ;;  %v6078_v44 = vsel %vm3008_vm6, %v5695_v23, 0.0  ;;  %v5696_v46 = vmul.f32 %v10910_v38, %v5428_v22 }
 0x6c4   :  { %v6877_v52 = vadd.f32 1.0, %v8269_v33  ;;  %v5697_v50 = vmul.f32 %v10906_v53, %v5429_v27  ;;  %v5937_v63 = vpop.xlane.xlu0 %5936  ;;  %v4990_v51 = vadd.f32 %v4989_v43, %v10889_v40  ;;  %v4991_v56 = vpop.f32.mrb[121].mxu1  ;;  %v6079_v19 = vadd.f32 %v6078_v44, %v5694_v42  ;;  %v12407_v43 = vld [vmem:[#allocation10_spill] sm:$0xff] }
 0x6c5   :  { %v8271_v39 = vpop.eup %8270  ;;  %v6369_v10 = vadd.f32 %v11436_v1, %v5937_v63  ;;  %v4992_v4 = vadd.f32 %v4991_v56, %v10894_v12  ;;  %v4993_v37 = vpop.f32.mrb[122].mxu1 }
 0x6c6   :  { %8280 = vrcp.f32 %v6877_v52  ;;  %v6878_v59 = vadd.f32 1.0, %v8271_v39  ;;  %v5941_v60 = vpop.xlane.xlu1 %5940  ;;  %v6082_v55 = vsel %vm3008_vm6, %v5697_v50, 0.0  ;;  %v5430_v61 = vmax.f32 %v4990_v51, 0.0  ;;  %v4995_v45 = vpop.f32.mrb[123].mxu1  ;;  %6080 = vadd.xlane.f32.xlu0 %v6079_v19 }
 0x6c7   :  { %v7713_v58 = vmul.f32 -1.442695, %v6369_v10  ;;  %v4994_v18 = vadd.f32 %v4993_v37, %v10889_v40  ;;  %v6370_v48 = vadd.f32 %v11436_v1, %v5941_v60  ;;  %v5431_v49 = vmax.f32 %v4992_v4, 0.0 }
 0x6c8   :  { %v8273_v47 = vpop.eup %8272  ;;  %8282 = vrcp.f32 %v6878_v59  ;;  %v4996_v57 = vadd.f32 %v4995_v45, %v10894_v12  ;;  %v6083_v11 = vadd.f32 %v6082_v55, %v5696_v46  ;;  %5258 = vmatmul.mubr.bf16.gmra.mrb[228].mxu1 %v12405_v5  ;;  %v5698_v2 = vmul.f32 %v10910_v38, %v5430_v61  ;;  %v12408_v46 = vld [vmem:[#allocation15_spill] sm:$0xff] }
 0x6c9   :  { %7260 = vst.msk [vmem:[%s12313_s11 + $0xb0] sm:$0xff] %vm7237_vm7, %v8273_v47  ;;  %8284 = vpow2.f32 %v7713_v58  ;;  %v5432_v26 = vmax.f32 %v4994_v18, 0.0  ;;  %v7714_v13 = vmul.f32 -1.442695, %v6370_v48  ;;  %v5699_v7 = vmul.f32 %v10906_v53, %v5431_v49  ;;  %7681 = vmatprep.mubr.msk.bf16.mxu1 %vm3008_vm6, %v12406_v25 }
 0x6ca   :  { %v8275_v36 = vpop.eup %8274  ;;  %v5433_v14 = vmax.f32 %v4996_v57, 0.0  ;;  %6084 = vadd.xlane.f32.xlu1 %v6083_v11 }
 0x6cb   :  { %v8277_v30 = vpop.eup %8276  ;;  %7261 = vst.msk [vmem:[%s12313_s11 + $0xb8] sm:$0xff] %vm7237_vm7, %v8275_v36  ;;  %8286 = vpow2.f32 %v7714_v13  ;;  %v4999_v15 = vpop.f32.mrb[124].mxu1  ;;  %v6086_v6 = vsel %vm3008_vm6, %v5699_v7, 0.0  ;;  %v5700_v0 = vmul.f32 %v10910_v38, %v5432_v26 }
 0x6cc   :  { %v6879_v29 = vadd.f32 1.0, %v8277_v30  ;;  %v5701_v35 = vmul.f32 %v10906_v53, %v5433_v14  ;;  %v5945_v21 = vpop.xlane.xlu0 %5944  ;;  %v5000_v24 = vadd.f32 %v4999_v15, %v10889_v40  ;;  %v5001_v8 = vpop.f32.mrb[125].mxu1  ;;  %v6087_v28 = vadd.f32 %v6086_v6, %v5698_v2  ;;  %v12409_v15 = vld [vmem:[#allocation12_spill] sm:$0xff] }
 0x6cd   :  { %v8279_v34 = vpop.eup %8278  ;;  %v6371_v9 = vadd.f32 %v11436_v1, %v5945_v21  ;;  %v5002_v20 = vadd.f32 %v5001_v8, %v10894_v12  ;;  %v5003_v3 = vpop.f32.mrb[126].mxu1 }
 0x6ce   :  { %8288 = vrcp.f32 %v6879_v29  ;;  %v6880_v62 = vadd.f32 1.0, %v8279_v34  ;;  %v5949_v32 = vpop.xlane.xlu1 %5948  ;;  %v6090_v41 = vsel %vm3008_vm6, %v5701_v35, 0.0  ;;  %v5434_v22 = vmax.f32 %v5000_v24, 0.0  ;;  %v5005_v23 = vpop.f32.mrb[127].mxu1  ;;  %6088 = vadd.xlane.f32.xlu0 %v6087_v28 }
 0x6cf   :  { %v7715_v31 = vmul.f32 -1.442695, %v6371_v9  ;;  %v5004_v16 = vadd.f32 %v5003_v3, %v10889_v40  ;;  %v6372_v54 = vadd.f32 %v11436_v1, %v5949_v32  ;;  %v5435_v17 = vmax.f32 %v5002_v20, 0.0 }
 0x6d0   :  { %v8281_v27 = vpop.eup %8280  ;;  %8290 = vrcp.f32 %v6880_v62  ;;  %v5006_v33 = vadd.f32 %v5005_v23, %v10894_v12  ;;  %v6091_v42 = vadd.f32 %v6090_v41, %v5700_v0  ;;  %5268 = vmatmul.mubr.bf16.gmra.mrb[232].mxu1 %v12407_v43  ;;  %v5702_v10 = vmul.f32 %v10910_v38, %v5434_v22  ;;  %v12410_v0 = vld [vmem:[#allocation3_spill] sm:$0xff] }
 0x6d1   :  { %7262 = vst.msk [vmem:[%s12313_s11 + $0xc0] sm:$0xff] %vm7237_vm7, %v8281_v27  ;;  %8292 = vpow2.f32 %v7715_v31  ;;  %v5436_v52 = vmax.f32 %v5004_v16, 0.0  ;;  %v7716_v50 = vmul.f32 -1.442695, %v6372_v54  ;;  %v5703_v44 = vmul.f32 %v10906_v53, %v5435_v17  ;;  %7682 = vmatprep.mubr.msk.bf16.mxu1 %vm3008_vm6, %v12408_v46 }
 0x6d2   :  { %v8283_v63 = vpop.eup %8282  ;;  %v5437_v39 = vmax.f32 %v5006_v33, 0.0  ;;  %6092 = vadd.xlane.f32.xlu1 %v6091_v42 }
 0x6d3   :  { %v8285_v51 = vpop.eup %8284  ;;  %7263 = vst.msk [vmem:[%s12313_s11 + $0xc8] sm:$0xff] %vm7237_vm7, %v8283_v63  ;;  %8294 = vpow2.f32 %v7716_v50  ;;  %v5009_v59 = vpop.f32.mrb[128].mxu1  ;;  %v6094_v37 = vsel %vm3008_vm6, %v5703_v44, 0.0  ;;  %v5704_v55 = vmul.f32 %v10910_v38, %v5436_v52 }
 0x6d4   :  { %v6881_v56 = vadd.f32 1.0, %v8285_v51  ;;  %v5705_v19 = vmul.f32 %v10906_v53, %v5437_v39  ;;  %v5953_v4 = vpop.xlane.xlu0 %5952  ;;  %v5010_v61 = vadd.f32 %v5009_v59, %v10889_v40  ;;  %v5011_v18 = vpop.f32.mrb[129].mxu1  ;;  %v6095_v48 = vadd.f32 %v6094_v37, %v5702_v10  ;;  %v12411_v59 = vld [vmem:[#allocation14_spill] sm:$0xff] }
 0x6d5   :  { %v8287_v60 = vpop.eup %8286  ;;  %v6373_v58 = vadd.f32 %v11436_v1, %v5953_v4  ;;  %v5012_v47 = vadd.f32 %v5011_v18, %v10894_v12  ;;  %v5013_v49 = vpop.f32.mrb[130].mxu1 }
 0x6d6   :  { %8296 = vrcp.f32 %v6881_v56  ;;  %v6882_v45 = vadd.f32 1.0, %v8287_v60  ;;  %v5957_v57 = vpop.xlane.xlu1 %5956  ;;  %v6098_v11 = vsel %vm3008_vm6, %v5705_v19, 0.0  ;;  %v5438_v26 = vmax.f32 %v5010_v61, 0.0  ;;  %v5015_v7 = vpop.f32.mrb[131].mxu1  ;;  %6096 = vadd.xlane.f32.xlu0 %v6095_v48 }
 0x6d7   :  { %v7717_v13 = vmul.f32 -1.442695, %v6373_v58  ;;  %v5014_v5 = vadd.f32 %v5013_v49, %v10889_v40  ;;  %v6374_v36 = vadd.f32 %v11436_v1, %v5957_v57  ;;  %v5439_v25 = vmax.f32 %v5012_v47, 0.0 }
 0x6d8   :  { %v8289_v14 = vpop.eup %8288  ;;  %8298 = vrcp.f32 %v6882_v45  ;;  %v5016_v30 = vadd.f32 %v5015_v7, %v10894_v12  ;;  %v6099_v2 = vadd.f32 %v6098_v11, %v5704_v55  ;;  %5278 = vmatmul.mubr.bf16.gmra.mrb[236].mxu1 %v12409_v15  ;;  %v5706_v9 = vmul.f32 %v10910_v38, %v5438_v26 }
 0x6d9   :  { %7264 = vst.msk [vmem:[%s12313_s11 + $0xd0] sm:$0xff] %vm7237_vm7, %v8289_v14  ;;  %8300 = vpow2.f32 %v7717_v13  ;;  %v5440_v29 = vmax.f32 %v5014_v5, 0.0  ;;  %v7718_v35 = vmul.f32 -1.442695, %v6374_v36  ;;  %v5707_v6 = vmul.f32 %v10906_v53, %v5439_v25  ;;  %7683 = vmatprep.mubr.msk.bf16.mxu1 %vm3008_vm6, %v12410_v0 }
 0x6da   :  { %v8291_v21 = vpop.eup %8290  ;;  %v5441_v34 = vmax.f32 %v5016_v30, 0.0  ;;  %6100 = vadd.xlane.f32.xlu1 %v6099_v2 }
 0x6db   :  { %v8293_v24 = vpop.eup %8292  ;;  %7265 = vst.msk [vmem:[%s12313_s11 + $0xd8] sm:$0xff] %vm7237_vm7, %v8291_v21  ;;  %8302 = vpow2.f32 %v7718_v35  ;;  %v5019_v62 = vpop.f32.mrb[132].mxu1  ;;  %v6102_v3 = vsel %vm3008_vm6, %v5707_v6, 0.0  ;;  %v5708_v41 = vmul.f32 %v10910_v38, %v5440_v29 }
 0x6dc   :  { %v6883_v8 = vadd.f32 1.0, %v8293_v24  ;;  %v5709_v28 = vmul.f32 %v10906_v53, %v5441_v34  ;;  %v5961_v20 = vpop.xlane.xlu0 %5960  ;;  %v5020_v22 = vadd.f32 %v5019_v62, %v10889_v40  ;;  %v5021_v16 = vpop.f32.mrb[133].mxu1  ;;  %v6103_v54 = vadd.f32 %v6102_v3, %v5706_v9 }
 0x6dd   :  { %v8295_v32 = vpop.eup %8294  ;;  %v6375_v31 = vadd.f32 %v11436_v1, %v5961_v20  ;;  %v5022_v27 = vadd.f32 %v5021_v16, %v10894_v12  ;;  %v5023_v17 = vpop.f32.mrb[134].mxu1 }
 0x6de   :  { %8304 = vrcp.f32 %v6883_v8  ;;  %v6884_v23 = vadd.f32 1.0, %v8295_v32  ;;  %v5965_v33 = vpop.xlane.xlu1 %5964  ;;  %v6106_v42 = vsel %vm3008_vm6, %v5709_v28, 0.0  ;;  %v5442_v52 = vmax.f32 %v5020_v22, 0.0  ;;  %v5025_v44 = vpop.f32.mrb[135].mxu1  ;;  %6104 = vadd.xlane.f32.xlu0 %v6103_v54 }
 0x6df   :  { %v7719_v50 = vmul.f32 -1.442695, %v6375_v31  ;;  %v5024_v43 = vadd.f32 %v5023_v17, %v10889_v40  ;;  %v6376_v63 = vadd.f32 %v11436_v1, %v5965_v33  ;;  %v5443_v46 = vmax.f32 %v5022_v27, 0.0 }
 0x6e0   :  { %v8297_v39 = vpop.eup %8296  ;;  %8306 = vrcp.f32 %v6884_v23  ;;  %v5026_v51 = vadd.f32 %v5025_v44, %v10894_v12  ;;  %v6107_v10 = vadd.f32 %v6106_v42, %v5708_v41  ;;  %5288 = vmatmul.mubr.bf16.gmra.mrb[240].mxu1 %v12411_v59  ;;  %v5710_v61 = vmul.f32 %v10910_v38, %v5442_v52 }
 0x6e1   :  { %7266 = vst.msk [vmem:[%s12313_s11 + $0xe0] sm:$0xff] %vm7237_vm7, %v8297_v39  ;;  %8308 = vpow2.f32 %v7719_v50  ;;  %v5444_v56 = vmax.f32 %v5024_v43, 0.0  ;;  %v7720_v19 = vmul.f32 -1.442695, %v6376_v63  ;;  %v5711_v37 = vmul.f32 %v10906_v53, %v5443_v46 }
 0x6e2   :  { %v8299_v4 = vpop.eup %8298  ;;  %v5445_v60 = vmax.f32 %v5026_v51, 0.0  ;;  %6108 = vadd.xlane.f32.xlu1 %v6107_v10 }
 0x6e3   :  { %v8301_v55 = vpop.eup %8300  ;;  %7267 = vst.msk [vmem:[%s12313_s11 + $0xe8] sm:$0xff] %vm7237_vm7, %v8299_v4  ;;  %8310 = vpow2.f32 %v7720_v19  ;;  %v5029_v48 = vpop.f32.mrb[136].mxu1  ;;  %v6110_v47 = vsel %vm3008_vm6, %v5711_v37, 0.0  ;;  %v5712_v57 = vmul.f32 %v10910_v38, %v5444_v56 }
 0x6e4   :  { %v6885_v58 = vadd.f32 1.0, %v8301_v55  ;;  %v5713_v18 = vmul.f32 %v10906_v53, %v5445_v60  ;;  %v5969_v45 = vpop.xlane.xlu0 %5968  ;;  %v5030_v11 = vadd.f32 %v5029_v48, %v10889_v40  ;;  %v5031_v13 = vpop.f32.mrb[137].mxu1  ;;  %v6111_v5 = vadd.f32 %v6110_v47, %v5710_v61 }
 0x6e5   :  { %v8303_v49 = vpop.eup %8302  ;;  %v6377_v26 = vadd.f32 %v11436_v1, %v5969_v45  ;;  %v5032_v7 = vadd.f32 %v5031_v13, %v10894_v12  ;;  %v5033_v14 = vpop.f32.mrb[138].mxu1 }
 0x6e6   :  { %8312 = vrcp.f32 %v6885_v58  ;;  %v6886_v36 = vadd.f32 1.0, %v8303_v49  ;;  %v5973_v25 = vpop.xlane.xlu1 %5972  ;;  %v6114_v30 = vsel %vm3008_vm6, %v5713_v18, 0.0  ;;  %v5446_v2 = vmax.f32 %v5030_v11, 0.0  ;;  %v5035_v21 = vpop.f32.mrb[139].mxu1  ;;  %6112 = vadd.xlane.f32.xlu0 %v6111_v5 }
 0x6e7   :  { %v7721_v29 = vmul.f32 -1.442695, %v6377_v26  ;;  %v5034_v35 = vadd.f32 %v5033_v14, %v10889_v40  ;;  %v6378_v15 = vadd.f32 %v11436_v1, %v5973_v25  ;;  %v5447_v34 = vmax.f32 %v5032_v7, 0.0 }
 0x6e8   :  { %v8305_v6 = vpop.eup %8304  ;;  %8314 = vrcp.f32 %v6886_v36  ;;  %v5036_v0 = vadd.f32 %v5035_v21, %v10894_v12  ;;  %v6115_v24 = vadd.f32 %v6114_v30, %v5712_v57  ;;  %v5714_v32 = vmul.f32 %v10910_v38, %v5446_v2 }
 0x6e9   :  { %7268 = vst.msk [vmem:[%s12313_s11 + $0xf0] sm:$0xff] %vm7237_vm7, %v8305_v6  ;;  %8316 = vpow2.f32 %v7721_v29  ;;  %v5448_v9 = vmax.f32 %v5034_v35, 0.0  ;;  %v7722_v8 = vmul.f32 -1.442695, %v6378_v15  ;;  %v5715_v62 = vmul.f32 %v10906_v53, %v5447_v34 }
 0x6ea   :  { %v8307_v28 = vpop.eup %8306  ;;  %v5449_v20 = vmax.f32 %v5036_v0, 0.0  ;;  %6116 = vadd.xlane.f32.xlu1 %v6115_v24 }
 0x6eb   :  { %v8309_v3 = vpop.eup %8308  ;;  %7269 = vst.msk [vmem:[%s12313_s11 + $0xf8] sm:$0xff] %vm7237_vm7, %v8307_v28  ;;  %8318 = vpow2.f32 %v7722_v8  ;;  %v5039_v31 = vpop.f32.mrb[140].mxu1  ;;  %v6118_v54 = vsel %vm3008_vm6, %v5715_v62, 0.0  ;;  %v5716_v27 = vmul.f32 %v10910_v38, %v5448_v9 }
 0x6ec   :  { %v6887_v41 = vadd.f32 1.0, %v8309_v3  ;;  %v5717_v22 = vmul.f32 %v10906_v53, %v5449_v20  ;;  %v5977_v16 = vpop.xlane.xlu0 %5976  ;;  %v5040_v17 = vadd.f32 %v5039_v31, %v10889_v40  ;;  %v5041_v42 = vpop.f32.mrb[141].mxu1  ;;  %v6119_v52 = vadd.f32 %v6118_v54, %v5714_v32 }
 0x6ed   :  { %v8311_v23 = vpop.eup %8310  ;;  %v6379_v33 = vadd.f32 %v11436_v1, %v5977_v16  ;;  %v5042_v43 = vadd.f32 %v5041_v42, %v10894_v12  ;;  %v5043_v63 = vpop.f32.mrb[142].mxu1 }
 0x6ee   :  { %8320 = vrcp.f32 %v6887_v41  ;;  %v6888_v50 = vadd.f32 1.0, %v8311_v23  ;;  %v5981_v44 = vpop.xlane.xlu1 %5980  ;;  %v6122_v39 = vsel %vm3008_vm6, %v5717_v22, 0.0  ;;  %v5450_v46 = vmax.f32 %v5040_v17, 0.0  ;;  %v5045_v19 = vpop.f32.mrb[143].mxu1  ;;  %6120 = vadd.xlane.f32.xlu0 %v6119_v52 }
 0x6ef   :  { %v7723_v51 = vmul.f32 -1.442695, %v6379_v33  ;;  %v5044_v10 = vadd.f32 %v5043_v63, %v10889_v40  ;;  %v6380_v56 = vadd.f32 %v11436_v1, %v5981_v44  ;;  %v5451_v4 = vmax.f32 %v5042_v43, 0.0 }
 0x6f0   :  { %v8313_v59 = vpop.eup %8312  ;;  %8322 = vrcp.f32 %v6888_v50  ;;  %v5046_v37 = vadd.f32 %v5045_v19, %v10894_v12  ;;  %v6123_v60 = vadd.f32 %v6122_v39, %v5716_v27  ;;  %v5718_v47 = vmul.f32 %v10910_v38, %v5450_v46 }
 0x6f1   :  { %7270 = vst.msk [vmem:[%s12313_s11 + $0x100] sm:$0xff] %vm7237_vm7, %v8313_v59  ;;  %8324 = vpow2.f32 %v7723_v51  ;;  %v5452_v55 = vmax.f32 %v5044_v10, 0.0  ;;  %v7724_v61 = vmul.f32 -1.442695, %v6380_v56  ;;  %v5719_v18 = vmul.f32 %v10906_v53, %v5451_v4 }
 0x6f2   :  { %v8315_v58 = vpop.eup %8314  ;;  %v5453_v48 = vmax.f32 %v5046_v37, 0.0  ;;  %6124 = vadd.xlane.f32.xlu1 %v6123_v60 }
 0x6f3   :  { %v8317_v45 = vpop.eup %8316  ;;  %7271 = vst.msk [vmem:[%s12313_s11 + $0x108] sm:$0xff] %vm7237_vm7, %v8315_v58  ;;  %8326 = vpow2.f32 %v7724_v61  ;;  %v5049_v11 = vpop.f32.mrb[144].mxu1  ;;  %v6126_v13 = vsel %vm3008_vm6, %v5719_v18, 0.0  ;;  %v5720_v36 = vmul.f32 %v10910_v38, %v5452_v55 }
 0x6f4   :  { %v6889_v49 = vadd.f32 1.0, %v8317_v45  ;;  %v5721_v57 = vmul.f32 %v10906_v53, %v5453_v48  ;;  %v5985_v26 = vpop.xlane.xlu0 %5984  ;;  %v5050_v7 = vadd.f32 %v5049_v11, %v10889_v40  ;;  %v5051_v25 = vpop.f32.mrb[145].mxu1  ;;  %v6127_v30 = vadd.f32 %v6126_v13, %v5718_v47 }
 0x6f5   :  { %v8319_v5 = vpop.eup %8318  ;;  %v6381_v14 = vadd.f32 %v11436_v1, %v5985_v26  ;;  %v5052_v29 = vadd.f32 %v5051_v25, %v10894_v12  ;;  %v5053_v35 = vpop.f32.mrb[146].mxu1 }
 0x6f6   :  { %8328 = vrcp.f32 %v6889_v49  ;;  %v6890_v2 = vadd.f32 1.0, %v8319_v5  ;;  %v6130_v15 = vsel %vm3008_vm6, %v5721_v57, 0.0  ;;  %v5454_v21 = vmax.f32 %v5050_v7, 0.0  ;;  %v5989_v0 = vpop.xlane.xlu1 %5988  ;;  %v5055_v24 = vpop.f32.mrb[147].mxu1  ;;  %6128 = vadd.xlane.f32.xlu0 %v6127_v30 }
 0x6f7   :  { %v7725_v6 = vmul.f32 -1.442695, %v6381_v14  ;;  %v5054_v34 = vadd.f32 %v5053_v35, %v10889_v40  ;;  %v6131_v9 = vadd.f32 %v6130_v15, %v5720_v36  ;;  %v5455_v28 = vmax.f32 %v5052_v29, 0.0 }
 0x6f8   :  { %v8321_v8 = vpop.eup %8320  ;;  %8330 = vrcp.f32 %v6890_v2  ;;  %v6382_v62 = vadd.f32 %v11436_v1, %v5989_v0  ;;  %v5056_v20 = vadd.f32 %v5055_v24, %v10894_v12  ;;  %v5722_v54 = vmul.f32 %v10910_v38, %v5454_v21 }
 0x6f9   :  { %7272 = vst.msk [vmem:[%s12313_s11 + $0x110] sm:$0xff] %vm7237_vm7, %v8321_v8  ;;  %8332 = vpow2.f32 %v7725_v6  ;;  %v5456_v3 = vmax.f32 %v5054_v34, 0.0  ;;  %6132 = vadd.xlane.f32.xlu1 %v6131_v9  ;;  %v5723_v41 = vmul.f32 %v10906_v53, %v5455_v28 }
 0x6fa   :  { %v8323_v32 = vpop.eup %8322  ;;  %v7726_v22 = vmul.f32 -1.442695, %v6382_v62  ;;  %v5457_v31 = vmax.f32 %v5056_v20, 0.0 }
 0x6fb   :  { %v8325_v16 = vpop.eup %8324  ;;  %7273 = vst.msk [vmem:[%s12313_s11 + $0x118] sm:$0xff] %vm7237_vm7, %v8323_v32  ;;  %v5059_v17 = vpop.f32.mrb[148].mxu1  ;;  %v6134_v42 = vsel %vm3008_vm6, %v5723_v41, 0.0  ;;  %v5724_v50 = vmul.f32 %v10910_v38, %v5456_v3 }
 0x6fc   :  { %v6891_v23 = vadd.f32 1.0, %v8325_v16  ;;  %8334 = vpow2.f32 %v7726_v22  ;;  %v5725_v27 = vmul.f32 %v10906_v53, %v5457_v31  ;;  %v5993_v33 = vpop.xlane.xlu0 %5992  ;;  %v5060_v43 = vadd.f32 %v5059_v17, %v10889_v40  ;;  %v5061_v44 = vpop.f32.mrb[149].mxu1 }
 0x6fd   :  { %v8327_v52 = vpop.eup %8326  ;;  %v6383_v63 = vadd.f32 %v11436_v1, %v5993_v33  ;;  %v6135_v39 = vadd.f32 %v6134_v42, %v5722_v54  ;;  %v5062_v51 = vadd.f32 %v5061_v44, %v10894_v12  ;;  %v5063_v10 = vpop.f32.mrb[150].mxu1 }
 0x6fe   :  { %8336 = vrcp.f32 %v6891_v23  ;;  %v6892_v46 = vadd.f32 1.0, %v8327_v52  ;;  %v6138_v56 = vsel %vm3008_vm6, %v5725_v27, 0.0  ;;  %v5458_v19 = vmax.f32 %v5060_v43, 0.0  ;;  %v5997_v37 = vpop.xlane.xlu1 %5996  ;;  %v5065_v60 = vpop.f32.mrb[151].mxu1 }
 0x6ff   :  { %v7727_v59 = vmul.f32 -1.442695, %v6383_v63  ;;  %v5064_v4 = vadd.f32 %v5063_v10, %v10889_v40  ;;  %6136 = vadd.xlane.f32.xlu0 %v6135_v39  ;;  %v6139_v55 = vadd.f32 %v6138_v56, %v5724_v50  ;;  %v5459_v58 = vmax.f32 %v5062_v51, 0.0 }
 0x700   :  { %v8329_v61 = vpop.eup %8328  ;;  %8338 = vrcp.f32 %v6892_v46  ;;  %v6384_v18 = vadd.f32 %v11436_v1, %v5997_v37  ;;  %v5066_v48 = vadd.f32 %v5065_v60, %v10894_v12  ;;  %v5726_v13 = vmul.f32 %v10910_v38, %v5458_v19 }
 0x701   :  { %7274 = vst.msk [vmem:[%s12313_s11 + $0x120] sm:$0xff] %vm7237_vm7, %v8329_v61  ;;  %8340 = vpow2.f32 %v7727_v59  ;;  %6140 = vadd.xlane.f32.xlu1 %v6139_v55  ;;  %v5727_v47 = vmul.f32 %v10906_v53, %v5459_v58  ;;  %v5460_v49 = vmax.f32 %v5064_v4, 0.0 }
 0x702   :  { %v8331_v45 = vpop.eup %8330  ;;  %v7728_v57 = vmul.f32 -1.442695, %v6384_v18  ;;  %v5461_v11 = vmax.f32 %v5066_v48, 0.0 }
 0x703   :  { %v8333_v26 = vpop.eup %8332  ;;  %7275 = vst.msk [vmem:[%s12313_s11 + $0x128] sm:$0xff] %vm7237_vm7, %v8331_v45  ;;  %v5069_v7 = vpop.f32.mrb[152].mxu1  ;;  %v6142_v25 = vsel %vm3008_vm6, %v5727_v47, 0.0  ;;  %v5728_v21 = vmul.f32 %v10910_v38, %v5460_v49 }
 0x704   :  { %v6893_v5 = vadd.f32 1.0, %v8333_v26  ;;  %8342 = vpow2.f32 %v7728_v57  ;;  %v5729_v36 = vmul.f32 %v10906_v53, %v5461_v11  ;;  %v6001_v14 = vpop.xlane.xlu0 %6000  ;;  %v5070_v30 = vadd.f32 %v5069_v7, %v10889_v40  ;;  %v5071_v29 = vpop.f32.mrb[153].mxu1 }
 0x705   :  { %v6385_v2 = vadd.f32 %v11436_v1, %v6001_v14  ;;  %v6143_v35 = vadd.f32 %v6142_v25, %v5726_v13  ;;  %v5072_v6 = vadd.f32 %v5071_v29, %v10894_v12  ;;  %v5073_v34 = vpop.f32.mrb[154].mxu1  ;;  %v6005_v62 = vpop.xlane.xlu1 %6004 }
 0x706   :  { %v8335_v15 = vpop.eup %8334  ;;  %8344 = vrcp.f32 %v6893_v5  ;;  %v6146_v0 = vsel %vm3008_vm6, %v5729_v36, 0.0  ;;  %v5462_v9 = vmax.f32 %v5070_v30, 0.0  ;;  %v5074_v28 = vadd.f32 %v5073_v34, %v10889_v40  ;;  %v5075_v20 = vpop.f32.mrb[155].mxu1 }
 0x707   :  { %v6894_v24 = vadd.f32 1.0, %v8335_v15  ;;  %v7729_v8 = vmul.f32 -1.442695, %v6385_v2  ;;  %6144 = vadd.xlane.f32.xlu0 %v6143_v35  ;;  %v5463_v32 = vmax.f32 %v5072_v6, 0.0  ;;  %v6386_v41 = vadd.f32 %v11436_v1, %v6005_v62 }
 0x708   :  { %v8337_v3 = vpop.eup %8336  ;;  %v5076_v22 = vadd.f32 %v5075_v20, %v10894_v12  ;;  %v6147_v31 = vadd.f32 %v6146_v0, %v5728_v21  ;;  %v5464_v16 = vmax.f32 %v5074_v28, 0.0  ;;  %v5730_v42 = vmul.f32 %v10910_v38, %v5462_v9 }
 0x709   :  { %7276 = vst.msk [vmem:[%s12313_s11 + $0x130] sm:$0xff] %vm7237_vm7, %v8337_v3  ;;  %8346 = vrcp.f32 %v6894_v24  ;;  %v5731_v23 = vmul.f32 %v10906_v53, %v5463_v32  ;;  %v7730_v27 = vmul.f32 -1.442695, %v6386_v41 }
 0x70a   :  { %v8339_v54 = vpop.eup %8338  ;;  %8348 = vpow2.f32 %v7729_v8  ;;  %v5465_v17 = vmax.f32 %v5076_v22, 0.0  ;;  %6148 = vadd.xlane.f32.xlu1 %v6147_v31  ;;  %v5732_v19 = vmul.f32 %v10910_v38, %v5464_v16 }
 0x70b   :  { %v8341_v33 = vpop.eup %8340  ;;  %7277 = vst.msk [vmem:[%s12313_s11 + $0x138] sm:$0xff] %vm7237_vm7, %v8339_v54  ;;  %8350 = vpow2.f32 %v7730_v27  ;;  %v5079_v43 = vpop.f32.mrb[156].mxu1  ;;  %v6150_v44 = vsel %vm3008_vm6, %v5731_v23, 0.0 }
 0x70c   :  { %v6895_v52 = vadd.f32 1.0, %v8341_v33  ;;  %v5733_v50 = vmul.f32 %v10906_v53, %v5465_v17  ;;  %v6009_v63 = vpop.xlane.xlu0 %6008  ;;  %v5080_v39 = vadd.f32 %v5079_v43, %v10889_v40  ;;  %v5081_v51 = vpop.f32.mrb[157].mxu1  ;;  %v6151_v10 = vadd.f32 %v6150_v44, %v5730_v42 }
 0x70d   :  { %v6387_v46 = vadd.f32 %v11436_v1, %v6009_v63  ;;  %v5082_v59 = vadd.f32 %v5081_v51, %v10894_v12  ;;  %v5083_v4 = vpop.f32.mrb[158].mxu1 }
 0x70e   :  { %v8343_v56 = vpop.eup %8342  ;;  %8352 = vrcp.f32 %v6895_v52  ;;  %v6154_v37 = vsel %vm3008_vm6, %v5733_v50, 0.0  ;;  %v5466_v55 = vmax.f32 %v5080_v39, 0.0  ;;  %v5084_v58 = vadd.f32 %v5083_v4, %v10889_v40  ;;  %v6013_v18 = vpop.xlane.xlu1 %6012  ;;  %6152 = vadd.xlane.f32.xlu0 %v6151_v10 }
 0x70f   :  { %v6896_v60 = vadd.f32 1.0, %v8343_v56  ;;  %v7731_v61 = vmul.f32 -1.442695, %v6387_v46  ;;  %v5085_v48 = vpop.f32.mrb[159].mxu1  ;;  %v5467_v47 = vmax.f32 %v5082_v59, 0.0  ;;  %v6388_v49 = vadd.f32 %v11436_v1, %v6013_v18 }
 0x710   :  { %v8345_v45 = vpop.eup %8344  ;;  %v5086_v57 = vadd.f32 %v5085_v48, %v10894_v12  ;;  %v6155_v11 = vadd.f32 %v6154_v37, %v5732_v19  ;;  %v5468_v26 = vmax.f32 %v5084_v58, 0.0  ;;  %v5734_v14 = vmul.f32 %v10910_v38, %v5466_v55 }
 0x711   :  { %7278 = vst.msk [vmem:[%s12313_s11 + $0x140] sm:$0xff] %vm7237_vm7, %v8345_v45  ;;  %8354 = vrcp.f32 %v6896_v60  ;;  %v5735_v13 = vmul.f32 %v10906_v53, %v5467_v47  ;;  %v7732_v5 = vmul.f32 -1.442695, %v6388_v49 }
 0x712   :  { %8356 = vpow2.f32 %v7731_v61  ;;  %v5469_v36 = vmax.f32 %v5086_v57, 0.0  ;;  %6156 = vadd.xlane.f32.xlu1 %v6155_v11  ;;  %v5736_v9 = vmul.f32 %v10910_v38, %v5468_v26 }
 0x713   :  { %v8347_v7 = vpop.eup %8346  ;;  %8358 = vpow2.f32 %v7732_v5  ;;  %v5089_v2 = vpop.f32.mrb[160].mxu1  ;;  %v6158_v35 = vsel %vm3008_vm6, %v5735_v13, 0.0 }
 0x714   :  { %v8349_v25 = vpop.eup %8348  ;;  %7279 = vst.msk [vmem:[%s12313_s11 + $0x148] sm:$0xff] %vm7237_vm7, %v8347_v7  ;;  %v5737_v30 = vmul.f32 %v10906_v53, %v5469_v36  ;;  %v6017_v29 = vpop.xlane.xlu0 %6016  ;;  %v5090_v21 = vadd.f32 %v5089_v2, %v10889_v40  ;;  %v6159_v0 = vadd.f32 %v6158_v35, %v5734_v14 }
 0x715   :  { %v6897_v15 = vadd.f32 1.0, %v8349_v25  ;;  %v6389_v6 = vadd.f32 %v11436_v1, %v6017_v29  ;;  %v5091_v34 = vpop.f32.mrb[161].mxu1  ;;  %v8351_v24 = vpop.eup %8350 }
 0x716   :  { %v5092_v8 = vadd.f32 %v5091_v34, %v10894_v12  ;;  %v5093_v28 = vpop.f32.mrb[162].mxu1  ;;  %v6162_v62 = vsel %vm3008_vm6, %v5737_v30, 0.0  ;;  %v6898_v20 = vadd.f32 1.0, %v8351_v24  ;;  %v5470_v3 = vmax.f32 %v5090_v21, 0.0  ;;  %6160 = vadd.xlane.f32.xlu0 %v6159_v0 }
 0x717   :  { %8360 = vrcp.f32 %v6897_v15  ;;  %v7733_v32 = vmul.f32 -1.442695, %v6389_v6  ;;  %v6021_v41 = vpop.xlane.xlu1 %6020  ;;  %v5095_v22 = vpop.f32.mrb[163].mxu1  ;;  %v5094_v54 = vadd.f32 %v5093_v28, %v10889_v40  ;;  %v6163_v17 = vadd.f32 %v6162_v62, %v5736_v9  ;;  %v11710_v9 = vld [vmem:[#allocation2] ss:$0 sm:$0xff] }
 0x718   :  { %v8353_v31 = vpop.eup %8352  ;;  %v5471_v16 = vmax.f32 %v5092_v8, 0.0  ;;  %v6390_v23 = vadd.f32 %v11436_v1, %v6021_v41  ;;  %v5096_v27 = vadd.f32 %v5095_v22, %v10894_v12  ;;  %8362 = vrcp.f32 %v6898_v20 }
 0x719   :  { %7280 = vst.msk [vmem:[%s12313_s11 + $0x150] sm:$0xff] %vm7237_vm7, %v8353_v31  ;;  %8364 = vpow2.f32 %v7733_v32  ;;  %6164 = vadd.xlane.f32.xlu1 %v6163_v17  ;;  %v5738_v63 = vmul.f32 %v10910_v38, %v5470_v3  ;;  %v5472_v44 = vmax.f32 %v5094_v54, 0.0 }
 0x71a   :  { %v5739_v33 = vmul.f32 %v10906_v53, %v5471_v16  ;;  %v7734_v42 = vmul.f32 -1.442695, %v6390_v23  ;;  %v5473_v50 = vmax.f32 %v5096_v27, 0.0 }
 0x71b   :  { %v8355_v52 = vpop.eup %8354  ;;  %v5099_v39 = vpop.f32.mrb[164].mxu1  ;;  %v5740_v5 = vmul.f32 %v10910_v38, %v5472_v44 }
 0x71c   :  { %v8357_v43 = vpop.eup %8356  ;;  %7281 = vst.msk [vmem:[%s12313_s11 + $0x158] sm:$0xff] %vm7237_vm7, %v8355_v52  ;;  %8366 = vpow2.f32 %v7734_v42  ;;  %v6025_v46 = vpop.xlane.xlu0 %6024  ;;  %v6166_v51 = vsel %vm3008_vm6, %v5739_v33, 0.0  ;;  %v5741_v56 = vmul.f32 %v10906_v53, %v5473_v50  ;;  %v5100_v19 = vadd.f32 %v5099_v39, %v10889_v40 }
 0x71d   :  { %v6899_v10 = vadd.f32 1.0, %v8357_v43  ;;  %v6391_v59 = vadd.f32 %v11436_v1, %v6025_v46  ;;  %v5101_v4 = vpop.f32.mrb[165].mxu1  ;;  %v8359_v37 = vpop.eup %8358  ;;  %v6167_v61 = vadd.f32 %v6166_v51, %v5738_v63 }
 0x71e   :  { %v5102_v60 = vadd.f32 %v5101_v4, %v10894_v12  ;;  %v5103_v55 = vpop.f32.mrb[166].mxu1  ;;  %v6900_v58 = vadd.f32 1.0, %v8359_v37  ;;  %v5474_v18 = vmax.f32 %v5100_v19, 0.0  ;;  %v6170_v36 = vsel %vm3008_vm6, %v5741_v56, 0.0 }
 0x71f   :  { %8368 = vrcp.f32 %v6899_v10  ;;  %v7735_v48 = vmul.f32 -1.442695, %v6391_v59  ;;  %v6029_v45 = vpop.xlane.xlu1 %6028  ;;  %v5105_v47 = vpop.f32.mrb[167].mxu1  ;;  %v5104_v57 = vadd.f32 %v5103_v55, %v10889_v40  ;;  %6168 = vadd.xlane.f32.xlu0 %v6167_v61  ;;  %v6171_v30 = vadd.f32 %v6170_v36, %v5740_v5 }
 0x720   :  { %v5475_v49 = vmax.f32 %v5102_v60, 0.0  ;;  %v6392_v11 = vadd.f32 %v11436_v1, %v6029_v45  ;;  %v5106_v26 = vadd.f32 %v5105_v47, %v10894_v12  ;;  %8370 = vrcp.f32 %v6900_v58 }
 0x721   :  { %v8361_v13 = vpop.eup %8360  ;;  %8372 = vpow2.f32 %v7735_v48  ;;  %v5742_v29 = vmul.f32 %v10910_v38, %v5474_v18  ;;  %v5476_v35 = vmax.f32 %v5104_v57, 0.0  ;;  %6172 = vadd.xlane.f32.xlu1 %v6171_v30 }
 0x722   :  { %7282 = vst.msk [vmem:[%s12313_s11 + $0x160] sm:$0xff] %vm7237_vm7, %v8361_v13  ;;  %v5743_v7 = vmul.f32 %v10906_v53, %v5475_v49  ;;  %v7736_v14 = vmul.f32 -1.442695, %v6392_v11  ;;  %v8363_v25 = vpop.eup %8362  ;;  %v5477_v1 = vmax.f32 %v5106_v26, 0.0 }
 0x723   :  { %v8365_v2 = vpop.eup %8364  ;;  %7283 = vst.msk [vmem:[%s12313_s11 + $0x168] sm:$0xff] %vm7237_vm7, %v8363_v25  ;;  %v5109_v15 = vpop.f32.mrb[168].mxu1  ;;  %v5744_v52 = vmul.f32 %v10910_v38, %v5476_v35 }
 0x724   :  { %8374 = vpow2.f32 %v7736_v14  ;;  %v6033_v21 = vpop.xlane.xlu0 %6032  ;;  %v6174_v6 = vsel %vm3008_vm6, %v5743_v7, 0.0  ;;  %v6901_v34 = vadd.f32 1.0, %v8365_v2  ;;  %v5745_v0 = vmul.f32 %v10906_v53, %v5477_v1  ;;  %v5111_v28 = vpop.f32.mrb[169].mxu1 }
 0x725   :  { %v5110_v24 = vadd.f32 %v5109_v15, %v10889_v40  ;;  %v6393_v8 = vadd.f32 %v11710_v9, %v6033_v21  ;;  %v5112_v20 = vadd.f32 %v5111_v28, %v10894_v12  ;;  %v5113_v3 = vpop.f32.mrb[170].mxu1  ;;  %v6175_v32 = vadd.f32 %v6174_v6, %v5742_v29 }
 0x726   :  { %v8367_v62 = vpop.eup %8366  ;;  %8376 = vrcp.f32 %v6901_v34  ;;  %v5115_v54 = vpop.f32.mrb[171].mxu1  ;;  %v5114_v27 = vadd.f32 %v5113_v3, %v10889_v40  ;;  %v6178_v50 = vsel %vm3008_vm6, %v5745_v0, 0.0 }
 0x727   :  { %v6902_v41 = vadd.f32 1.0, %v8367_v62  ;;  %v5478_v22 = vmax.f32 %v5110_v24, 0.0  ;;  %v7737_v31 = vmul.f32 -1.442695, %v6393_v8  ;;  %v6037_v16 = vpop.xlane.xlu1 %6036  ;;  %v5479_v23 = vmax.f32 %v5112_v20, 0.0  ;;  %6176 = vadd.xlane.f32.xlu0 %v6175_v32 }
 0x728   :  { %v6394_v17 = vadd.f32 %v11710_v9, %v6037_v16  ;;  %v5116_v33 = vadd.f32 %v5115_v54, %v10894_v12  ;;  %v6179_v46 = vadd.f32 %v6178_v50, %v5744_v52  ;;  %v5480_v56 = vmax.f32 %v5114_v27, 0.0 }
 0x729   :  { %v8369_v42 = vpop.eup %8368  ;;  %8378 = vrcp.f32 %v6902_v41  ;;  %v5747_v43 = vmul.f32 %v10906_v53, %v5479_v23  ;;  %v5746_v10 = vmul.f32 %v10910_v38, %v5478_v22 }
 0x72a   :  { %7284 = vst.msk [vmem:[%s12313_s11 + $0x170] sm:$0xff] %vm7237_vm7, %v8369_v42  ;;  %8380 = vpow2.f32 %v7737_v31  ;;  %v7738_v63 = vmul.f32 -1.442695, %v6394_v17  ;;  %v8371_v44 = vpop.eup %8370  ;;  %v5481_v39 = vmax.f32 %v5116_v33, 0.0  ;;  %6180 = vadd.xlane.f32.xlu1 %v6179_v46  ;;  %v5748_v1 = vmul.f32 %v10910_v38, %v5480_v56 }
 0x72b   :  { %v8373_v51 = vpop.eup %8372  ;;  %7285 = vst.msk [vmem:[%s12313_s11 + $0x178] sm:$0xff] %vm7237_vm7, %v8371_v44  ;;  %v5119_v19 = vpop.f32.mrb[172].mxu1  ;;  %v6182_v4 = vsel %vm3008_vm6, %v5747_v43, 0.0 }
 0x72c   :  { %8382 = vpow2.f32 %v7738_v63  ;;  %v6041_v59 = vpop.xlane.xlu0 %6040  ;;  %v6903_v37 = vadd.f32 1.0, %v8373_v51  ;;  %v5749_v60 = vmul.f32 %v10906_v53, %v5481_v39  ;;  %v5120_v55 = vadd.f32 %v5119_v19, %v10889_v40  ;;  %v5121_v58 = vpop.f32.mrb[173].mxu1 }
 0x72d   :  { %v6395_v61 = vadd.f32 %v11710_v9, %v6041_v59  ;;  %v5122_v48 = vadd.f32 %v5121_v58, %v10894_v12  ;;  %v5123_v45 = vpop.f32.mrb[174].mxu1  ;;  %v6183_v47 = vadd.f32 %v6182_v4, %v5746_v10 }
 0x72e   :  { %v8375_v18 = vpop.eup %8374  ;;  %8384 = vrcp.f32 %v6903_v37  ;;  %v5482_v57 = vmax.f32 %v5120_v55, 0.0  ;;  %v5125_v13 = vpop.f32.mrb[175].mxu1  ;;  %v5124_v36 = vadd.f32 %v5123_v45, %v10889_v40  ;;  %v6186_v30 = vsel %vm3008_vm6, %v5749_v60, 0.0 }
 0x72f   :  { %v6904_v49 = vadd.f32 1.0, %v8375_v18  ;;  %v7739_v11 = vmul.f32 -1.442695, %v6395_v61  ;;  %v6045_v26 = vpop.xlane.xlu1 %6044  ;;  %v5483_v5 = vmax.f32 %v5122_v48, 0.0  ;;  %v5126_v14 = vadd.f32 %v5125_v13, %v10894_v12  ;;  %6184 = vadd.xlane.f32.xlu0 %v6183_v47 }
 0x730   :  { %v6396_v7 = vadd.f32 %v11710_v9, %v6045_v26  ;;  %v8377_v25 = vpop.eup %8376  ;;  %v6187_v21 = vadd.f32 %v6186_v30, %v5748_v1  ;;  %v5750_v34 = vmul.f32 %v10910_v38, %v5482_v57  ;;  %v5484_v0 = vmax.f32 %v5124_v36, 0.0 }
 0x731   :  { %8386 = vrcp.f32 %v6904_v49  ;;  %7286 = vst.msk [vmem:[%s12313_s11 + $0x180] sm:$0xff] %vm7237_vm7, %v8377_v25  ;;  %v5751_v2 = vmul.f32 %v10906_v53, %v5483_v5  ;;  %v5485_v15 = vmax.f32 %v5126_v14, 0.0 }
 0x732   :  { %8388 = vpow2.f32 %v7739_v11  ;;  %v7740_v29 = vmul.f32 -1.442695, %v6396_v7  ;;  %6188 = vadd.xlane.f32.xlu1 %v6187_v21  ;;  %v5752_v39 = vmul.f32 %v10910_v38, %v5484_v0 }
 0x733   :  { %v8379_v35 = vpop.eup %8378  ;;  %v5129_v24 = vpop.f32.mrb[176].mxu1  ;;  %v6190_v28 = vsel %vm3008_vm6, %v5751_v2, 0.0  ;;  %v5753_v20 = vmul.f32 %v10906_v53, %v5485_v15 }
 0x734   :  { %v8381_v6 = vpop.eup %8380  ;;  %7287 = vst.msk [vmem:[%s12313_s11 + $0x188] sm:$0xff] %vm7237_vm7, %v8379_v35  ;;  %8390 = vpow2.f32 %v7740_v29  ;;  %v6049_v8 = vpop.xlane.xlu0 %6048  ;;  %v5130_v3 = vadd.f32 %v5129_v24, %v10889_v40  ;;  %v6191_v54 = vadd.f32 %v6190_v28, %v5750_v34 }
 0x735   :  { %v6905_v62 = vadd.f32 1.0, %v8381_v6  ;;  %v6397_v32 = vadd.f32 %v11710_v9, %v6049_v8  ;;  %v5131_v41 = vpop.f32.mrb[177].mxu1  ;;  %v6194_v46 = vsel %vm3008_vm6, %v5753_v20, 0.0 }
 0x736   :  { %v8383_v22 = vpop.eup %8382  ;;  %v5132_v31 = vadd.f32 %v5131_v41, %v10894_v12  ;;  %v5133_v16 = vpop.f32.mrb[178].mxu1  ;;  %v5486_v27 = vmax.f32 %v5130_v3, 0.0  ;;  %6192 = vadd.xlane.f32.xlu0 %v6191_v54  ;;  %v6195_v59 = vadd.f32 %v6194_v46, %v5752_v39 }
 0x737   :  { %8392 = vrcp.f32 %v6905_v62  ;;  %v6906_v23 = vadd.f32 1.0, %v8383_v22  ;;  %v7741_v17 = vmul.f32 -1.442695, %v6397_v32  ;;  %v6053_v33 = vpop.xlane.xlu1 %6052  ;;  %v5135_v42 = vpop.f32.mrb[179].mxu1  ;;  %v5134_v50 = vadd.f32 %v5133_v16, %v10889_v40 }
 0x738   :  { %v5487_v52 = vmax.f32 %v5132_v31, 0.0  ;;  %v6398_v43 = vadd.f32 %v11710_v9, %v6053_v33  ;;  %v5136_v63 = vadd.f32 %v5135_v42, %v10894_v12  ;;  %v8385_v44 = vpop.eup %8384  ;;  %v5754_v37 = vmul.f32 %v10910_v38, %v5486_v27  ;;  %6196 = vadd.xlane.f32.xlu1 %v6195_v59 }
 0x739   :  { %8394 = vrcp.f32 %v6906_v23  ;;  %7288 = vst.msk [vmem:[%s12313_s11 + $0x190] sm:$0xff] %vm7237_vm7, %v8385_v44  ;;  %v5488_v60 = vmax.f32 %v5134_v50, 0.0 }
 0x73a   :  { %8396 = vpow2.f32 %v7741_v17  ;;  %v5755_v51 = vmul.f32 %v10906_v53, %v5487_v52  ;;  %v7742_v10 = vmul.f32 -1.442695, %v6398_v43  ;;  %v5489_v19 = vmax.f32 %v5136_v63, 0.0 }
 0x73b   :  { %v8387_v56 = vpop.eup %8386  ;;  %v5139_v55 = vpop.f32.mrb[180].mxu1  ;;  %v5756_v15 = vmul.f32 %v10910_v38, %v5488_v60 }
 0x73c   :  { %v8389_v4 = vpop.eup %8388  ;;  %7289 = vst.msk [vmem:[%s12313_s11 + $0x198] sm:$0xff] %vm7237_vm7, %v8387_v56  ;;  %8398 = vpow2.f32 %v7742_v10  ;;  %v6057_v61 = vpop.xlane.xlu0 %6056  ;;  %v6198_v58 = vsel %vm3008_vm6, %v5755_v51, 0.0  ;;  %v5757_v48 = vmul.f32 %v10906_v53, %v5489_v19  ;;  %v5140_v45 = vadd.f32 %v5139_v55, %v10889_v40 }
 0x73d   :  { %v6907_v18 = vadd.f32 1.0, %v8389_v4  ;;  %v6399_v47 = vadd.f32 %v11710_v9, %v6057_v61  ;;  %v5141_v49 = vpop.f32.mrb[181].mxu1  ;;  %v6199_v13 = vadd.f32 %v6198_v58, %v5754_v37 }
 0x73e   :  { %v8391_v57 = vpop.eup %8390  ;;  %v5142_v11 = vadd.f32 %v5141_v49, %v10894_v12  ;;  %v5143_v26 = vpop.f32.mrb[182].mxu1  ;;  %v5490_v36 = vmax.f32 %v5140_v45, 0.0  ;;  %v6202_v21 = vsel %vm3008_vm6, %v5757_v48, 0.0 }
 0x73f   :  { %8400 = vrcp.f32 %v6907_v18  ;;  %v6908_v5 = vadd.f32 1.0, %v8391_v57  ;;  %v7743_v7 = vmul.f32 -1.442695, %v6399_v47  ;;  %v6061_v14 = vpop.xlane.xlu1 %6060  ;;  %v5145_v25 = vpop.f32.mrb[183].mxu1  ;;  %v5144_v30 = vadd.f32 %v5143_v26, %v10889_v40  ;;  %6200 = vadd.xlane.f32.xlu0 %v6199_v13 }
 0x740   :  { %v5491_v1 = vmax.f32 %v5142_v11, 0.0  ;;  %v6400_v2 = vadd.f32 %v11710_v9, %v6061_v14  ;;  %v5146_v29 = vadd.f32 %v5145_v25, %v10894_v12  ;;  %v6203_v8 = vadd.f32 %v6202_v21, %v5756_v15 }
 0x741   :  { %v8393_v35 = vpop.eup %8392  ;;  %8402 = vrcp.f32 %v6908_v5  ;;  %v5758_v62 = vmul.f32 %v10910_v38, %v5490_v36  ;;  %v5492_v20 = vmax.f32 %v5144_v30, 0.0 }
 0x742   :  { %7290 = vst.msk [vmem:[%s12313_s11 + $0x1a0] sm:$0xff] %vm7237_vm7, %v8393_v35  ;;  %8404 = vpow2.f32 %v7743_v7  ;;  %v5759_v6 = vmul.f32 %v10906_v53, %v5491_v1  ;;  %v7744_v34 = vmul.f32 -1.442695, %v6400_v2  ;;  %v5493_v24 = vmax.f32 %v5146_v29, 0.0  ;;  %6204 = vadd.xlane.f32.xlu1 %v6203_v8 }
 0x743   :  { %v8395_v0 = vpop.eup %8394  ;;  %v5149_v3 = vpop.f32.mrb[184].mxu1  ;;  %v5760_v19 = vmul.f32 %v10910_v38, %v5492_v20 }
 0x744   :  { %v8397_v28 = vpop.eup %8396  ;;  %7291 = vst.msk [vmem:[%s12313_s11 + $0x1a8] sm:$0xff] %vm7237_vm7, %v8395_v0  ;;  %8406 = vpow2.f32 %v7744_v34  ;;  %v6065_v32 = vpop.xlane.xlu0 %6064  ;;  %v6206_v41 = vsel %vm3008_vm6, %v5759_v6, 0.0  ;;  %v5761_v31 = vmul.f32 %v10906_v53, %v5493_v24  ;;  %v5150_v16 = vadd.f32 %v5149_v3, %v10889_v40 }
 0x745   :  { %v6909_v22 = vadd.f32 1.0, %v8397_v28  ;;  %v6401_v54 = vadd.f32 %v11710_v9, %v6065_v32  ;;  %v5151_v23 = vpop.f32.mrb[185].mxu1  ;;  %v6207_v42 = vadd.f32 %v6206_v41, %v5758_v62 }
 0x746   :  { %v8399_v27 = vpop.eup %8398  ;;  %v5152_v17 = vadd.f32 %v5151_v23, %v10894_v12  ;;  %v5153_v33 = vpop.f32.mrb[186].mxu1  ;;  %v5494_v50 = vmax.f32 %v5150_v16, 0.0  ;;  %v6210_v59 = vsel %vm3008_vm6, %v5761_v31, 0.0 }
 0x747   :  { %8408 = vrcp.f32 %v6909_v22  ;;  %v6910_v52 = vadd.f32 1.0, %v8399_v27  ;;  %v7745_v43 = vmul.f32 -1.442695, %v6401_v54  ;;  %v6069_v63 = vpop.xlane.xlu1 %6068  ;;  %v5155_v44 = vpop.f32.mrb[187].mxu1  ;;  %v5154_v46 = vadd.f32 %v5153_v33, %v10889_v40  ;;  %6208 = vadd.xlane.f32.xlu0 %v6207_v42 }
 0x748   :  { %v5495_v39 = vmax.f32 %v5152_v17, 0.0  ;;  %v6402_v51 = vadd.f32 %v11710_v9, %v6069_v63  ;;  %v5156_v10 = vadd.f32 %v5155_v44, %v10894_v12  ;;  %v6211_v61 = vadd.f32 %v6210_v59, %v5760_v19 }
 0x749   :  { %v8401_v56 = vpop.eup %8400  ;;  %8410 = vrcp.f32 %v6910_v52  ;;  %v5762_v18 = vmul.f32 %v10910_v38, %v5494_v50  ;;  %v5496_v48 = vmax.f32 %v5154_v46, 0.0 }
 0x74a   :  { %7292 = vst.msk [vmem:[%s12313_s11 + $0x1b0] sm:$0xff] %vm7237_vm7, %v8401_v56  ;;  %8412 = vpow2.f32 %v7745_v43  ;;  %v5763_v4 = vmul.f32 %v10906_v53, %v5495_v39  ;;  %v7746_v37 = vmul.f32 -1.442695, %v6402_v51  ;;  %v5497_v55 = vmax.f32 %v5156_v10, 0.0  ;;  %6212 = vadd.xlane.f32.xlu1 %v6211_v61 }
 0x74b   :  { %v8403_v60 = vpop.eup %8402  ;;  %v5159_v45 = vpop.f32.mrb[188].mxu1  ;;  %v5764_v24 = vmul.f32 %v10910_v38, %v5496_v48 }
 0x74c   :  { %v8405_v58 = vpop.eup %8404  ;;  %7293 = vst.msk [vmem:[%s12313_s11 + $0x1b8] sm:$0xff] %vm7237_vm7, %v8403_v60  ;;  %8414 = vpow2.f32 %v7746_v37  ;;  %v6073_v47 = vpop.xlane.xlu0 %6072  ;;  %v6214_v49 = vsel %vm3008_vm6, %v5763_v4, 0.0  ;;  %v5765_v11 = vmul.f32 %v10906_v53, %v5497_v55  ;;  %v5160_v26 = vadd.f32 %v5159_v45, %v10889_v40 }
 0x74d   :  { %v6911_v57 = vadd.f32 1.0, %v8405_v58  ;;  %v6403_v13 = vadd.f32 %v11710_v9, %v6073_v47  ;;  %v5161_v5 = vpop.f32.mrb[189].mxu1  ;;  %v6215_v25 = vadd.f32 %v6214_v49, %v5762_v18 }
 0x74e   :  { %v8407_v36 = vpop.eup %8406  ;;  %v5162_v7 = vadd.f32 %v5161_v5, %v10894_v12  ;;  %v5163_v14 = vpop.f32.mrb[190].mxu1  ;;  %v5498_v30 = vmax.f32 %v5160_v26, 0.0  ;;  %v6218_v8 = vsel %vm3008_vm6, %v5765_v11, 0.0 }
 0x74f   :  { %8416 = vrcp.f32 %v6911_v57  ;;  %v6912_v1 = vadd.f32 1.0, %v8407_v36  ;;  %v7747_v2 = vmul.f32 -1.442695, %v6403_v13  ;;  %v6077_v29 = vpop.xlane.xlu1 %6076  ;;  %v5165_v35 = vpop.f32.mrb[191].mxu1  ;;  %v5164_v21 = vadd.f32 %v5163_v14, %v10889_v40  ;;  %6216 = vadd.xlane.f32.xlu0 %v6215_v25 }
 0x750   :  { %v5499_v15 = vmax.f32 %v5162_v7, 0.0  ;;  %v6404_v6 = vadd.f32 %v11710_v9, %v6077_v29  ;;  %v5166_v34 = vadd.f32 %v5165_v35, %v10894_v12  ;;  %v6219_v32 = vadd.f32 %v6218_v8, %v5764_v24 }
 0x751   :  { %v8409_v0 = vpop.eup %8408  ;;  %8418 = vrcp.f32 %v6912_v1  ;;  %v5766_v22 = vmul.f32 %v10910_v38, %v5498_v30  ;;  %v5500_v31 = vmax.f32 %v5164_v21, 0.0 }
 0x752   :  { %7294 = vst.msk [vmem:[%s12313_s11 + $0x1c0] sm:$0xff] %vm7237_vm7, %v8409_v0  ;;  %8420 = vpow2.f32 %v7747_v2  ;;  %v5767_v28 = vmul.f32 %v10906_v53, %v5499_v15  ;;  %v7748_v62 = vmul.f32 -1.442695, %v6404_v6  ;;  %v5501_v3 = vmax.f32 %v5166_v34, 0.0  ;;  %6220 = vadd.xlane.f32.xlu1 %v6219_v32 }
 0x753   :  { %v8411_v20 = vpop.eup %8410  ;;  %v5169_v16 = vpop.f32.mrb[192].mxu1  ;;  %v5768_v55 = vmul.f32 %v10910_v38, %v5500_v31 }
 0x754   :  { %v8413_v41 = vpop.eup %8412  ;;  %7295 = vst.msk [vmem:[%s12313_s11 + $0x1c8] sm:$0xff] %vm7237_vm7, %v8411_v20  ;;  %8422 = vpow2.f32 %v7748_v62  ;;  %v6081_v54 = vpop.xlane.xlu0 %6080  ;;  %v6222_v23 = vsel %vm3008_vm6, %v5767_v28, 0.0  ;;  %v5769_v17 = vmul.f32 %v10906_v53, %v5501_v3  ;;  %v5170_v33 = vadd.f32 %v5169_v16, %v10889_v40 }
 0x755   :  { %v6913_v27 = vadd.f32 1.0, %v8413_v41  ;;  %v6405_v42 = vadd.f32 %v11710_v9, %v6081_v54  ;;  %v5171_v52 = vpop.f32.mrb[193].mxu1  ;;  %v6223_v44 = vadd.f32 %v6222_v23, %v5766_v22 }
 0x756   :  { %v8415_v50 = vpop.eup %8414  ;;  %v5172_v43 = vadd.f32 %v5171_v52, %v10894_v12  ;;  %v5173_v63 = vpop.f32.mrb[194].mxu1  ;;  %v5502_v46 = vmax.f32 %v5170_v33, 0.0  ;;  %v6226_v61 = vsel %vm3008_vm6, %v5769_v17, 0.0 }
 0x757   :  { %8424 = vrcp.f32 %v6913_v27  ;;  %v6914_v39 = vadd.f32 1.0, %v8415_v50  ;;  %v7749_v51 = vmul.f32 -1.442695, %v6405_v42  ;;  %v6085_v10 = vpop.xlane.xlu1 %6084  ;;  %v5175_v56 = vpop.f32.mrb[195].mxu1  ;;  %v5174_v59 = vadd.f32 %v5173_v63, %v10889_v40  ;;  %6224 = vadd.xlane.f32.xlu0 %v6223_v44 }
 0x758   :  { %v5503_v19 = vmax.f32 %v5172_v43, 0.0  ;;  %v6406_v4 = vadd.f32 %v11710_v9, %v6085_v10  ;;  %v5176_v37 = vadd.f32 %v5175_v56, %v10894_v12  ;;  %v6227_v47 = vadd.f32 %v6226_v61, %v5768_v55 }
 0x759   :  { %v8417_v60 = vpop.eup %8416  ;;  %8426 = vrcp.f32 %v6914_v39  ;;  %v5770_v57 = vmul.f32 %v10910_v38, %v5502_v46  ;;  %v5504_v11 = vmax.f32 %v5174_v59, 0.0 }
 0x75a   :  { %7296 = vst.msk [vmem:[%s12313_s11 + $0x1d0] sm:$0xff] %vm7237_vm7, %v8417_v60  ;;  %8428 = vpow2.f32 %v7749_v51  ;;  %v5771_v58 = vmul.f32 %v10906_v53, %v5503_v19  ;;  %v7750_v18 = vmul.f32 -1.442695, %v6406_v4  ;;  %v5505_v45 = vmax.f32 %v5176_v37, 0.0  ;;  %6228 = vadd.xlane.f32.xlu1 %v6227_v47 }
 0x75b   :  { %v8419_v48 = vpop.eup %8418  ;;  %v5179_v26 = vpop.f32.mrb[196].mxu1  ;;  %v5772_v3 = vmul.f32 %v10910_v38, %v5504_v11 }
 0x75c   :  { %v8421_v49 = vpop.eup %8420  ;;  %7297 = vst.msk [vmem:[%s12313_s11 + $0x1d8] sm:$0xff] %vm7237_vm7, %v8419_v48  ;;  %8430 = vpow2.f32 %v7750_v18  ;;  %v6089_v13 = vpop.xlane.xlu0 %6088  ;;  %v6230_v5 = vsel %vm3008_vm6, %v5771_v58, 0.0  ;;  %v5773_v7 = vmul.f32 %v10906_v53, %v5505_v45  ;;  %v5180_v14 = vadd.f32 %v5179_v26, %v10889_v40 }
 0x75d   :  { %v6915_v36 = vadd.f32 1.0, %v8421_v49  ;;  %v6407_v25 = vadd.f32 %v11710_v9, %v6089_v13  ;;  %v5181_v1 = vpop.f32.mrb[197].mxu1  ;;  %v6231_v35 = vadd.f32 %v6230_v5, %v5770_v57 }
 0x75e   :  { %v8423_v30 = vpop.eup %8422  ;;  %v5182_v2 = vadd.f32 %v5181_v1, %v10894_v12  ;;  %v5183_v29 = vpop.f32.mrb[198].mxu1  ;;  %v5506_v21 = vmax.f32 %v5180_v14, 0.0  ;;  %v6234_v32 = vsel %vm3008_vm6, %v5773_v7, 0.0 }
 0x75f   :  { %8432 = vrcp.f32 %v6915_v36  ;;  %v6916_v15 = vadd.f32 1.0, %v8423_v30  ;;  %v7751_v6 = vmul.f32 -1.442695, %v6407_v25  ;;  %v6093_v34 = vpop.xlane.xlu1 %6092  ;;  %v5185_v0 = vpop.f32.mrb[199].mxu1  ;;  %v5184_v8 = vadd.f32 %v5183_v29, %v10889_v40  ;;  %6232 = vadd.xlane.f32.xlu0 %v6231_v35 }
 0x760   :  { %v5507_v24 = vmax.f32 %v5182_v2, 0.0  ;;  %v6408_v28 = vadd.f32 %v11710_v9, %v6093_v34  ;;  %v5186_v62 = vadd.f32 %v5185_v0, %v10894_v12  ;;  %v6235_v54 = vadd.f32 %v6234_v32, %v5772_v3 }
 0x761   :  { %v8425_v20 = vpop.eup %8424  ;;  %8434 = vrcp.f32 %v6916_v15  ;;  %v5774_v27 = vmul.f32 %v10910_v38, %v5506_v21  ;;  %v5508_v17 = vmax.f32 %v5184_v8, 0.0 }
 0x762   :  { %7298 = vst.msk [vmem:[%s12313_s11 + $0x1e0] sm:$0xff] %vm7237_vm7, %v8425_v20  ;;  %8436 = vpow2.f32 %v7751_v6  ;;  %v5775_v41 = vmul.f32 %v10906_v53, %v5507_v24  ;;  %v7752_v22 = vmul.f32 -1.442695, %v6408_v28  ;;  %v5509_v16 = vmax.f32 %v5186_v62, 0.0  ;;  %6236 = vadd.xlane.f32.xlu1 %v6235_v54 }
 0x763   :  { %v8427_v31 = vpop.eup %8426  ;;  %v5189_v33 = vpop.f32.mrb[200].mxu1  ;;  %v5776_v45 = vmul.f32 %v10910_v38, %v5508_v17 }
 0x764   :  { %v8429_v23 = vpop.eup %8428  ;;  %7299 = vst.msk [vmem:[%s12313_s11 + $0x1e8] sm:$0xff] %vm7237_vm7, %v8427_v31  ;;  %8438 = vpow2.f32 %v7752_v22  ;;  %v6097_v42 = vpop.xlane.xlu0 %6096  ;;  %v6238_v52 = vsel %vm3008_vm6, %v5775_v41, 0.0  ;;  %v5777_v43 = vmul.f32 %v10906_v53, %v5509_v16  ;;  %v5190_v63 = vadd.f32 %v5189_v33, %v10889_v40 }
 0x765   :  { %v6917_v50 = vadd.f32 1.0, %v8429_v23  ;;  %v6409_v44 = vadd.f32 %v11710_v9, %v6097_v42  ;;  %v5191_v39 = vpop.f32.mrb[201].mxu1  ;;  %v6239_v56 = vadd.f32 %v6238_v52, %v5774_v27 }
 0x766   :  { %v8431_v46 = vpop.eup %8430  ;;  %v5192_v51 = vadd.f32 %v5191_v39, %v10894_v12  ;;  %v5193_v10 = vpop.f32.mrb[202].mxu1  ;;  %v5510_v59 = vmax.f32 %v5190_v63, 0.0  ;;  %v6242_v47 = vsel %vm3008_vm6, %v5777_v43, 0.0 }
 0x767   :  { %8440 = vrcp.f32 %v6917_v50  ;;  %v6918_v19 = vadd.f32 1.0, %v8431_v46  ;;  %v7753_v4 = vmul.f32 -1.442695, %v6409_v44  ;;  %v6101_v37 = vpop.xlane.xlu1 %6100  ;;  %v5195_v60 = vpop.f32.mrb[203].mxu1  ;;  %v5194_v61 = vadd.f32 %v5193_v10, %v10889_v40  ;;  %6240 = vadd.xlane.f32.xlu0 %v6239_v56 }
 0x768   :  { %v5511_v55 = vmax.f32 %v5192_v51, 0.0  ;;  %v6410_v58 = vadd.f32 %v11710_v9, %v6101_v37  ;;  %v5196_v18 = vadd.f32 %v5195_v60, %v10894_v12  ;;  %v6243_v13 = vadd.f32 %v6242_v47, %v5776_v45 }
 0x769   :  { %v8433_v48 = vpop.eup %8432  ;;  %8442 = vrcp.f32 %v6918_v19  ;;  %v5778_v36 = vmul.f32 %v10910_v38, %v5510_v59  ;;  %v5512_v7 = vmax.f32 %v5194_v61, 0.0 }
 0x76a   :  { %7300 = vst.msk [vmem:[%s12313_s11 + $0x1f0] sm:$0xff] %vm7237_vm7, %v8433_v48  ;;  %8444 = vpow2.f32 %v7753_v4  ;;  %v5779_v49 = vmul.f32 %v10906_v53, %v5511_v55  ;;  %v7754_v57 = vmul.f32 -1.442695, %v6410_v58  ;;  %v5513_v26 = vmax.f32 %v5196_v18, 0.0  ;;  %6244 = vadd.xlane.f32.xlu1 %v6243_v13 }
 0x76b   :  { %v8435_v11 = vpop.eup %8434  ;;  %v5199_v14 = vpop.f32.mrb[204].mxu1  ;;  %v5780_v16 = vmul.f32 %v10910_v38, %v5512_v7 }
 0x76c   :  { %v8437_v5 = vpop.eup %8436  ;;  %7301 = vst.msk [vmem:[%s12313_s11 + $0x1f8] sm:$0xff] %vm7237_vm7, %v8435_v11  ;;  %8446 = vpow2.f32 %v7754_v57  ;;  %v6105_v25 = vpop.xlane.xlu0 %6104  ;;  %v6246_v1 = vsel %vm3008_vm6, %v5779_v49, 0.0  ;;  %v5781_v2 = vmul.f32 %v10906_v53, %v5513_v26  ;;  %v5200_v29 = vadd.f32 %v5199_v14, %v10889_v40 }
 0x76d   :  { %v6919_v30 = vadd.f32 1.0, %v8437_v5  ;;  %v6411_v35 = vadd.f32 %v11710_v9, %v6105_v25  ;;  %v5201_v15 = vpop.f32.mrb[205].mxu1  ;;  %v6247_v0 = vadd.f32 %v6246_v1, %v5778_v36 }
 0x76e   :  { %v8439_v21 = vpop.eup %8438  ;;  %v5202_v6 = vadd.f32 %v5201_v15, %v10894_v12  ;;  %v5203_v34 = vpop.f32.mrb[206].mxu1  ;;  %v5514_v8 = vmax.f32 %v5200_v29, 0.0  ;;  %v6250_v54 = vsel %vm3008_vm6, %v5781_v2, 0.0 }
 0x76f   :  { %8448 = vrcp.f32 %v6919_v30  ;;  %v6920_v24 = vadd.f32 1.0, %v8439_v21  ;;  %v7755_v28 = vmul.f32 -1.442695, %v6411_v35  ;;  %v6109_v62 = vpop.xlane.xlu1 %6108  ;;  %v5205_v20 = vpop.f32.mrb[207].mxu1  ;;  %v5204_v32 = vadd.f32 %v5203_v34, %v10889_v40  ;;  %6248 = vadd.xlane.f32.xlu0 %v6247_v0 }
 0x770   :  { %v5515_v3 = vmax.f32 %v5202_v6, 0.0  ;;  %v6412_v41 = vadd.f32 %v11710_v9, %v6109_v62  ;;  %v5206_v22 = vadd.f32 %v5205_v20, %v10894_v12  ;;  %v6251_v42 = vadd.f32 %v6250_v54, %v5780_v16 }
 0x771   :  { %v8441_v31 = vpop.eup %8440  ;;  %8450 = vrcp.f32 %v6920_v24  ;;  %v5782_v50 = vmul.f32 %v10910_v38, %v5514_v8  ;;  %v5516_v43 = vmax.f32 %v5204_v32, 0.0 }
 0x772   :  { %7302 = vst.msk [vmem:[%s12313_s11 + $0x200] sm:$0xff] %vm7237_vm7, %v8441_v31  ;;  %8452 = vpow2.f32 %v7755_v28  ;;  %v5783_v23 = vmul.f32 %v10906_v53, %v5515_v3  ;;  %v7756_v27 = vmul.f32 -1.442695, %v6412_v41  ;;  %v5517_v33 = vmax.f32 %v5206_v22, 0.0  ;;  %6252 = vadd.xlane.f32.xlu1 %v6251_v42 }
 0x773   :  { %v8443_v17 = vpop.eup %8442  ;;  %v5209_v63 = vpop.f32.mrb[208].mxu1  ;;  %v5784_v26 = vmul.f32 %v10910_v38, %v5516_v43 }
 0x774   :  { %v8445_v52 = vpop.eup %8444  ;;  %7303 = vst.msk [vmem:[%s12313_s11 + $0x208] sm:$0xff] %vm7237_vm7, %v8443_v17  ;;  %8454 = vpow2.f32 %v7756_v27  ;;  %v6113_v44 = vpop.xlane.xlu0 %6112  ;;  %v6254_v39 = vsel %vm3008_vm6, %v5783_v23, 0.0  ;;  %v5785_v51 = vmul.f32 %v10906_v53, %v5517_v33  ;;  %v5210_v10 = vadd.f32 %v5209_v63, %v10889_v40 }
 0x775   :  { %v6921_v46 = vadd.f32 1.0, %v8445_v52  ;;  %v6413_v56 = vadd.f32 %v11710_v9, %v6113_v44  ;;  %v5211_v19 = vpop.f32.mrb[209].mxu1  ;;  %v6255_v60 = vadd.f32 %v6254_v39, %v5782_v50 }
 0x776   :  { %v8447_v59 = vpop.eup %8446  ;;  %v5212_v4 = vadd.f32 %v5211_v19, %v10894_v12  ;;  %v5213_v37 = vpop.f32.mrb[210].mxu1  ;;  %v5518_v61 = vmax.f32 %v5210_v10, 0.0  ;;  %v6258_v13 = vsel %vm3008_vm6, %v5785_v51, 0.0 }
 0x777   :  { %8456 = vrcp.f32 %v6921_v46  ;;  %v6922_v55 = vadd.f32 1.0, %v8447_v59  ;;  %v7757_v58 = vmul.f32 -1.442695, %v6413_v56  ;;  %v6117_v18 = vpop.xlane.xlu1 %6116  ;;  %v5215_v48 = vpop.f32.mrb[211].mxu1  ;;  %v5214_v47 = vadd.f32 %v5213_v37, %v10889_v40  ;;  %6256 = vadd.xlane.f32.xlu0 %v6255_v60 }
 0x778   :  { %v5519_v45 = vmax.f32 %v5212_v4, 0.0  ;;  %v6414_v49 = vadd.f32 %v11710_v9, %v6117_v18  ;;  %v5216_v57 = vadd.f32 %v5215_v48, %v10894_v12  ;;  %v6259_v25 = vadd.f32 %v6258_v13, %v5784_v26 }
 0x779   :  { %v8449_v11 = vpop.eup %8448  ;;  %8458 = vrcp.f32 %v6922_v55  ;;  %v5786_v30 = vmul.f32 %v10910_v38, %v5518_v61  ;;  %v5520_v2 = vmax.f32 %v5214_v47, 0.0 }
 0x77a   :  { %7304 = vst.msk [vmem:[%s12313_s11 + $0x210] sm:$0xff] %vm7237_vm7, %v8449_v11  ;;  %8460 = vpow2.f32 %v7757_v58  ;;  %v5787_v5 = vmul.f32 %v10906_v53, %v5519_v45  ;;  %v7758_v36 = vmul.f32 -1.442695, %v6414_v49  ;;  %v5521_v14 = vmax.f32 %v5216_v57, 0.0  ;;  %6260 = vadd.xlane.f32.xlu1 %v6259_v25 }
 0x77b   :  { %v8451_v7 = vpop.eup %8450  ;;  %v5219_v29 = vpop.f32.mrb[212].mxu1  ;;  %v5788_v33 = vmul.f32 %v10910_v38, %v5520_v2 }
 0x77c   :  { %v8453_v1 = vpop.eup %8452  ;;  %7305 = vst.msk [vmem:[%s12313_s11 + $0x218] sm:$0xff] %vm7237_vm7, %v8451_v7  ;;  %8462 = vpow2.f32 %v7758_v36  ;;  %v6121_v35 = vpop.xlane.xlu0 %6120  ;;  %v6262_v15 = vsel %vm3008_vm6, %v5787_v5, 0.0  ;;  %v5789_v6 = vmul.f32 %v10906_v53, %v5521_v14  ;;  %v5220_v34 = vadd.f32 %v5219_v29, %v10889_v40 }
 0x77d   :  { %v6923_v21 = vadd.f32 1.0, %v8453_v1  ;;  %v6415_v0 = vadd.f32 %v11710_v9, %v6121_v35  ;;  %v5221_v24 = vpop.f32.mrb[213].mxu1  ;;  %v6263_v20 = vadd.f32 %v6262_v15, %v5786_v30 }
 0x77e   :  { %v8455_v8 = vpop.eup %8454  ;;  %v5222_v28 = vadd.f32 %v5221_v24, %v10894_v12  ;;  %v5223_v62 = vpop.f32.mrb[214].mxu1  ;;  %v5522_v32 = vmax.f32 %v5220_v34, 0.0  ;;  %v6266_v42 = vsel %vm3008_vm6, %v5789_v6, 0.0 }
 0x77f   :  { %8464 = vrcp.f32 %v6923_v21  ;;  %v6924_v3 = vadd.f32 1.0, %v8455_v8  ;;  %v7759_v41 = vmul.f32 -1.442695, %v6415_v0  ;;  %v6125_v22 = vpop.xlane.xlu1 %6124  ;;  %v5225_v31 = vpop.f32.mrb[215].mxu1  ;;  %v5224_v54 = vadd.f32 %v5223_v62, %v10889_v40  ;;  %6264 = vadd.xlane.f32.xlu0 %v6263_v20  ;;  %v11972_v62 = vld [vmem:[#allocation2] ss:$0 sm:$0xff] }
 0x780   :  { %v5523_v16 = vmax.f32 %v5222_v28, 0.0  ;;  %v6416_v23 = vadd.f32 %v11710_v9, %v6125_v22  ;;  %v5226_v27 = vadd.f32 %v5225_v31, %v10894_v12  ;;  %v6267_v44 = vadd.f32 %v6266_v42, %v5788_v33 }
 0x781   :  { %v8457_v17 = vpop.eup %8456  ;;  %8466 = vrcp.f32 %v6924_v3  ;;  %v5790_v46 = vmul.f32 %v10910_v38, %v5522_v32  ;;  %v5524_v51 = vmax.f32 %v5224_v54, 0.0 }
 0x782   :  { %7306 = vst.msk [vmem:[%s12313_s11 + $0x220] sm:$0xff] %vm7237_vm7, %v8457_v17  ;;  %8468 = vpow2.f32 %v7759_v41  ;;  %v5791_v52 = vmul.f32 %v10906_v53, %v5523_v16  ;;  %v7760_v50 = vmul.f32 -1.442695, %v6416_v23  ;;  %v5525_v63 = vmax.f32 %v5226_v27, 0.0  ;;  %6268 = vadd.xlane.f32.xlu1 %v6267_v44 }
 0x783   :  { %v8459_v43 = vpop.eup %8458  ;;  %v5229_v10 = vpop.f32.mrb[216].mxu1  ;;  %v5792_v14 = vmul.f32 %v10910_v38, %v5524_v51 }
 0x784   :  { %v8461_v39 = vpop.eup %8460  ;;  %7307 = vst.msk [vmem:[%s12313_s11 + $0x228] sm:$0xff] %vm7237_vm7, %v8459_v43  ;;  %8470 = vpow2.f32 %v7760_v50  ;;  %v6129_v56 = vpop.xlane.xlu0 %6128  ;;  %v6270_v19 = vsel %vm3008_vm6, %v5791_v52, 0.0  ;;  %v5793_v4 = vmul.f32 %v10906_v53, %v5525_v63  ;;  %v5230_v37 = vadd.f32 %v5229_v10, %v10889_v40 }
 0x785   :  { %v6925_v59 = vadd.f32 1.0, %v8461_v39  ;;  %v6417_v60 = vadd.f32 %v11710_v9, %v6129_v56  ;;  %v5231_v55 = vpop.f32.mrb[217].mxu1  ;;  %v6271_v45 = vadd.f32 %v6270_v19, %v5790_v46 }
 0x786   :  { %v8463_v61 = vpop.eup %8462  ;;  %v5232_v58 = vadd.f32 %v5231_v55, %v10894_v12  ;;  %v5233_v18 = vpop.f32.mrb[218].mxu1  ;;  %v5526_v49 = vmax.f32 %v5230_v37, 0.0  ;;  %v6274_v25 = vsel %vm3008_vm6, %v5793_v4, 0.0 }
 0x787   :  { %v6133_v48 = vpop.xlane.xlu1 %6132  ;;  %8472 = vrcp.f32 %v6925_v59  ;;  %v6926_v47 = vadd.f32 1.0, %v8463_v61  ;;  %v7761_v57 = vmul.f32 -1.442695, %v6417_v60  ;;  %v5235_v11 = vpop.f32.mrb[219].mxu1  ;;  %v5234_v13 = vadd.f32 %v5233_v18, %v10889_v40  ;;  %6272 = vadd.xlane.f32.xlu0 %v6271_v45 }
 0x788   :  { %v5527_v26 = vmax.f32 %v5232_v58, 0.0  ;;  %v6418_v5 = vadd.f32 %v11710_v9, %v6133_v48  ;;  %v5236_v36 = vadd.f32 %v5235_v11, %v10894_v12  ;;  %v6275_v29 = vadd.f32 %v6274_v25, %v5792_v14 }
 0x789   :  { %v8465_v7 = vpop.eup %8464  ;;  %8474 = vrcp.f32 %v6926_v47  ;;  %v5794_v15 = vmul.f32 %v10910_v38, %v5526_v49  ;;  %v5528_v21 = vmax.f32 %v5234_v13, 0.0 }
 0x78a   :  { %7308 = vst.msk [vmem:[%s12313_s11 + $0x230] sm:$0xff] %vm7237_vm7, %v8465_v7  ;;  %8476 = vpow2.f32 %v7761_v57  ;;  %v5795_v1 = vmul.f32 %v10906_v53, %v5527_v26  ;;  %v7762_v30 = vmul.f32 -1.442695, %v6418_v5  ;;  %v5529_v9 = vmax.f32 %v5236_v36, 0.0  ;;  %6276 = vadd.xlane.f32.xlu1 %v6275_v29 }
 0x78b   :  { %v8467_v2 = vpop.eup %8466  ;;  %v5239_v6 = vpop.f32.mrb[220].mxu1  ;;  %v5796_v63 = vmul.f32 %v10910_v38, %v5528_v21 }
 0x78c   :  { %v8469_v35 = vpop.eup %8468  ;;  %7309 = vst.msk [vmem:[%s12313_s11 + $0x238] sm:$0xff] %vm7237_vm7, %v8467_v2  ;;  %8478 = vpow2.f32 %v7762_v30  ;;  %v6137_v34 = vpop.xlane.xlu0 %6136  ;;  %v6278_v0 = vsel %vm3008_vm6, %v5795_v1, 0.0  ;;  %v5797_v8 = vmul.f32 %v10906_v53, %v5529_v9  ;;  %v5240_v28 = vadd.f32 %v5239_v6, %v10889_v40 }
 0x78d   :  { %v6927_v24 = vadd.f32 1.0, %v8469_v35  ;;  %v6419_v20 = vadd.f32 %v11972_v62, %v6137_v34  ;;  %v5241_v3 = vpop.f32.mrb[221].mxu1  ;;  %v6279_v16 = vadd.f32 %v6278_v0, %v5794_v15 }
 0x78e   :  { %v8471_v32 = vpop.eup %8470  ;;  %v5242_v41 = vadd.f32 %v5241_v3, %v10894_v12  ;;  %v5243_v22 = vpop.f32.mrb[222].mxu1  ;;  %v5530_v23 = vmax.f32 %v5240_v28, 0.0  ;;  %v6282_v44 = vsel %vm3008_vm6, %v5797_v8, 0.0 }
 0x78f   :  { %v6141_v31 = vpop.xlane.xlu1 %6140  ;;  %8480 = vrcp.f32 %v6927_v24  ;;  %v6928_v54 = vadd.f32 1.0, %v8471_v32  ;;  %v7763_v27 = vmul.f32 -1.442695, %v6419_v20  ;;  %v5245_v17 = vpop.f32.mrb[223].mxu1  ;;  %v5244_v42 = vadd.f32 %v5243_v22, %v10889_v40  ;;  %6280 = vadd.xlane.f32.xlu0 %v6279_v16 }
 0x790   :  { %v5531_v33 = vmax.f32 %v5242_v41, 0.0  ;;  %v6420_v52 = vadd.f32 %v11972_v62, %v6141_v31  ;;  %v5246_v50 = vadd.f32 %v5245_v17, %v10894_v12  ;;  %v6283_v56 = vadd.f32 %v6282_v44, %v5796_v63 }
 0x791   :  { %v8473_v43 = vpop.eup %8472  ;;  %8482 = vrcp.f32 %v6928_v54  ;;  %v5798_v59 = vmul.f32 %v10910_v38, %v5530_v23  ;;  %v5532_v4 = vmax.f32 %v5244_v42, 0.0 }
 0x792   :  { %7310 = vst.msk [vmem:[%s12313_s11 + $0x240] sm:$0xff] %vm7237_vm7, %v8473_v43  ;;  %8484 = vpow2.f32 %v7763_v27  ;;  %v5799_v39 = vmul.f32 %v10906_v53, %v5531_v33  ;;  %v7764_v46 = vmul.f32 -1.442695, %v6420_v52  ;;  %v5533_v10 = vmax.f32 %v5246_v50, 0.0  ;;  %6284 = vadd.xlane.f32.xlu1 %v6283_v56 }
 0x793   :  { %v8475_v51 = vpop.eup %8474  ;;  %v5249_v37 = vpop.f32.mrb[224].mxu1  ;;  %v5800_v9 = vmul.f32 %v10910_v38, %v5532_v4 }
 0x794   :  { %v8477_v19 = vpop.eup %8476  ;;  %7311 = vst.msk [vmem:[%s12313_s11 + $0x248] sm:$0xff] %vm7237_vm7, %v8475_v51  ;;  %8486 = vpow2.f32 %v7764_v46  ;;  %v6145_v60 = vpop.xlane.xlu0 %6144  ;;  %v6286_v55 = vsel %vm3008_vm6, %v5799_v39, 0.0  ;;  %v5801_v58 = vmul.f32 %v10906_v53, %v5533_v10  ;;  %v5250_v18 = vadd.f32 %v5249_v37, %v10889_v40 }
 0x795   :  { %v6929_v61 = vadd.f32 1.0, %v8477_v19  ;;  %v6421_v48 = vadd.f32 %v11972_v62, %v6145_v60  ;;  %v5251_v45 = vpop.f32.mrb[225].mxu1  ;;  %v6287_v11 = vadd.f32 %v6286_v55, %v5798_v59 }
 0x796   :  { %v8479_v47 = vpop.eup %8478  ;;  %v5252_v49 = vadd.f32 %v5251_v45, %v10894_v12  ;;  %v5253_v57 = vpop.f32.mrb[226].mxu1  ;;  %v5534_v13 = vmax.f32 %v5250_v18, 0.0  ;;  %v6290_v29 = vsel %vm3008_vm6, %v5801_v58, 0.0 }
 0x797   :  { %8488 = vrcp.f32 %v6929_v61  ;;  %v6930_v26 = vadd.f32 1.0, %v8479_v47  ;;  %v7765_v5 = vmul.f32 -1.442695, %v6421_v48  ;;  %v6149_v36 = vpop.xlane.xlu1 %6148  ;;  %v5255_v7 = vpop.f32.mrb[227].mxu1  ;;  %v5254_v25 = vadd.f32 %v5253_v57, %v10889_v40  ;;  %6288 = vadd.xlane.f32.xlu0 %v6287_v11 }
 0x798   :  { %v5535_v14 = vmax.f32 %v5252_v49, 0.0  ;;  %v6422_v1 = vadd.f32 %v11972_v62, %v6149_v36  ;;  %v5256_v30 = vadd.f32 %v5255_v7, %v10894_v12  ;;  %v6291_v34 = vadd.f32 %v6290_v29, %v5800_v9 }
 0x799   :  { %v8481_v2 = vpop.eup %8480  ;;  %8490 = vrcp.f32 %v6930_v26  ;;  %v5802_v24 = vmul.f32 %v10910_v38, %v5534_v13  ;;  %v5536_v8 = vmax.f32 %v5254_v25, 0.0 }
 0x79a   :  { %7312 = vst.msk [vmem:[%s12313_s11 + $0x250] sm:$0xff] %vm7237_vm7, %v8481_v2  ;;  %8492 = vpow2.f32 %v7765_v5  ;;  %v5803_v35 = vmul.f32 %v10906_v53, %v5535_v14  ;;  %v7766_v15 = vmul.f32 -1.442695, %v6422_v1  ;;  %v5537_v6 = vmax.f32 %v5256_v30, 0.0  ;;  %6292 = vadd.xlane.f32.xlu1 %v6291_v34 }
 0x79b   :  { %v8483_v21 = vpop.eup %8482  ;;  %v5259_v28 = vpop.f32.mrb[228].mxu1  ;;  %v5804_v10 = vmul.f32 %v10910_v38, %v5536_v8 }
 0x79c   :  { %v8485_v0 = vpop.eup %8484  ;;  %7313 = vst.msk [vmem:[%s12313_s11 + $0x258] sm:$0xff] %vm7237_vm7, %v8483_v21  ;;  %8494 = vpow2.f32 %v7766_v15  ;;  %v6153_v20 = vpop.xlane.xlu0 %6152  ;;  %v6294_v3 = vsel %vm3008_vm6, %v5803_v35, 0.0  ;;  %v5805_v41 = vmul.f32 %v10906_v53, %v5537_v6  ;;  %v5260_v22 = vadd.f32 %v5259_v28, %v10889_v40 }
 0x79d   :  { %v6931_v32 = vadd.f32 1.0, %v8485_v0  ;;  %v6423_v31 = vadd.f32 %v11972_v62, %v6153_v20  ;;  %v5261_v16 = vpop.f32.mrb[229].mxu1  ;;  %v6295_v17 = vadd.f32 %v6294_v3, %v5802_v24 }
 0x79e   :  { %v8487_v54 = vpop.eup %8486  ;;  %v5262_v23 = vadd.f32 %v5261_v16, %v10894_v12  ;;  %v5263_v27 = vpop.f32.mrb[230].mxu1  ;;  %v5538_v42 = vmax.f32 %v5260_v22, 0.0  ;;  %v6298_v56 = vsel %vm3008_vm6, %v5805_v41, 0.0 }
 0x79f   :  { %8496 = vrcp.f32 %v6931_v32  ;;  %v6932_v33 = vadd.f32 1.0, %v8487_v54  ;;  %v7767_v52 = vmul.f32 -1.442695, %v6423_v31  ;;  %v6157_v50 = vpop.xlane.xlu1 %6156  ;;  %v5265_v43 = vpop.f32.mrb[231].mxu1  ;;  %v5264_v44 = vadd.f32 %v5263_v27, %v10889_v40  ;;  %6296 = vadd.xlane.f32.xlu0 %v6295_v17 }
 0x7a0   :  { %v5539_v63 = vmax.f32 %v5262_v23, 0.0  ;;  %v6424_v39 = vadd.f32 %v11972_v62, %v6157_v50  ;;  %v5266_v46 = vadd.f32 %v5265_v43, %v10894_v12  ;;  %v6299_v55 = vadd.f32 %v6298_v56, %v5804_v10 }
 0x7a1   :  { %v8489_v51 = vpop.eup %8488  ;;  %8498 = vrcp.f32 %v6932_v33  ;;  %v5540_v59 = vmax.f32 %v5264_v44, 0.0  ;;  %v5806_v58 = vmul.f32 %v10910_v38, %v5538_v42 }
 0x7a2   :  { %7314 = vst.msk [vmem:[%s12313_s11 + $0x260] sm:$0xff] %vm7237_vm7, %v8489_v51  ;;  %8500 = vpow2.f32 %v7767_v52  ;;  %v5807_v19 = vmul.f32 %v10906_v53, %v5539_v63  ;;  %v7768_v4 = vmul.f32 -1.442695, %v6424_v39  ;;  %v5541_v60 = vmax.f32 %v5266_v46, 0.0  ;;  %6300 = vadd.xlane.f32.xlu1 %v6299_v55 }
 0x7a3   :  { %v8491_v37 = vpop.eup %8490  ;;  %v5269_v18 = vpop.f32.mrb[232].mxu1  ;;  %v5808_v5 = vmul.f32 %v10910_v38, %v5540_v59 }
 0x7a4   :  { %v8493_v61 = vpop.eup %8492  ;;  %7315 = vst.msk [vmem:[%s12313_s11 + $0x268] sm:$0xff] %vm7237_vm7, %v8491_v37  ;;  %8502 = vpow2.f32 %v7768_v4  ;;  %v6161_v48 = vpop.xlane.xlu0 %6160  ;;  %v6302_v45 = vsel %vm3008_vm6, %v5807_v19, 0.0  ;;  %v5809_v49 = vmul.f32 %v10906_v53, %v5541_v60  ;;  %v5270_v57 = vadd.f32 %v5269_v18, %v10889_v40 }
 0x7a5   :  { %v6933_v47 = vadd.f32 1.0, %v8493_v61  ;;  %v6425_v11 = vadd.f32 %v11972_v62, %v6161_v48  ;;  %v5271_v26 = vpop.f32.mrb[233].mxu1  ;;  %v6303_v14 = vadd.f32 %v6302_v45, %v5806_v58 }
 0x7a6   :  { %v8495_v13 = vpop.eup %8494  ;;  %v5272_v36 = vadd.f32 %v5271_v26, %v10894_v12  ;;  %v5273_v7 = vpop.f32.mrb[234].mxu1  ;;  %v5542_v1 = vmax.f32 %v5270_v57, 0.0  ;;  %v6306_v21 = vsel %vm3008_vm6, %v5809_v49, 0.0 }
 0x7a7   :  { %8504 = vrcp.f32 %v6933_v47  ;;  %v6934_v25 = vadd.f32 1.0, %v8495_v13  ;;  %v7769_v30 = vmul.f32 -1.442695, %v6425_v11  ;;  %v5275_v2 = vpop.f32.mrb[235].mxu1  ;;  %v5274_v29 = vadd.f32 %v5273_v7, %v10889_v40  ;;  %v6165_v35 = vpop.xlane.xlu1 %6164  ;;  %6304 = vadd.xlane.f32.xlu0 %v6303_v14 }
 0x7a8   :  { %v5543_v9 = vmax.f32 %v5272_v36, 0.0  ;;  %v5276_v15 = vadd.f32 %v5275_v2, %v10894_v12  ;;  %v6426_v34 = vadd.f32 %v11972_v62, %v6165_v35  ;;  %v6307_v0 = vadd.f32 %v6306_v21, %v5808_v5 }
 0x7a9   :  { %v8497_v6 = vpop.eup %8496  ;;  %8506 = vrcp.f32 %v6934_v25  ;;  %v5544_v8 = vmax.f32 %v5274_v29, 0.0  ;;  %v5810_v3 = vmul.f32 %v10910_v38, %v5542_v1 }
 0x7aa   :  { %7316 = vst.msk [vmem:[%s12313_s11 + $0x270] sm:$0xff] %vm7237_vm7, %v8497_v6  ;;  %8508 = vpow2.f32 %v7769_v30  ;;  %v5811_v24 = vmul.f32 %v10906_v53, %v5543_v9  ;;  %v5545_v28 = vmax.f32 %v5276_v15, 0.0  ;;  %v7770_v32 = vmul.f32 -1.442695, %v6426_v34  ;;  %6308 = vadd.xlane.f32.xlu1 %v6307_v0 }
 0x7ab   :  { %v8499_v20 = vpop.eup %8498  ;;  %v5279_v31 = vpop.f32.mrb[236].mxu1  ;;  %v5812_v52 = vmul.f32 %v10910_v38, %v5544_v8 }
 0x7ac   :  { %v8501_v41 = vpop.eup %8500  ;;  %7317 = vst.msk [vmem:[%s12313_s11 + $0x278] sm:$0xff] %vm7237_vm7, %v8499_v20  ;;  %v5813_v22 = vmul.f32 %v10906_v53, %v5545_v28  ;;  %v6310_v16 = vsel %vm3008_vm6, %v5811_v24, 0.0  ;;  %8510 = vpow2.f32 %v7770_v32  ;;  %v5280_v23 = vadd.f32 %v5279_v31, %v10889_v40  ;;  %v6169_v27 = vpop.xlane.xlu0 %6168 }
 0x7ad   :  { %v6935_v54 = vadd.f32 1.0, %v8501_v41  ;;  %v5281_v17 = vpop.f32.mrb[237].mxu1  ;;  %v6311_v33 = vadd.f32 %v6310_v16, %v5810_v3  ;;  %v6427_v50 = vadd.f32 %v11972_v62, %v6169_v27 }
 0x7ae   :  { %v8503_v42 = vpop.eup %8502  ;;  %v5282_v43 = vadd.f32 %v5281_v17, %v10894_v12  ;;  %v5283_v63 = vpop.f32.mrb[238].mxu1  ;;  %v6314_v44 = vsel %vm3008_vm6, %v5813_v22, 0.0  ;;  %v5546_v46 = vmax.f32 %v5280_v23, 0.0 }
 0x7af   :  { %8512 = vrcp.f32 %v6935_v54  ;;  %v6936_v39 = vadd.f32 1.0, %v8503_v42  ;;  %v5284_v51 = vadd.f32 %v5283_v63, %v10889_v40  ;;  %v5285_v10 = vpop.f32.mrb[239].mxu1  ;;  %6312 = vadd.xlane.f32.xlu0 %v6311_v33  ;;  %v7771_v56 = vmul.f32 -1.442695, %v6427_v50  ;;  %v6173_v61 = vpop.xlane.xlu1 %6172 }
 0x7b0   :  { %v5547_v19 = vmax.f32 %v5282_v43, 0.0  ;;  %v5286_v59 = vadd.f32 %v5285_v10, %v10894_v12  ;;  %v6315_v4 = vadd.f32 %v6314_v44, %v5812_v52  ;;  %v5814_v48 = vmul.f32 %v10910_v38, %v5546_v46 }
 0x7b1   :  { %v8505_v37 = vpop.eup %8504  ;;  %8514 = vrcp.f32 %v6936_v39  ;;  %v5548_v60 = vmax.f32 %v5284_v51, 0.0  ;;  %v6428_v45 = vadd.f32 %v11972_v62, %v6173_v61 }
 0x7b2   :  { %7318 = vst.msk [vmem:[%s12313_s11 + $0x280] sm:$0xff] %vm7237_vm7, %v8505_v37  ;;  %8516 = vpow2.f32 %v7771_v56  ;;  %v5815_v55 = vmul.f32 %v10906_v53, %v5547_v19  ;;  %v5549_v58 = vmax.f32 %v5286_v59, 0.0  ;;  %6316 = vadd.xlane.f32.xlu1 %v6315_v4 }
 0x7b3   :  { %v8507_v18 = vpop.eup %8506  ;;  %v5816_v49 = vmul.f32 %v10910_v38, %v5548_v60  ;;  %v5289_v11 = vpop.f32.mrb[240].mxu1  ;;  %v7772_v5 = vmul.f32 -1.442695, %v6428_v45 }
 0x7b4   :  { %v8509_v47 = vpop.eup %8508  ;;  %7319 = vst.msk [vmem:[%s12313_s11 + $0x288] sm:$0xff] %vm7237_vm7, %v8507_v18  ;;  %v5817_v57 = vmul.f32 %v10906_v53, %v5549_v58  ;;  %v6318_v26 = vsel %vm3008_vm6, %v5815_v55, 0.0  ;;  %v6177_v36 = vpop.xlane.xlu0 %6176  ;;  %v5290_v7 = vadd.f32 %v5289_v11, %v10889_v40 }
 0x7b5   :  { %v6937_v13 = vadd.f32 1.0, %v8509_v47  ;;  %v5291_v14 = vpop.f32.mrb[241].mxu1  ;;  %v6319_v25 = vadd.f32 %v6318_v26, %v5814_v48  ;;  %v6429_v1 = vadd.f32 %v11972_v62, %v6177_v36 }
 0x7b6   :  { %v5292_v30 = vadd.f32 %v5291_v14, %v10894_v12  ;;  %v5293_v2 = vpop.f32.mrb[242].mxu1  ;;  %v6322_v9 = vsel %vm3008_vm6, %v5817_v57, 0.0  ;;  %v8511_v29 = vpop.eup %8510  ;;  %v5550_v35 = vmax.f32 %v5290_v7, 0.0 }
 0x7b7   :  { %8518 = vrcp.f32 %v6937_v13  ;;  %v5294_v15 = vadd.f32 %v5293_v2, %v10889_v40  ;;  %6320 = vadd.xlane.f32.xlu0 %v6319_v25  ;;  %v5295_v21 = vpop.f32.mrb[243].mxu1  ;;  %v6323_v6 = vadd.f32 %v6322_v9, %v5816_v49  ;;  %v6938_v34 = vadd.f32 1.0, %v8511_v29  ;;  %v6181_v40 = vpop.xlane.xlu1 %6180 }
 0x7b8   :  { %8520 = vpow2.f32 %v7772_v5  ;;  %v7773_v0 = vmul.f32 -1.442695, %v6429_v1  ;;  %v5551_v24 = vmax.f32 %v5292_v30, 0.0  ;;  %v5296_v28 = vadd.f32 %v5295_v21, %v10894_v12 }
 0x7b9   :  { %v8513_v8 = vpop.eup %8512  ;;  %6324 = vadd.xlane.f32.xlu1 %v6323_v6  ;;  %8522 = vrcp.f32 %v6938_v34  ;;  %v5552_v3 = vmax.f32 %v5294_v15, 0.0  ;;  %v5818_v41 = vmul.f32 %v10910_v38, %v5550_v35  ;;  %v6430_v22 = vadd.f32 %v11972_v62, %v6181_v40 }
 0x7ba   :  { %7320 = vst.msk [vmem:[%s12313_s11 + $0x290] sm:$0xff] %vm7237_vm7, %v8513_v8  ;;  %v5819_v20 = vmul.f32 %v10906_v53, %v5551_v24  ;;  %8524 = vpow2.f32 %v7773_v0  ;;  %v5553_v31 = vmax.f32 %v5296_v28, 0.0 }
 0x7bb   :  { %v8515_v32 = vpop.eup %8514  ;;  %v7774_v23 = vmul.f32 -1.442695, %v6430_v22  ;;  %v5820_v42 = vmul.f32 %v10910_v38, %v5552_v3 }
 0x7bc   :  { %v8517_v16 = vpop.eup %8516  ;;  %7321 = vst.msk [vmem:[%s12313_s11 + $0x298] sm:$0xff] %vm7237_vm7, %v8515_v32  ;;  %v6326_v12 = vsel %vm3008_vm6, %v5819_v20, 0.0  ;;  %v5821_v27 = vmul.f32 %v10906_v53, %v5553_v31  ;;  %v6185_v17 = vpop.xlane.xlu0 %6184 }
 0x7bd   :  { %v6939_v54 = vadd.f32 1.0, %v8517_v16  ;;  %v6327_v33 = vadd.f32 %v6326_v12, %v5818_v41  ;;  %v6431_v52 = vadd.f32 %v11972_v62, %v6185_v17 }
 0x7be   :  { %v6330_v50 = vsel %vm3008_vm6, %v5821_v27, 0.0 }
 0x7bf   :  { %8526 = vrcp.f32 %v6939_v54  ;;  %6328 = vadd.xlane.f32.xlu0 %v6327_v33  ;;  %v7775_v43 = vmul.f32 -1.442695, %v6431_v52  ;;  %v6331_v63 = vadd.f32 %v6330_v50, %v5820_v42  ;;  %v6189_v53 = vpop.xlane.xlu1 %6188 }
 0x7c0   :  { %8528 = vpow2.f32 %v7774_v23  ;;  %v6432_v46 = vadd.f32 %v11972_v62, %v6189_v53 }
 0x7c1   :  { %v8519_v44 = vpop.eup %8518  ;;  %8530 = vpow2.f32 %v7775_v43  ;;  %6332 = vadd.xlane.f32.xlu1 %v6331_v63 }
 0x7c2   :  { %v8521_v39 = vpop.eup %8520  ;;  %7322 = vst.msk [vmem:[%s12313_s11 + $0x2a0] sm:$0xff] %vm7237_vm7, %v8519_v44  ;;  %v7776_v56 = vmul.f32 -1.442695, %v6432_v46 }
 0x7c3   :  { %v6940_v38 = vadd.f32 1.0, %v8521_v39  ;;  %v8523_v51 = vpop.eup %8522  ;;  %v6193_v19 = vpop.xlane.xlu0 %6192 }
 0x7c4   :  { %v8525_v10 = vpop.eup %8524  ;;  %7323 = vst.msk [vmem:[%s12313_s11 + $0x2a8] sm:$0xff] %vm7237_vm7, %v8523_v51  ;;  %v6433_v4 = vadd.f32 %v11972_v62, %v6193_v19 }
 0x7c5   :  { %8532 = vrcp.f32 %v6940_v38  ;;  %v6941_v59 = vadd.f32 1.0, %v8525_v10  ;;  %v6197_v61 = vpop.xlane.xlu1 %6196 }
 0x7c6   :  { %8534 = vpow2.f32 %v7776_v56  ;;  %v7777_v37 = vmul.f32 -1.442695, %v6433_v4  ;;  %v6434_v18 = vadd.f32 %v11972_v62, %v6197_v61 }
 0x7c7   :  { %8536 = vrcp.f32 %v6941_v59 }
 0x7c8   :  { %8538 = vpow2.f32 %v7777_v37  ;;  %v7778_v47 = vmul.f32 -1.442695, %v6434_v18 }
 0x7c9   :  { %v8527_v60 = vpop.eup %8526 }
 0x7ca   :  { %v8529_v55 = vpop.eup %8528  ;;  %7324 = vst.msk [vmem:[%s12313_s11 + $0x2b0] sm:$0xff] %vm7237_vm7, %v8527_v60 }
 0x7cb   :  { %v6942_v58 = vadd.f32 1.0, %v8529_v55  ;;  %v8531_v48 = vpop.eup %8530 }
 0x7cc   :  { %v6943_v45 = vadd.f32 1.0, %v8531_v48  ;;  %v6201_v49 = vpop.xlane.xlu0 %6200 }
 0x7cd   :  { %8540 = vrcp.f32 %v6942_v58  ;;  %v6435_v57 = vadd.f32 %v11972_v62, %v6201_v49 }
 0x7ce   :  { %8542 = vrcp.f32 %v6943_v45 }
 0x7cf   :  { %v8533_v11 = vpop.eup %8532  ;;  %8544 = vpow2.f32 %v7778_v47  ;;  %v7779_v26 = vmul.f32 -1.442695, %v6435_v57  ;;  %v6205_v7 = vpop.xlane.xlu1 %6204 }
 0x7d0   :  { %7325 = vst.msk [vmem:[%s12313_s11 + $0x2b8] sm:$0xff] %vm7237_vm7, %v8533_v11  ;;  %v8535_v13 = vpop.eup %8534  ;;  %v6436_v14 = vadd.f32 %v11972_v62, %v6205_v7 }
 0x7d1   :  { %v8537_v5 = vpop.eup %8536  ;;  %v6944_v36 = vadd.f32 1.0, %v8535_v13  ;;  %8546 = vpow2.f32 %v7779_v26 }
 0x7d2   :  { %7326 = vst.msk [vmem:[%s12313_s11 + $0x2c0] sm:$0xff] %vm7237_vm7, %v8537_v5  ;;  %v8539_v25 = vpop.eup %8538  ;;  %v7780_v30 = vmul.f32 -1.442695, %v6436_v14 }
 0x7d3   :  { %8548 = vrcp.f32 %v6944_v36  ;;  %v6945_v1 = vadd.f32 1.0, %v8539_v25 }
 0x7d4   :  { %v6209_v2 = vpop.xlane.xlu0 %6208 }
 0x7d5   :  { %v6437_v9 = vadd.f32 %v11972_v62, %v6209_v2  ;;  %8550 = vrcp.f32 %v6945_v1 }
 0x7d6   :  { %8552 = vpow2.f32 %v7780_v30 }
 0x7d7   :  { %v8541_v29 = vpop.eup %8540  ;;  %v7781_v35 = vmul.f32 -1.442695, %v6437_v9  ;;  %v6213_v6 = vpop.xlane.xlu1 %6212 }
 0x7d8   :  { %7327 = vst.msk [vmem:[%s12313_s11 + $0x2c8] sm:$0xff] %vm7237_vm7, %v8541_v29  ;;  %v8543_v15 = vpop.eup %8542  ;;  %v6438_v0 = vadd.f32 %v11972_v62, %v6213_v6 }
 0x7d9   :  { %v8545_v21 = vpop.eup %8544  ;;  %7328 = vst.msk [vmem:[%s12313_s11 + $0x2d0] sm:$0xff] %vm7237_vm7, %v8543_v15  ;;  %8554 = vpow2.f32 %v7781_v35 }
 0x7da   :  { %v6946_v34 = vadd.f32 1.0, %v8545_v21  ;;  %v7782_v28 = vmul.f32 -1.442695, %v6438_v0 }
 0x7db   :  { %v8547_v24 = vpop.eup %8546 }
 0x7dc   :  { %8556 = vrcp.f32 %v6946_v34  ;;  %v6947_v8 = vadd.f32 1.0, %v8547_v24  ;;  %v6217_v20 = vpop.xlane.xlu0 %6216 }
 0x7dd   :  { %v8549_v40 = vpop.eup %8548  ;;  %v6439_v3 = vadd.f32 %v11972_v62, %v6217_v20 }
 0x7de   :  { %7329 = vst.msk [vmem:[%s12313_s11 + $0x2d8] sm:$0xff] %vm7237_vm7, %v8549_v40  ;;  %8558 = vrcp.f32 %v6947_v8 }
 0x7df   :  { %8560 = vpow2.f32 %v7782_v28  ;;  %v7783_v32 = vmul.f32 -1.442695, %v6439_v3  ;;  %v8551_v41 = vpop.eup %8550  ;;  %v6221_v31 = vpop.xlane.xlu1 %6220 }
 0x7e0   :  { %v8553_v22 = vpop.eup %8552  ;;  %7330 = vst.msk [vmem:[%s12313_s11 + $0x2e0] sm:$0xff] %vm7237_vm7, %v8551_v41  ;;  %v6440_v12 = vadd.f32 %v11972_v62, %v6221_v31 }
 0x7e1   :  { %8562 = vpow2.f32 %v7783_v32  ;;  %v6948_v16 = vadd.f32 1.0, %v8553_v22 }
 0x7e2   :  { %v7784_v27 = vmul.f32 -1.442695, %v6440_v12 }
 0x7e3   :  { %v8555_v54 = vpop.eup %8554  ;;  %8564 = vrcp.f32 %v6948_v16 }
 0x7e4   :  { %v6949_v23 = vadd.f32 1.0, %v8555_v54  ;;  %v6225_v17 = vpop.xlane.xlu0 %6224 }
 0x7e5   :  { %v6441_v33 = vadd.f32 %v11972_v62, %v6225_v17 }
 0x7e6   :  { %v8557_v42 = vpop.eup %8556  ;;  %8566 = vrcp.f32 %v6949_v23 }
 0x7e7   :  { %7331 = vst.msk [vmem:[%s12313_s11 + $0x2e8] sm:$0xff] %vm7237_vm7, %v8557_v42  ;;  %8568 = vpow2.f32 %v7784_v27  ;;  %v7785_v52 = vmul.f32 -1.442695, %v6441_v33  ;;  %v6229_v63 = vpop.xlane.xlu1 %6228 }
 0x7e8   :  { %v8559_v50 = vpop.eup %8558  ;;  %v6442_v39 = vadd.f32 %v11972_v62, %v6229_v63 }
 0x7e9   :  { %v8561_v43 = vpop.eup %8560  ;;  %7332 = vst.msk [vmem:[%s12313_s11 + $0x2f0] sm:$0xff] %vm7237_vm7, %v8559_v50  ;;  %8570 = vpow2.f32 %v7785_v52 }
 0x7ea   :  { %v6950_v44 = vadd.f32 1.0, %v8561_v43  ;;  %v7786_v46 = vmul.f32 -1.442695, %v6442_v39 }
 0x7eb   :  { %v8563_v53 = vpop.eup %8562 }
 0x7ec   :  { %8572 = vrcp.f32 %v6950_v44  ;;  %v6951_v38 = vadd.f32 1.0, %v8563_v53  ;;  %v6233_v51 = vpop.xlane.xlu0 %6232 }
 0x7ed   :  { %v6443_v10 = vadd.f32 %v11972_v62, %v6233_v51  ;;  %v8565_v56 = vpop.eup %8564 }
 0x7ee   :  { %8574 = vrcp.f32 %v6951_v38  ;;  %7333 = vst.msk [vmem:[%s12313_s11 + $0x2f8] sm:$0xff] %vm7237_vm7, %v8565_v56 }
 0x7ef   :  { %8576 = vpow2.f32 %v7786_v46  ;;  %v7787_v19 = vmul.f32 -1.442695, %v6443_v10  ;;  %v6237_v37 = vpop.xlane.xlu1 %6236 }
 0x7f0   :  { %v8567_v59 = vpop.eup %8566  ;;  %v6444_v55 = vadd.f32 %v11972_v62, %v6237_v37 }
 0x7f1   :  { %v8569_v4 = vpop.eup %8568  ;;  %7334 = vst.msk [vmem:[%s12313_s11 + $0x300] sm:$0xff] %vm7237_vm7, %v8567_v59  ;;  %8578 = vpow2.f32 %v7787_v19 }
 0x7f2   :  { %v6952_v60 = vadd.f32 1.0, %v8569_v4  ;;  %v7788_v18 = vmul.f32 -1.442695, %v6444_v55 }
 0x7f3   :  { %v8571_v61 = vpop.eup %8570 }
 0x7f4   :  { %8580 = vrcp.f32 %v6952_v60  ;;  %v6953_v58 = vadd.f32 1.0, %v8571_v61  ;;  %v6241_v48 = vpop.xlane.xlu0 %6240 }
 0x7f5   :  { %v6445_v45 = vadd.f32 %v11972_v62, %v6241_v48 }
 0x7f6   :  { %v8573_v47 = vpop.eup %8572  ;;  %8582 = vrcp.f32 %v6953_v58 }
 0x7f7   :  { %7335 = vst.msk [vmem:[%s12313_s11 + $0x308] sm:$0xff] %vm7237_vm7, %v8573_v47  ;;  %8584 = vpow2.f32 %v7788_v18  ;;  %v7789_v49 = vmul.f32 -1.442695, %v6445_v45  ;;  %v6245_v26 = vpop.xlane.xlu1 %6244 }
 0x7f8   :  { %v8575_v57 = vpop.eup %8574  ;;  %v6446_v5 = vadd.f32 %v11972_v62, %v6245_v26 }
 0x7f9   :  { %v8577_v11 = vpop.eup %8576  ;;  %7336 = vst.msk [vmem:[%s12313_s11 + $0x310] sm:$0xff] %vm7237_vm7, %v8575_v57  ;;  %8586 = vpow2.f32 %v7789_v49 }
 0x7fa   :  { %v6954_v13 = vadd.f32 1.0, %v8577_v11  ;;  %v7790_v14 = vmul.f32 -1.442695, %v6446_v5 }
 0x7fb   :  { %v8579_v36 = vpop.eup %8578 }
 0x7fc   :  { %8588 = vrcp.f32 %v6954_v13  ;;  %v6955_v7 = vadd.f32 1.0, %v8579_v36  ;;  %v6249_v25 = vpop.xlane.xlu0 %6248 }
 0x7fd   :  { %v6447_v1 = vadd.f32 %v11972_v62, %v6249_v25 }
 0x7fe   :  { %v8581_v30 = vpop.eup %8580  ;;  %8590 = vrcp.f32 %v6955_v7 }
 0x7ff   :  { %7337 = vst.msk [vmem:[%s12313_s11 + $0x318] sm:$0xff] %vm7237_vm7, %v8581_v30  ;;  %8592 = vpow2.f32 %v7790_v14  ;;  %v7791_v2 = vmul.f32 -1.442695, %v6447_v1  ;;  %v6253_v35 = vpop.xlane.xlu1 %6252 }
 0x800   :  { %v8583_v9 = vpop.eup %8582  ;;  %v6448_v21 = vadd.f32 %v11972_v62, %v6253_v35 }
 0x801   :  { %v8585_v29 = vpop.eup %8584  ;;  %7338 = vst.msk [vmem:[%s12313_s11 + $0x320] sm:$0xff] %vm7237_vm7, %v8583_v9  ;;  %8594 = vpow2.f32 %v7791_v2 }
 0x802   :  { %v6956_v15 = vadd.f32 1.0, %v8585_v29  ;;  %v7792_v0 = vmul.f32 -1.442695, %v6448_v21 }
 0x803   :  { %v8587_v6 = vpop.eup %8586 }
 0x804   :  { %8596 = vrcp.f32 %v6956_v15  ;;  %v6957_v34 = vadd.f32 1.0, %v8587_v6  ;;  %v6257_v24 = vpop.xlane.xlu0 %6256 }
 0x805   :  { %v6449_v8 = vadd.f32 %v11972_v62, %v6257_v24 }
 0x806   :  { %v8589_v28 = vpop.eup %8588  ;;  %8598 = vrcp.f32 %v6957_v34 }
 0x807   :  { %7339 = vst.msk [vmem:[%s12313_s11 + $0x328] sm:$0xff] %vm7237_vm7, %v8589_v28  ;;  %8600 = vpow2.f32 %v7792_v0  ;;  %v7793_v20 = vmul.f32 -1.442695, %v6449_v8  ;;  %v6261_v32 = vpop.xlane.xlu1 %6260 }
 0x808   :  { %v8591_v40 = vpop.eup %8590  ;;  %v6450_v22 = vadd.f32 %v11972_v62, %v6261_v32 }
 0x809   :  { %v8593_v3 = vpop.eup %8592  ;;  %7340 = vst.msk [vmem:[%s12313_s11 + $0x330] sm:$0xff] %vm7237_vm7, %v8591_v40  ;;  %8602 = vpow2.f32 %v7793_v20 }
 0x80a   :  { %v6958_v41 = vadd.f32 1.0, %v8593_v3  ;;  %v7794_v12 = vmul.f32 -1.442695, %v6450_v22 }
 0x80b   :  { %v8595_v31 = vpop.eup %8594 }
 0x80c   :  { %8604 = vrcp.f32 %v6958_v41  ;;  %v6959_v16 = vadd.f32 1.0, %v8595_v31  ;;  %v6265_v54 = vpop.xlane.xlu0 %6264 }
 0x80d   :  { %v6451_v23 = vadd.f32 %v11972_v62, %v6265_v54 }
 0x80e   :  { %v8597_v27 = vpop.eup %8596  ;;  %8606 = vrcp.f32 %v6959_v16 }
 0x80f   :  { %7341 = vst.msk [vmem:[%s12313_s11 + $0x338] sm:$0xff] %vm7237_vm7, %v8597_v27  ;;  %8608 = vpow2.f32 %v7794_v12  ;;  %v7795_v17 = vmul.f32 -1.442695, %v6451_v23  ;;  %v6269_v52 = vpop.xlane.xlu1 %6268 }
 0x810   :  { %v8599_v33 = vpop.eup %8598  ;;  %v6452_v43 = vadd.f32 %v11972_v62, %v6269_v52 }
 0x811   :  { %v8601_v42 = vpop.eup %8600  ;;  %7342 = vst.msk [vmem:[%s12313_s11 + $0x340] sm:$0xff] %vm7237_vm7, %v8599_v33  ;;  %8610 = vpow2.f32 %v7795_v17  ;;  %v8691_v17 = vld [vmem:[#allocation2] ss:$0 sm:$0xff] }
 0x812   :  { %v6960_v50 = vadd.f32 1.0, %v8601_v42  ;;  %v7796_v39 = vmul.f32 -1.442695, %v6452_v43 }
 0x813   :  { %v8603_v63 = vpop.eup %8602 }
 0x814   :  { %8612 = vrcp.f32 %v6960_v50  ;;  %v6961_v44 = vadd.f32 1.0, %v8603_v63  ;;  %v6273_v53 = vpop.xlane.xlu0 %6272 }
 0x815   :  { %v6453_v38 = vadd.f32 %v11972_v62, %v6273_v53 }
 0x816   :  { %v8605_v46 = vpop.eup %8604  ;;  %8614 = vrcp.f32 %v6961_v44 }
 0x817   :  { %7343 = vst.msk [vmem:[%s12313_s11 + $0x348] sm:$0xff] %vm7237_vm7, %v8605_v46  ;;  %8616 = vpow2.f32 %v7796_v39  ;;  %v7797_v51 = vmul.f32 -1.442695, %v6453_v38  ;;  %v6277_v19 = vpop.xlane.xlu1 %6276 }
 0x818   :  { %v8607_v10 = vpop.eup %8606  ;;  %v6454_v4 = vadd.f32 %v11972_v62, %v6277_v19 }
 0x819   :  { %v8609_v56 = vpop.eup %8608  ;;  %7344 = vst.msk [vmem:[%s12313_s11 + $0x350] sm:$0xff] %vm7237_vm7, %v8607_v10  ;;  %8618 = vpow2.f32 %v7797_v51 }
 0x81a   :  { %v6962_v59 = vadd.f32 1.0, %v8609_v56  ;;  %v7798_v55 = vmul.f32 -1.442695, %v6454_v4 }
 0x81b   :  { %v8611_v37 = vpop.eup %8610 }
 0x81c   :  { %8620 = vrcp.f32 %v6962_v59  ;;  %v6963_v60 = vadd.f32 1.0, %v8611_v37  ;;  %v6281_v61 = vpop.xlane.xlu0 %6280 }
 0x81d   :  { %v6455_v58 = vadd.f32 %v11972_v62, %v6281_v61 }
 0x81e   :  { %v8613_v18 = vpop.eup %8612  ;;  %8622 = vrcp.f32 %v6963_v60 }
 0x81f   :  { %7345 = vst.msk [vmem:[%s12313_s11 + $0x358] sm:$0xff] %vm7237_vm7, %v8613_v18  ;;  %8624 = vpow2.f32 %v7798_v55  ;;  %v7799_v48 = vmul.f32 -1.442695, %v6455_v58  ;;  %v6285_v49 = vpop.xlane.xlu1 %6284 }
 0x820   :  { %v8615_v45 = vpop.eup %8614  ;;  %v6456_v11 = vadd.f32 %v11972_v62, %v6285_v49 }
 0x821   :  { %v8617_v47 = vpop.eup %8616  ;;  %7346 = vst.msk [vmem:[%s12313_s11 + $0x360] sm:$0xff] %vm7237_vm7, %v8615_v45  ;;  %8626 = vpow2.f32 %v7799_v48 }
 0x822   :  { %v6964_v57 = vadd.f32 1.0, %v8617_v47  ;;  %v7800_v5 = vmul.f32 -1.442695, %v6456_v11 }
 0x823   :  { %v8619_v26 = vpop.eup %8618 }
 0x824   :  { %8628 = vrcp.f32 %v6964_v57  ;;  %v6965_v13 = vadd.f32 1.0, %v8619_v26  ;;  %v6289_v36 = vpop.xlane.xlu0 %6288 }
 0x825   :  { %v6457_v7 = vadd.f32 %v11972_v62, %v6289_v36 }
 0x826   :  { %v8621_v14 = vpop.eup %8620  ;;  %8630 = vrcp.f32 %v6965_v13 }
 0x827   :  { %7347 = vst.msk [vmem:[%s12313_s11 + $0x368] sm:$0xff] %vm7237_vm7, %v8621_v14  ;;  %8632 = vpow2.f32 %v7800_v5  ;;  %v7801_v25 = vmul.f32 -1.442695, %v6457_v7  ;;  %v6293_v2 = vpop.xlane.xlu1 %6292 }
 0x828   :  { %v8623_v1 = vpop.eup %8622  ;;  %v6458_v29 = vadd.f32 %v11972_v62, %v6293_v2 }
 0x829   :  { %v8625_v30 = vpop.eup %8624  ;;  %7348 = vst.msk [vmem:[%s12313_s11 + $0x370] sm:$0xff] %vm7237_vm7, %v8623_v1  ;;  %8634 = vpow2.f32 %v7801_v25 }
 0x82a   :  { %v6966_v9 = vadd.f32 1.0, %v8625_v30  ;;  %v7802_v21 = vmul.f32 -1.442695, %v6458_v29 }
 0x82b   :  { %v8627_v35 = vpop.eup %8626 }
 0x82c   :  { %8636 = vrcp.f32 %v6966_v9  ;;  %v6967_v15 = vadd.f32 1.0, %v8627_v35  ;;  %v6297_v6 = vpop.xlane.xlu0 %6296 }
 0x82d   :  { %v6459_v34 = vadd.f32 %v11972_v62, %v6297_v6 }
 0x82e   :  { %v8629_v0 = vpop.eup %8628  ;;  %8638 = vrcp.f32 %v6967_v15 }
 0x82f   :  { %7349 = vst.msk [vmem:[%s12313_s11 + $0x378] sm:$0xff] %vm7237_vm7, %v8629_v0  ;;  %8640 = vpow2.f32 %v7802_v21  ;;  %v7803_v24 = vmul.f32 -1.442695, %v6459_v34  ;;  %v6301_v20 = vpop.xlane.xlu1 %6300 }
 0x830   :  { %v8631_v8 = vpop.eup %8630  ;;  %v6460_v3 = vadd.f32 %v11972_v62, %v6301_v20 }
 0x831   :  { %v8633_v28 = vpop.eup %8632  ;;  %7350 = vst.msk [vmem:[%s12313_s11 + $0x380] sm:$0xff] %vm7237_vm7, %v8631_v8  ;;  %8642 = vpow2.f32 %v7803_v24 }
 0x832   :  { %v6968_v40 = vadd.f32 1.0, %v8633_v28  ;;  %v7804_v22 = vmul.f32 -1.442695, %v6460_v3 }
 0x833   :  { %v8635_v32 = vpop.eup %8634 }
 0x834   :  { %8644 = vrcp.f32 %v6968_v40  ;;  %v6969_v41 = vadd.f32 1.0, %v8635_v32  ;;  %v6305_v31 = vpop.xlane.xlu0 %6304 }
 0x835   :  { %v6461_v16 = vadd.f32 %v11972_v62, %v6305_v31 }
 0x836   :  { %v8637_v12 = vpop.eup %8636  ;;  %8646 = vrcp.f32 %v6969_v41 }
 0x837   :  { %7351 = vst.msk [vmem:[%s12313_s11 + $0x388] sm:$0xff] %vm7237_vm7, %v8637_v12  ;;  %8648 = vpow2.f32 %v7804_v22  ;;  %v7805_v54 = vmul.f32 -1.442695, %v6461_v16  ;;  %v6309_v23 = vpop.xlane.xlu1 %6308 }
 0x838   :  { %v8639_v27 = vpop.eup %8638  ;;  %v6462_v33 = vadd.f32 %v8691_v17, %v6309_v23 }
 0x839   :  { %v8641_v42 = vpop.eup %8640  ;;  %7352 = vst.msk [vmem:[%s12313_s11 + $0x390] sm:$0xff] %vm7237_vm7, %v8639_v27  ;;  %8650 = vpow2.f32 %v7805_v54 }
 0x83a   :  { %v6970_v62 = vadd.f32 1.0, %v8641_v42  ;;  %v7806_v52 = vmul.f32 -1.442695, %v6462_v33 }
 0x83b   :  { %v8643_v50 = vpop.eup %8642 }
 0x83c   :  { %v6313_v43 = vpop.xlane.xlu0 %6312  ;;  %8652 = vrcp.f32 %v6970_v62  ;;  %v6971_v63 = vadd.f32 1.0, %v8643_v50 }
 0x83d   :  { %v6463_v44 = vadd.f32 %v8691_v17, %v6313_v43  ;;  %8654 = vpow2.f32 %v7806_v52 }
 0x83e   :  { %v8645_v39 = vpop.eup %8644  ;;  %8656 = vrcp.f32 %v6971_v63 }
 0x83f   :  { %v7807_v53 = vmul.f32 -1.442695, %v6463_v44  ;;  %v6317_v38 = vpop.xlane.xlu1 %6316  ;;  %7353 = vst.msk [vmem:[%s12313_s11 + $0x398] sm:$0xff] %vm7237_vm7, %v8645_v39 }
 0x840   :  { %v6464_v46 = vadd.f32 %v8691_v17, %v6317_v38  ;;  %v8647_v51 = vpop.eup %8646 }
 0x841   :  { %8658 = vpow2.f32 %v7807_v53  ;;  %v8649_v10 = vpop.eup %8648  ;;  %7354 = vst.msk [vmem:[%s12313_s11 + $0x3a0] sm:$0xff] %vm7237_vm7, %v8647_v51 }
 0x842   :  { %v7808_v56 = vmul.f32 -1.442695, %v6464_v46  ;;  %v6972_v19 = vadd.f32 1.0, %v8649_v10 }
 0x843   :  { %v8651_v59 = vpop.eup %8650 }
 0x844   :  { %8660 = vpow2.f32 %v7808_v56  ;;  %v6321_v4 = vpop.xlane.xlu0 %6320  ;;  %v6973_v37 = vadd.f32 1.0, %v8651_v59 }
 0x845   :  { %8662 = vrcp.f32 %v6972_v19  ;;  %v6465_v60 = vadd.f32 %v8691_v17, %v6321_v4 }
 0x846   :  { %v6325_v55 = vpop.xlane.xlu1 %6324  ;;  %v8653_v61 = vpop.eup %8652  ;;  %8664 = vrcp.f32 %v6973_v37 }
 0x847   :  { %v7809_v58 = vmul.f32 -1.442695, %v6465_v60  ;;  %v6466_v18 = vadd.f32 %v8691_v17, %v6325_v55  ;;  %v8655_v48 = vpop.eup %8654  ;;  %7355 = vst.msk [vmem:[%s12313_s11 + $0x3a8] sm:$0xff] %vm7237_vm7, %v8653_v61 }
 0x848   :  { %v8657_v45 = vpop.eup %8656  ;;  %v6974_v47 = vadd.f32 1.0, %v8655_v48 }
 0x849   :  { %8666 = vpow2.f32 %v7809_v58  ;;  %v7810_v49 = vmul.f32 -1.442695, %v6466_v18  ;;  %7356 = vst.msk [vmem:[%s12313_s11 + $0x3b0] sm:$0xff] %vm7237_vm7, %v8657_v45 }
 0x84a   :  { %8668 = vrcp.f32 %v6974_v47 }
 0x84b   :  { %v8659_v57 = vpop.eup %8658  ;;  %8670 = vpow2.f32 %v7810_v49 }
 0x84c   :  { %v6975_v11 = vadd.f32 1.0, %v8659_v57  ;;  %v6329_v26 = vpop.xlane.xlu0 %6328 }
 0x84d   :  { %v6467_v13 = vadd.f32 %v8691_v17, %v6329_v26 }
 0x84e   :  { %v8661_v5 = vpop.eup %8660  ;;  %8672 = vrcp.f32 %v6975_v11  ;;  %v6333_v25 = vpop.xlane.xlu1 %6332 }
 0x84f   :  { %v8663_v36 = vpop.eup %8662  ;;  %v6976_v7 = vadd.f32 1.0, %v8661_v5  ;;  %v7811_v14 = vmul.f32 -1.442695, %v6467_v13  ;;  %v6468_v1 = vadd.f32 %v8691_v17, %v6333_v25 }
 0x850   :  { %7357 = vst.msk [vmem:[%s12313_s11 + $0x3b8] sm:$0xff] %vm7237_vm7, %v8663_v36  ;;  %v8665_v30 = vpop.eup %8664 }
 0x851   :  { %8674 = vrcp.f32 %v6976_v7  ;;  %7358 = vst.msk [vmem:[%s12313_s11 + $0x3c0] sm:$0xff] %vm7237_vm7, %v8665_v30  ;;  %v7812_v2 = vmul.f32 -1.442695, %v6468_v1 }
 0x852   :  { %8676 = vpow2.f32 %v7811_v14 }
 0x853   :  { %v8667_v9 = vpop.eup %8666  ;;  %8678 = vpow2.f32 %v7812_v2 }
 0x854   :  { %v6977_v29 = vadd.f32 1.0, %v8667_v9  ;;  %v8669_v35 = vpop.eup %8668 }
 0x855   :  { %v8671_v15 = vpop.eup %8670  ;;  %7359 = vst.msk [vmem:[%s12313_s11 + $0x3c8] sm:$0xff] %vm7237_vm7, %v8669_v35 }
 0x856   :  { %8680 = vrcp.f32 %v6977_v29  ;;  %v6978_v21 = vadd.f32 1.0, %v8671_v15 }
 0x858   :  { %v8673_v6 = vpop.eup %8672  ;;  %8682 = vrcp.f32 %v6978_v21 }
 0x859   :  { %7360 = vst.msk [vmem:[%s12313_s11 + $0x3d0] sm:$0xff] %vm7237_vm7, %v8673_v6 }
 0x85b   :  { %v8675_v34 = vpop.eup %8674 }
 0x85c   :  { %v8677_v0 = vpop.eup %8676  ;;  %7361 = vst.msk [vmem:[%s12313_s11 + $0x3d8] sm:$0xff] %vm7237_vm7, %v8675_v34 }
 0x85d   :  { %v6979_v24 = vadd.f32 1.0, %v8677_v0  ;;  %v8679_v8 = vpop.eup %8678 }
 0x85e   :  { %v6980_v28 = vadd.f32 1.0, %v8679_v8 }
 0x85f   :  { %8684 = vrcp.f32 %v6979_v24 }
 0x860   :  { %v8681_v20 = vpop.eup %8680  ;;  %8686 = vrcp.f32 %v6980_v28 }
 0x861   :  { %7362 = vst.msk [vmem:[%s12313_s11 + $0x3e0] sm:$0xff] %vm7237_vm7, %v8681_v20 }
 0x862   :  { %v8683_v40 = vpop.eup %8682 }
 0x863   :  { %7363 = vst.msk [vmem:[%s12313_s11 + $0x3e8] sm:$0xff] %vm7237_vm7, %v8683_v40 }
 0x869   :  { %v8685_v3 = vpop.eup %8684 }
 0x86a   :  { %7364 = vst.msk [vmem:[%s12313_s11 + $0x3f0] sm:$0xff] %vm7237_vm7, %v8685_v3  ;;  %v8687_v32 = vpop.eup %8686 }
 0x86b   :  { %7365 = vst.msk [vmem:[%s12313_s11 + $0x3f8] sm:$0xff] %vm7237_vm7, %v8687_v32 }

</bundles_post_ra>
